<compile_context>
chip_gen: v7x
topology: tpu7x:2x2x1
jax: 0.10.0
libtpu: 0.0.40
codegen_flags: <defaults>
</compile_context>

<pallas_src>
import functools
import math

import numpy as np
import jax
import jax.numpy as jnp
from jax.experimental import pallas as pl
from jax.experimental.pallas import tpu as pltpu

EPS = 1e-5
MARG = 16   # sublane margin around the image scratch; must be >= Wi+1 of every stage
_CP = pltpu.CompilerParams(vmem_limit_bytes=32 * 1024 * 1024)


def _vmem_specs(k):
    return [pl.BlockSpec(memory_space=pltpu.MemorySpace.VMEM) for _ in range(k)]


# ---------------------------- fused decoder kernel ----------------------------

def decoder_kernel(x_ref, w1_ref, gbd_ref,
                   wpk1_ref, gb1_ref,
                   wpk2_ref, gb2_ref, sel2_ref,
                   wpk3_ref, gb3_ref,
                   out_ref, s_img, x9s,
                   *, n, c, h8, w8, cpad):
    f32 = jnp.float32

    # -------- dense + BatchNorm1d (batch stats) + ReLU, all f32 --------
    # Linear bias omitted: a per-feature constant cancels exactly in (h - mu).
    h = jnp.dot(x_ref[...], w1_ref[...], preferred_element_type=f32)
    nb = f32(h.shape[0])
    mu1 = jnp.sum(h, axis=0, keepdims=True) / nb
    var1 = jnp.sum((h - mu1) ** 2, axis=0, keepdims=True) / nb
    h = jnp.maximum((h - mu1) * jax.lax.rsqrt(var1 + EPS) * gbd_ref[0:1, :]
                    + gbd_ref[1:2, :], 0.0)

    # torch .view(N, C, H8, W8): dense features were pre-permuted to (q, c) lane order,
    # so each image row (n, h0, w0) is one contiguous 16-lane slice of h.
    q_cnt = h8 * w8
    for nn in range(n):
        for q in range(q_cnt):
            r = MARG + nn * q_cnt + q
            s_img[r:r + 1, :] = h[nn:nn + 1, q * c:(q + 1) * c]

    # -------- one ConvTranspose2d(4,s2,p1) + BatchNorm2d(batch stats) + act --------
    def conv_stage(hi, wi, wpk_ref, gb_ref, act):
        m_in = n * hi * wi
        # im2col: 9 masked, row-shifted static slices of the margined image scratch.
        row = jax.lax.broadcasted_iota(jnp.int32, (m_in, c), 0)
        wo = row & (wi - 1)
        ho = (row >> int(math.log2(wi))) & (hi - 1)
        for t in range(9):
            sh, sw = t // 3, t % 3
            d = (sh - 1) * wi + (sw - 1)
            tap = s_img[MARG + d: MARG + d + m_in, :]
            ok = ((ho + (sh - 1) >= 0) & (ho + (sh - 1) < hi)
                  & (wo + (sw - 1) >= 0) & (wo + (sw - 1) < wi))
            x9s[0:m_in, t * c:(t + 1) * c] = jnp.where(ok, tap, 0.0).astype(jnp.bfloat16)

        # single fused MXU matmul over all 9 taps: (M, 9C) x (9C, 4*cpad) -> f32
        out = jnp.dot(x9s[0:m_in, :], wpk_ref[...], preferred_element_type=f32)

        # per-channel batch statistics, folded across the 4 phase column-blocks (XLU).
        def fold(v):
            return (v + pltpu.roll(v, cpad, axis=1) + pltpu.roll(v, 2 * cpad, axis=1)
                    + pltpu.roll(v, 3 * cpad, axis=1))

        cnt = f32(4 * m_in)                 # N * H_out * W_out positions per channel
        mu = fold(jnp.sum(out, axis=0, keepdims=True)) / cnt
        dlt = out - mu
        var = fold(jnp.sum(dlt * dlt, axis=0, keepdims=True)) / cnt
        y = dlt * (jax.lax.rsqrt(var + EPS) * gb_ref[0:1, :]) + gb_ref[1:2, :]
        if act == "relu":
            return jnp.maximum(y, 0.0)
        return 0.5 * jnp.tanh(0.5 * y) + 0.5        # sigmoid, one EUP push

    # -------- phase un-interleave: rows (n,h,w) x lanes (p,c) -> rows (n,2h+a,2w+b) --------
    def scatter_rows(y, hi, wi):            # tiny boundary: unrolled single-row copies
        for nn in range(n):
            for ho_ in range(2 * hi):
                for wo_ in range(2 * wi):
                    m_o = (nn * 2 * hi + ho_) * 2 * wi + wo_
                    p = (ho_ % 2) * 2 + (wo_ % 2)
                    m_i = (nn * hi + ho_ // 2) * wi + wo_ // 2
                    s_img[MARG + m_o: MARG + m_o + 1, :] = \
                        y[m_i:m_i + 1, p * cpad: p * cpad + c]

    def scatter_rows_mm(y, sel_ref, hi, wi):  # larger boundary: 4 selection matmuls (MXU)
        m_in = n * hi * wi
        m_out = 4 * m_in
        acc = None
        for p in range(4):
            term = jnp.dot(sel_ref[:, p * m_in:(p + 1) * m_in],
                           y[:, p * cpad: p * cpad + c],
                           preferred_element_type=f32)
            acc = term if acc is None else acc + term
        s_img[MARG:MARG + m_out, :] = acc

    y1 = conv_stage(h8, w8, wpk1_ref, gb1_ref, "relu")
    scatter_rows(y1, h8, w8)
    y2 = conv_stage(2 * h8, 2 * w8, wpk2_ref, gb2_ref, "relu")
    scatter_rows_mm(y2, sel2_ref, 2 * h8, 2 * w8)
    out_ref[...] = conv_stage(4 * h8, 4 * w8, wpk3_ref, gb3_ref, "sigmoid")


# ---------------------------- one-time parameter packing (hoisted) ----------------------------

def _pack_convt_weight(w, cpad):
    # w: PyTorch ConvTranspose2d weight (Cin, Cout, 4, 4) -> packed (9*Cin, 4*cpad).
    # Row block (sh*3+sw)*Cin is the tap taken at offset (sh, sw) of the zero-padded
    # input; it feeds phase (a, b) through kernel element (kh, kw) = (3+a-2*sh, 3+b-2*sw)
    # iff sh in {a, a+1} and sw in {b, b+1} (stride-2 sub-pixel decomposition).
    cin, cout = w.shape[0], w.shape[1]
    wk = jnp.transpose(w, (2, 3, 0, 1))                        # (kh, kw, Cin, Cout)
    zero = jnp.zeros((cin, cpad), w.dtype)
    rows = []
    for sh in range(3):
        for sw in range(3):
            cols = []
            for a in range(2):
                for b in range(2):
                    if a <= sh <= a + 1 and b <= sw <= b + 1:
                        cols.append(jnp.pad(wk[3 + a - 2 * sh, 3 + b - 2 * sw],
                                            ((0, 0), (0, cpad - cout))))
                    else:
                        cols.append(zero)
            rows.append(jnp.concatenate(cols, axis=1))         # (Cin, 4*cpad)
    return jnp.concatenate(rows, axis=0)                       # (9*Cin, 4*cpad)


def prepare_decoder_params(params, hidden, output_size, batch):
    """Constant packing done ONCE, outside the per-forward path."""
    c_out, h_out, w_out = output_size
    h8, w8 = h_out // 8, w_out // 8
    q_cnt = h8 * w8
    cpad = ((max(hidden, c_out) + 31) // 32) * 32              # 4*cpad multiple of 128

    # dense: drop Linear bias (cancels under batch-stat BN); permute features so the
    # lane layout is (spatial position q, channel c).
    perm = np.array([cc * q_cnt + q for q in range(q_cnt) for cc in range(hidden)],
                    np.int32)
    w1p = params["w1"][:, perm]
    gbd = jnp.stack([params["g1"].reshape(-1)[perm], params["bt1"].reshape(-1)[perm]])

    def tile_phase(v):
        vp = jnp.pad(v.reshape(1, -1).astype(jnp.float32),
                     ((0, 0), (0, cpad - v.shape[-1])))
        return jnp.tile(vp, (1, 4))

    def pack_stage(wk, gk, btk):                                # conv bias dropped
        return (_pack_convt_weight(params[wk], cpad).astype(jnp.bfloat16),
                jnp.concatenate([tile_phase(params[gk]), tile_phase(params[btk])], axis=0))

    wpk1, gb1 = pack_stage("wc1", "gc1", "btc1")
    wpk2, gb2 = pack_stage("wc2", "gc2", "btc2")
    wpk3, gb3 = pack_stage("wc3", "gc3", "btc3")

    # 0/1 row-selection matrices for the stage-2 -> stage-3 phase un-interleave,
    # packed as (M_out, 4*M_in) with the 4 phase blocks along lanes.
    def sel_matrix(nb, hi, wi):
        m_in, m_out = nb * hi * wi, 4 * nb * hi * wi
        s = np.zeros((m_out, 4 * m_in), np.float32)
        for nn in range(nb):
            for ho in range(2 * hi):
                for wo in range(2 * wi):
                    m_o = (nn * 2 * hi + ho) * 2 * wi + wo
                    p = (ho % 2) * 2 + (wo % 2)
                    m_i = (nn * hi + ho // 2) * wi + wo // 2
                    s[m_o, p * m_in + m_i] = 1.0
        return jnp.asarray(s)

    sel2 = sel_matrix(batch, 2 * h8, 2 * w8)

    return dict(w1p=w1p, gbd=gbd, wpk1=wpk1, gb1=gb1,
                wpk2=wpk2, gb2=gb2, sel2=sel2, wpk3=wpk3, gb3=gb3)


# ---------------------------- forward wrapper ----------------------------

def decoder_forward(prep, mean_x, hidden, output_size):
    c_out, h_out, w_out = output_size
    h8, w8 = h_out // 8, w_out // 8
    n = mean_x.shape[0]
    c = hidden
    cpad = ((max(hidden, c_out) + 31) // 32) * 32
    assert (h8 & (h8 - 1)) == 0 and (w8 & (w8 - 1)) == 0, "spatial dims must be pow2"
    assert MARG >= 4 * w8 + 1
    m3 = n * (4 * h8) * (4 * w8)            # rows of the final phase-packed stage

    out = pl.pallas_call(
        functools.partial(decoder_kernel, n=n, c=c, h8=h8, w8=w8, cpad=cpad),
        out_shape=jax.ShapeDtypeStruct((m3, 4 * cpad), jnp.float32),
        in_specs=_vmem_specs(10),
        out_specs=pl.BlockSpec(memory_space=pltpu.MemorySpace.VMEM),
        scratch_shapes=[pltpu.VMEM((MARG + m3 + MARG, c), jnp.float32),   # image scratch
                        pltpu.VMEM((m3, 9 * c), jnp.bfloat16)],           # im2col staging
        compiler_params=_CP,
    )(mean_x, prep["w1p"], prep["gbd"], prep["wpk1"], prep["gb1"],
      prep["wpk2"], prep["gb2"], prep["sel2"], prep["wpk3"], prep["gb3"])

    # Final phase un-interleave + channel crop + NCHW: one small XLA rearrangement of
    # the 64 KB kernel output (everything upstream stayed in VMEM).
    h2, w2 = h_out // 2, w_out // 2
    y = out.reshape(n, h2, w2, 2, 2, cpad)[..., :c_out]
    y = y.transpose(0, 1, 3, 2, 4, 5).reshape(n, h_out, w_out, c_out)
    return y.transpose(0, 3, 1, 2)


# ---------------------------- pure-JAX f32 reference (module spec) ----------------------------

def reference_forward(params, mean_x, hidden, output_size):
    c_out, h_out, w_out = output_size
    h8, w8 = h_out // 8, w_out // 8
    n = mean_x.shape[0]
    h = mean_x @ params["w1"] + params["b1"]
    mu = h.mean(0, keepdims=True)
    var = ((h - mu) ** 2).mean(0, keepdims=True)
    h = jnp.maximum((h - mu) * jax.lax.rsqrt(var + EPS) * params["g1"] + params["bt1"], 0.0)
    y = h.reshape(n, hidden, h8, w8)

    def convt(y, w, b, g, bt, act):
        w_eq = jnp.flip(w, axis=(2, 3)).transpose(1, 0, 2, 3)     # (Cout, Cin, kH, kW)
        z = jax.lax.conv_general_dilated(
            y, w_eq, window_strides=(1, 1), padding=((2, 2), (2, 2)),
            lhs_dilation=(2, 2), dimension_numbers=("NCHW", "OIHW", "NCHW"))
        z = z + b.reshape(1, -1, 1, 1)
        mu = z.mean(axis=(0, 2, 3), keepdims=True)
        var = ((z - mu) ** 2).mean(axis=(0, 2, 3), keepdims=True)
        z = (z - mu) * jax.lax.rsqrt(var + EPS) * g.reshape(1, -1, 1, 1) + bt.reshape(1, -1, 1, 1)
        return jnp.maximum(z, 0.0) if act == "relu" else 1.0 / (1.0 + jnp.exp(-z))

    y = convt(y, params["wc1"], params["bc1"], params["gc1"], params["btc1"], "relu")
    y = convt(y, params["wc2"], params["bc2"], params["gc2"], params["btc2"], "relu")
    y = convt(y, params["wc3"], params["bc3"], params["gc3"], params["btc3"], "sigmoid")
    return y


# ---------------------------- main ----------------------------

if __name__ == "__main__":
    INPUT_SIZE = 32
    HIDDEN = 16
    OUTPUT_SIZE = (3, 16, 16)   # (C, H, W)
    BATCH = 2
    F = OUTPUT_SIZE[1] // 8 * (OUTPUT_SIZE[2] // 8) * HIDDEN

    key = jax.random.PRNGKey(0)
    ks = jax.random.split(key, 16)

    def nrm(k, shape, s=0.1):
        return (s * jax.random.normal(k, shape)).astype(jnp.float32)

    params = {
        "w1": nrm(ks[0], (INPUT_SIZE, F)),
        "b1": nrm(ks[1], (1, F)),
        "g1": 1.0 + nrm(ks[2], (1, F)),
        "bt1": nrm(ks[3], (1, F)),
        "wc1": nrm(ks[4], (HIDDEN, HIDDEN, 4, 4)),
        "bc1": nrm(ks[5], (HIDDEN,)),
        "gc1": 1.0 + nrm(ks[6], (HIDDEN,)),
        "btc1": nrm(ks[7], (HIDDEN,)),
        "wc2": nrm(ks[8], (HIDDEN, HIDDEN, 4, 4)),
        "bc2": nrm(ks[9], (HIDDEN,)),
        "gc2": 1.0 + nrm(ks[10], (HIDDEN,)),
        "btc2": nrm(ks[11], (HIDDEN,)),
        "wc3": nrm(ks[12], (HIDDEN, OUTPUT_SIZE[0], 4, 4)),
        "bc3": nrm(ks[13], (OUTPUT_SIZE[0],)),
        "gc3": 1.0 + nrm(ks[14], (OUTPUT_SIZE[0],)),
        "btc3": nrm(ks[15], (OUTPUT_SIZE[0],)),
    }
    mean_x = jax.random.normal(jax.random.fold_in(key, 123), (BATCH, INPUT_SIZE), jnp.float32)

    # one-time constant packing (hoisted out of the forward path)
    prep = prepare_decoder_params(params, HIDDEN, OUTPUT_SIZE, BATCH)

    decoder = jax.jit(decoder_forward, static_argnums=(2, 3))
    out = jax.block_until_ready(decoder(prep, mean_x, HIDDEN, OUTPUT_SIZE))
    assert out.shape == (BATCH,) + OUTPUT_SIZE, out.shape

    ref = jax.block_until_ready(reference_forward(params, mean_x, HIDDEN, OUTPUT_SIZE))
    # Tolerance accounts for bf16 MXU operands in the three conv-transpose stages
    # (f32 accumulation / BN); expected max-abs error vs the pure-f32 spec is ~5e-3.
    err = float(jnp.max(jnp.abs(out - ref)))
    assert err < 2e-2, f"max abs error {err}"
    print("KERNEL_OK")
</pallas_src>

<mosaic_0001>
module attributes {stable_mosaic.version = 11 : i64} {
  func.func @decoder_kernel(%arg0: memref<2x32xf32, #tpu.memory_space<vmem>>, %arg1: memref<32x64xf32, #tpu.memory_space<vmem>>, %arg2: memref<2x64xf32, #tpu.memory_space<vmem>>, %arg3: memref<144x128xbf16, #tpu.memory_space<vmem>>, %arg4: memref<2x128xf32, #tpu.memory_space<vmem>>, %arg5: memref<144x128xbf16, #tpu.memory_space<vmem>>, %arg6: memref<2x128xf32, #tpu.memory_space<vmem>>, %arg7: memref<128x128xf32, #tpu.memory_space<vmem>>, %arg8: memref<144x128xbf16, #tpu.memory_space<vmem>>, %arg9: memref<2x128xf32, #tpu.memory_space<vmem>>, %arg10: memref<128x128xf32, #tpu.memory_space<vmem>>, %arg11: memref<160x16xf32, #tpu.memory_space<vmem>>, %arg12: memref<128x144xbf16, #tpu.memory_space<vmem>>) attributes {dimension_semantics = [], scalar_prefetch = 0 : i64, scratch_operands = 2 : i64, tpu.core_type = #tpu.core_type<tc>} {
    %c0 = arith.constant 0 : index
    %c0_0 = arith.constant 0 : index
    %0 = vector.load %arg0[%c0, %c0_0] : memref<2x32xf32, #tpu.memory_space<vmem>>, vector<2x32xf32>
    %c0_1 = arith.constant 0 : index
    %c0_2 = arith.constant 0 : index
    %1 = vector.load %arg1[%c0_1, %c0_2] : memref<32x64xf32, #tpu.memory_space<vmem>>, vector<32x64xf32>
    %cst = arith.constant dense<0.000000e+00> : vector<2x64xf32>
    %2 = tpu.matmul %0, %1, %cst {dimension_numbers = #tpu.dot_dimension_numbers<[1], [0], [0], [1], [0, 0, 1, 1], [], []>} : vector<2x32xf32>, vector<32x64xf32>, vector<2x64xf32> -> vector<2x64xf32>
    %cst_3 = arith.constant dense<0.000000e+00> : vector<64xf32>
    %3 = vector.multi_reduction <add>, %2, %cst_3 [0] : vector<2x64xf32> to vector<64xf32>
    %4 = vector.shape_cast %3 : vector<64xf32> to vector<1x64xf32>
    %cst_4 = arith.constant 2.000000e+00 : f32
    %5 = vector.broadcast %cst_4 : f32 to vector<1x64xf32>
    %6 = arith.divf %4, %5 : vector<1x64xf32>
    %7 = vector.broadcast %6 : vector<1x64xf32> to vector<2x64xf32>
    %8 = arith.subf %2, %7 : vector<2x64xf32>
    %9 = arith.mulf %8, %8 : vector<2x64xf32>
    %cst_5 = arith.constant dense<0.000000e+00> : vector<64xf32>
    %10 = vector.multi_reduction <add>, %9, %cst_5 [0] : vector<2x64xf32> to vector<64xf32>
    %11 = vector.shape_cast %10 : vector<64xf32> to vector<1x64xf32>
    %cst_6 = arith.constant 2.000000e+00 : f32
    %12 = vector.broadcast %cst_6 : f32 to vector<1x64xf32>
    %13 = arith.divf %11, %12 : vector<1x64xf32>
    %14 = vector.broadcast %6 : vector<1x64xf32> to vector<2x64xf32>
    %15 = arith.subf %2, %14 : vector<2x64xf32>
    %cst_7 = arith.constant 9.99999974E-6 : f32
    %16 = vector.broadcast %cst_7 : f32 to vector<1x64xf32>
    %17 = arith.addf %13, %16 : vector<1x64xf32>
    %18 = math.rsqrt %17 : vector<1x64xf32>
    %19 = vector.broadcast %18 : vector<1x64xf32> to vector<2x64xf32>
    %20 = arith.mulf %15, %19 : vector<2x64xf32>
    %c0_8 = arith.constant 0 : index
    %c0_9 = arith.constant 0 : index
    %21 = vector.load %arg2[%c0_8, %c0_9] : memref<2x64xf32, #tpu.memory_space<vmem>>, vector<1x64xf32>
    %22 = vector.broadcast %21 : vector<1x64xf32> to vector<2x64xf32>
    %23 = arith.mulf %20, %22 : vector<2x64xf32>
    %c1 = arith.constant 1 : index
    %c0_10 = arith.constant 0 : index
    %24 = vector.load %arg2[%c1, %c0_10] : memref<2x64xf32, #tpu.memory_space<vmem>>, vector<1x64xf32>
    %25 = vector.broadcast %24 : vector<1x64xf32> to vector<2x64xf32>
    %26 = arith.addf %23, %25 : vector<2x64xf32>
    %cst_11 = arith.constant 0.000000e+00 : f32
    %27 = vector.broadcast %cst_11 : f32 to vector<2x64xf32>
    %28 = arith.maximumf %26, %27 : vector<2x64xf32>
    %29 = vector.extract_strided_slice %28 {offsets = [0, 0], sizes = [1, 16], strides = [1, 1]} : vector<2x64xf32> to vector<1x16xf32>
    %c16 = arith.constant 16 : index
    %c0_12 = arith.constant 0 : index
    %30 = vector.load %arg11[%c16, %c0_12] : memref<160x16xf32, #tpu.memory_space<vmem>>, vector<1x16xf32>
    tpu.vector_store %arg11[%c16, %c0_12], %29 {strides = array<i32>} : memref<160x16xf32, #tpu.memory_space<vmem>>, vector<1x16xf32>,
    %31 = vector.extract_strided_slice %28 {offsets = [0, 16], sizes = [1, 16], strides = [1, 1]} : vector<2x64xf32> to vector<1x16xf32>
    %c17 = arith.constant 17 : index
    %c0_13 = arith.constant 0 : index
    %32 = vector.load %arg11[%c17, %c0_13] : memref<160x16xf32, #tpu.memory_space<vmem>>, vector<1x16xf32>
    tpu.vector_store %arg11[%c17, %c0_13], %31 {strides = array<i32>} : memref<160x16xf32, #tpu.memory_space<vmem>>, vector<1x16xf32>,
    %33 = vector.extract_strided_slice %28 {offsets = [0, 32], sizes = [1, 16], strides = [1, 1]} : vector<2x64xf32> to vector<1x16xf32>
    %c18 = arith.constant 18 : index
    %c0_14 = arith.constant 0 : index
    %34 = vector.load %arg11[%c18, %c0_14] : memref<160x16xf32, #tpu.memory_space<vmem>>, vector<1x16xf32>
    tpu.vector_store %arg11[%c18, %c0_14], %33 {strides = array<i32>} : memref<160x16xf32, #tpu.memory_space<vmem>>, vector<1x16xf32>,
    %35 = vector.extract_strided_slice %28 {offsets = [0, 48], sizes = [1, 16], strides = [1, 1]} : vector<2x64xf32> to vector<1x16xf32>
    %c19 = arith.constant 19 : index
    %c0_15 = arith.constant 0 : index
    %36 = vector.load %arg11[%c19, %c0_15] : memref<160x16xf32, #tpu.memory_space<vmem>>, vector<1x16xf32>
    tpu.vector_store %arg11[%c19, %c0_15], %35 {strides = array<i32>} : memref<160x16xf32, #tpu.memory_space<vmem>>, vector<1x16xf32>,
    %37 = vector.extract_strided_slice %28 {offsets = [1, 0], sizes = [1, 16], strides = [1, 1]} : vector<2x64xf32> to vector<1x16xf32>
    %c20 = arith.constant 20 : index
    %c0_16 = arith.constant 0 : index
    %38 = vector.load %arg11[%c20, %c0_16] : memref<160x16xf32, #tpu.memory_space<vmem>>, vector<1x16xf32>
    tpu.vector_store %arg11[%c20, %c0_16], %37 {strides = array<i32>} : memref<160x16xf32, #tpu.memory_space<vmem>>, vector<1x16xf32>,
    %39 = vector.extract_strided_slice %28 {offsets = [1, 16], sizes = [1, 16], strides = [1, 1]} : vector<2x64xf32> to vector<1x16xf32>
    %c21 = arith.constant 21 : index
    %c0_17 = arith.constant 0 : index
    %40 = vector.load %arg11[%c21, %c0_17] : memref<160x16xf32, #tpu.memory_space<vmem>>, vector<1x16xf32>
    tpu.vector_store %arg11[%c21, %c0_17], %39 {strides = array<i32>} : memref<160x16xf32, #tpu.memory_space<vmem>>, vector<1x16xf32>,
    %41 = vector.extract_strided_slice %28 {offsets = [1, 32], sizes = [1, 16], strides = [1, 1]} : vector<2x64xf32> to vector<1x16xf32>
    %c22 = arith.constant 22 : index
    %c0_18 = arith.constant 0 : index
    %42 = vector.load %arg11[%c22, %c0_18] : memref<160x16xf32, #tpu.memory_space<vmem>>, vector<1x16xf32>
    tpu.vector_store %arg11[%c22, %c0_18], %41 {strides = array<i32>} : memref<160x16xf32, #tpu.memory_space<vmem>>, vector<1x16xf32>,
    %43 = vector.extract_strided_slice %28 {offsets = [1, 48], sizes = [1, 16], strides = [1, 1]} : vector<2x64xf32> to vector<1x16xf32>
    %c23 = arith.constant 23 : index
    %c0_19 = arith.constant 0 : index
    %44 = vector.load %arg11[%c23, %c0_19] : memref<160x16xf32, #tpu.memory_space<vmem>>, vector<1x16xf32>
    tpu.vector_store %arg11[%c23, %c0_19], %43 {strides = array<i32>} : memref<160x16xf32, #tpu.memory_space<vmem>>, vector<1x16xf32>,
    %45 = tpu.iota {dimensions = array<i32: 0>} : vector<8x16xi32>
    %c1_i32 = arith.constant 1 : i32
    %46 = vector.broadcast %c1_i32 : i32 to vector<8x16xi32>
    %47 = arith.andi %45, %46 : vector<8x16xi32>
    %c1_i32_20 = arith.constant 1 : i32
    %48 = vector.broadcast %c1_i32_20 : i32 to vector<8x16xi32>
    %49 = arith.shrsi %45, %48 : vector<8x16xi32>
    %c1_i32_21 = arith.constant 1 : i32
    %50 = vector.broadcast %c1_i32_21 : i32 to vector<8x16xi32>
    %51 = arith.andi %49, %50 : vector<8x16xi32>
    %c13 = arith.constant 13 : index
    %c0_22 = arith.constant 0 : index
    %52 = vector.load %arg11[%c13, %c0_22] : memref<160x16xf32, #tpu.memory_space<vmem>>, vector<8x16xf32>
    %c-1_i32 = arith.constant -1 : i32
    %53 = vector.broadcast %c-1_i32 : i32 to vector<8x16xi32>
    %54 = arith.addi %51, %53 : vector<8x16xi32>
    %c0_i32 = arith.constant 0 : i32
    %55 = vector.broadcast %c0_i32 : i32 to vector<8x16xi32>
    %56 = arith.cmpi sge, %54, %55 : vector<8x16xi32>
    %c-1_i32_23 = arith.constant -1 : i32
    %57 = vector.broadcast %c-1_i32_23 : i32 to vector<8x16xi32>
    %58 = arith.addi %51, %57 : vector<8x16xi32>
    %c2_i32 = arith.constant 2 : i32
    %59 = vector.broadcast %c2_i32 : i32 to vector<8x16xi32>
    %60 = arith.cmpi slt, %58, %59 : vector<8x16xi32>
    %61 = arith.andi %56, %60 : vector<8x16xi1>
    %c-1_i32_24 = arith.constant -1 : i32
    %62 = vector.broadcast %c-1_i32_24 : i32 to vector<8x16xi32>
    %63 = arith.addi %47, %62 : vector<8x16xi32>
    %c0_i32_25 = arith.constant 0 : i32
    %64 = vector.broadcast %c0_i32_25 : i32 to vector<8x16xi32>
    %65 = arith.cmpi sge, %63, %64 : vector<8x16xi32>
    %66 = arith.andi %61, %65 : vector<8x16xi1>
    %c-1_i32_26 = arith.constant -1 : i32
    %67 = vector.broadcast %c-1_i32_26 : i32 to vector<8x16xi32>
    %68 = arith.addi %47, %67 : vector<8x16xi32>
    %c2_i32_27 = arith.constant 2 : i32
    %69 = vector.broadcast %c2_i32_27 : i32 to vector<8x16xi32>
    %70 = arith.cmpi slt, %68, %69 : vector<8x16xi32>
    %71 = arith.andi %66, %70 : vector<8x16xi1>
    %cst_28 = arith.constant 0.000000e+00 : f32
    %72 = vector.broadcast %cst_28 : f32 to vector<8x16xf32>
    %73 = arith.select %71, %52, %72 : vector<8x16xi1>, vector<8x16xf32>
    %74 = arith.truncf %73 : vector<8x16xf32> to vector<8x16xbf16>
    %c0_29 = arith.constant 0 : index
    %c0_30 = arith.constant 0 : index
    %75 = vector.load %arg12[%c0_29, %c0_30] : memref<128x144xbf16, #tpu.memory_space<vmem>>, vector<8x16xbf16>
    tpu.vector_store %arg12[%c0_29, %c0_30], %74 {strides = array<i32>} : memref<128x144xbf16, #tpu.memory_space<vmem>>, vector<8x16xbf16>,
    %c14 = arith.constant 14 : index
    %c0_31 = arith.constant 0 : index
    %76 = vector.load %arg11[%c14, %c0_31] : memref<160x16xf32, #tpu.memory_space<vmem>>, vector<8x16xf32>
    %c-1_i32_32 = arith.constant -1 : i32
    %77 = vector.broadcast %c-1_i32_32 : i32 to vector<8x16xi32>
    %78 = arith.addi %51, %77 : vector<8x16xi32>
    %c0_i32_33 = arith.constant 0 : i32
    %79 = vector.broadcast %c0_i32_33 : i32 to vector<8x16xi32>
    %80 = arith.cmpi sge, %78, %79 : vector<8x16xi32>
    %c-1_i32_34 = arith.constant -1 : i32
    %81 = vector.broadcast %c-1_i32_34 : i32 to vector<8x16xi32>
    %82 = arith.addi %51, %81 : vector<8x16xi32>
    %c2_i32_35 = arith.constant 2 : i32
    %83 = vector.broadcast %c2_i32_35 : i32 to vector<8x16xi32>
    %84 = arith.cmpi slt, %82, %83 : vector<8x16xi32>
    %85 = arith.andi %80, %84 : vector<8x16xi1>
    %c0_i32_36 = arith.constant 0 : i32
    %86 = vector.broadcast %c0_i32_36 : i32 to vector<8x16xi32>
    %87 = arith.addi %47, %86 : vector<8x16xi32>
    %c0_i32_37 = arith.constant 0 : i32
    %88 = vector.broadcast %c0_i32_37 : i32 to vector<8x16xi32>
    %89 = arith.cmpi sge, %87, %88 : vector<8x16xi32>
    %90 = arith.andi %85, %89 : vector<8x16xi1>
    %c0_i32_38 = arith.constant 0 : i32
    %91 = vector.broadcast %c0_i32_38 : i32 to vector<8x16xi32>
    %92 = arith.addi %47, %91 : vector<8x16xi32>
    %c2_i32_39 = arith.constant 2 : i32
    %93 = vector.broadcast %c2_i32_39 : i32 to vector<8x16xi32>
    %94 = arith.cmpi slt, %92, %93 : vector<8x16xi32>
    %95 = arith.andi %90, %94 : vector<8x16xi1>
    %cst_40 = arith.constant 0.000000e+00 : f32
    %96 = vector.broadcast %cst_40 : f32 to vector<8x16xf32>
    %97 = arith.select %95, %76, %96 : vector<8x16xi1>, vector<8x16xf32>
    %98 = arith.truncf %97 : vector<8x16xf32> to vector<8x16xbf16>
    %c0_41 = arith.constant 0 : index
    %c16_42 = arith.constant 16 : index
    %99 = vector.load %arg12[%c0_41, %c16_42] : memref<128x144xbf16, #tpu.memory_space<vmem>>, vector<8x16xbf16>
    tpu.vector_store %arg12[%c0_41, %c16_42], %98 {strides = array<i32>} : memref<128x144xbf16, #tpu.memory_space<vmem>>, vector<8x16xbf16>,
    %c15 = arith.constant 15 : index
    %c0_43 = arith.constant 0 : index
    %100 = vector.load %arg11[%c15, %c0_43] : memref<160x16xf32, #tpu.memory_space<vmem>>, vector<8x16xf32>
    %c-1_i32_44 = arith.constant -1 : i32
    %101 = vector.broadcast %c-1_i32_44 : i32 to vector<8x16xi32>
    %102 = arith.addi %51, %101 : vector<8x16xi32>
    %c0_i32_45 = arith.constant 0 : i32
    %103 = vector.broadcast %c0_i32_45 : i32 to vector<8x16xi32>
    %104 = arith.cmpi sge, %102, %103 : vector<8x16xi32>
    %c-1_i32_46 = arith.constant -1 : i32
    %105 = vector.broadcast %c-1_i32_46 : i32 to vector<8x16xi32>
    %106 = arith.addi %51, %105 : vector<8x16xi32>
    %c2_i32_47 = arith.constant 2 : i32
    %107 = vector.broadcast %c2_i32_47 : i32 to vector<8x16xi32>
    %108 = arith.cmpi slt, %106, %107 : vector<8x16xi32>
    %109 = arith.andi %104, %108 : vector<8x16xi1>
    %c1_i32_48 = arith.constant 1 : i32
    %110 = vector.broadcast %c1_i32_48 : i32 to vector<8x16xi32>
    %111 = arith.addi %47, %110 : vector<8x16xi32>
    %c0_i32_49 = arith.constant 0 : i32
    %112 = vector.broadcast %c0_i32_49 : i32 to vector<8x16xi32>
    %113 = arith.cmpi sge, %111, %112 : vector<8x16xi32>
    %114 = arith.andi %109, %113 : vector<8x16xi1>
    %c1_i32_50 = arith.constant 1 : i32
    %115 = vector.broadcast %c1_i32_50 : i32 to vector<8x16xi32>
    %116 = arith.addi %47, %115 : vector<8x16xi32>
    %c2_i32_51 = arith.constant 2 : i32
    %117 = vector.broadcast %c2_i32_51 : i32 to vector<8x16xi32>
    %118 = arith.cmpi slt, %116, %117 : vector<8x16xi32>
    %119 = arith.andi %114, %118 : vector<8x16xi1>
    %cst_52 = arith.constant 0.000000e+00 : f32
    %120 = vector.broadcast %cst_52 : f32 to vector<8x16xf32>
    %121 = arith.select %119, %100, %120 : vector<8x16xi1>, vector<8x16xf32>
    %122 = arith.truncf %121 : vector<8x16xf32> to vector<8x16xbf16>
    %c0_53 = arith.constant 0 : index
    %c32 = arith.constant 32 : index
    %123 = vector.load %arg12[%c0_53, %c32] : memref<128x144xbf16, #tpu.memory_space<vmem>>, vector<8x16xbf16>
    tpu.vector_store %arg12[%c0_53, %c32], %122 {strides = array<i32>} : memref<128x144xbf16, #tpu.memory_space<vmem>>, vector<8x16xbf16>,
    %c15_54 = arith.constant 15 : index
    %c0_55 = arith.constant 0 : index
    %124 = vector.load %arg11[%c15_54, %c0_55] : memref<160x16xf32, #tpu.memory_space<vmem>>, vector<8x16xf32>
    %c0_i32_56 = arith.constant 0 : i32
    %125 = vector.broadcast %c0_i32_56 : i32 to vector<8x16xi32>
    %126 = arith.addi %51, %125 : vector<8x16xi32>
    %c0_i32_57 = arith.constant 0 : i32
    %127 = vector.broadcast %c0_i32_57 : i32 to vector<8x16xi32>
    %128 = arith.cmpi sge, %126, %127 : vector<8x16xi32>
    %c0_i32_58 = arith.constant 0 : i32
    %129 = vector.broadcast %c0_i32_58 : i32 to vector<8x16xi32>
    %130 = arith.addi %51, %129 : vector<8x16xi32>
    %c2_i32_59 = arith.constant 2 : i32
    %131 = vector.broadcast %c2_i32_59 : i32 to vector<8x16xi32>
    %132 = arith.cmpi slt, %130, %131 : vector<8x16xi32>
    %133 = arith.andi %128, %132 : vector<8x16xi1>
    %c-1_i32_60 = arith.constant -1 : i32
    %134 = vector.broadcast %c-1_i32_60 : i32 to vector<8x16xi32>
    %135 = arith.addi %47, %134 : vector<8x16xi32>
    %c0_i32_61 = arith.constant 0 : i32
    %136 = vector.broadcast %c0_i32_61 : i32 to vector<8x16xi32>
    %137 = arith.cmpi sge, %135, %136 : vector<8x16xi32>
    %138 = arith.andi %133, %137 : vector<8x16xi1>
    %c-1_i32_62 = arith.constant -1 : i32
    %139 = vector.broadcast %c-1_i32_62 : i32 to vector<8x16xi32>
    %140 = arith.addi %47, %139 : vector<8x16xi32>
    %c2_i32_63 = arith.constant 2 : i32
    %141 = vector.broadcast %c2_i32_63 : i32 to vector<8x16xi32>
    %142 = arith.cmpi slt, %140, %141 : vector<8x16xi32>
    %143 = arith.andi %138, %142 : vector<8x16xi1>
    %cst_64 = arith.constant 0.000000e+00 : f32
    %144 = vector.broadcast %cst_64 : f32 to vector<8x16xf32>
    %145 = arith.select %143, %124, %144 : vector<8x16xi1>, vector<8x16xf32>
    %146 = arith.truncf %145 : vector<8x16xf32> to vector<8x16xbf16>
    %c0_65 = arith.constant 0 : index
    %c48 = arith.constant 48 : index
    %147 = vector.load %arg12[%c0_65, %c48] : memref<128x144xbf16, #tpu.memory_space<vmem>>, vector<8x16xbf16>
    tpu.vector_store %arg12[%c0_65, %c48], %146 {strides = array<i32>} : memref<128x144xbf16, #tpu.memory_space<vmem>>, vector<8x16xbf16>,
    %c16_66 = arith.constant 16 : index
    %c0_67 = arith.constant 0 : index
    %148 = vector.load %arg11[%c16_66, %c0_67] : memref<160x16xf32, #tpu.memory_space<vmem>>, vector<8x16xf32>
    %c0_i32_68 = arith.constant 0 : i32
    %149 = vector.broadcast %c0_i32_68 : i32 to vector<8x16xi32>
    %150 = arith.addi %51, %149 : vector<8x16xi32>
    %c0_i32_69 = arith.constant 0 : i32
    %151 = vector.broadcast %c0_i32_69 : i32 to vector<8x16xi32>
    %152 = arith.cmpi sge, %150, %151 : vector<8x16xi32>
    %c0_i32_70 = arith.constant 0 : i32
    %153 = vector.broadcast %c0_i32_70 : i32 to vector<8x16xi32>
    %154 = arith.addi %51, %153 : vector<8x16xi32>
    %c2_i32_71 = arith.constant 2 : i32
    %155 = vector.broadcast %c2_i32_71 : i32 to vector<8x16xi32>
    %156 = arith.cmpi slt, %154, %155 : vector<8x16xi32>
    %157 = arith.andi %152, %156 : vector<8x16xi1>
    %c0_i32_72 = arith.constant 0 : i32
    %158 = vector.broadcast %c0_i32_72 : i32 to vector<8x16xi32>
    %159 = arith.addi %47, %158 : vector<8x16xi32>
    %c0_i32_73 = arith.constant 0 : i32
    %160 = vector.broadcast %c0_i32_73 : i32 to vector<8x16xi32>
    %161 = arith.cmpi sge, %159, %160 : vector<8x16xi32>
    %162 = arith.andi %157, %161 : vector<8x16xi1>
    %c0_i32_74 = arith.constant 0 : i32
    %163 = vector.broadcast %c0_i32_74 : i32 to vector<8x16xi32>
    %164 = arith.addi %47, %163 : vector<8x16xi32>
    %c2_i32_75 = arith.constant 2 : i32
    %165 = vector.broadcast %c2_i32_75 : i32 to vector<8x16xi32>
    %166 = arith.cmpi slt, %164, %165 : vector<8x16xi32>
    %167 = arith.andi %162, %166 : vector<8x16xi1>
    %cst_76 = arith.constant 0.000000e+00 : f32
    %168 = vector.broadcast %cst_76 : f32 to vector<8x16xf32>
    %169 = arith.select %167, %148, %168 : vector<8x16xi1>, vector<8x16xf32>
    %170 = arith.truncf %169 : vector<8x16xf32> to vector<8x16xbf16>
    %c0_77 = arith.constant 0 : index
    %c64 = arith.constant 64 : index
    %171 = vector.load %arg12[%c0_77, %c64] : memref<128x144xbf16, #tpu.memory_space<vmem>>, vector<8x16xbf16>
    tpu.vector_store %arg12[%c0_77, %c64], %170 {strides = array<i32>} : memref<128x144xbf16, #tpu.memory_space<vmem>>, vector<8x16xbf16>,
    %c17_78 = arith.constant 17 : index
    %c0_79 = arith.constant 0 : index
    %172 = vector.load %arg11[%c17_78, %c0_79] : memref<160x16xf32, #tpu.memory_space<vmem>>, vector<8x16xf32>
    %c0_i32_80 = arith.constant 0 : i32
    %173 = vector.broadcast %c0_i32_80 : i32 to vector<8x16xi32>
    %174 = arith.addi %51, %173 : vector<8x16xi32>
    %c0_i32_81 = arith.constant 0 : i32
    %175 = vector.broadcast %c0_i32_81 : i32 to vector<8x16xi32>
    %176 = arith.cmpi sge, %174, %175 : vector<8x16xi32>
    %c0_i32_82 = arith.constant 0 : i32
    %177 = vector.broadcast %c0_i32_82 : i32 to vector<8x16xi32>
    %178 = arith.addi %51, %177 : vector<8x16xi32>
    %c2_i32_83 = arith.constant 2 : i32
    %179 = vector.broadcast %c2_i32_83 : i32 to vector<8x16xi32>
    %180 = arith.cmpi slt, %178, %179 : vector<8x16xi32>
    %181 = arith.andi %176, %180 : vector<8x16xi1>
    %c1_i32_84 = arith.constant 1 : i32
    %182 = vector.broadcast %c1_i32_84 : i32 to vector<8x16xi32>
    %183 = arith.addi %47, %182 : vector<8x16xi32>
    %c0_i32_85 = arith.constant 0 : i32
    %184 = vector.broadcast %c0_i32_85 : i32 to vector<8x16xi32>
    %185 = arith.cmpi sge, %183, %184 : vector<8x16xi32>
    %186 = arith.andi %181, %185 : vector<8x16xi1>
    %c1_i32_86 = arith.constant 1 : i32
    %187 = vector.broadcast %c1_i32_86 : i32 to vector<8x16xi32>
    %188 = arith.addi %47, %187 : vector<8x16xi32>
    %c2_i32_87 = arith.constant 2 : i32
    %189 = vector.broadcast %c2_i32_87 : i32 to vector<8x16xi32>
    %190 = arith.cmpi slt, %188, %189 : vector<8x16xi32>
    %191 = arith.andi %186, %190 : vector<8x16xi1>
    %cst_88 = arith.constant 0.000000e+00 : f32
    %192 = vector.broadcast %cst_88 : f32 to vector<8x16xf32>
    %193 = arith.select %191, %172, %192 : vector<8x16xi1>, vector<8x16xf32>
    %194 = arith.truncf %193 : vector<8x16xf32> to vector<8x16xbf16>
    %c0_89 = arith.constant 0 : index
    %c80 = arith.constant 80 : index
    %195 = vector.load %arg12[%c0_89, %c80] : memref<128x144xbf16, #tpu.memory_space<vmem>>, vector<8x16xbf16>
    tpu.vector_store %arg12[%c0_89, %c80], %194 {strides = array<i32>} : memref<128x144xbf16, #tpu.memory_space<vmem>>, vector<8x16xbf16>,
    %c17_90 = arith.constant 17 : index
    %c0_91 = arith.constant 0 : index
    %196 = vector.load %arg11[%c17_90, %c0_91] : memref<160x16xf32, #tpu.memory_space<vmem>>, vector<8x16xf32>
    %c1_i32_92 = arith.constant 1 : i32
    %197 = vector.broadcast %c1_i32_92 : i32 to vector<8x16xi32>
    %198 = arith.addi %51, %197 : vector<8x16xi32>
    %c0_i32_93 = arith.constant 0 : i32
    %199 = vector.broadcast %c0_i32_93 : i32 to vector<8x16xi32>
    %200 = arith.cmpi sge, %198, %199 : vector<8x16xi32>
    %c1_i32_94 = arith.constant 1 : i32
    %201 = vector.broadcast %c1_i32_94 : i32 to vector<8x16xi32>
    %202 = arith.addi %51, %201 : vector<8x16xi32>
    %c2_i32_95 = arith.constant 2 : i32
    %203 = vector.broadcast %c2_i32_95 : i32 to vector<8x16xi32>
    %204 = arith.cmpi slt, %202, %203 : vector<8x16xi32>
    %205 = arith.andi %200, %204 : vector<8x16xi1>
    %c-1_i32_96 = arith.constant -1 : i32
    %206 = vector.broadcast %c-1_i32_96 : i32 to vector<8x16xi32>
    %207 = arith.addi %47, %206 : vector<8x16xi32>
    %c0_i32_97 = arith.constant 0 : i32
    %208 = vector.broadcast %c0_i32_97 : i32 to vector<8x16xi32>
    %209 = arith.cmpi sge, %207, %208 : vector<8x16xi32>
    %210 = arith.andi %205, %209 : vector<8x16xi1>
    %c-1_i32_98 = arith.constant -1 : i32
    %211 = vector.broadcast %c-1_i32_98 : i32 to vector<8x16xi32>
    %212 = arith.addi %47, %211 : vector<8x16xi32>
    %c2_i32_99 = arith.constant 2 : i32
    %213 = vector.broadcast %c2_i32_99 : i32 to vector<8x16xi32>
    %214 = arith.cmpi slt, %212, %213 : vector<8x16xi32>
    %215 = arith.andi %210, %214 : vector<8x16xi1>
    %cst_100 = arith.constant 0.000000e+00 : f32
    %216 = vector.broadcast %cst_100 : f32 to vector<8x16xf32>
    %217 = arith.select %215, %196, %216 : vector<8x16xi1>, vector<8x16xf32>
    %218 = arith.truncf %217 : vector<8x16xf32> to vector<8x16xbf16>
    %c0_101 = arith.constant 0 : index
    %c96 = arith.constant 96 : index
    %219 = vector.load %arg12[%c0_101, %c96] : memref<128x144xbf16, #tpu.memory_space<vmem>>, vector<8x16xbf16>
    tpu.vector_store %arg12[%c0_101, %c96], %218 {strides = array<i32>} : memref<128x144xbf16, #tpu.memory_space<vmem>>, vector<8x16xbf16>,
    %c18_102 = arith.constant 18 : index
    %c0_103 = arith.constant 0 : index
    %220 = vector.load %arg11[%c18_102, %c0_103] : memref<160x16xf32, #tpu.memory_space<vmem>>, vector<8x16xf32>
    %c1_i32_104 = arith.constant 1 : i32
    %221 = vector.broadcast %c1_i32_104 : i32 to vector<8x16xi32>
    %222 = arith.addi %51, %221 : vector<8x16xi32>
    %c0_i32_105 = arith.constant 0 : i32
    %223 = vector.broadcast %c0_i32_105 : i32 to vector<8x16xi32>
    %224 = arith.cmpi sge, %222, %223 : vector<8x16xi32>
    %c1_i32_106 = arith.constant 1 : i32
    %225 = vector.broadcast %c1_i32_106 : i32 to vector<8x16xi32>
    %226 = arith.addi %51, %225 : vector<8x16xi32>
    %c2_i32_107 = arith.constant 2 : i32
    %227 = vector.broadcast %c2_i32_107 : i32 to vector<8x16xi32>
    %228 = arith.cmpi slt, %226, %227 : vector<8x16xi32>
    %229 = arith.andi %224, %228 : vector<8x16xi1>
    %c0_i32_108 = arith.constant 0 : i32
    %230 = vector.broadcast %c0_i32_108 : i32 to vector<8x16xi32>
    %231 = arith.addi %47, %230 : vector<8x16xi32>
    %c0_i32_109 = arith.constant 0 : i32
    %232 = vector.broadcast %c0_i32_109 : i32 to vector<8x16xi32>
    %233 = arith.cmpi sge, %231, %232 : vector<8x16xi32>
    %234 = arith.andi %229, %233 : vector<8x16xi1>
    %c0_i32_110 = arith.constant 0 : i32
    %235 = vector.broadcast %c0_i32_110 : i32 to vector<8x16xi32>
    %236 = arith.addi %47, %235 : vector<8x16xi32>
    %c2_i32_111 = arith.constant 2 : i32
    %237 = vector.broadcast %c2_i32_111 : i32 to vector<8x16xi32>
    %238 = arith.cmpi slt, %236, %237 : vector<8x16xi32>
    %239 = arith.andi %234, %238 : vector<8x16xi1>
    %cst_112 = arith.constant 0.000000e+00 : f32
    %240 = vector.broadcast %cst_112 : f32 to vector<8x16xf32>
    %241 = arith.select %239, %220, %240 : vector<8x16xi1>, vector<8x16xf32>
    %242 = arith.truncf %241 : vector<8x16xf32> to vector<8x16xbf16>
    %c0_113 = arith.constant 0 : index
    %c112 = arith.constant 112 : index
    %243 = vector.load %arg12[%c0_113, %c112] : memref<128x144xbf16, #tpu.memory_space<vmem>>, vector<8x16xbf16>
    tpu.vector_store %arg12[%c0_113, %c112], %242 {strides = array<i32>} : memref<128x144xbf16, #tpu.memory_space<vmem>>, vector<8x16xbf16>,
    %c19_114 = arith.constant 19 : index
    %c0_115 = arith.constant 0 : index
    %244 = vector.load %arg11[%c19_114, %c0_115] : memref<160x16xf32, #tpu.memory_space<vmem>>, vector<8x16xf32>
    %c1_i32_116 = arith.constant 1 : i32
    %245 = vector.broadcast %c1_i32_116 : i32 to vector<8x16xi32>
    %246 = arith.addi %51, %245 : vector<8x16xi32>
    %c0_i32_117 = arith.constant 0 : i32
    %247 = vector.broadcast %c0_i32_117 : i32 to vector<8x16xi32>
    %248 = arith.cmpi sge, %246, %247 : vector<8x16xi32>
    %c1_i32_118 = arith.constant 1 : i32
    %249 = vector.broadcast %c1_i32_118 : i32 to vector<8x16xi32>
    %250 = arith.addi %51, %249 : vector<8x16xi32>
    %c2_i32_119 = arith.constant 2 : i32
    %251 = vector.broadcast %c2_i32_119 : i32 to vector<8x16xi32>
    %252 = arith.cmpi slt, %250, %251 : vector<8x16xi32>
    %253 = arith.andi %248, %252 : vector<8x16xi1>
    %c1_i32_120 = arith.constant 1 : i32
    %254 = vector.broadcast %c1_i32_120 : i32 to vector<8x16xi32>
    %255 = arith.addi %47, %254 : vector<8x16xi32>
    %c0_i32_121 = arith.constant 0 : i32
    %256 = vector.broadcast %c0_i32_121 : i32 to vector<8x16xi32>
    %257 = arith.cmpi sge, %255, %256 : vector<8x16xi32>
    %258 = arith.andi %253, %257 : vector<8x16xi1>
    %c1_i32_122 = arith.constant 1 : i32
    %259 = vector.broadcast %c1_i32_122 : i32 to vector<8x16xi32>
    %260 = arith.addi %47, %259 : vector<8x16xi32>
    %c2_i32_123 = arith.constant 2 : i32
    %261 = vector.broadcast %c2_i32_123 : i32 to vector<8x16xi32>
    %262 = arith.cmpi slt, %260, %261 : vector<8x16xi32>
    %263 = arith.andi %258, %262 : vector<8x16xi1>
    %cst_124 = arith.constant 0.000000e+00 : f32
    %264 = vector.broadcast %cst_124 : f32 to vector<8x16xf32>
    %265 = arith.select %263, %244, %264 : vector<8x16xi1>, vector<8x16xf32>
    %266 = arith.truncf %265 : vector<8x16xf32> to vector<8x16xbf16>
    %c0_125 = arith.constant 0 : index
    %c128 = arith.constant 128 : index
    %267 = vector.load %arg12[%c0_125, %c128] : memref<128x144xbf16, #tpu.memory_space<vmem>>, vector<8x16xbf16>
    tpu.vector_store %arg12[%c0_125, %c128], %266 {strides = array<i32>} : memref<128x144xbf16, #tpu.memory_space<vmem>>, vector<8x16xbf16>,
    %c0_126 = arith.constant 0 : index
    %c0_127 = arith.constant 0 : index
    %268 = vector.load %arg12[%c0_126, %c0_127] : memref<128x144xbf16, #tpu.memory_space<vmem>>, vector<8x144xbf16>
    %c0_128 = arith.constant 0 : index
    %c0_129 = arith.constant 0 : index
    %269 = vector.load %arg3[%c0_128, %c0_129] : memref<144x128xbf16, #tpu.memory_space<vmem>>, vector<144x128xbf16>
    %cst_130 = arith.constant dense<0.000000e+00> : vector<8x128xf32>
    %270 = tpu.matmul %268, %269, %cst_130 {dimension_numbers = #tpu.dot_dimension_numbers<[1], [0], [0], [1], [0, 0, 1, 1], [], []>} : vector<8x144xbf16>, vector<144x128xbf16>, vector<8x128xf32> -> vector<8x128xf32>
    %cst_131 = arith.constant dense<0.000000e+00> : vector<128xf32>
    %271 = vector.multi_reduction <add>, %270, %cst_131 [0] : vector<8x128xf32> to vector<128xf32>
    %272 = vector.shape_cast %271 : vector<128xf32> to vector<1x128xf32>
    %c32_i32 = arith.constant 32 : i32
    %273 = tpu.dynamic_rotate %272 by %c32_i32 dim 1 : vector<1x128xf32>, i32 -> vector<1x128xf32>
    %274 = arith.addf %272, %273 : vector<1x128xf32>
    %c64_i32 = arith.constant 64 : i32
    %275 = tpu.dynamic_rotate %272 by %c64_i32 dim 1 : vector<1x128xf32>, i32 -> vector<1x128xf32>
    %276 = arith.addf %274, %275 : vector<1x128xf32>
    %c96_i32 = arith.constant 96 : i32
    %277 = tpu.dynamic_rotate %272 by %c96_i32 dim 1 : vector<1x128xf32>, i32 -> vector<1x128xf32>
    %278 = arith.addf %276, %277 : vector<1x128xf32>
    %cst_132 = arith.constant 3.200000e+01 : f32
    %279 = vector.broadcast %cst_132 : f32 to vector<1x128xf32>
    %280 = arith.divf %278, %279 : vector<1x128xf32>
    %281 = vector.broadcast %280 : vector<1x128xf32> to vector<8x128xf32>
    %282 = arith.subf %270, %281 : vector<8x128xf32>
    %283 = arith.mulf %282, %282 : vector<8x128xf32>
    %cst_133 = arith.constant dense<0.000000e+00> : vector<128xf32>
    %284 = vector.multi_reduction <add>, %283, %cst_133 [0] : vector<8x128xf32> to vector<128xf32>
    %285 = vector.shape_cast %284 : vector<128xf32> to vector<1x128xf32>
    %c32_i32_134 = arith.constant 32 : i32
    %286 = tpu.dynamic_rotate %285 by %c32_i32_134 dim 1 : vector<1x128xf32>, i32 -> vector<1x128xf32>
    %287 = arith.addf %285, %286 : vector<1x128xf32>
    %c64_i32_135 = arith.constant 64 : i32
    %288 = tpu.dynamic_rotate %285 by %c64_i32_135 dim 1 : vector<1x128xf32>, i32 -> vector<1x128xf32>
    %289 = arith.addf %287, %288 : vector<1x128xf32>
    %c96_i32_136 = arith.constant 96 : i32
    %290 = tpu.dynamic_rotate %285 by %c96_i32_136 dim 1 : vector<1x128xf32>, i32 -> vector<1x128xf32>
    %291 = arith.addf %289, %290 : vector<1x128xf32>
    %cst_137 = arith.constant 3.200000e+01 : f32
    %292 = vector.broadcast %cst_137 : f32 to vector<1x128xf32>
    %293 = arith.divf %291, %292 : vector<1x128xf32>
    %cst_138 = arith.constant 9.99999974E-6 : f32
    %294 = vector.broadcast %cst_138 : f32 to vector<1x128xf32>
    %295 = arith.addf %293, %294 : vector<1x128xf32>
    %296 = math.rsqrt %295 : vector<1x128xf32>
    %c0_139 = arith.constant 0 : index
    %c0_140 = arith.constant 0 : index
    %297 = vector.load %arg4[%c0_139, %c0_140] : memref<2x128xf32, #tpu.memory_space<vmem>>, vector<1x128xf32>
    %298 = arith.mulf %296, %297 : vector<1x128xf32>
    %299 = vector.broadcast %298 : vector<1x128xf32> to vector<8x128xf32>
    %300 = arith.mulf %282, %299 : vector<8x128xf32>
    %c1_141 = arith.constant 1 : index
    %c0_142 = arith.constant 0 : index
    %301 = vector.load %arg4[%c1_141, %c0_142] : memref<2x128xf32, #tpu.memory_space<vmem>>, vector<1x128xf32>
    %302 = vector.broadcast %301 : vector<1x128xf32> to vector<8x128xf32>
    %303 = arith.addf %300, %302 : vector<8x128xf32>
    %cst_143 = arith.constant 0.000000e+00 : f32
    %304 = vector.broadcast %cst_143 : f32 to vector<8x128xf32>
    %305 = arith.maximumf %303, %304 : vector<8x128xf32>
    %306 = vector.extract_strided_slice %305 {offsets = [0, 0], sizes = [1, 16], strides = [1, 1]} : vector<8x128xf32> to vector<1x16xf32>
    %c16_144 = arith.constant 16 : index
    %c0_145 = arith.constant 0 : index
    %307 = vector.load %arg11[%c16_144, %c0_145] : memref<160x16xf32, #tpu.memory_space<vmem>>, vector<1x16xf32>
    tpu.vector_store %arg11[%c16_144, %c0_145], %306 {strides = array<i32>} : memref<160x16xf32, #tpu.memory_space<vmem>>, vector<1x16xf32>,
    %308 = vector.extract_strided_slice %305 {offsets = [0, 32], sizes = [1, 16], strides = [1, 1]} : vector<8x128xf32> to vector<1x16xf32>
    %c17_146 = arith.constant 17 : index
    %c0_147 = arith.constant 0 : index
    %309 = vector.load %arg11[%c17_146, %c0_147] : memref<160x16xf32, #tpu.memory_space<vmem>>, vector<1x16xf32>
    tpu.vector_store %arg11[%c17_146, %c0_147], %308 {strides = array<i32>} : memref<160x16xf32, #tpu.memory_space<vmem>>, vector<1x16xf32>,
    %310 = vector.extract_strided_slice %305 {offsets = [1, 0], sizes = [1, 16], strides = [1, 1]} : vector<8x128xf32> to vector<1x16xf32>
    %c18_148 = arith.constant 18 : index
    %c0_149 = arith.constant 0 : index
    %311 = vector.load %arg11[%c18_148, %c0_149] : memref<160x16xf32, #tpu.memory_space<vmem>>, vector<1x16xf32>
    tpu.vector_store %arg11[%c18_148, %c0_149], %310 {strides = array<i32>} : memref<160x16xf32, #tpu.memory_space<vmem>>, vector<1x16xf32>,
    %312 = vector.extract_strided_slice %305 {offsets = [1, 32], sizes = [1, 16], strides = [1, 1]} : vector<8x128xf32> to vector<1x16xf32>
    %c19_150 = arith.constant 19 : index
    %c0_151 = arith.constant 0 : index
    %313 = vector.load %arg11[%c19_150, %c0_151] : memref<160x16xf32, #tpu.memory_space<vmem>>, vector<1x16xf32>
    tpu.vector_store %arg11[%c19_150, %c0_151], %312 {strides = array<i32>} : memref<160x16xf32, #tpu.memory_space<vmem>>, vector<1x16xf32>,
    %314 = vector.extract_strided_slice %305 {offsets = [0, 64], sizes = [1, 16], strides = [1, 1]} : vector<8x128xf32> to vector<1x16xf32>
    %c20_152 = arith.constant 20 : index
    %c0_153 = arith.constant 0 : index
    %315 = vector.load %arg11[%c20_152, %c0_153] : memref<160x16xf32, #tpu.memory_space<vmem>>, vector<1x16xf32>
    tpu.vector_store %arg11[%c20_152, %c0_153], %314 {strides = array<i32>} : memref<160x16xf32, #tpu.memory_space<vmem>>, vector<1x16xf32>,
    %316 = vector.extract_strided_slice %305 {offsets = [0, 96], sizes = [1, 16], strides = [1, 1]} : vector<8x128xf32> to vector<1x16xf32>
    %c21_154 = arith.constant 21 : index
    %c0_155 = arith.constant 0 : index
    %317 = vector.load %arg11[%c21_154, %c0_155] : memref<160x16xf32, #tpu.memory_space<vmem>>, vector<1x16xf32>
    tpu.vector_store %arg11[%c21_154, %c0_155], %316 {strides = array<i32>} : memref<160x16xf32, #tpu.memory_space<vmem>>, vector<1x16xf32>,
    %318 = vector.extract_strided_slice %305 {offsets = [1, 64], sizes = [1, 16], strides = [1, 1]} : vector<8x128xf32> to vector<1x16xf32>
    %c22_156 = arith.constant 22 : index
    %c0_157 = arith.constant 0 : index
    %319 = vector.load %arg11[%c22_156, %c0_157] : memref<160x16xf32, #tpu.memory_space<vmem>>, vector<1x16xf32>
    tpu.vector_store %arg11[%c22_156, %c0_157], %318 {strides = array<i32>} : memref<160x16xf32, #tpu.memory_space<vmem>>, vector<1x16xf32>,
    %320 = vector.extract_strided_slice %305 {offsets = [1, 96], sizes = [1, 16], strides = [1, 1]} : vector<8x128xf32> to vector<1x16xf32>
    %c23_158 = arith.constant 23 : index
    %c0_159 = arith.constant 0 : index
    %321 = vector.load %arg11[%c23_158, %c0_159] : memref<160x16xf32, #tpu.memory_space<vmem>>, vector<1x16xf32>
    tpu.vector_store %arg11[%c23_158, %c0_159], %320 {strides = array<i32>} : memref<160x16xf32, #tpu.memory_space<vmem>>, vector<1x16xf32>,
    %322 = vector.extract_strided_slice %305 {offsets = [2, 0], sizes = [1, 16], strides = [1, 1]} : vector<8x128xf32> to vector<1x16xf32>
    %c24 = arith.constant 24 : index
    %c0_160 = arith.constant 0 : index
    %323 = vector.load %arg11[%c24, %c0_160] : memref<160x16xf32, #tpu.memory_space<vmem>>, vector<1x16xf32>
    tpu.vector_store %arg11[%c24, %c0_160], %322 {strides = array<i32>} : memref<160x16xf32, #tpu.memory_space<vmem>>, vector<1x16xf32>,
    %324 = vector.extract_strided_slice %305 {offsets = [2, 32], sizes = [1, 16], strides = [1, 1]} : vector<8x128xf32> to vector<1x16xf32>
    %c25 = arith.constant 25 : index
    %c0_161 = arith.constant 0 : index
    %325 = vector.load %arg11[%c25, %c0_161] : memref<160x16xf32, #tpu.memory_space<vmem>>, vector<1x16xf32>
    tpu.vector_store %arg11[%c25, %c0_161], %324 {strides = array<i32>} : memref<160x16xf32, #tpu.memory_space<vmem>>, vector<1x16xf32>,
    %326 = vector.extract_strided_slice %305 {offsets = [3, 0], sizes = [1, 16], strides = [1, 1]} : vector<8x128xf32> to vector<1x16xf32>
    %c26 = arith.constant 26 : index
    %c0_162 = arith.constant 0 : index
    %327 = vector.load %arg11[%c26, %c0_162] : memref<160x16xf32, #tpu.memory_space<vmem>>, vector<1x16xf32>
    tpu.vector_store %arg11[%c26, %c0_162], %326 {strides = array<i32>} : memref<160x16xf32, #tpu.memory_space<vmem>>, vector<1x16xf32>,
    %328 = vector.extract_strided_slice %305 {offsets = [3, 32], sizes = [1, 16], strides = [1, 1]} : vector<8x128xf32> to vector<1x16xf32>
    %c27 = arith.constant 27 : index
    %c0_163 = arith.constant 0 : index
    %329 = vector.load %arg11[%c27, %c0_163] : memref<160x16xf32, #tpu.memory_space<vmem>>, vector<1x16xf32>
    tpu.vector_store %arg11[%c27, %c0_163], %328 {strides = array<i32>} : memref<160x16xf32, #tpu.memory_space<vmem>>, vector<1x16xf32>,
    %330 = vector.extract_strided_slice %305 {offsets = [2, 64], sizes = [1, 16], strides = [1, 1]} : vector<8x128xf32> to vector<1x16xf32>
    %c28 = arith.constant 28 : index
    %c0_164 = arith.constant 0 : index
    %331 = vector.load %arg11[%c28, %c0_164] : memref<160x16xf32, #tpu.memory_space<vmem>>, vector<1x16xf32>
    tpu.vector_store %arg11[%c28, %c0_164], %330 {strides = array<i32>} : memref<160x16xf32, #tpu.memory_space<vmem>>, vector<1x16xf32>,
    %332 = vector.extract_strided_slice %305 {offsets = [2, 96], sizes = [1, 16], strides = [1, 1]} : vector<8x128xf32> to vector<1x16xf32>
    %c29 = arith.constant 29 : index
    %c0_165 = arith.constant 0 : index
    %333 = vector.load %arg11[%c29, %c0_165] : memref<160x16xf32, #tpu.memory_space<vmem>>, vector<1x16xf32>
    tpu.vector_store %arg11[%c29, %c0_165], %332 {strides = array<i32>} : memref<160x16xf32, #tpu.memory_space<vmem>>, vector<1x16xf32>,
    %334 = vector.extract_strided_slice %305 {offsets = [3, 64], sizes = [1, 16], strides = [1, 1]} : vector<8x128xf32> to vector<1x16xf32>
    %c30 = arith.constant 30 : index
    %c0_166 = arith.constant 0 : index
    %335 = vector.load %arg11[%c30, %c0_166] : memref<160x16xf32, #tpu.memory_space<vmem>>, vector<1x16xf32>
    tpu.vector_store %arg11[%c30, %c0_166], %334 {strides = array<i32>} : memref<160x16xf32, #tpu.memory_space<vmem>>, vector<1x16xf32>,
    %336 = vector.extract_strided_slice %305 {offsets = [3, 96], sizes = [1, 16], strides = [1, 1]} : vector<8x128xf32> to vector<1x16xf32>
    %c31 = arith.constant 31 : index
    %c0_167 = arith.constant 0 : index
    %337 = vector.load %arg11[%c31, %c0_167] : memref<160x16xf32, #tpu.memory_space<vmem>>, vector<1x16xf32>
    tpu.vector_store %arg11[%c31, %c0_167], %336 {strides = array<i32>} : memref<160x16xf32, #tpu.memory_space<vmem>>, vector<1x16xf32>,
    %338 = vector.extract_strided_slice %305 {offsets = [4, 0], sizes = [1, 16], strides = [1, 1]} : vector<8x128xf32> to vector<1x16xf32>
    %c32_168 = arith.constant 32 : index
    %c0_169 = arith.constant 0 : index
    %339 = vector.load %arg11[%c32_168, %c0_169] : memref<160x16xf32, #tpu.memory_space<vmem>>, vector<1x16xf32>
    tpu.vector_store %arg11[%c32_168, %c0_169], %338 {strides = array<i32>} : memref<160x16xf32, #tpu.memory_space<vmem>>, vector<1x16xf32>,
    %340 = vector.extract_strided_slice %305 {offsets = [4, 32], sizes = [1, 16], strides = [1, 1]} : vector<8x128xf32> to vector<1x16xf32>
    %c33 = arith.constant 33 : index
    %c0_170 = arith.constant 0 : index
    %341 = vector.load %arg11[%c33, %c0_170] : memref<160x16xf32, #tpu.memory_space<vmem>>, vector<1x16xf32>
    tpu.vector_store %arg11[%c33, %c0_170], %340 {strides = array<i32>} : memref<160x16xf32, #tpu.memory_space<vmem>>, vector<1x16xf32>,
    %342 = vector.extract_strided_slice %305 {offsets = [5, 0], sizes = [1, 16], strides = [1, 1]} : vector<8x128xf32> to vector<1x16xf32>
    %c34 = arith.constant 34 : index
    %c0_171 = arith.constant 0 : index
    %343 = vector.load %arg11[%c34, %c0_171] : memref<160x16xf32, #tpu.memory_space<vmem>>, vector<1x16xf32>
    tpu.vector_store %arg11[%c34, %c0_171], %342 {strides = array<i32>} : memref<160x16xf32, #tpu.memory_space<vmem>>, vector<1x16xf32>,
    %344 = vector.extract_strided_slice %305 {offsets = [5, 32], sizes = [1, 16], strides = [1, 1]} : vector<8x128xf32> to vector<1x16xf32>
    %c35 = arith.constant 35 : index
    %c0_172 = arith.constant 0 : index
    %345 = vector.load %arg11[%c35, %c0_172] : memref<160x16xf32, #tpu.memory_space<vmem>>, vector<1x16xf32>
    tpu.vector_store %arg11[%c35, %c0_172], %344 {strides = array<i32>} : memref<160x16xf32, #tpu.memory_space<vmem>>, vector<1x16xf32>,
    %346 = vector.extract_strided_slice %305 {offsets = [4, 64], sizes = [1, 16], strides = [1, 1]} : vector<8x128xf32> to vector<1x16xf32>
    %c36 = arith.constant 36 : index
    %c0_173 = arith.constant 0 : index
    %347 = vector.load %arg11[%c36, %c0_173] : memref<160x16xf32, #tpu.memory_space<vmem>>, vector<1x16xf32>
    tpu.vector_store %arg11[%c36, %c0_173], %346 {strides = array<i32>} : memref<160x16xf32, #tpu.memory_space<vmem>>, vector<1x16xf32>,
    %348 = vector.extract_strided_slice %305 {offsets = [4, 96], sizes = [1, 16], strides = [1, 1]} : vector<8x128xf32> to vector<1x16xf32>
    %c37 = arith.constant 37 : index
    %c0_174 = arith.constant 0 : index
    %349 = vector.load %arg11[%c37, %c0_174] : memref<160x16xf32, #tpu.memory_space<vmem>>, vector<1x16xf32>
    tpu.vector_store %arg11[%c37, %c0_174], %348 {strides = array<i32>} : memref<160x16xf32, #tpu.memory_space<vmem>>, vector<1x16xf32>,
    %350 = vector.extract_strided_slice %305 {offsets = [5, 64], sizes = [1, 16], strides = [1, 1]} : vector<8x128xf32> to vector<1x16xf32>
    %c38 = arith.constant 38 : index
    %c0_175 = arith.constant 0 : index
    %351 = vector.load %arg11[%c38, %c0_175] : memref<160x16xf32, #tpu.memory_space<vmem>>, vector<1x16xf32>
    tpu.vector_store %arg11[%c38, %c0_175], %350 {strides = array<i32>} : memref<160x16xf32, #tpu.memory_space<vmem>>, vector<1x16xf32>,
    %352 = vector.extract_strided_slice %305 {offsets = [5, 96], sizes = [1, 16], strides = [1, 1]} : vector<8x128xf32> to vector<1x16xf32>
    %c39 = arith.constant 39 : index
    %c0_176 = arith.constant 0 : index
    %353 = vector.load %arg11[%c39, %c0_176] : memref<160x16xf32, #tpu.memory_space<vmem>>, vector<1x16xf32>
    tpu.vector_store %arg11[%c39, %c0_176], %352 {strides = array<i32>} : memref<160x16xf32, #tpu.memory_space<vmem>>, vector<1x16xf32>,
    %354 = vector.extract_strided_slice %305 {offsets = [6, 0], sizes = [1, 16], strides = [1, 1]} : vector<8x128xf32> to vector<1x16xf32>
    %c40 = arith.constant 40 : index
    %c0_177 = arith.constant 0 : index
    %355 = vector.load %arg11[%c40, %c0_177] : memref<160x16xf32, #tpu.memory_space<vmem>>, vector<1x16xf32>
    tpu.vector_store %arg11[%c40, %c0_177], %354 {strides = array<i32>} : memref<160x16xf32, #tpu.memory_space<vmem>>, vector<1x16xf32>,
    %356 = vector.extract_strided_slice %305 {offsets = [6, 32], sizes = [1, 16], strides = [1, 1]} : vector<8x128xf32> to vector<1x16xf32>
    %c41 = arith.constant 41 : index
    %c0_178 = arith.constant 0 : index
    %357 = vector.load %arg11[%c41, %c0_178] : memref<160x16xf32, #tpu.memory_space<vmem>>, vector<1x16xf32>
    tpu.vector_store %arg11[%c41, %c0_178], %356 {strides = array<i32>} : memref<160x16xf32, #tpu.memory_space<vmem>>, vector<1x16xf32>,
    %358 = vector.extract_strided_slice %305 {offsets = [7, 0], sizes = [1, 16], strides = [1, 1]} : vector<8x128xf32> to vector<1x16xf32>
    %c42 = arith.constant 42 : index
    %c0_179 = arith.constant 0 : index
    %359 = vector.load %arg11[%c42, %c0_179] : memref<160x16xf32, #tpu.memory_space<vmem>>, vector<1x16xf32>
    tpu.vector_store %arg11[%c42, %c0_179], %358 {strides = array<i32>} : memref<160x16xf32, #tpu.memory_space<vmem>>, vector<1x16xf32>,
    %360 = vector.extract_strided_slice %305 {offsets = [7, 32], sizes = [1, 16], strides = [1, 1]} : vector<8x128xf32> to vector<1x16xf32>
    %c43 = arith.constant 43 : index
    %c0_180 = arith.constant 0 : index
    %361 = vector.load %arg11[%c43, %c0_180] : memref<160x16xf32, #tpu.memory_space<vmem>>, vector<1x16xf32>
    tpu.vector_store %arg11[%c43, %c0_180], %360 {strides = array<i32>} : memref<160x16xf32, #tpu.memory_space<vmem>>, vector<1x16xf32>,
    %362 = vector.extract_strided_slice %305 {offsets = [6, 64], sizes = [1, 16], strides = [1, 1]} : vector<8x128xf32> to vector<1x16xf32>
    %c44 = arith.constant 44 : index
    %c0_181 = arith.constant 0 : index
    %363 = vector.load %arg11[%c44, %c0_181] : memref<160x16xf32, #tpu.memory_space<vmem>>, vector<1x16xf32>
    tpu.vector_store %arg11[%c44, %c0_181], %362 {strides = array<i32>} : memref<160x16xf32, #tpu.memory_space<vmem>>, vector<1x16xf32>,
    %364 = vector.extract_strided_slice %305 {offsets = [6, 96], sizes = [1, 16], strides = [1, 1]} : vector<8x128xf32> to vector<1x16xf32>
    %c45 = arith.constant 45 : index
    %c0_182 = arith.constant 0 : index
    %365 = vector.load %arg11[%c45, %c0_182] : memref<160x16xf32, #tpu.memory_space<vmem>>, vector<1x16xf32>
    tpu.vector_store %arg11[%c45, %c0_182], %364 {strides = array<i32>} : memref<160x16xf32, #tpu.memory_space<vmem>>, vector<1x16xf32>,
    %366 = vector.extract_strided_slice %305 {offsets = [7, 64], sizes = [1, 16], strides = [1, 1]} : vector<8x128xf32> to vector<1x16xf32>
    %c46 = arith.constant 46 : index
    %c0_183 = arith.constant 0 : index
    %367 = vector.load %arg11[%c46, %c0_183] : memref<160x16xf32, #tpu.memory_space<vmem>>, vector<1x16xf32>
    tpu.vector_store %arg11[%c46, %c0_183], %366 {strides = array<i32>} : memref<160x16xf32, #tpu.memory_space<vmem>>, vector<1x16xf32>,
    %368 = vector.extract_strided_slice %305 {offsets = [7, 96], sizes = [1, 16], strides = [1, 1]} : vector<8x128xf32> to vector<1x16xf32>
    %c47 = arith.constant 47 : index
    %c0_184 = arith.constant 0 : index
    %369 = vector.load %arg11[%c47, %c0_184] : memref<160x16xf32, #tpu.memory_space<vmem>>, vector<1x16xf32>
    tpu.vector_store %arg11[%c47, %c0_184], %368 {strides = array<i32>} : memref<160x16xf32, #tpu.memory_space<vmem>>, vector<1x16xf32>,
    %370 = tpu.iota {dimensions = array<i32: 0>} : vector<32x16xi32>
    %c3_i32 = arith.constant 3 : i32
    %371 = vector.broadcast %c3_i32 : i32 to vector<32x16xi32>
    %372 = arith.andi %370, %371 : vector<32x16xi32>
    %c2_i32_185 = arith.constant 2 : i32
    %373 = vector.broadcast %c2_i32_185 : i32 to vector<32x16xi32>
    %374 = arith.shrsi %370, %373 : vector<32x16xi32>
    %c3_i32_186 = arith.constant 3 : i32
    %375 = vector.broadcast %c3_i32_186 : i32 to vector<32x16xi32>
    %376 = arith.andi %374, %375 : vector<32x16xi32>
    %c11 = arith.constant 11 : index
    %c0_187 = arith.constant 0 : index
    %377 = vector.load %arg11[%c11, %c0_187] : memref<160x16xf32, #tpu.memory_space<vmem>>, vector<32x16xf32>
    %c-1_i32_188 = arith.constant -1 : i32
    %378 = vector.broadcast %c-1_i32_188 : i32 to vector<32x16xi32>
    %379 = arith.addi %376, %378 : vector<32x16xi32>
    %c0_i32_189 = arith.constant 0 : i32
    %380 = vector.broadcast %c0_i32_189 : i32 to vector<32x16xi32>
    %381 = arith.cmpi sge, %379, %380 : vector<32x16xi32>
    %c-1_i32_190 = arith.constant -1 : i32
    %382 = vector.broadcast %c-1_i32_190 : i32 to vector<32x16xi32>
    %383 = arith.addi %376, %382 : vector<32x16xi32>
    %c4_i32 = arith.constant 4 : i32
    %384 = vector.broadcast %c4_i32 : i32 to vector<32x16xi32>
    %385 = arith.cmpi slt, %383, %384 : vector<32x16xi32>
    %386 = arith.andi %381, %385 : vector<32x16xi1>
    %c-1_i32_191 = arith.constant -1 : i32
    %387 = vector.broadcast %c-1_i32_191 : i32 to vector<32x16xi32>
    %388 = arith.addi %372, %387 : vector<32x16xi32>
    %c0_i32_192 = arith.constant 0 : i32
    %389 = vector.broadcast %c0_i32_192 : i32 to vector<32x16xi32>
    %390 = arith.cmpi sge, %388, %389 : vector<32x16xi32>
    %391 = arith.andi %386, %390 : vector<32x16xi1>
    %c-1_i32_193 = arith.constant -1 : i32
    %392 = vector.broadcast %c-1_i32_193 : i32 to vector<32x16xi32>
    %393 = arith.addi %372, %392 : vector<32x16xi32>
    %c4_i32_194 = arith.constant 4 : i32
    %394 = vector.broadcast %c4_i32_194 : i32 to vector<32x16xi32>
    %395 = arith.cmpi slt, %393, %394 : vector<32x16xi32>
    %396 = arith.andi %391, %395 : vector<32x16xi1>
    %cst_195 = arith.constant 0.000000e+00 : f32
    %397 = vector.broadcast %cst_195 : f32 to vector<32x16xf32>
    %398 = arith.select %396, %377, %397 : vector<32x16xi1>, vector<32x16xf32>
    %399 = arith.truncf %398 : vector<32x16xf32> to vector<32x16xbf16>
    %c0_196 = arith.constant 0 : index
    %c0_197 = arith.constant 0 : index
    %400 = vector.load %arg12[%c0_196, %c0_197] : memref<128x144xbf16, #tpu.memory_space<vmem>>, vector<32x16xbf16>
    tpu.vector_store %arg12[%c0_196, %c0_197], %399 {strides = array<i32>} : memref<128x144xbf16, #tpu.memory_space<vmem>>, vector<32x16xbf16>,
    %c12 = arith.constant 12 : index
    %c0_198 = arith.constant 0 : index
    %401 = vector.load %arg11[%c12, %c0_198] : memref<160x16xf32, #tpu.memory_space<vmem>>, vector<32x16xf32>
    %c-1_i32_199 = arith.constant -1 : i32
    %402 = vector.broadcast %c-1_i32_199 : i32 to vector<32x16xi32>
    %403 = arith.addi %376, %402 : vector<32x16xi32>
    %c0_i32_200 = arith.constant 0 : i32
    %404 = vector.broadcast %c0_i32_200 : i32 to vector<32x16xi32>
    %405 = arith.cmpi sge, %403, %404 : vector<32x16xi32>
    %c-1_i32_201 = arith.constant -1 : i32
    %406 = vector.broadcast %c-1_i32_201 : i32 to vector<32x16xi32>
    %407 = arith.addi %376, %406 : vector<32x16xi32>
    %c4_i32_202 = arith.constant 4 : i32
    %408 = vector.broadcast %c4_i32_202 : i32 to vector<32x16xi32>
    %409 = arith.cmpi slt, %407, %408 : vector<32x16xi32>
    %410 = arith.andi %405, %409 : vector<32x16xi1>
    %c0_i32_203 = arith.constant 0 : i32
    %411 = vector.broadcast %c0_i32_203 : i32 to vector<32x16xi32>
    %412 = arith.addi %372, %411 : vector<32x16xi32>
    %c0_i32_204 = arith.constant 0 : i32
    %413 = vector.broadcast %c0_i32_204 : i32 to vector<32x16xi32>
    %414 = arith.cmpi sge, %412, %413 : vector<32x16xi32>
    %415 = arith.andi %410, %414 : vector<32x16xi1>
    %c0_i32_205 = arith.constant 0 : i32
    %416 = vector.broadcast %c0_i32_205 : i32 to vector<32x16xi32>
    %417 = arith.addi %372, %416 : vector<32x16xi32>
    %c4_i32_206 = arith.constant 4 : i32
    %418 = vector.broadcast %c4_i32_206 : i32 to vector<32x16xi32>
    %419 = arith.cmpi slt, %417, %418 : vector<32x16xi32>
    %420 = arith.andi %415, %419 : vector<32x16xi1>
    %cst_207 = arith.constant 0.000000e+00 : f32
    %421 = vector.broadcast %cst_207 : f32 to vector<32x16xf32>
    %422 = arith.select %420, %401, %421 : vector<32x16xi1>, vector<32x16xf32>
    %423 = arith.truncf %422 : vector<32x16xf32> to vector<32x16xbf16>
    %c0_208 = arith.constant 0 : index
    %c16_209 = arith.constant 16 : index
    %424 = vector.load %arg12[%c0_208, %c16_209] : memref<128x144xbf16, #tpu.memory_space<vmem>>, vector<32x16xbf16>
    tpu.vector_store %arg12[%c0_208, %c16_209], %423 {strides = array<i32>} : memref<128x144xbf16, #tpu.memory_space<vmem>>, vector<32x16xbf16>,
    %c13_210 = arith.constant 13 : index
    %c0_211 = arith.constant 0 : index
    %425 = vector.load %arg11[%c13_210, %c0_211] : memref<160x16xf32, #tpu.memory_space<vmem>>, vector<32x16xf32>
    %c-1_i32_212 = arith.constant -1 : i32
    %426 = vector.broadcast %c-1_i32_212 : i32 to vector<32x16xi32>
    %427 = arith.addi %376, %426 : vector<32x16xi32>
    %c0_i32_213 = arith.constant 0 : i32
    %428 = vector.broadcast %c0_i32_213 : i32 to vector<32x16xi32>
    %429 = arith.cmpi sge, %427, %428 : vector<32x16xi32>
    %c-1_i32_214 = arith.constant -1 : i32
    %430 = vector.broadcast %c-1_i32_214 : i32 to vector<32x16xi32>
    %431 = arith.addi %376, %430 : vector<32x16xi32>
    %c4_i32_215 = arith.constant 4 : i32
    %432 = vector.broadcast %c4_i32_215 : i32 to vector<32x16xi32>
    %433 = arith.cmpi slt, %431, %432 : vector<32x16xi32>
    %434 = arith.andi %429, %433 : vector<32x16xi1>
    %c1_i32_216 = arith.constant 1 : i32
    %435 = vector.broadcast %c1_i32_216 : i32 to vector<32x16xi32>
    %436 = arith.addi %372, %435 : vector<32x16xi32>
    %c0_i32_217 = arith.constant 0 : i32
    %437 = vector.broadcast %c0_i32_217 : i32 to vector<32x16xi32>
    %438 = arith.cmpi sge, %436, %437 : vector<32x16xi32>
    %439 = arith.andi %434, %438 : vector<32x16xi1>
    %c1_i32_218 = arith.constant 1 : i32
    %440 = vector.broadcast %c1_i32_218 : i32 to vector<32x16xi32>
    %441 = arith.addi %372, %440 : vector<32x16xi32>
    %c4_i32_219 = arith.constant 4 : i32
    %442 = vector.broadcast %c4_i32_219 : i32 to vector<32x16xi32>
    %443 = arith.cmpi slt, %441, %442 : vector<32x16xi32>
    %444 = arith.andi %439, %443 : vector<32x16xi1>
    %cst_220 = arith.constant 0.000000e+00 : f32
    %445 = vector.broadcast %cst_220 : f32 to vector<32x16xf32>
    %446 = arith.select %444, %425, %445 : vector<32x16xi1>, vector<32x16xf32>
    %447 = arith.truncf %446 : vector<32x16xf32> to vector<32x16xbf16>
    %c0_221 = arith.constant 0 : index
    %c32_222 = arith.constant 32 : index
    %448 = vector.load %arg12[%c0_221, %c32_222] : memref<128x144xbf16, #tpu.memory_space<vmem>>, vector<32x16xbf16>
    tpu.vector_store %arg12[%c0_221, %c32_222], %447 {strides = array<i32>} : memref<128x144xbf16, #tpu.memory_space<vmem>>, vector<32x16xbf16>,
    %c15_223 = arith.constant 15 : index
    %c0_224 = arith.constant 0 : index
    %449 = vector.load %arg11[%c15_223, %c0_224] : memref<160x16xf32, #tpu.memory_space<vmem>>, vector<32x16xf32>
    %c0_i32_225 = arith.constant 0 : i32
    %450 = vector.broadcast %c0_i32_225 : i32 to vector<32x16xi32>
    %451 = arith.addi %376, %450 : vector<32x16xi32>
    %c0_i32_226 = arith.constant 0 : i32
    %452 = vector.broadcast %c0_i32_226 : i32 to vector<32x16xi32>
    %453 = arith.cmpi sge, %451, %452 : vector<32x16xi32>
    %c0_i32_227 = arith.constant 0 : i32
    %454 = vector.broadcast %c0_i32_227 : i32 to vector<32x16xi32>
    %455 = arith.addi %376, %454 : vector<32x16xi32>
    %c4_i32_228 = arith.constant 4 : i32
    %456 = vector.broadcast %c4_i32_228 : i32 to vector<32x16xi32>
    %457 = arith.cmpi slt, %455, %456 : vector<32x16xi32>
    %458 = arith.andi %453, %457 : vector<32x16xi1>
    %c-1_i32_229 = arith.constant -1 : i32
    %459 = vector.broadcast %c-1_i32_229 : i32 to vector<32x16xi32>
    %460 = arith.addi %372, %459 : vector<32x16xi32>
    %c0_i32_230 = arith.constant 0 : i32
    %461 = vector.broadcast %c0_i32_230 : i32 to vector<32x16xi32>
    %462 = arith.cmpi sge, %460, %461 : vector<32x16xi32>
    %463 = arith.andi %458, %462 : vector<32x16xi1>
    %c-1_i32_231 = arith.constant -1 : i32
    %464 = vector.broadcast %c-1_i32_231 : i32 to vector<32x16xi32>
    %465 = arith.addi %372, %464 : vector<32x16xi32>
    %c4_i32_232 = arith.constant 4 : i32
    %466 = vector.broadcast %c4_i32_232 : i32 to vector<32x16xi32>
    %467 = arith.cmpi slt, %465, %466 : vector<32x16xi32>
    %468 = arith.andi %463, %467 : vector<32x16xi1>
    %cst_233 = arith.constant 0.000000e+00 : f32
    %469 = vector.broadcast %cst_233 : f32 to vector<32x16xf32>
    %470 = arith.select %468, %449, %469 : vector<32x16xi1>, vector<32x16xf32>
    %471 = arith.truncf %470 : vector<32x16xf32> to vector<32x16xbf16>
    %c0_234 = arith.constant 0 : index
    %c48_235 = arith.constant 48 : index
    %472 = vector.load %arg12[%c0_234, %c48_235] : memref<128x144xbf16, #tpu.memory_space<vmem>>, vector<32x16xbf16>
    tpu.vector_store %arg12[%c0_234, %c48_235], %471 {strides = array<i32>} : memref<128x144xbf16, #tpu.memory_space<vmem>>, vector<32x16xbf16>,
    %c16_236 = arith.constant 16 : index
    %c0_237 = arith.constant 0 : index
    %473 = vector.load %arg11[%c16_236, %c0_237] : memref<160x16xf32, #tpu.memory_space<vmem>>, vector<32x16xf32>
    %c0_i32_238 = arith.constant 0 : i32
    %474 = vector.broadcast %c0_i32_238 : i32 to vector<32x16xi32>
    %475 = arith.addi %376, %474 : vector<32x16xi32>
    %c0_i32_239 = arith.constant 0 : i32
    %476 = vector.broadcast %c0_i32_239 : i32 to vector<32x16xi32>
    %477 = arith.cmpi sge, %475, %476 : vector<32x16xi32>
    %c0_i32_240 = arith.constant 0 : i32
    %478 = vector.broadcast %c0_i32_240 : i32 to vector<32x16xi32>
    %479 = arith.addi %376, %478 : vector<32x16xi32>
    %c4_i32_241 = arith.constant 4 : i32
    %480 = vector.broadcast %c4_i32_241 : i32 to vector<32x16xi32>
    %481 = arith.cmpi slt, %479, %480 : vector<32x16xi32>
    %482 = arith.andi %477, %481 : vector<32x16xi1>
    %c0_i32_242 = arith.constant 0 : i32
    %483 = vector.broadcast %c0_i32_242 : i32 to vector<32x16xi32>
    %484 = arith.addi %372, %483 : vector<32x16xi32>
    %c0_i32_243 = arith.constant 0 : i32
    %485 = vector.broadcast %c0_i32_243 : i32 to vector<32x16xi32>
    %486 = arith.cmpi sge, %484, %485 : vector<32x16xi32>
    %487 = arith.andi %482, %486 : vector<32x16xi1>
    %c0_i32_244 = arith.constant 0 : i32
    %488 = vector.broadcast %c0_i32_244 : i32 to vector<32x16xi32>
    %489 = arith.addi %372, %488 : vector<32x16xi32>
    %c4_i32_245 = arith.constant 4 : i32
    %490 = vector.broadcast %c4_i32_245 : i32 to vector<32x16xi32>
    %491 = arith.cmpi slt, %489, %490 : vector<32x16xi32>
    %492 = arith.andi %487, %491 : vector<32x16xi1>
    %cst_246 = arith.constant 0.000000e+00 : f32
    %493 = vector.broadcast %cst_246 : f32 to vector<32x16xf32>
    %494 = arith.select %492, %473, %493 : vector<32x16xi1>, vector<32x16xf32>
    %495 = arith.truncf %494 : vector<32x16xf32> to vector<32x16xbf16>
    %c0_247 = arith.constant 0 : index
    %c64_248 = arith.constant 64 : index
    %496 = vector.load %arg12[%c0_247, %c64_248] : memref<128x144xbf16, #tpu.memory_space<vmem>>, vector<32x16xbf16>
    tpu.vector_store %arg12[%c0_247, %c64_248], %495 {strides = array<i32>} : memref<128x144xbf16, #tpu.memory_space<vmem>>, vector<32x16xbf16>,
    %c17_249 = arith.constant 17 : index
    %c0_250 = arith.constant 0 : index
    %497 = vector.load %arg11[%c17_249, %c0_250] : memref<160x16xf32, #tpu.memory_space<vmem>>, vector<32x16xf32>
    %c0_i32_251 = arith.constant 0 : i32
    %498 = vector.broadcast %c0_i32_251 : i32 to vector<32x16xi32>
    %499 = arith.addi %376, %498 : vector<32x16xi32>
    %c0_i32_252 = arith.constant 0 : i32
    %500 = vector.broadcast %c0_i32_252 : i32 to vector<32x16xi32>
    %501 = arith.cmpi sge, %499, %500 : vector<32x16xi32>
    %c0_i32_253 = arith.constant 0 : i32
    %502 = vector.broadcast %c0_i32_253 : i32 to vector<32x16xi32>
    %503 = arith.addi %376, %502 : vector<32x16xi32>
    %c4_i32_254 = arith.constant 4 : i32
    %504 = vector.broadcast %c4_i32_254 : i32 to vector<32x16xi32>
    %505 = arith.cmpi slt, %503, %504 : vector<32x16xi32>
    %506 = arith.andi %501, %505 : vector<32x16xi1>
    %c1_i32_255 = arith.constant 1 : i32
    %507 = vector.broadcast %c1_i32_255 : i32 to vector<32x16xi32>
    %508 = arith.addi %372, %507 : vector<32x16xi32>
    %c0_i32_256 = arith.constant 0 : i32
    %509 = vector.broadcast %c0_i32_256 : i32 to vector<32x16xi32>
    %510 = arith.cmpi sge, %508, %509 : vector<32x16xi32>
    %511 = arith.andi %506, %510 : vector<32x16xi1>
    %c1_i32_257 = arith.constant 1 : i32
    %512 = vector.broadcast %c1_i32_257 : i32 to vector<32x16xi32>
    %513 = arith.addi %372, %512 : vector<32x16xi32>
    %c4_i32_258 = arith.constant 4 : i32
    %514 = vector.broadcast %c4_i32_258 : i32 to vector<32x16xi32>
    %515 = arith.cmpi slt, %513, %514 : vector<32x16xi32>
    %516 = arith.andi %511, %515 : vector<32x16xi1>
    %cst_259 = arith.constant 0.000000e+00 : f32
    %517 = vector.broadcast %cst_259 : f32 to vector<32x16xf32>
    %518 = arith.select %516, %497, %517 : vector<32x16xi1>, vector<32x16xf32>
    %519 = arith.truncf %518 : vector<32x16xf32> to vector<32x16xbf16>
    %c0_260 = arith.constant 0 : index
    %c80_261 = arith.constant 80 : index
    %520 = vector.load %arg12[%c0_260, %c80_261] : memref<128x144xbf16, #tpu.memory_space<vmem>>, vector<32x16xbf16>
    tpu.vector_store %arg12[%c0_260, %c80_261], %519 {strides = array<i32>} : memref<128x144xbf16, #tpu.memory_space<vmem>>, vector<32x16xbf16>,
    %c19_262 = arith.constant 19 : index
    %c0_263 = arith.constant 0 : index
    %521 = vector.load %arg11[%c19_262, %c0_263] : memref<160x16xf32, #tpu.memory_space<vmem>>, vector<32x16xf32>
    %c1_i32_264 = arith.constant 1 : i32
    %522 = vector.broadcast %c1_i32_264 : i32 to vector<32x16xi32>
    %523 = arith.addi %376, %522 : vector<32x16xi32>
    %c0_i32_265 = arith.constant 0 : i32
    %524 = vector.broadcast %c0_i32_265 : i32 to vector<32x16xi32>
    %525 = arith.cmpi sge, %523, %524 : vector<32x16xi32>
    %c1_i32_266 = arith.constant 1 : i32
    %526 = vector.broadcast %c1_i32_266 : i32 to vector<32x16xi32>
    %527 = arith.addi %376, %526 : vector<32x16xi32>
    %c4_i32_267 = arith.constant 4 : i32
    %528 = vector.broadcast %c4_i32_267 : i32 to vector<32x16xi32>
    %529 = arith.cmpi slt, %527, %528 : vector<32x16xi32>
    %530 = arith.andi %525, %529 : vector<32x16xi1>
    %c-1_i32_268 = arith.constant -1 : i32
    %531 = vector.broadcast %c-1_i32_268 : i32 to vector<32x16xi32>
    %532 = arith.addi %372, %531 : vector<32x16xi32>
    %c0_i32_269 = arith.constant 0 : i32
    %533 = vector.broadcast %c0_i32_269 : i32 to vector<32x16xi32>
    %534 = arith.cmpi sge, %532, %533 : vector<32x16xi32>
    %535 = arith.andi %530, %534 : vector<32x16xi1>
    %c-1_i32_270 = arith.constant -1 : i32
    %536 = vector.broadcast %c-1_i32_270 : i32 to vector<32x16xi32>
    %537 = arith.addi %372, %536 : vector<32x16xi32>
    %c4_i32_271 = arith.constant 4 : i32
    %538 = vector.broadcast %c4_i32_271 : i32 to vector<32x16xi32>
    %539 = arith.cmpi slt, %537, %538 : vector<32x16xi32>
    %540 = arith.andi %535, %539 : vector<32x16xi1>
    %cst_272 = arith.constant 0.000000e+00 : f32
    %541 = vector.broadcast %cst_272 : f32 to vector<32x16xf32>
    %542 = arith.select %540, %521, %541 : vector<32x16xi1>, vector<32x16xf32>
    %543 = arith.truncf %542 : vector<32x16xf32> to vector<32x16xbf16>
    %c0_273 = arith.constant 0 : index
    %c96_274 = arith.constant 96 : index
    %544 = vector.load %arg12[%c0_273, %c96_274] : memref<128x144xbf16, #tpu.memory_space<vmem>>, vector<32x16xbf16>
    tpu.vector_store %arg12[%c0_273, %c96_274], %543 {strides = array<i32>} : memref<128x144xbf16, #tpu.memory_space<vmem>>, vector<32x16xbf16>,
    %c20_275 = arith.constant 20 : index
    %c0_276 = arith.constant 0 : index
    %545 = vector.load %arg11[%c20_275, %c0_276] : memref<160x16xf32, #tpu.memory_space<vmem>>, vector<32x16xf32>
    %c1_i32_277 = arith.constant 1 : i32
    %546 = vector.broadcast %c1_i32_277 : i32 to vector<32x16xi32>
    %547 = arith.addi %376, %546 : vector<32x16xi32>
    %c0_i32_278 = arith.constant 0 : i32
    %548 = vector.broadcast %c0_i32_278 : i32 to vector<32x16xi32>
    %549 = arith.cmpi sge, %547, %548 : vector<32x16xi32>
    %c1_i32_279 = arith.constant 1 : i32
    %550 = vector.broadcast %c1_i32_279 : i32 to vector<32x16xi32>
    %551 = arith.addi %376, %550 : vector<32x16xi32>
    %c4_i32_280 = arith.constant 4 : i32
    %552 = vector.broadcast %c4_i32_280 : i32 to vector<32x16xi32>
    %553 = arith.cmpi slt, %551, %552 : vector<32x16xi32>
    %554 = arith.andi %549, %553 : vector<32x16xi1>
    %c0_i32_281 = arith.constant 0 : i32
    %555 = vector.broadcast %c0_i32_281 : i32 to vector<32x16xi32>
    %556 = arith.addi %372, %555 : vector<32x16xi32>
    %c0_i32_282 = arith.constant 0 : i32
    %557 = vector.broadcast %c0_i32_282 : i32 to vector<32x16xi32>
    %558 = arith.cmpi sge, %556, %557 : vector<32x16xi32>
    %559 = arith.andi %554, %558 : vector<32x16xi1>
    %c0_i32_283 = arith.constant 0 : i32
    %560 = vector.broadcast %c0_i32_283 : i32 to vector<32x16xi32>
    %561 = arith.addi %372, %560 : vector<32x16xi32>
    %c4_i32_284 = arith.constant 4 : i32
    %562 = vector.broadcast %c4_i32_284 : i32 to vector<32x16xi32>
    %563 = arith.cmpi slt, %561, %562 : vector<32x16xi32>
    %564 = arith.andi %559, %563 : vector<32x16xi1>
    %cst_285 = arith.constant 0.000000e+00 : f32
    %565 = vector.broadcast %cst_285 : f32 to vector<32x16xf32>
    %566 = arith.select %564, %545, %565 : vector<32x16xi1>, vector<32x16xf32>
    %567 = arith.truncf %566 : vector<32x16xf32> to vector<32x16xbf16>
    %c0_286 = arith.constant 0 : index
    %c112_287 = arith.constant 112 : index
    %568 = vector.load %arg12[%c0_286, %c112_287] : memref<128x144xbf16, #tpu.memory_space<vmem>>, vector<32x16xbf16>
    tpu.vector_store %arg12[%c0_286, %c112_287], %567 {strides = array<i32>} : memref<128x144xbf16, #tpu.memory_space<vmem>>, vector<32x16xbf16>,
    %c21_288 = arith.constant 21 : index
    %c0_289 = arith.constant 0 : index
    %569 = vector.load %arg11[%c21_288, %c0_289] : memref<160x16xf32, #tpu.memory_space<vmem>>, vector<32x16xf32>
    %c1_i32_290 = arith.constant 1 : i32
    %570 = vector.broadcast %c1_i32_290 : i32 to vector<32x16xi32>
    %571 = arith.addi %376, %570 : vector<32x16xi32>
    %c0_i32_291 = arith.constant 0 : i32
    %572 = vector.broadcast %c0_i32_291 : i32 to vector<32x16xi32>
    %573 = arith.cmpi sge, %571, %572 : vector<32x16xi32>
    %c1_i32_292 = arith.constant 1 : i32
    %574 = vector.broadcast %c1_i32_292 : i32 to vector<32x16xi32>
    %575 = arith.addi %376, %574 : vector<32x16xi32>
    %c4_i32_293 = arith.constant 4 : i32
    %576 = vector.broadcast %c4_i32_293 : i32 to vector<32x16xi32>
    %577 = arith.cmpi slt, %575, %576 : vector<32x16xi32>
    %578 = arith.andi %573, %577 : vector<32x16xi1>
    %c1_i32_294 = arith.constant 1 : i32
    %579 = vector.broadcast %c1_i32_294 : i32 to vector<32x16xi32>
    %580 = arith.addi %372, %579 : vector<32x16xi32>
    %c0_i32_295 = arith.constant 0 : i32
    %581 = vector.broadcast %c0_i32_295 : i32 to vector<32x16xi32>
    %582 = arith.cmpi sge, %580, %581 : vector<32x16xi32>
    %583 = arith.andi %578, %582 : vector<32x16xi1>
    %c1_i32_296 = arith.constant 1 : i32
    %584 = vector.broadcast %c1_i32_296 : i32 to vector<32x16xi32>
    %585 = arith.addi %372, %584 : vector<32x16xi32>
    %c4_i32_297 = arith.constant 4 : i32
    %586 = vector.broadcast %c4_i32_297 : i32 to vector<32x16xi32>
    %587 = arith.cmpi slt, %585, %586 : vector<32x16xi32>
    %588 = arith.andi %583, %587 : vector<32x16xi1>
    %cst_298 = arith.constant 0.000000e+00 : f32
    %589 = vector.broadcast %cst_298 : f32 to vector<32x16xf32>
    %590 = arith.select %588, %569, %589 : vector<32x16xi1>, vector<32x16xf32>
    %591 = arith.truncf %590 : vector<32x16xf32> to vector<32x16xbf16>
    %c0_299 = arith.constant 0 : index
    %c128_300 = arith.constant 128 : index
    %592 = vector.load %arg12[%c0_299, %c128_300] : memref<128x144xbf16, #tpu.memory_space<vmem>>, vector<32x16xbf16>
    tpu.vector_store %arg12[%c0_299, %c128_300], %591 {strides = array<i32>} : memref<128x144xbf16, #tpu.memory_space<vmem>>, vector<32x16xbf16>,
    %c0_301 = arith.constant 0 : index
    %c0_302 = arith.constant 0 : index
    %593 = vector.load %arg12[%c0_301, %c0_302] : memref<128x144xbf16, #tpu.memory_space<vmem>>, vector<32x144xbf16>
    %c0_303 = arith.constant 0 : index
    %c0_304 = arith.constant 0 : index
    %594 = vector.load %arg5[%c0_303, %c0_304] : memref<144x128xbf16, #tpu.memory_space<vmem>>, vector<144x128xbf16>
    %cst_305 = arith.constant dense<0.000000e+00> : vector<32x128xf32>
    %595 = tpu.matmul %593, %594, %cst_305 {dimension_numbers = #tpu.dot_dimension_numbers<[1], [0], [0], [1], [0, 0, 1, 1], [], []>} : vector<32x144xbf16>, vector<144x128xbf16>, vector<32x128xf32> -> vector<32x128xf32>
    %cst_306 = arith.constant dense<0.000000e+00> : vector<128xf32>
    %596 = vector.multi_reduction <add>, %595, %cst_306 [0] : vector<32x128xf32> to vector<128xf32>
    %597 = vector.shape_cast %596 : vector<128xf32> to vector<1x128xf32>
    %c32_i32_307 = arith.constant 32 : i32
    %598 = tpu.dynamic_rotate %597 by %c32_i32_307 dim 1 : vector<1x128xf32>, i32 -> vector<1x128xf32>
    %599 = arith.addf %597, %598 : vector<1x128xf32>
    %c64_i32_308 = arith.constant 64 : i32
    %600 = tpu.dynamic_rotate %597 by %c64_i32_308 dim 1 : vector<1x128xf32>, i32 -> vector<1x128xf32>
    %601 = arith.addf %599, %600 : vector<1x128xf32>
    %c96_i32_309 = arith.constant 96 : i32
    %602 = tpu.dynamic_rotate %597 by %c96_i32_309 dim 1 : vector<1x128xf32>, i32 -> vector<1x128xf32>
    %603 = arith.addf %601, %602 : vector<1x128xf32>
    %cst_310 = arith.constant 1.280000e+02 : f32
    %604 = vector.broadcast %cst_310 : f32 to vector<1x128xf32>
    %605 = arith.divf %603, %604 : vector<1x128xf32>
    %606 = vector.broadcast %605 : vector<1x128xf32> to vector<32x128xf32>
    %607 = arith.subf %595, %606 : vector<32x128xf32>
    %608 = arith.mulf %607, %607 : vector<32x128xf32>
    %cst_311 = arith.constant dense<0.000000e+00> : vector<128xf32>
    %609 = vector.multi_reduction <add>, %608, %cst_311 [0] : vector<32x128xf32> to vector<128xf32>
    %610 = vector.shape_cast %609 : vector<128xf32> to vector<1x128xf32>
    %c32_i32_312 = arith.constant 32 : i32
    %611 = tpu.dynamic_rotate %610 by %c32_i32_312 dim 1 : vector<1x128xf32>, i32 -> vector<1x128xf32>
    %612 = arith.addf %610, %611 : vector<1x128xf32>
    %c64_i32_313 = arith.constant 64 : i32
    %613 = tpu.dynamic_rotate %610 by %c64_i32_313 dim 1 : vector<1x128xf32>, i32 -> vector<1x128xf32>
    %614 = arith.addf %612, %613 : vector<1x128xf32>
    %c96_i32_314 = arith.constant 96 : i32
    %615 = tpu.dynamic_rotate %610 by %c96_i32_314 dim 1 : vector<1x128xf32>, i32 -> vector<1x128xf32>
    %616 = arith.addf %614, %615 : vector<1x128xf32>
    %cst_315 = arith.constant 1.280000e+02 : f32
    %617 = vector.broadcast %cst_315 : f32 to vector<1x128xf32>
    %618 = arith.divf %616, %617 : vector<1x128xf32>
    %cst_316 = arith.constant 9.99999974E-6 : f32
    %619 = vector.broadcast %cst_316 : f32 to vector<1x128xf32>
    %620 = arith.addf %618, %619 : vector<1x128xf32>
    %621 = math.rsqrt %620 : vector<1x128xf32>
    %c0_317 = arith.constant 0 : index
    %c0_318 = arith.constant 0 : index
    %622 = vector.load %arg6[%c0_317, %c0_318] : memref<2x128xf32, #tpu.memory_space<vmem>>, vector<1x128xf32>
    %623 = arith.mulf %621, %622 : vector<1x128xf32>
    %624 = vector.broadcast %623 : vector<1x128xf32> to vector<32x128xf32>
    %625 = arith.mulf %607, %624 : vector<32x128xf32>
    %c1_319 = arith.constant 1 : index
    %c0_320 = arith.constant 0 : index
    %626 = vector.load %arg6[%c1_319, %c0_320] : memref<2x128xf32, #tpu.memory_space<vmem>>, vector<1x128xf32>
    %627 = vector.broadcast %626 : vector<1x128xf32> to vector<32x128xf32>
    %628 = arith.addf %625, %627 : vector<32x128xf32>
    %cst_321 = arith.constant 0.000000e+00 : f32
    %629 = vector.broadcast %cst_321 : f32 to vector<32x128xf32>
    %630 = arith.maximumf %628, %629 : vector<32x128xf32>
    %c0_322 = arith.constant 0 : index
    %c0_323 = arith.constant 0 : index
    %631 = vector.load %arg7[%c0_322, %c0_323] : memref<128x128xf32, #tpu.memory_space<vmem>>, vector<128x32xf32>
    %632 = vector.extract_strided_slice %630 {offsets = [0, 0], sizes = [32, 16], strides = [1, 1]} : vector<32x128xf32> to vector<32x16xf32>
    %cst_324 = arith.constant dense<0.000000e+00> : vector<128x16xf32>
    %633 = tpu.matmul %631, %632, %cst_324 {dimension_numbers = #tpu.dot_dimension_numbers<[1], [0], [0], [1], [0, 0, 1, 1], [], []>} : vector<128x32xf32>, vector<32x16xf32>, vector<128x16xf32> -> vector<128x16xf32>
    %c0_325 = arith.constant 0 : index
    %c32_326 = arith.constant 32 : index
    %634 = vector.load %arg7[%c0_325, %c32_326] : memref<128x128xf32, #tpu.memory_space<vmem>>, vector<128x32xf32>
    %635 = vector.extract_strided_slice %630 {offsets = [0, 32], sizes = [32, 16], strides = [1, 1]} : vector<32x128xf32> to vector<32x16xf32>
    %cst_327 = arith.constant dense<0.000000e+00> : vector<128x16xf32>
    %636 = tpu.matmul %634, %635, %cst_327 {dimension_numbers = #tpu.dot_dimension_numbers<[1], [0], [0], [1], [0, 0, 1, 1], [], []>} : vector<128x32xf32>, vector<32x16xf32>, vector<128x16xf32> -> vector<128x16xf32>
    %637 = arith.addf %633, %636 : vector<128x16xf32>
    %c0_328 = arith.constant 0 : index
    %c64_329 = arith.constant 64 : index
    %638 = vector.load %arg7[%c0_328, %c64_329] : memref<128x128xf32, #tpu.memory_space<vmem>>, vector<128x32xf32>
    %639 = vector.extract_strided_slice %630 {offsets = [0, 64], sizes = [32, 16], strides = [1, 1]} : vector<32x128xf32> to vector<32x16xf32>
    %cst_330 = arith.constant dense<0.000000e+00> : vector<128x16xf32>
    %640 = tpu.matmul %638, %639, %cst_330 {dimension_numbers = #tpu.dot_dimension_numbers<[1], [0], [0], [1], [0, 0, 1, 1], [], []>} : vector<128x32xf32>, vector<32x16xf32>, vector<128x16xf32> -> vector<128x16xf32>
    %641 = arith.addf %637, %640 : vector<128x16xf32>
    %c0_331 = arith.constant 0 : index
    %c96_332 = arith.constant 96 : index
    %642 = vector.load %arg7[%c0_331, %c96_332] : memref<128x128xf32, #tpu.memory_space<vmem>>, vector<128x32xf32>
    %643 = vector.extract_strided_slice %630 {offsets = [0, 96], sizes = [32, 16], strides = [1, 1]} : vector<32x128xf32> to vector<32x16xf32>
    %cst_333 = arith.constant dense<0.000000e+00> : vector<128x16xf32>
    %644 = tpu.matmul %642, %643, %cst_333 {dimension_numbers = #tpu.dot_dimension_numbers<[1], [0], [0], [1], [0, 0, 1, 1], [], []>} : vector<128x32xf32>, vector<32x16xf32>, vector<128x16xf32> -> vector<128x16xf32>
    %645 = arith.addf %641, %644 : vector<128x16xf32>
    %c16_334 = arith.constant 16 : index
    %c0_335 = arith.constant 0 : index
    %646 = vector.load %arg11[%c16_334, %c0_335] : memref<160x16xf32, #tpu.memory_space<vmem>>, vector<128x16xf32>
    tpu.vector_store %arg11[%c16_334, %c0_335], %645 {strides = array<i32>} : memref<160x16xf32, #tpu.memory_space<vmem>>, vector<128x16xf32>,
    %647 = tpu.iota {dimensions = array<i32: 0>} : vector<128x16xi32>
    %c7_i32 = arith.constant 7 : i32
    %648 = vector.broadcast %c7_i32 : i32 to vector<128x16xi32>
    %649 = arith.andi %647, %648 : vector<128x16xi32>
    %c3_i32_336 = arith.constant 3 : i32
    %650 = vector.broadcast %c3_i32_336 : i32 to vector<128x16xi32>
    %651 = arith.shrsi %647, %650 : vector<128x16xi32>
    %c7_i32_337 = arith.constant 7 : i32
    %652 = vector.broadcast %c7_i32_337 : i32 to vector<128x16xi32>
    %653 = arith.andi %651, %652 : vector<128x16xi32>
    %c7 = arith.constant 7 : index
    %c0_338 = arith.constant 0 : index
    %654 = vector.load %arg11[%c7, %c0_338] : memref<160x16xf32, #tpu.memory_space<vmem>>, vector<128x16xf32>
    %c-1_i32_339 = arith.constant -1 : i32
    %655 = vector.broadcast %c-1_i32_339 : i32 to vector<128x16xi32>
    %656 = arith.addi %653, %655 : vector<128x16xi32>
    %c0_i32_340 = arith.constant 0 : i32
    %657 = vector.broadcast %c0_i32_340 : i32 to vector<128x16xi32>
    %658 = arith.cmpi sge, %656, %657 : vector<128x16xi32>
    %c-1_i32_341 = arith.constant -1 : i32
    %659 = vector.broadcast %c-1_i32_341 : i32 to vector<128x16xi32>
    %660 = arith.addi %653, %659 : vector<128x16xi32>
    %c8_i32 = arith.constant 8 : i32
    %661 = vector.broadcast %c8_i32 : i32 to vector<128x16xi32>
    %662 = arith.cmpi slt, %660, %661 : vector<128x16xi32>
    %663 = arith.andi %658, %662 : vector<128x16xi1>
    %c-1_i32_342 = arith.constant -1 : i32
    %664 = vector.broadcast %c-1_i32_342 : i32 to vector<128x16xi32>
    %665 = arith.addi %649, %664 : vector<128x16xi32>
    %c0_i32_343 = arith.constant 0 : i32
    %666 = vector.broadcast %c0_i32_343 : i32 to vector<128x16xi32>
    %667 = arith.cmpi sge, %665, %666 : vector<128x16xi32>
    %668 = arith.andi %663, %667 : vector<128x16xi1>
    %c-1_i32_344 = arith.constant -1 : i32
    %669 = vector.broadcast %c-1_i32_344 : i32 to vector<128x16xi32>
    %670 = arith.addi %649, %669 : vector<128x16xi32>
    %c8_i32_345 = arith.constant 8 : i32
    %671 = vector.broadcast %c8_i32_345 : i32 to vector<128x16xi32>
    %672 = arith.cmpi slt, %670, %671 : vector<128x16xi32>
    %673 = arith.andi %668, %672 : vector<128x16xi1>
    %cst_346 = arith.constant 0.000000e+00 : f32
    %674 = vector.broadcast %cst_346 : f32 to vector<128x16xf32>
    %675 = arith.select %673, %654, %674 : vector<128x16xi1>, vector<128x16xf32>
    %676 = arith.truncf %675 : vector<128x16xf32> to vector<128x16xbf16>
    %c0_347 = arith.constant 0 : index
    %c0_348 = arith.constant 0 : index
    %677 = vector.load %arg12[%c0_347, %c0_348] : memref<128x144xbf16, #tpu.memory_space<vmem>>, vector<128x16xbf16>
    tpu.vector_store %arg12[%c0_347, %c0_348], %676 {strides = array<i32>} : memref<128x144xbf16, #tpu.memory_space<vmem>>, vector<128x16xbf16>,
    %c8 = arith.constant 8 : index
    %c0_349 = arith.constant 0 : index
    %678 = vector.load %arg11[%c8, %c0_349] : memref<160x16xf32, #tpu.memory_space<vmem>>, vector<128x16xf32>
    %c-1_i32_350 = arith.constant -1 : i32
    %679 = vector.broadcast %c-1_i32_350 : i32 to vector<128x16xi32>
    %680 = arith.addi %653, %679 : vector<128x16xi32>
    %c0_i32_351 = arith.constant 0 : i32
    %681 = vector.broadcast %c0_i32_351 : i32 to vector<128x16xi32>
    %682 = arith.cmpi sge, %680, %681 : vector<128x16xi32>
    %c-1_i32_352 = arith.constant -1 : i32
    %683 = vector.broadcast %c-1_i32_352 : i32 to vector<128x16xi32>
    %684 = arith.addi %653, %683 : vector<128x16xi32>
    %c8_i32_353 = arith.constant 8 : i32
    %685 = vector.broadcast %c8_i32_353 : i32 to vector<128x16xi32>
    %686 = arith.cmpi slt, %684, %685 : vector<128x16xi32>
    %687 = arith.andi %682, %686 : vector<128x16xi1>
    %c0_i32_354 = arith.constant 0 : i32
    %688 = vector.broadcast %c0_i32_354 : i32 to vector<128x16xi32>
    %689 = arith.addi %649, %688 : vector<128x16xi32>
    %c0_i32_355 = arith.constant 0 : i32
    %690 = vector.broadcast %c0_i32_355 : i32 to vector<128x16xi32>
    %691 = arith.cmpi sge, %689, %690 : vector<128x16xi32>
    %692 = arith.andi %687, %691 : vector<128x16xi1>
    %c0_i32_356 = arith.constant 0 : i32
    %693 = vector.broadcast %c0_i32_356 : i32 to vector<128x16xi32>
    %694 = arith.addi %649, %693 : vector<128x16xi32>
    %c8_i32_357 = arith.constant 8 : i32
    %695 = vector.broadcast %c8_i32_357 : i32 to vector<128x16xi32>
    %696 = arith.cmpi slt, %694, %695 : vector<128x16xi32>
    %697 = arith.andi %692, %696 : vector<128x16xi1>
    %cst_358 = arith.constant 0.000000e+00 : f32
    %698 = vector.broadcast %cst_358 : f32 to vector<128x16xf32>
    %699 = arith.select %697, %678, %698 : vector<128x16xi1>, vector<128x16xf32>
    %700 = arith.truncf %699 : vector<128x16xf32> to vector<128x16xbf16>
    %c0_359 = arith.constant 0 : index
    %c16_360 = arith.constant 16 : index
    %701 = vector.load %arg12[%c0_359, %c16_360] : memref<128x144xbf16, #tpu.memory_space<vmem>>, vector<128x16xbf16>
    tpu.vector_store %arg12[%c0_359, %c16_360], %700 {strides = array<i32>} : memref<128x144xbf16, #tpu.memory_space<vmem>>, vector<128x16xbf16>,
    %c9 = arith.constant 9 : index
    %c0_361 = arith.constant 0 : index
    %702 = vector.load %arg11[%c9, %c0_361] : memref<160x16xf32, #tpu.memory_space<vmem>>, vector<128x16xf32>
    %c-1_i32_362 = arith.constant -1 : i32
    %703 = vector.broadcast %c-1_i32_362 : i32 to vector<128x16xi32>
    %704 = arith.addi %653, %703 : vector<128x16xi32>
    %c0_i32_363 = arith.constant 0 : i32
    %705 = vector.broadcast %c0_i32_363 : i32 to vector<128x16xi32>
    %706 = arith.cmpi sge, %704, %705 : vector<128x16xi32>
    %c-1_i32_364 = arith.constant -1 : i32
    %707 = vector.broadcast %c-1_i32_364 : i32 to vector<128x16xi32>
    %708 = arith.addi %653, %707 : vector<128x16xi32>
    %c8_i32_365 = arith.constant 8 : i32
    %709 = vector.broadcast %c8_i32_365 : i32 to vector<128x16xi32>
    %710 = arith.cmpi slt, %708, %709 : vector<128x16xi32>
    %711 = arith.andi %706, %710 : vector<128x16xi1>
    %c1_i32_366 = arith.constant 1 : i32
    %712 = vector.broadcast %c1_i32_366 : i32 to vector<128x16xi32>
    %713 = arith.addi %649, %712 : vector<128x16xi32>
    %c0_i32_367 = arith.constant 0 : i32
    %714 = vector.broadcast %c0_i32_367 : i32 to vector<128x16xi32>
    %715 = arith.cmpi sge, %713, %714 : vector<128x16xi32>
    %716 = arith.andi %711, %715 : vector<128x16xi1>
    %c1_i32_368 = arith.constant 1 : i32
    %717 = vector.broadcast %c1_i32_368 : i32 to vector<128x16xi32>
    %718 = arith.addi %649, %717 : vector<128x16xi32>
    %c8_i32_369 = arith.constant 8 : i32
    %719 = vector.broadcast %c8_i32_369 : i32 to vector<128x16xi32>
    %720 = arith.cmpi slt, %718, %719 : vector<128x16xi32>
    %721 = arith.andi %716, %720 : vector<128x16xi1>
    %cst_370 = arith.constant 0.000000e+00 : f32
    %722 = vector.broadcast %cst_370 : f32 to vector<128x16xf32>
    %723 = arith.select %721, %702, %722 : vector<128x16xi1>, vector<128x16xf32>
    %724 = arith.truncf %723 : vector<128x16xf32> to vector<128x16xbf16>
    %c0_371 = arith.constant 0 : index
    %c32_372 = arith.constant 32 : index
    %725 = vector.load %arg12[%c0_371, %c32_372] : memref<128x144xbf16, #tpu.memory_space<vmem>>, vector<128x16xbf16>
    tpu.vector_store %arg12[%c0_371, %c32_372], %724 {strides = array<i32>} : memref<128x144xbf16, #tpu.memory_space<vmem>>, vector<128x16xbf16>,
    %c15_373 = arith.constant 15 : index
    %c0_374 = arith.constant 0 : index
    %726 = vector.load %arg11[%c15_373, %c0_374] : memref<160x16xf32, #tpu.memory_space<vmem>>, vector<128x16xf32>
    %c0_i32_375 = arith.constant 0 : i32
    %727 = vector.broadcast %c0_i32_375 : i32 to vector<128x16xi32>
    %728 = arith.addi %653, %727 : vector<128x16xi32>
    %c0_i32_376 = arith.constant 0 : i32
    %729 = vector.broadcast %c0_i32_376 : i32 to vector<128x16xi32>
    %730 = arith.cmpi sge, %728, %729 : vector<128x16xi32>
    %c0_i32_377 = arith.constant 0 : i32
    %731 = vector.broadcast %c0_i32_377 : i32 to vector<128x16xi32>
    %732 = arith.addi %653, %731 : vector<128x16xi32>
    %c8_i32_378 = arith.constant 8 : i32
    %733 = vector.broadcast %c8_i32_378 : i32 to vector<128x16xi32>
    %734 = arith.cmpi slt, %732, %733 : vector<128x16xi32>
    %735 = arith.andi %730, %734 : vector<128x16xi1>
    %c-1_i32_379 = arith.constant -1 : i32
    %736 = vector.broadcast %c-1_i32_379 : i32 to vector<128x16xi32>
    %737 = arith.addi %649, %736 : vector<128x16xi32>
    %c0_i32_380 = arith.constant 0 : i32
    %738 = vector.broadcast %c0_i32_380 : i32 to vector<128x16xi32>
    %739 = arith.cmpi sge, %737, %738 : vector<128x16xi32>
    %740 = arith.andi %735, %739 : vector<128x16xi1>
    %c-1_i32_381 = arith.constant -1 : i32
    %741 = vector.broadcast %c-1_i32_381 : i32 to vector<128x16xi32>
    %742 = arith.addi %649, %741 : vector<128x16xi32>
    %c8_i32_382 = arith.constant 8 : i32
    %743 = vector.broadcast %c8_i32_382 : i32 to vector<128x16xi32>
    %744 = arith.cmpi slt, %742, %743 : vector<128x16xi32>
    %745 = arith.andi %740, %744 : vector<128x16xi1>
    %cst_383 = arith.constant 0.000000e+00 : f32
    %746 = vector.broadcast %cst_383 : f32 to vector<128x16xf32>
    %747 = arith.select %745, %726, %746 : vector<128x16xi1>, vector<128x16xf32>
    %748 = arith.truncf %747 : vector<128x16xf32> to vector<128x16xbf16>
    %c0_384 = arith.constant 0 : index
    %c48_385 = arith.constant 48 : index
    %749 = vector.load %arg12[%c0_384, %c48_385] : memref<128x144xbf16, #tpu.memory_space<vmem>>, vector<128x16xbf16>
    tpu.vector_store %arg12[%c0_384, %c48_385], %748 {strides = array<i32>} : memref<128x144xbf16, #tpu.memory_space<vmem>>, vector<128x16xbf16>,
    %c16_386 = arith.constant 16 : index
    %c0_387 = arith.constant 0 : index
    %750 = vector.load %arg11[%c16_386, %c0_387] : memref<160x16xf32, #tpu.memory_space<vmem>>, vector<128x16xf32>
    %c0_i32_388 = arith.constant 0 : i32
    %751 = vector.broadcast %c0_i32_388 : i32 to vector<128x16xi32>
    %752 = arith.addi %653, %751 : vector<128x16xi32>
    %c0_i32_389 = arith.constant 0 : i32
    %753 = vector.broadcast %c0_i32_389 : i32 to vector<128x16xi32>
    %754 = arith.cmpi sge, %752, %753 : vector<128x16xi32>
    %c0_i32_390 = arith.constant 0 : i32
    %755 = vector.broadcast %c0_i32_390 : i32 to vector<128x16xi32>
    %756 = arith.addi %653, %755 : vector<128x16xi32>
    %c8_i32_391 = arith.constant 8 : i32
    %757 = vector.broadcast %c8_i32_391 : i32 to vector<128x16xi32>
    %758 = arith.cmpi slt, %756, %757 : vector<128x16xi32>
    %759 = arith.andi %754, %758 : vector<128x16xi1>
    %c0_i32_392 = arith.constant 0 : i32
    %760 = vector.broadcast %c0_i32_392 : i32 to vector<128x16xi32>
    %761 = arith.addi %649, %760 : vector<128x16xi32>
    %c0_i32_393 = arith.constant 0 : i32
    %762 = vector.broadcast %c0_i32_393 : i32 to vector<128x16xi32>
    %763 = arith.cmpi sge, %761, %762 : vector<128x16xi32>
    %764 = arith.andi %759, %763 : vector<128x16xi1>
    %c0_i32_394 = arith.constant 0 : i32
    %765 = vector.broadcast %c0_i32_394 : i32 to vector<128x16xi32>
    %766 = arith.addi %649, %765 : vector<128x16xi32>
    %c8_i32_395 = arith.constant 8 : i32
    %767 = vector.broadcast %c8_i32_395 : i32 to vector<128x16xi32>
    %768 = arith.cmpi slt, %766, %767 : vector<128x16xi32>
    %769 = arith.andi %764, %768 : vector<128x16xi1>
    %cst_396 = arith.constant 0.000000e+00 : f32
    %770 = vector.broadcast %cst_396 : f32 to vector<128x16xf32>
    %771 = arith.select %769, %750, %770 : vector<128x16xi1>, vector<128x16xf32>
    %772 = arith.truncf %771 : vector<128x16xf32> to vector<128x16xbf16>
    %c0_397 = arith.constant 0 : index
    %c64_398 = arith.constant 64 : index
    %773 = vector.load %arg12[%c0_397, %c64_398] : memref<128x144xbf16, #tpu.memory_space<vmem>>, vector<128x16xbf16>
    tpu.vector_store %arg12[%c0_397, %c64_398], %772 {strides = array<i32>} : memref<128x144xbf16, #tpu.memory_space<vmem>>, vector<128x16xbf16>,
    %c17_399 = arith.constant 17 : index
    %c0_400 = arith.constant 0 : index
    %774 = vector.load %arg11[%c17_399, %c0_400] : memref<160x16xf32, #tpu.memory_space<vmem>>, vector<128x16xf32>
    %c0_i32_401 = arith.constant 0 : i32
    %775 = vector.broadcast %c0_i32_401 : i32 to vector<128x16xi32>
    %776 = arith.addi %653, %775 : vector<128x16xi32>
    %c0_i32_402 = arith.constant 0 : i32
    %777 = vector.broadcast %c0_i32_402 : i32 to vector<128x16xi32>
    %778 = arith.cmpi sge, %776, %777 : vector<128x16xi32>
    %c0_i32_403 = arith.constant 0 : i32
    %779 = vector.broadcast %c0_i32_403 : i32 to vector<128x16xi32>
    %780 = arith.addi %653, %779 : vector<128x16xi32>
    %c8_i32_404 = arith.constant 8 : i32
    %781 = vector.broadcast %c8_i32_404 : i32 to vector<128x16xi32>
    %782 = arith.cmpi slt, %780, %781 : vector<128x16xi32>
    %783 = arith.andi %778, %782 : vector<128x16xi1>
    %c1_i32_405 = arith.constant 1 : i32
    %784 = vector.broadcast %c1_i32_405 : i32 to vector<128x16xi32>
    %785 = arith.addi %649, %784 : vector<128x16xi32>
    %c0_i32_406 = arith.constant 0 : i32
    %786 = vector.broadcast %c0_i32_406 : i32 to vector<128x16xi32>
    %787 = arith.cmpi sge, %785, %786 : vector<128x16xi32>
    %788 = arith.andi %783, %787 : vector<128x16xi1>
    %c1_i32_407 = arith.constant 1 : i32
    %789 = vector.broadcast %c1_i32_407 : i32 to vector<128x16xi32>
    %790 = arith.addi %649, %789 : vector<128x16xi32>
    %c8_i32_408 = arith.constant 8 : i32
    %791 = vector.broadcast %c8_i32_408 : i32 to vector<128x16xi32>
    %792 = arith.cmpi slt, %790, %791 : vector<128x16xi32>
    %793 = arith.andi %788, %792 : vector<128x16xi1>
    %cst_409 = arith.constant 0.000000e+00 : f32
    %794 = vector.broadcast %cst_409 : f32 to vector<128x16xf32>
    %795 = arith.select %793, %774, %794 : vector<128x16xi1>, vector<128x16xf32>
    %796 = arith.truncf %795 : vector<128x16xf32> to vector<128x16xbf16>
    %c0_410 = arith.constant 0 : index
    %c80_411 = arith.constant 80 : index
    %797 = vector.load %arg12[%c0_410, %c80_411] : memref<128x144xbf16, #tpu.memory_space<vmem>>, vector<128x16xbf16>
    tpu.vector_store %arg12[%c0_410, %c80_411], %796 {strides = array<i32>} : memref<128x144xbf16, #tpu.memory_space<vmem>>, vector<128x16xbf16>,
    %c23_412 = arith.constant 23 : index
    %c0_413 = arith.constant 0 : index
    %798 = vector.load %arg11[%c23_412, %c0_413] : memref<160x16xf32, #tpu.memory_space<vmem>>, vector<128x16xf32>
    %c1_i32_414 = arith.constant 1 : i32
    %799 = vector.broadcast %c1_i32_414 : i32 to vector<128x16xi32>
    %800 = arith.addi %653, %799 : vector<128x16xi32>
    %c0_i32_415 = arith.constant 0 : i32
    %801 = vector.broadcast %c0_i32_415 : i32 to vector<128x16xi32>
    %802 = arith.cmpi sge, %800, %801 : vector<128x16xi32>
    %c1_i32_416 = arith.constant 1 : i32
    %803 = vector.broadcast %c1_i32_416 : i32 to vector<128x16xi32>
    %804 = arith.addi %653, %803 : vector<128x16xi32>
    %c8_i32_417 = arith.constant 8 : i32
    %805 = vector.broadcast %c8_i32_417 : i32 to vector<128x16xi32>
    %806 = arith.cmpi slt, %804, %805 : vector<128x16xi32>
    %807 = arith.andi %802, %806 : vector<128x16xi1>
    %c-1_i32_418 = arith.constant -1 : i32
    %808 = vector.broadcast %c-1_i32_418 : i32 to vector<128x16xi32>
    %809 = arith.addi %649, %808 : vector<128x16xi32>
    %c0_i32_419 = arith.constant 0 : i32
    %810 = vector.broadcast %c0_i32_419 : i32 to vector<128x16xi32>
    %811 = arith.cmpi sge, %809, %810 : vector<128x16xi32>
    %812 = arith.andi %807, %811 : vector<128x16xi1>
    %c-1_i32_420 = arith.constant -1 : i32
    %813 = vector.broadcast %c-1_i32_420 : i32 to vector<128x16xi32>
    %814 = arith.addi %649, %813 : vector<128x16xi32>
    %c8_i32_421 = arith.constant 8 : i32
    %815 = vector.broadcast %c8_i32_421 : i32 to vector<128x16xi32>
    %816 = arith.cmpi slt, %814, %815 : vector<128x16xi32>
    %817 = arith.andi %812, %816 : vector<128x16xi1>
    %cst_422 = arith.constant 0.000000e+00 : f32
    %818 = vector.broadcast %cst_422 : f32 to vector<128x16xf32>
    %819 = arith.select %817, %798, %818 : vector<128x16xi1>, vector<128x16xf32>
    %820 = arith.truncf %819 : vector<128x16xf32> to vector<128x16xbf16>
    %c0_423 = arith.constant 0 : index
    %c96_424 = arith.constant 96 : index
    %821 = vector.load %arg12[%c0_423, %c96_424] : memref<128x144xbf16, #tpu.memory_space<vmem>>, vector<128x16xbf16>
    tpu.vector_store %arg12[%c0_423, %c96_424], %820 {strides = array<i32>} : memref<128x144xbf16, #tpu.memory_space<vmem>>, vector<128x16xbf16>,
    %c24_425 = arith.constant 24 : index
    %c0_426 = arith.constant 0 : index
    %822 = vector.load %arg11[%c24_425, %c0_426] : memref<160x16xf32, #tpu.memory_space<vmem>>, vector<128x16xf32>
    %c1_i32_427 = arith.constant 1 : i32
    %823 = vector.broadcast %c1_i32_427 : i32 to vector<128x16xi32>
    %824 = arith.addi %653, %823 : vector<128x16xi32>
    %c0_i32_428 = arith.constant 0 : i32
    %825 = vector.broadcast %c0_i32_428 : i32 to vector<128x16xi32>
    %826 = arith.cmpi sge, %824, %825 : vector<128x16xi32>
    %c1_i32_429 = arith.constant 1 : i32
    %827 = vector.broadcast %c1_i32_429 : i32 to vector<128x16xi32>
    %828 = arith.addi %653, %827 : vector<128x16xi32>
    %c8_i32_430 = arith.constant 8 : i32
    %829 = vector.broadcast %c8_i32_430 : i32 to vector<128x16xi32>
    %830 = arith.cmpi slt, %828, %829 : vector<128x16xi32>
    %831 = arith.andi %826, %830 : vector<128x16xi1>
    %c0_i32_431 = arith.constant 0 : i32
    %832 = vector.broadcast %c0_i32_431 : i32 to vector<128x16xi32>
    %833 = arith.addi %649, %832 : vector<128x16xi32>
    %c0_i32_432 = arith.constant 0 : i32
    %834 = vector.broadcast %c0_i32_432 : i32 to vector<128x16xi32>
    %835 = arith.cmpi sge, %833, %834 : vector<128x16xi32>
    %836 = arith.andi %831, %835 : vector<128x16xi1>
    %c0_i32_433 = arith.constant 0 : i32
    %837 = vector.broadcast %c0_i32_433 : i32 to vector<128x16xi32>
    %838 = arith.addi %649, %837 : vector<128x16xi32>
    %c8_i32_434 = arith.constant 8 : i32
    %839 = vector.broadcast %c8_i32_434 : i32 to vector<128x16xi32>
    %840 = arith.cmpi slt, %838, %839 : vector<128x16xi32>
    %841 = arith.andi %836, %840 : vector<128x16xi1>
    %cst_435 = arith.constant 0.000000e+00 : f32
    %842 = vector.broadcast %cst_435 : f32 to vector<128x16xf32>
    %843 = arith.select %841, %822, %842 : vector<128x16xi1>, vector<128x16xf32>
    %844 = arith.truncf %843 : vector<128x16xf32> to vector<128x16xbf16>
    %c0_436 = arith.constant 0 : index
    %c112_437 = arith.constant 112 : index
    %845 = vector.load %arg12[%c0_436, %c112_437] : memref<128x144xbf16, #tpu.memory_space<vmem>>, vector<128x16xbf16>
    tpu.vector_store %arg12[%c0_436, %c112_437], %844 {strides = array<i32>} : memref<128x144xbf16, #tpu.memory_space<vmem>>, vector<128x16xbf16>,
    %c25_438 = arith.constant 25 : index
    %c0_439 = arith.constant 0 : index
    %846 = vector.load %arg11[%c25_438, %c0_439] : memref<160x16xf32, #tpu.memory_space<vmem>>, vector<128x16xf32>
    %c1_i32_440 = arith.constant 1 : i32
    %847 = vector.broadcast %c1_i32_440 : i32 to vector<128x16xi32>
    %848 = arith.addi %653, %847 : vector<128x16xi32>
    %c0_i32_441 = arith.constant 0 : i32
    %849 = vector.broadcast %c0_i32_441 : i32 to vector<128x16xi32>
    %850 = arith.cmpi sge, %848, %849 : vector<128x16xi32>
    %c1_i32_442 = arith.constant 1 : i32
    %851 = vector.broadcast %c1_i32_442 : i32 to vector<128x16xi32>
    %852 = arith.addi %653, %851 : vector<128x16xi32>
    %c8_i32_443 = arith.constant 8 : i32
    %853 = vector.broadcast %c8_i32_443 : i32 to vector<128x16xi32>
    %854 = arith.cmpi slt, %852, %853 : vector<128x16xi32>
    %855 = arith.andi %850, %854 : vector<128x16xi1>
    %c1_i32_444 = arith.constant 1 : i32
    %856 = vector.broadcast %c1_i32_444 : i32 to vector<128x16xi32>
    %857 = arith.addi %649, %856 : vector<128x16xi32>
    %c0_i32_445 = arith.constant 0 : i32
    %858 = vector.broadcast %c0_i32_445 : i32 to vector<128x16xi32>
    %859 = arith.cmpi sge, %857, %858 : vector<128x16xi32>
    %860 = arith.andi %855, %859 : vector<128x16xi1>
    %c1_i32_446 = arith.constant 1 : i32
    %861 = vector.broadcast %c1_i32_446 : i32 to vector<128x16xi32>
    %862 = arith.addi %649, %861 : vector<128x16xi32>
    %c8_i32_447 = arith.constant 8 : i32
    %863 = vector.broadcast %c8_i32_447 : i32 to vector<128x16xi32>
    %864 = arith.cmpi slt, %862, %863 : vector<128x16xi32>
    %865 = arith.andi %860, %864 : vector<128x16xi1>
    %cst_448 = arith.constant 0.000000e+00 : f32
    %866 = vector.broadcast %cst_448 : f32 to vector<128x16xf32>
    %867 = arith.select %865, %846, %866 : vector<128x16xi1>, vector<128x16xf32>
    %868 = arith.truncf %867 : vector<128x16xf32> to vector<128x16xbf16>
    %c0_449 = arith.constant 0 : index
    %c128_450 = arith.constant 128 : index
    %869 = vector.load %arg12[%c0_449, %c128_450] : memref<128x144xbf16, #tpu.memory_space<vmem>>, vector<128x16xbf16>
    tpu.vector_store %arg12[%c0_449, %c128_450], %868 {strides = array<i32>} : memref<128x144xbf16, #tpu.memory_space<vmem>>, vector<128x16xbf16>,
    %c0_451 = arith.constant 0 : index
    %c0_452 = arith.constant 0 : index
    %870 = vector.load %arg12[%c0_451, %c0_452] : memref<128x144xbf16, #tpu.memory_space<vmem>>, vector<128x144xbf16>
    %c0_453 = arith.constant 0 : index
    %c0_454 = arith.constant 0 : index
    %871 = vector.load %arg8[%c0_453, %c0_454] : memref<144x128xbf16, #tpu.memory_space<vmem>>, vector<144x128xbf16>
    %cst_455 = arith.constant dense<0.000000e+00> : vector<128x128xf32>
    %872 = tpu.matmul %870, %871, %cst_455 {dimension_numbers = #tpu.dot_dimension_numbers<[1], [0], [0], [1], [0, 0, 1, 1], [], []>} : vector<128x144xbf16>, vector<144x128xbf16>, vector<128x128xf32> -> vector<128x128xf32>
    %cst_456 = arith.constant dense<0.000000e+00> : vector<128xf32>
    %873 = vector.multi_reduction <add>, %872, %cst_456 [0] : vector<128x128xf32> to vector<128xf32>
    %874 = vector.shape_cast %873 : vector<128xf32> to vector<1x128xf32>
    %c32_i32_457 = arith.constant 32 : i32
    %875 = tpu.dynamic_rotate %874 by %c32_i32_457 dim 1 : vector<1x128xf32>, i32 -> vector<1x128xf32>
    %876 = arith.addf %874, %875 : vector<1x128xf32>
    %c64_i32_458 = arith.constant 64 : i32
    %877 = tpu.dynamic_rotate %874 by %c64_i32_458 dim 1 : vector<1x128xf32>, i32 -> vector<1x128xf32>
    %878 = arith.addf %876, %877 : vector<1x128xf32>
    %c96_i32_459 = arith.constant 96 : i32
    %879 = tpu.dynamic_rotate %874 by %c96_i32_459 dim 1 : vector<1x128xf32>, i32 -> vector<1x128xf32>
    %880 = arith.addf %878, %879 : vector<1x128xf32>
    %cst_460 = arith.constant 5.120000e+02 : f32
    %881 = vector.broadcast %cst_460 : f32 to vector<1x128xf32>
    %882 = arith.divf %880, %881 : vector<1x128xf32>
    %883 = vector.broadcast %882 : vector<1x128xf32> to vector<128x128xf32>
    %884 = arith.subf %872, %883 : vector<128x128xf32>
    %885 = arith.mulf %884, %884 : vector<128x128xf32>
    %cst_461 = arith.constant dense<0.000000e+00> : vector<128xf32>
    %886 = vector.multi_reduction <add>, %885, %cst_461 [0] : vector<128x128xf32> to vector<128xf32>
    %887 = vector.shape_cast %886 : vector<128xf32> to vector<1x128xf32>
    %c32_i32_462 = arith.constant 32 : i32
    %888 = tpu.dynamic_rotate %887 by %c32_i32_462 dim 1 : vector<1x128xf32>, i32 -> vector<1x128xf32>
    %889 = arith.addf %887, %888 : vector<1x128xf32>
    %c64_i32_463 = arith.constant 64 : i32
    %890 = tpu.dynamic_rotate %887 by %c64_i32_463 dim 1 : vector<1x128xf32>, i32 -> vector<1x128xf32>
    %891 = arith.addf %889, %890 : vector<1x128xf32>
    %c96_i32_464 = arith.constant 96 : i32
    %892 = tpu.dynamic_rotate %887 by %c96_i32_464 dim 1 : vector<1x128xf32>, i32 -> vector<1x128xf32>
    %893 = arith.addf %891, %892 : vector<1x128xf32>
    %cst_465 = arith.constant 5.120000e+02 : f32
    %894 = vector.broadcast %cst_465 : f32 to vector<1x128xf32>
    %895 = arith.divf %893, %894 : vector<1x128xf32>
    %cst_466 = arith.constant 9.99999974E-6 : f32
    %896 = vector.broadcast %cst_466 : f32 to vector<1x128xf32>
    %897 = arith.addf %895, %896 : vector<1x128xf32>
    %898 = math.rsqrt %897 : vector<1x128xf32>
    %c0_467 = arith.constant 0 : index
    %c0_468 = arith.constant 0 : index
    %899 = vector.load %arg9[%c0_467, %c0_468] : memref<2x128xf32, #tpu.memory_space<vmem>>, vector<1x128xf32>
    %900 = arith.mulf %898, %899 : vector<1x128xf32>
    %901 = vector.broadcast %900 : vector<1x128xf32> to vector<128x128xf32>
    %902 = arith.mulf %884, %901 : vector<128x128xf32>
    %c1_469 = arith.constant 1 : index
    %c0_470 = arith.constant 0 : index
    %903 = vector.load %arg9[%c1_469, %c0_470] : memref<2x128xf32, #tpu.memory_space<vmem>>, vector<1x128xf32>
    %904 = vector.broadcast %903 : vector<1x128xf32> to vector<128x128xf32>
    %905 = arith.addf %902, %904 : vector<128x128xf32>
    %cst_471 = arith.constant 5.000000e-01 : f32
    %906 = vector.broadcast %cst_471 : f32 to vector<128x128xf32>
    %907 = arith.mulf %906, %905 : vector<128x128xf32>
    %908 = math.tanh %907 : vector<128x128xf32>
    %cst_472 = arith.constant 5.000000e-01 : f32
    %909 = vector.broadcast %cst_472 : f32 to vector<128x128xf32>
    %910 = arith.mulf %909, %908 : vector<128x128xf32>
    %cst_473 = arith.constant 5.000000e-01 : f32
    %911 = vector.broadcast %cst_473 : f32 to vector<128x128xf32>
    %912 = arith.addf %910, %911 : vector<128x128xf32>
    %c0_474 = arith.constant 0 : index
    %c0_475 = arith.constant 0 : index
    %913 = vector.load %arg10[%c0_474, %c0_475] : memref<128x128xf32, #tpu.memory_space<vmem>>, vector<128x128xf32>
    tpu.vector_store %arg10[%c0_474, %c0_475], %912 {strides = array<i32>} : memref<128x128xf32, #tpu.memory_space<vmem>>, vector<128x128xf32>,
    return
  }
}

</mosaic_0001>

<bundles_post_ra>
// kernel: decoder_forward.1
= control target key start
LH: loop header
LB: loop body
LE: loop exit
PB: predicated region body
PF: predicated region fallthrough
CT: control target
= control target key end

     0   :  { %15 = vsyncpa [#allocation5], 0  ;;  %s7680_s0 = inlined_call_operand.vmem [shape: f32[2,32], index: 0, kind: input, shape index: {}]   ;;  %s7681_s1 = inlined_call_operand.hbm [shape: f32[32,64], index: 1, kind: input, shape index: {}]   ;;  %s7682_s2 = inlined_call_operand.vmem [shape: f32[2,64], index: 2, kind: input, shape index: {}]   ;;  %s7683_s3 = inlined_call_operand.hbm [shape: bf16[144,128], index: 3, kind: input, shape index: {}]   ;;  %s7684_s4 = inlined_call_operand.hbm [shape: f32[2,128], index: 4, kind: input, shape index: {}]   ;;  %s7685_s5 = inlined_call_operand.hbm [shape: bf16[144,128], index: 5, kind: input, shape index: {}]   ;;  %s7686_s6 = inlined_call_operand.hbm [shape: f32[2,128], index: 6, kind: input, shape index: {}]   ;;  %s7687_s7 = inlined_call_operand.hbm [shape: f32[128,128], index: 7, kind: input, shape index: {}]   ;;  %s7688_s8 = inlined_call_operand.hbm [shape: bf16[144,128], index: 8, kind: input, shape index: {}]   ;;  %s7689_s9 = inlined_call_operand.vmem [shape: f32[2,128], index: 9, kind: input, shape index: {}]   ;;  %s7690_s10 = inlined_call_operand.vmem [shape: f32[128,128], index: 10, kind: output, shape index: {}]  }
   0x1   :  { %16 = vsyncpa [#allocation7], 0 }
   0x2   :  { %17 = vsyncpa [#allocation10], 0 }
   0x3   :  { %18 = vsyncpa [#allocation13], 0  ;;  %s4509_s13 = smov [#allocation6]   ;;  %s4347_s17 = scalar_lea.hbm %s7683_s3, 1152 }
   0x4   :  { %s40_s14 = sshll.u32 %s4509_s13, 4  ;;  %p4348_p0 = scmp.ne.s32.totalorder %s7683_s3, %s4347_s17  ;;  %s41_s14 = int_to_ptr.vmem [resolvable:$true] %s40_s14 }
   0x5   :  { %p4351_p1 = scmp.lt.u32.totalorder %s4347_s17, %s7683_s3 }
   0x7   :  { %p4353_p2 = pnand %p4351_p1, %p4348_p0 }
   0x9   :  { %4356 = shalt.err (!%p4353_p2)
}
   0xa   :  { %s4357_s22 = scalar_lea.vmem %s41_s14, 1152  ;;  %p4362_p4 = scmp.lt.s32.totalorder %s41_s14, %s41_s14 }
   0xb   :  { %p4358_p3 = scmp.ne.s32.totalorder %s41_s14, %s4357_s22  ;;  %p4363_p5 = scmp.lt.s32.totalorder %s4357_s22, %s4357_s22 }
   0xd   :  { %p4364_p6 = por %p4363_p5, %p4362_p4 }
   0xf   :  { %p4365_p7 = pnand %p4364_p6, %p4358_p3 }
  0x11   :  { %4368 = shalt.err (!%p4365_p7)
}
  0x12   :  { %s4510_s23 = smov 64   ;;  %s4511_s24 = smov 4  }
  0x13   :  { %46 = dma.hbm_to_vmem [thread:$0]  %s7683_s3, 1152, %s41_s14, [#allocation7], %s4510_s23, %s4510_s23, %s4511_s24  }
  0x14   :  { %s4512_s27 = smov [#allocation9]   ;;  %s4369_s11 = scalar_lea.hbm %s7685_s5, 1152 }
  0x15   :  { %s62_s28 = sshll.u32 %s4512_s27, 4  ;;  %p4370_p8 = scmp.ne.s32.totalorder %s7685_s5, %s4369_s11  ;;  %s63_s28 = int_to_ptr.vmem [resolvable:$true] %s62_s28 }
  0x16   :  { %p4373_p9 = scmp.lt.u32.totalorder %s4369_s11, %s7685_s5 }
  0x18   :  { %p4375_p10 = pnand %p4373_p9, %p4370_p8 }
  0x1a   :  { %4378 = shalt.err (!%p4375_p10)
}
  0x1b   :  { %s4379_s17 = scalar_lea.vmem %s63_s28, 1152  ;;  %p4384_p12 = scmp.lt.s32.totalorder %s63_s28, %s63_s28 }
  0x1c   :  { %p4380_p11 = scmp.ne.s32.totalorder %s63_s28, %s4379_s17  ;;  %p4385_p13 = scmp.lt.s32.totalorder %s4379_s17, %s4379_s17 }
  0x1e   :  { %p4386_p0 = por %p4385_p13, %p4384_p12 }
  0x20   :  { %p4387_p1 = pnand %p4386_p0, %p4380_p11 }
  0x22   :  { %4390 = shalt.err (!%p4387_p1)
}
  0x23   :  { %68 = dma.hbm_to_vmem [thread:$0]  %s7685_s5, 1152, %s63_s28, [#allocation10], %s4510_s23, %s4510_s23, %s4511_s24  }
  0x24   :  { %s4513_s18 = smov [#allocation12]   ;;  %s4514_s20 = smov [#allocation4]  }
  0x25   :  { %s84_s19 = sshll.u32 %s4513_s18, 4  ;;  %s26_s21 = sshll.u32 %s4514_s20, 4  ;;  %s85_s19 = int_to_ptr.vmem [resolvable:$true] %s84_s19  ;;  %s4615_s21 = int_to_ptr.vmem [resolvable:$true] %s26_s21 }
  0x26   :  { %s4391_s26 = scalar_lea.hbm %s7687_s7, 2048 }
  0x27   :  { %p4392_p2 = scmp.ne.s32.totalorder %s7687_s7, %s4391_s26  ;;  %p4395_p3 = scmp.lt.u32.totalorder %s4391_s26, %s7687_s7 }
  0x29   :  { %p4397_p4 = pnand %p4395_p3, %p4392_p2 }
  0x2b   :  { %4400 = shalt.err (!%p4397_p4)
}
  0x2c   :  { %s4401_s5 = scalar_lea.vmem %s85_s19, 2048  ;;  %p4406_p6 = scmp.lt.s32.totalorder %s85_s19, %s85_s19 }
  0x2d   :  { %p4402_p5 = scmp.ne.s32.totalorder %s85_s19, %s4401_s5  ;;  %p4407_p7 = scmp.lt.s32.totalorder %s4401_s5, %s4401_s5 }
  0x2f   :  { %p4408_p8 = por %p4407_p7, %p4406_p6 }
  0x31   :  { %p4409_p9 = pnand %p4408_p8, %p4402_p5 }
  0x33   :  { %4412 = shalt.err (!%p4409_p9)
}
  0x34   :  { %s4515_s28 = smov 128   ;;  %s4516_s12 = smov 8  }
  0x35   :  { %90 = dma.hbm_to_vmem [thread:$0]  %s7687_s7, 2048, %s85_s19, [#allocation13], %s4515_s28, %s4515_s28, %s4516_s12  }
  0x36   :  { %s4413_s3 = scalar_lea.hbm %s7681_s1, 512 }
  0x37   :  { %p4414_p10 = scmp.ne.s32.totalorder %s7681_s1, %s4413_s3  ;;  %p4417_p11 = scmp.lt.u32.totalorder %s4413_s3, %s7681_s1 }
  0x39   :  { %p4419_p12 = pnand %p4417_p11, %p4414_p10 }
  0x3b   :  { %4422 = shalt.err (!%p4419_p12)
}
  0x3c   :  { %s4423_s25 = scalar_lea.vmem %s4615_s21, 512  ;;  %p4428_p0 = scmp.lt.s32.totalorder %s4615_s21, %s4615_s21 }
  0x3d   :  { %p4424_p13 = scmp.ne.s32.totalorder %s4615_s21, %s4423_s25  ;;  %p4429_p1 = scmp.lt.s32.totalorder %s4423_s25, %s4423_s25 }
  0x3f   :  { %p4430_p2 = por %p4429_p1, %p4428_p0 }
  0x41   :  { %p4431_p3 = pnand %p4430_p2, %p4424_p13 }
  0x43   :  { %4434 = shalt.err (!%p4431_p3)
}
  0x44   :  { %32 = dma.hbm_to_vmem [thread:$0]  %s7681_s1, 512, %s4615_s21, [#allocation5], %s4515_s28, %s4515_s28, %s4516_s12  }
  0x45   :  { %s4517_s26 = smov [#allocation8]   ;;  %s4518_s29 = smov [#allocation11]  }
  0x46   :  { %s53_s27 = sshll.u32 %s4517_s26, 4  ;;  %s75_s30 = sshll.u32 %s4518_s29, 4  ;;  %s54_s27 = int_to_ptr.vmem [resolvable:$true] %s53_s27  ;;  %s76_s30 = int_to_ptr.vmem [resolvable:$true] %s75_s30 }
  0x47   :  { %s4435_s13 = scalar_lea.hbm %s7684_s4, 32 }
  0x48   :  { %p4436_p4 = scmp.ne.s32.totalorder %s7684_s4, %s4435_s13  ;;  %p4439_p5 = scmp.lt.u32.totalorder %s4435_s13, %s7684_s4 }
  0x4a   :  { %p4441_p6 = pnand %p4439_p5, %p4436_p4 }
  0x4c   :  { %4444 = shalt.err (!%p4441_p6)
}
  0x4d   :  { %s4445_s1 = scalar_lea.vmem %s54_s27, 32  ;;  %p4450_p8 = scmp.lt.s32.totalorder %s54_s27, %s54_s27 }
  0x4e   :  { %p4446_p7 = scmp.ne.s32.totalorder %s54_s27, %s4445_s1  ;;  %p4451_p9 = scmp.lt.s32.totalorder %s4445_s1, %s4445_s1 }
  0x50   :  { %p4452_p10 = por %p4451_p9, %p4450_p8 }
  0x52   :  { %p4453_p11 = pnand %p4452_p10, %p4446_p7 }
  0x54   :  { %4456 = shalt.err (!%p4453_p11)
}
  0x55   :  { %56 = dma.hbm_to_vmem [thread:$0]  %s7684_s4, 32, %s54_s27, [#allocation7]  }
  0x56   :  { %s4457_s18 = scalar_lea.hbm %s7686_s6, 32 }
  0x57   :  { %p4458_p12 = scmp.ne.s32.totalorder %s7686_s6, %s4457_s18  ;;  %p4461_p13 = scmp.lt.u32.totalorder %s4457_s18, %s7686_s6 }
  0x59   :  { %p4463_p0 = pnand %p4461_p13, %p4458_p12 }
  0x5b   :  { %4466 = shalt.err (!%p4463_p0)
}
  0x5c   :  { %s4467_s19 = scalar_lea.vmem %s76_s30, 32  ;;  %p4472_p2 = scmp.lt.s32.totalorder %s76_s30, %s76_s30 }
  0x5d   :  { %p4468_p1 = scmp.ne.s32.totalorder %s76_s30, %s4467_s19  ;;  %p4473_p3 = scmp.lt.s32.totalorder %s4467_s19, %s4467_s19 }
  0x5f   :  { %p4474_p4 = por %p4473_p3, %p4472_p2 }
  0x61   :  { %p4475_p5 = pnand %p4474_p4, %p4468_p1 }
  0x63   :  { %4478 = shalt.err (!%p4475_p5)
}
  0x64   :  { %78 = dma.hbm_to_vmem [thread:$0]  %s7686_s6, 32, %s76_s30, [#allocation10]  }
  0x65   :  { %s4519_s27 = smov [#allocation14]   ;;  %s4479_s13 = scalar_lea.hbm %s7688_s8, 1152 }
  0x66   :  { %s96_s29 = sshll.u32 %s4519_s27, 4  ;;  %p4480_p6 = scmp.ne.s32.totalorder %s7688_s8, %s4479_s13  ;;  %s97_s29 = int_to_ptr.vmem [resolvable:$true] %s96_s29 }
  0x67   :  { %p4483_p7 = scmp.lt.u32.totalorder %s4479_s13, %s7688_s8 }
  0x69   :  { %p4485_p8 = pnand %p4483_p7, %p4480_p6 }
  0x6b   :  { %4488 = shalt.err (!%p4485_p8)
}
  0x6c   :  { %s4489_s1 = scalar_lea.vmem %s97_s29, 1152  ;;  %p4494_p10 = scmp.lt.s32.totalorder %s97_s29, %s97_s29 }
  0x6d   :  { %p4490_p9 = scmp.ne.s32.totalorder %s97_s29, %s4489_s1  ;;  %p4495_p11 = scmp.lt.s32.totalorder %s4489_s1, %s4489_s1 }
  0x6f   :  { %p4496_p12 = por %p4495_p11, %p4494_p10 }
  0x71   :  { %p4497_p13 = pnand %p4496_p12, %p4490_p9 }
  0x73   :  { %4500 = shalt.err (!%p4497_p13)
}
  0x74   :  { %102 = dma.hbm_to_vmem [thread:$0]  %s7688_s8, 1152, %s97_s29, [#allocation13], %s4510_s23, %s4510_s23, %s4511_s24  }
  0x75   :  { %4501 = dma.done.wait [#allocation5], 512  }
  0x76   :  { %4502 = vsyncadd [#allocation5], 4294966784 }
  0x77   :  { %4503 = dma.done.wait [#allocation7], 1184  }
  0x78   :  { %4504 = vsyncadd [#allocation7], 4294966112 }
  0x79   :  { %4505 = dma.done.wait [#allocation10], 1184  }
  0x7a   :  { %4506 = vsyncadd [#allocation10], 4294966112 }
  0x7b   :  { %4507 = dma.done.wait [#allocation13], 3200  }
  0x7c   :  { %4508 = vsyncadd [#allocation13], 4294964096  ;;  %v4520_v0 = vmov 0.0|0.0   ;;  %vm4521_vm0 = vmmov 0   ;;  %v4522_v1 = vmov 0.0   ;;  %v128_v2 = vld [vmem:[#allocation4] sm:$0xff]  ;;  %v262_v42 = vlaneseq }
  0x7d   :  { %4143 = vmatprep.subr.bf16.mxu1 %v4520_v0  ;;  %4012 = vmatprep.mubr.msk.f32.mxu1 %vm4521_vm0, %v4522_v1  ;;  %v129_v3 = vld [vmem:[#allocation4 + $0x8] sm:$0xff]  ;;  %v130_v4 = vld [vmem:[#allocation4 + $0x10] sm:$0xff]  ;;  %v131_v6 = vld [vmem:[#allocation4 + $0x18] sm:$0xff]  ;;  %vm7691_vm1 = vcmask 261120   ;;  %vm206_vm2 = vcmask 517120   ;;  %vm7693_vm3 = vcmask 122880  }
  0x7e   :  { %v4144_v5 = vpack.c.bf16 %v129_v3, %v128_v2  ;;  %v4147_v7 = vpack.c.bf16 %v131_v6, %v130_v4  ;;  %v127_v8 = vld [vmem:[%s7680_s0] sm:$0x3]  ;;  %vm7700_vm4 = vcmask 123905   ;;  %s4523_s14 = smov 80   ;;  %s4524_s18 = smov 112   ;;  %v7718_v38 = vmov 0  }
  0x7f   :  { %v3812_v31 = vld [vmem:[%s7682_s2] ss:$0 sm:$0xff]  ;;  %v3813_v33 = vld [vmem:[%s7682_s2 + $0x1] ss:$0 sm:$0xff]  ;;  %s4525_s20 = smov 96   ;;  %1013 = vmatprep.subr.bf16.mxu0 %v7718_v38  ;;  %v4281_v39 = vld [vmem:[#allocation6 + $0x8] sm:$0xff]  }
  0x80   :  { %4145 = vmatpush3.bf16.msra.mxu1 %v4144_v5  ;;  %v4280_v37 = vld [vmem:[#allocation6] sm:$0xff]   ;;  %v4282_v40 = vld [vmem:[#allocation6 + $0x10] sm:$0xff]   ;;  %v4283_v41 = vld [vmem:[#allocation6 + $0x18] sm:$0xff]   ;;  %v4706_v43 = vshrl.u32 %v262_v42, 7  ;;  %s4527_s2 = smov 32   ;;  %s4528_s22 = smov 16  }
  0x81   :  { %4146 = vmatprep.subr.bf16.mxu1 %v4520_v0  ;;  %v4284_v53 = vld [vmem:[#allocation6 + $0x20] sm:$0xff]   ;;  %v4285_v57 = vld [vmem:[#allocation6 + $0x28] sm:$0xff]   ;;  %s4529_s25 = smov 48  }
  0x82   :  { %v265_v44 = vshra.s32 %v4706_v43, 1  ;;  %v264_v46 = vand.u32 1, %v4706_v43 }
  0x84   :  { %4148 = vmatpush3.bf16.msra.mxu1 %v4147_v7  ;;  %v266_v45 = vand.u32 1, %v265_v44  ;;  %v295_v51 = vadd.s32 1, %v264_v46  ;;  %v272_v52 = vadd.s32 4294967295, %v264_v46  ;;  %v4286_v7 = vld [vmem:[#allocation6 + $0x30] sm:$0xff]  }
  0x85   :  { %454 = vmatprep.subr.bf16.mxu1 %v7718_v38 }
  0x86   :  { %v268_v47 = vadd.s32 4294967295, %v266_v45  ;;  %v345_v48 = vadd.s32 1, %v266_v45  ;;  %vm298_vm10 = vcmp.lt.s32.totalorder %v295_v51, 2  ;;  %vm309_vm11 = vcmp.ge.s32.totalorder %v266_v45, 0 }
  0x87   :  { %4013 = vmatmul.mubr.msk.f32.vlgmr.msra.gmra.mrb[0].mxu1 %vm7691_vm1, %v127_v8  ;;  %vm310_vm12 = vcmp.lt.s32.totalorder %v266_v45, 2  ;;  %vm273_vm15 = vcmp.ge.s32.totalorder %v272_v52, 0 }
  0x88   :  { %455 = vmatpush1.bf16.msra.mxu1 %v4280_v37  ;;  %vm269_vm5 = vcmp.ge.s32.totalorder %v268_v47, 0  ;;  %vm270_vm6 = vcmp.lt.s32.totalorder %v268_v47, 2  ;;  %vm346_vm7 = vcmp.ge.s32.totalorder %v345_v48, 0  ;;  %vm347_vm8 = vcmp.lt.s32.totalorder %v345_v48, 2  ;;  %vm4728_vm0 = vmand %vm309_vm11, %vm310_vm12 }
  0x89   :  { %456 = vmatprep.subr.bf16.mxu1 %v7718_v38  ;;  %vm4714_vm9 = vmand %vm269_vm5, %vm270_vm6  ;;  %vm7692_vm11 = vcmask 130048   ;;  %vm306_vm12 = vcmask 388352  }
  0x8a   :  { %vm4720_vm13 = vmand %vm346_vm7, %vm347_vm8  ;;  %vm279_vm7 = vcmask 125952  }
  0x8b   :  { %vm299_vm14 = vmand %vm4714_vm9, %vm298_vm10 }
  0x8c   :  { %457 = vmatpush1.bf16.msra.mxu1 %v4281_v39  ;;  %vm4738_vm5 = vmand %vm4714_vm9, %vm273_vm15 }
  0x8d   :  { %458 = vmatprep.subr.bf16.mxu1 %v7718_v38  ;;  %vm312_vm6 = vmand %vm4728_vm0, %vm273_vm15 }
  0x8e   :  { %vm349_vm8 = vmand %vm4720_vm13, %vm273_vm15  ;;  %vm331_vm15 = vcmask 650752  }
  0x90   :  { %459 = vmatpush1.bf16.msra.mxu1 %v4282_v40 }
  0x91   :  { %460 = vmatprep.subr.bf16.mxu1 %v7718_v38 }
  0x94   :  { %461 = vmatpush1.bf16.msra.mxu1 %v4283_v41 }
  0x95   :  { %462 = vmatprep.subr.bf16.mxu1 %v7718_v38 }
  0x98   :  { %463 = vmatpush1.bf16.msra.mxu1 %v4284_v53 }
  0x99   :  { %464 = vmatprep.subr.bf16.mxu1 %v7718_v38 }
  0x9c   :  { %465 = vmatpush1.bf16.msra.mxu1 %v4285_v57 }
  0x9d   :  { %466 = vmatprep.subr.bf16.mxu1 %v7718_v38 }
  0xa0   :  { %467 = vmatpush1.bf16.msra.mxu1 %v4286_v7 }
  0xa1   :  { %468 = vmatprep.subr.bf16.mxu1 %v7718_v38 }
 0x15a   :  { %v202_v9 = vpop.f32.mrb[0].mxu1 }
 0x15b   :  { %v207_v10 = vsel %vm206_vm2, %v202_v9, 0.0  ;;  %v4014_v11 = vpop.f32.mrb[1].mxu1 }
 0x15c   :  { %v208_v12 = vrot.slane %v207_v10, 4 }
 0x15e   :  { %v209_v13 = vadd.f32 %v208_v12, %v207_v10 }
 0x160   :  { %v210_v14 = vrot.slane %v209_v13, 2 }
 0x162   :  { %v211_v15 = vadd.f32 %v210_v14, %v209_v13  ;;  %v4287_v13 = vld [vmem:[#allocation6 + $0x38] sm:$0xff]  }
 0x163   :  { %469 = vmatpush1.bf16.msra.mxu1 %v4287_v13 }
 0x164   :  { %v212_v16 = vrot.slane %v211_v15, 1  ;;  %470 = vmatprep.subr.bf16.mxu1 %v7718_v38 }
 0x166   :  { %v213_v17 = vadd.f32 %v212_v16, %v211_v15 }
 0x168   :  { %v215_v18 = vmul.f32 0.5, %v213_v17 }
 0x16a   :  { %v216_v19 = vsub.f32 %v202_v9, %v215_v18 }
 0x16c   :  { %v217_v20 = vmul.f32 %v216_v19, %v216_v19 }
 0x16e   :  { %v218_v21 = vsel %vm206_vm2, %v217_v20, 0.0  ;;  %vm372_vm2 = vmand %vm4720_vm13, %vm298_vm10 }
 0x16f   :  { %v219_v22 = vrot.slane %v218_v21, 4 }
 0x171   :  { %v220_v23 = vadd.f32 %v219_v22, %v218_v21 }
 0x173   :  { %v221_v24 = vrot.slane %v220_v23, 2 }
 0x175   :  { %v222_v25 = vadd.f32 %v221_v24, %v220_v23 }
 0x177   :  { %v223_v26 = vrot.slane %v222_v25, 1 }
 0x179   :  { %v224_v27 = vadd.f32 %v223_v26, %v222_v25 }
 0x17b   :  { %v225_v28 = vmul.f32 0.5, %v224_v27 }
 0x17d   :  { %v226_v29 = vadd.f32 1e-05, %v225_v28 }
 0x17f   :  { %4307 = vrsqrt.f32 %v226_v29 }
 0x189   :  { %v4308_v30 = vpop.eup %4307 }
 0x18a   :  { %v228_v32 = vmul.f32 %v4308_v30, %v216_v19  ;;  %v4288_v19 = vld [vmem:[#allocation6 + $0x40] sm:$0xff]  }
 0x18b   :  { %471 = vmatpush1.bf16.msra.mxu1 %v4288_v19  ;;  %v604_v19 = vshra.s32 %v4706_v43, 2 }
 0x18c   :  { %v234_v34 = vmul.f32 %v3812_v31, %v228_v32 }
 0x18e   :  { %v240_v35 = vadd.f32 %v3813_v33, %v234_v34 }
 0x190   :  { %v241_v36 = vmax.f32 %v240_v35, 0.0 }
 0x192   :  { %253 = vrot.lane.b32.xlu1 %v241_v36, %s4523_s14  ;;  %245 = vrot.lane.b32.xlu0 %v241_v36, %s4524_s18  ;;  %243 = vst.msk [vmem:[#allocation2 + $0x10] sm:$0x1] %vm7693_vm3, %v241_v36 }
 0x193   :  { %258 = vst.msk [vmem:[#allocation2 + $0x13] sm:$0x2] %vm7700_vm4, %v241_v36 }
 0x196   :  { %249 = vrot.lane.b32.xlu0 %v241_v36, %s4525_s20 }
 0x204   :  { %v254_v49 = vpop.permute.xlu1 %253  ;;  %v246_v50 = vpop.permute.xlu0 %245 }
 0x205   :  { %256 = vst.msk [vmem:[#allocation2 + $0x13] sm:$0x1] %vm7693_vm3, %v254_v49  ;;  %248 = vst.msk [vmem:[#allocation2 + $0x11] sm:$0x1] %vm7693_vm3, %v246_v50 }
 0x206   :  { %261 = vst.msk [vmem:[#allocation2 + $0x16] sm:$0x2] %vm7700_vm4, %v254_v49  ;;  %259 = vst.msk [vmem:[#allocation2 + $0x14] sm:$0x2] %vm7700_vm4, %v246_v50  ;;  %v4776_v50 = vsub.s32 0, %v4706_v43 }
 0x208   :  { %v250_v54 = vpop.permute.xlu0 %249  ;;  %7861 = vst [vmem:[#allocation19_spill] sm:$0xff] %v4776_v50 }
 0x209   :  { %252 = vst.msk [vmem:[#allocation2 + $0x12] sm:$0x1] %vm7693_vm3, %v250_v54 }
 0x20a   :  { %260 = vst.msk [vmem:[#allocation2 + $0x15] sm:$0x2] %vm7700_vm4, %v250_v54 }
 0x210   :  { %v281_v62 = vld [vmem:[#allocation2 + $0xe] sm:$0xff] }
 0x211   :  { %v370_v60 = vld [vmem:[#allocation2 + $0x13] sm:$0xff]  ;;  %v286_v1 = vsel %vm4714_vm9, %v281_v62, 0.0  ;;  %vm335_vm9 = vmand %vm4728_vm0, %vm298_vm10  ;;  %vm292_vm10 = vcmask 257152  }
 0x212   :  { %v294_v61 = vld [vmem:[#allocation2 + $0xf] sm:$0xff]  ;;  %v373_v0 = vsel %vm372_vm2, %v370_v60, 0.0  ;;  %v287_v6 = vpack.c.bf16 %v286_v1, %v286_v1  ;;  %vm368_vm2 = vcmask 1044352  }
 0x213   :  { %v300_v63 = vsel %vm299_vm14, %v294_v61, 0.0  ;;  %v322_v2 = vld [vmem:[#allocation2 + $0x10] sm:$0xff]  ;;  %v374_v5 = vpack.c.bf16 %v373_v0, %v373_v0  ;;  %v314_v9 = vsel %vm312_vm6, %v294_v61, 0.0  ;;  %vm320_vm14 = vcmask 519552  }
 0x214   :  { %v267_v3 = vld [vmem:[#allocation2 + $0xd] sm:$0xff]  ;;  %v301_v4 = vpack.c.bf16 %v300_v63, %v300_v63  ;;  %v325_v8 = vsel %vm4728_vm0, %v322_v2, 0.0  ;;  %289 = vrot.lane.b32.xlu1 %v287_v6, %s4528_s22  ;;  %v315_v15 = vpack.c.bf16 %v314_v9, %v314_v9  ;;  %vm342_vm0 = vcmask 781952   ;;  %v535_v6 = vld [vmem:[#allocation8] sm:$0x1] }
 0x215   :  { %v277_v10 = vsel %vm4738_vm5, %v267_v3, 0.0  ;;  %375 = vst.msk [vmem:[#allocation3 + $0x8] sm:$0xf] %vm279_vm7, %v374_v5  ;;  %v344_v12 = vld [vmem:[#allocation2 + $0x11] sm:$0xff]  ;;  %v326_v14 = vpack.c.bf16 %v325_v8, %v325_v8  ;;  %vm7699_vm5 = vcmask 124930   ;;  %vm7698_vm6 = vcmask 125955  }
 0x216   :  { %303 = vrot.lane.b32.xlu0 %v301_v4, %s4527_s2  ;;  %v278_v11 = vpack.c.bf16 %v277_v10, %v277_v10  ;;  %v351_v16 = vsel %vm349_vm8, %v344_v12, 0.0  ;;  %v336_v17 = vsel %vm335_vm9, %v344_v12, 0.0  ;;  %v359_v18 = vld [vmem:[#allocation2 + $0x12] sm:$0xff]  ;;  %v3824_v10 = vld [vmem:[#allocation8 + $0x1] ss:$0 sm:$0xff]  ;;  %vm7696_vm8 = vcmask 128005  }
 0x217   :  { %v352_v20 = vpack.c.bf16 %v351_v16, %v351_v16  ;;  %v337_v22 = vpack.c.bf16 %v336_v17, %v336_v17  ;;  %v362_v23 = vsel %vm4720_vm13, %v359_v18, 0.0  ;;  %vm357_vm13 = vcmask 913152   ;;  %v4291_v16 = vld [vmem:[#allocation9 + $0x10] sm:$0xff]   ;;  %v4292_v17 = vld [vmem:[#allocation9 + $0x18] sm:$0xff]  }
 0x218   :  { %280 = vst.msk [vmem:[#allocation3] sm:$0xf] %vm279_vm7, %v278_v11  ;;  %317 = vrot.lane.b32.xlu1 %v315_v15, %s4529_s25  ;;  %v363_v24 = vpack.c.bf16 %v362_v23, %v362_v23  ;;  %vm7697_vm7 = vcmask 126980   ;;  %vm7695_vm9 = vcmask 129030   ;;  %v4290_v15 = vld [vmem:[#allocation9 + $0x8] sm:$0xff]   ;;  %v4799_v18 = vadd.s32 8, %v4706_v43 }
 0x21a   :  { %328 = vrot.lane.b32.xlu0 %v326_v14, %s4510_s23  ;;  %v4289_v14 = vld [vmem:[#allocation9] sm:$0xff]  }
 0x21b   :  { %1014 = vmatpush1.bf16.msra.mxu0 %v4289_v14 }
 0x21c   :  { %v377_v21 = vld [vmem:[#allocation3 + $0x8] sm:$0xf]  ;;  %339 = vrot.lane.b32.xlu1 %v337_v22, %s4523_s14  ;;  %1015 = vmatprep.subr.bf16.mxu0 %v7718_v38 }
 0x21d   :  { %3823 = vmatprep.mubr.msk.bf16.mxu1 %vm7692_vm11, %v377_v21  ;;  %v4803_v21 = vand.u32 3, %v604_v19 }
 0x21e   :  { %354 = vrot.lane.b32.xlu0 %v352_v20, %s4525_s20  ;;  %v605_v20 = vshra.s32 %v4799_v18, 2 }
 0x21f   :  { %1016 = vmatpush1.bf16.msra.mxu0 %v4290_v15  ;;  %v616_v23 = vadd.s32 4294967295, %v4803_v21 }
 0x220   :  { %365 = vrot.lane.b32.xlu1 %v363_v24, %s4524_s18  ;;  %1017 = vmatprep.subr.bf16.mxu0 %v7718_v38  ;;  %v4805_v22 = vand.u32 3, %v605_v20  ;;  %v4809_v24 = vadd.s32 16, %v4706_v43 }
 0x223   :  { %1018 = vmatpush1.bf16.msra.mxu0 %v4291_v16 }
 0x224   :  { %1019 = vmatprep.subr.bf16.mxu0 %v7718_v38 }
 0x227   :  { %1020 = vmatpush1.bf16.msra.mxu0 %v4292_v17 }
 0x228   :  { %1021 = vmatprep.subr.bf16.mxu0 %v7718_v38 }
 0x286   :  { %v290_v26 = vpop.permute.xlu1 %289 }
 0x287   :  { %293 = vst.msk [vmem:[#allocation3] sm:$0xf] %vm292_vm10, %v290_v26  ;;  %vm7694_vm10 = vcmask 130055   ;;  %v617_v26 = vadd.s32 4294967295, %v4805_v22 }
 0x288   :  { %v304_v25 = vpop.permute.xlu0 %303 }
 0x289   :  { %307 = vst.msk [vmem:[#allocation3] sm:$0xf] %vm306_vm12, %v304_v25  ;;  %v600_v25 = vand.u32 3, %v4706_v43  ;;  %vm620_vm12 = vcmp.ge.s32.totalorder %v616_v23, 0 }
 0x28a   :  { %v318_v28 = vpop.permute.xlu1 %317 }
 0x28b   :  { %321 = vst.msk [vmem:[#allocation3] sm:$0xf] %vm320_vm14, %v318_v28  ;;  %v841_v28 = vadd.s32 1, %v4803_v21  ;;  %vm624_vm14 = vcmp.lt.s32.totalorder %v616_v23, 4 }
 0x28c   :  { %v329_v27 = vpop.permute.xlu0 %328  ;;  %vm4827_vm1 = vmand %vm620_vm12, %vm624_vm14  ;;  %vm7874_vm14 = vcmask 122880  }
 0x28d   :  { %332 = vst.msk [vmem:[#allocation3] sm:$0xf] %vm331_vm15, %v329_v27  ;;  %v601_v27 = vand.u32 3, %v4799_v18  ;;  %vm621_vm15 = vcmp.ge.s32.totalorder %v617_v26, 0 }
 0x28e   :  { %v340_v30 = vpop.permute.xlu1 %339 }
 0x28f   :  { %343 = vst.msk [vmem:[#allocation3] sm:$0xf] %vm342_vm0, %v340_v30  ;;  %v842_v30 = vadd.s32 1, %v4805_v22  ;;  %vm625_vm0 = vcmp.lt.s32.totalorder %v617_v26, 4 }
 0x290   :  { %v355_v29 = vpop.permute.xlu0 %354 }
 0x291   :  { %358 = vst.msk [vmem:[#allocation3] sm:$0xf] %vm357_vm13, %v355_v29  ;;  %v4816_v29 = vadd.s32 24, %v4706_v43  ;;  %vm845_vm13 = vcmp.ge.s32.totalorder %v841_v28, 0  ;;  %vm846_vm11 = vcmp.ge.s32.totalorder %v842_v30, 0 }
 0x292   :  { %v366_v31 = vpop.permute.xlu1 %365 }
 0x293   :  { %369 = vst.msk [vmem:[#allocation3] sm:$0xf] %vm368_vm2, %v366_v31  ;;  %v606_v31 = vshra.s32 %v4809_v24, 2  ;;  %vm849_vm2 = vcmp.lt.s32.totalorder %v841_v28, 4 }
 0x29a   :  { %v376_v32 = vld [vmem:[#allocation3] sm:$0xf] }
 0x29b   :  { %487 = vmatmul.mubr.bf16.vlgmr.msra.gmra.mrb[4].mxu1 %v376_v32  ;;  %v4820_v32 = vadd.s32 1, %v600_v25 }
 0x36e   :  { %v488_v33 = vpop.f32.mrb[4].mxu1 }
 0x36f   :  { %v494_v34 = vrot.slane %v488_v33, 4  ;;  %v490_v35 = vpop.f32.mrb[5].mxu1 }
 0x370   :  { %v491_v36 = vpop.f32.mrb[6].mxu1  ;;  %v607_v35 = vshra.s32 %v4816_v29, 2 }
 0x371   :  { %v495_v37 = vadd.f32 %v494_v34, %v488_v33  ;;  %v492_v39 = vpop.f32.mrb[7].mxu1  ;;  %v4824_v34 = vadd.s32 1, %v601_v27  ;;  %v7862_v36 = vmov 0 }
 0x372   :  { %v7863_v36 = vsel %vm4827_vm1, 4294967295, %v7862_v36  ;;  %v4835_v39 = vand.u32 3, %v606_v31 }
 0x373   :  { %v496_v40 = vrot.slane %v495_v37, 2 }
 0x375   :  { %v497_v41 = vadd.f32 %v496_v40, %v495_v37  ;;  %v7866_v40 = vmov 0 }
 0x377   :  { %v498_v42 = vrot.slane %v497_v41, 1 }
 0x379   :  { %v499_v44 = vadd.f32 %v498_v42, %v497_v41  ;;  %v4842_v41 = vadd.s32 4294967295, %v601_v27  ;;  %v7868_v42 = vmov 0 }
 0x37b   :  { %503 = vrot.lane.b32.xlu1 %v499_v44, %s4510_s23  ;;  %500 = vrot.lane.b32.xlu0 %v499_v44, %s4527_s2 }
 0x37f   :  { %506 = vrot.lane.b32.xlu0 %v499_v44, %s4525_s20 }
 0x3ed   :  { %v501_v45 = vpop.permute.xlu0 %500  ;;  %v504_v47 = vpop.permute.xlu1 %503 }
 0x3ee   :  { %v502_v46 = vadd.f32 %v501_v45, %v499_v44  ;;  %v4850_v44 = vand.u32 3, %v607_v35 }
 0x3f0   :  { %v505_v48 = vadd.f32 %v504_v47, %v502_v46  ;;  %v602_v47 = vand.u32 3, %v4809_v24 }
 0x3f1   :  { %v507_v49 = vpop.permute.xlu0 %506 }
 0x3f2   :  { %v508_v51 = vadd.f32 %v507_v49, %v505_v48  ;;  %v7884_v49 = vmov 0  ;;  %v5022_v14 = vadd.s32 1, %v602_v47 }
 0x3f4   :  { %v510_v52 = vmul.f32 0.03125, %v508_v51  ;;  %v618_v51 = vadd.s32 4294967295, %v4835_v39 }
 0x3f6   :  { %v514_v53 = vrot.slane %v510_v52, %v4776_v50  ;;  %v7887_v52 = vmov 0 }
 0x3f8   :  { %v515_v54 = vsub.f32 %v488_v33, %v514_v53  ;;  %v4822_v33 = vadd.s32 4294967295, %v600_v25  ;;  %v7890_v53 = vmov 0 }
 0x3fa   :  { %v516_v55 = vmul.f32 %v515_v54, %v515_v54 }
 0x3fc   :  { %v517_v56 = vrot.slane %v516_v55, 4 }
 0x3fe   :  { %v518_v57 = vadd.f32 %v517_v56, %v516_v55  ;;  %v603_v55 = vand.u32 3, %v4816_v29 }
 0x400   :  { %v519_v58 = vrot.slane %v518_v57, 2  ;;  %v5024_v15 = vadd.s32 1, %v603_v55 }
 0x402   :  { %v520_v59 = vadd.f32 %v519_v58, %v518_v57  ;;  %v619_v57 = vadd.s32 4294967295, %v4850_v44  ;;  %v4293_v58 = vld [vmem:[#allocation9 + $0x20] sm:$0xff]  }
 0x403   :  { %1022 = vmatpush1.bf16.msra.mxu0 %v4293_v58 }
 0x404   :  { %v521_v60 = vrot.slane %v520_v59, 1  ;;  %1023 = vmatprep.subr.bf16.mxu0 %v7718_v38 }
 0x406   :  { %v522_v61 = vadd.f32 %v521_v60, %v520_v59 }
 0x408   :  { %526 = vrot.lane.b32.xlu0 %v522_v61, %s4510_s23  ;;  %523 = vrot.lane.b32.xlu1 %v522_v61, %s4527_s2 }
 0x40c   :  { %529 = vrot.lane.b32.xlu1 %v522_v61, %s4525_s20 }
 0x47a   :  { %v524_v62 = vpop.permute.xlu1 %523  ;;  %v527_v0 = vpop.permute.xlu0 %526 }
 0x47b   :  { %v525_v63 = vadd.f32 %v524_v62, %v522_v61  ;;  %v4931_v61 = vadd.s32 4294967295, %v602_v47 }
 0x47d   :  { %v528_v1 = vadd.f32 %v527_v0, %v525_v63  ;;  %v4957_v0 = vadd.s32 4294967295, %v603_v55 }
 0x47e   :  { %v530_v2 = vpop.permute.xlu1 %529 }
 0x47f   :  { %v531_v3 = vadd.f32 %v530_v2, %v528_v1  ;;  %v7915_v1 = vmov 0  ;;  %v843_v2 = vadd.s32 1, %v4835_v39 }
 0x481   :  { %v532_v4 = vmul.f32 0.03125, %v531_v3  ;;  %v4970_v3 = vadd.s32 1, %v4850_v44 }
 0x483   :  { %v533_v5 = vadd.f32 1e-05, %v532_v4  ;;  %v4294_v4 = vld [vmem:[#allocation9 + $0x28] sm:$0xff]  }
 0x484   :  { %1024 = vmatpush1.bf16.msra.mxu0 %v4294_v4 }
 0x485   :  { %4309 = vrsqrt.f32 %v533_v5  ;;  %v7918_v5 = vmov 0  ;;  %1025 = vmatprep.subr.bf16.mxu0 %v7718_v38 }
 0x48f   :  { %v4310_v7 = vpop.eup %4309 }
 0x490   :  { %v536_v8 = vmul.f32 %v4310_v7, %v535_v6  ;;  %v7920_v6 = vmov 0 }
 0x492   :  { %v540_v9 = vrot.slane %v536_v8, %v4776_v50 }
 0x494   :  { %v541_v11 = vmul.f32 %v540_v9, %v515_v54  ;;  %v7893_v54 = vmov 0 }
 0x496   :  { %v547_v12 = vadd.f32 %v3824_v10, %v541_v11  ;;  %v7925_v11 = vmov 0 }
 0x498   :  { %v548_v13 = vmax.f32 %v547_v12, 0.0 }
 0x49a   :  { %549 = vst.msk [vmem:[#allocation2 + $0x10] sm:$0x1] %vm7693_vm3, %v548_v13  ;;  %557 = vrot.lane.b32.xlu1 %v548_v13, %s4510_s23  ;;  %551 = vrot.lane.b32.xlu0 %v548_v13, %s4525_s20  ;;  %vm850_vm3 = vcmp.lt.s32.totalorder %v842_v30, 4 }
 0x49b   :  { %555 = vst.msk [vmem:[#allocation2 + $0x11] sm:$0x2] %vm7700_vm4, %v548_v13 }
 0x49c   :  { %571 = vst.msk [vmem:[#allocation2 + $0x17] sm:$0x8] %vm7698_vm6, %v548_v13 }
 0x49d   :  { %578 = vst.msk [vmem:[#allocation2 + $0x1c] sm:$0x10] %vm7697_vm7, %v548_v13  ;;  %vm4846_vm7 = vmand %vm846_vm11, %vm850_vm3  ;;  %vm7870_vm3 = vcmask 126980   ;;  %vm7871_vm11 = vcmask 128005  }
 0x49e   :  { %581 = vst.msk [vmem:[#allocation2 + $0x1d] sm:$0x20] %vm7696_vm8, %v548_v13  ;;  %561 = vrot.lane.b32.xlu0 %v548_v13, %s4527_s2  ;;  %vm4838_vm8 = vmand %vm845_vm13, %vm849_vm2  ;;  %v7869_v42 = vsel %vm4846_vm7, 4294967295, %v7868_v42  ;;  %vm7872_vm13 = vcmask 129030   ;;  %vm7873_vm2 = vcmask 130055  }
 0x49f   :  { %588 = vst.msk [vmem:[#allocation2 + $0x22] sm:$0x40] %vm7695_vm9, %v548_v13  ;;  %v7867_v40 = vsel %vm4838_vm8, 4294967295, %v7866_v40  ;;  %vm7877_vm12 = vmmov %vm7871_vm11 }
 0x4a0   :  { %591 = vst.msk [vmem:[#allocation2 + $0x23] sm:$0x80] %vm7694_vm10, %v548_v13  ;;  %vm4831_vm10 = vmand %vm621_vm15, %vm625_vm0 }
 0x4a1   :  { %568 = vst.msk [vmem:[#allocation2 + $0x16] sm:$0x4] %vm7699_vm5, %v548_v13  ;;  %vm7875_vm15 = vmmov %vm7874_vm14 }
 0x4a2   :  { %vm7876_vm0 = vmmov %vm7870_vm3 }
 0x4a3   :  { %vm7878_vm9 = vmmov %vm7872_vm13 }
 0x50c   :  { %v558_v45 = vpop.permute.xlu1 %557  ;;  %v552_v46 = vpop.permute.xlu0 %551 }
 0x50d   :  { %565 = vst.msk [vmem:[#allocation2 + $0x15] sm:$0x2] %vm7700_vm4, %v558_v45  ;;  %556 = vst.msk [vmem:[#allocation2 + $0x12] sm:$0x2] %vm7700_vm4, %v552_v46  ;;  %vm7896_vm4 = vcmp.ge.s32.totalorder %v4803_v21, 0 }
 0x50e   :  { %573 = vst.msk [vmem:[#allocation2 + $0x1a] sm:$0x4] %vm7699_vm5, %v558_v45  ;;  %569 = vst.msk [vmem:[#allocation2 + $0x17] sm:$0x4] %vm7699_vm5, %v552_v46  ;;  %vm7895_vm5 = vcmp.lt.s32.totalorder %v4803_v21, 4 }
 0x50f   :  { %575 = vst.msk [vmem:[#allocation2 + $0x1b] sm:$0x8] %vm7698_vm6, %v558_v45  ;;  %572 = vst.msk [vmem:[#allocation2 + $0x18] sm:$0x8] %vm7698_vm6, %v552_v46 }
 0x510   :  { %583 = vst.msk [vmem:[#allocation2 + $0x20] sm:$0x10] %vm7870_vm3, %v558_v45  ;;  %vm7879_vm3 = vmmov %vm7873_vm2  ;;  %v562_v59 = vpop.permute.xlu0 %561 }
 0x511   :  { %585 = vst.msk [vmem:[#allocation2 + $0x21] sm:$0x20] %vm7871_vm11, %v558_v45  ;;  %vm7880_vm11 = vcmp.lt.s32.totalorder %v4820_v32, 4 }
 0x512   :  { %593 = vst.msk [vmem:[#allocation2 + $0x26] sm:$0x40] %vm7872_vm13, %v558_v45  ;;  %vm7886_vm13 = vcmp.lt.s32.totalorder %v4824_v34, 4 }
 0x513   :  { %595 = vst.msk [vmem:[#allocation2 + $0x27] sm:$0x80] %vm7873_vm2, %v558_v45  ;;  %vm4894_vm2 = vmand %vm4831_vm10, %vm7886_vm13 }
 0x514   :  { %560 = vst.msk [vmem:[#allocation2 + $0x14] sm:$0x1] %vm7874_vm14, %v558_v45  ;;  %vm4875_vm14 = vmand %vm4827_vm1, %vm7880_vm11  ;;  %v7888_v52 = vsel %vm4894_vm2, 4294967295, %v7887_v52  ;;  %vm7906_vm2 = vcmask 128005  }
 0x515   :  { %554 = vst.msk [vmem:[#allocation2 + $0x11] sm:$0x1] %vm7875_vm15, %v552_v46  ;;  %vm743_vm15 = vcmp.ge.s32.totalorder %v4805_v22, 0 }
 0x516   :  { %579 = vst.msk [vmem:[#allocation2 + $0x1d] sm:$0x10] %vm7876_vm0, %v552_v46  ;;  %vm747_vm0 = vcmp.lt.s32.totalorder %v4805_v22, 4 }
 0x517   :  { %582 = vst.msk [vmem:[#allocation2 + $0x1e] sm:$0x20] %vm7877_vm12, %v552_v46  ;;  %vm7883_vm12 = vcmp.ge.s32.totalorder %v4822_v33, 0 }
 0x518   :  { %589 = vst.msk [vmem:[#allocation2 + $0x23] sm:$0x40] %vm7878_vm9, %v552_v46  ;;  %vm4885_vm9 = vmand %vm4827_vm1, %vm7883_vm12 }
 0x519   :  { %592 = vst.msk [vmem:[#allocation2 + $0x24] sm:$0x80] %vm7879_vm3, %v552_v46  ;;  %v7885_v49 = vsel %vm4885_vm9, 4294967295, %v7884_v49  ;;  %vm7889_vm3 = vmmov %vm7880_vm11  ;;  %vm7909_vm9 = vcmp.ge.s32.totalorder %v4842_v41, 0 }
 0x51a   :  { %vm4902_vm11 = vmand %vm4838_vm8, %vm7889_vm3  ;;  %586 = vst.msk [vmem:[#allocation2 + $0x22] sm:$0x20] %vm7906_vm2, %v562_v59 }
 0x51b   :  { %v7891_v53 = vsel %vm4902_vm11, 4294967295, %v7890_v53  ;;  %vm7892_vm12 = vmmov %vm7886_vm13  ;;  %vm7901_vm13 = vcmask 122880   ;;  %vm7905_vm11 = vcmask 126980  }
 0x51c   :  { %vm4910_vm6 = vmand %vm4846_vm7, %vm7892_vm12  ;;  %564 = vst.msk [vmem:[#allocation2 + $0x15] sm:$0x1] %vm7901_vm13, %v562_v59  ;;  %vm626_vm13 = vcmp.lt.s32.totalorder %v618_v51, 4  ;;  %v697_v8 = vld [vmem:[#allocation2 + $0xd] sm:$0xff] }
 0x51d   :  { %v7894_v54 = vsel %vm4910_vm6, 4294967295, %v7893_v54  ;;  %vm4920_vm3 = vmand %vm7896_vm4, %vm7895_vm5  ;;  %vm7902_vm6 = vcmask 123905   ;;  %vm7903_vm4 = vcmask 124930   ;;  %vm7904_vm5 = vcmask 125955   ;;  %584 = vst.msk [vmem:[#allocation2 + $0x21] sm:$0x10] %vm7905_vm11, %v562_v59 }
 0x51e   :  { %vm4925_vm12 = vmand %vm743_vm15, %vm747_vm0  ;;  %566 = vst.msk [vmem:[#allocation2 + $0x16] sm:$0x2] %vm7902_vm6, %v562_v59  ;;  %vm7907_vm15 = vcmask 129030   ;;  %vm7908_vm0 = vcmask 130055   ;;  %vm622_vm6 = vcmp.ge.s32.totalorder %v618_v51, 0  ;;  %v660_v9 = vld [vmem:[#allocation2 + $0xc] sm:$0xff] }
 0x51f   :  { %574 = vst.msk [vmem:[#allocation2 + $0x1b] sm:$0x4] %vm7903_vm4, %v562_v59  ;;  %vm4945_vm1 = vmand %vm4831_vm10, %vm7909_vm9  ;;  %vm7912_vm4 = vcmp.ge.s32.totalorder %v4822_v33, 0  ;;  %v612_v10 = vld [vmem:[#allocation2 + $0xb] sm:$0xff]  ;;  %v721_v19 = vsel %vm4875_vm14, %v697_v8, 0.0 }
 0x520   :  { %576 = vst.msk [vmem:[#allocation2 + $0x1c] sm:$0x8] %vm7904_vm5, %v562_v59  ;;  %vm4953_vm2 = vmand %vm4920_vm3, %vm7912_vm4 }
 0x521   :  { %594 = vst.msk [vmem:[#allocation2 + $0x27] sm:$0x40] %vm7907_vm15, %v562_v59  ;;  %vm4964_vm11 = vmand %vm4925_vm12, %vm7909_vm9 }
 0x522   :  { %596 = vst.msk [vmem:[#allocation2 + $0x28] sm:$0x80] %vm7908_vm0, %v562_v59  ;;  %v7916_v1 = vsel %vm4964_vm11, 4294967295, %v7915_v1  ;;  %vm7917_vm0 = vmmov %vm7912_vm4  ;;  %vm7934_vm11 = vcmp.ge.s32.totalorder %v4931_v61, 0 }
 0x523   :  { %vm4976_vm4 = vmand %vm4838_vm8, %vm7917_vm0  ;;  %vm7924_vm0 = vcmp.lt.s32.totalorder %v4820_v32, 4  ;;  %v738_v45 = vld [vmem:[#allocation2 + $0xf] sm:$0xff] }
 0x524   :  { %v7919_v5 = vsel %vm4976_vm4, 4294967295, %v7918_v5  ;;  %vm4984_vm5 = vmand %vm4846_vm7, %vm7909_vm9  ;;  %vm7927_vm9 = vcmp.lt.s32.totalorder %v4824_v34, 4  ;;  %vm7941_vm7 = vnez %v7894_v54  ;;  %v762_v48 = vsel %vm4953_vm2, %v738_v45, 0.0  ;;  %v5115_v62 = vld [vmem:[#allocation2 + $0x23] sm:$0xff] }
 0x525   :  { %v7921_v6 = vsel %vm4984_vm5, 4294967295, %v7920_v6  ;;  %vm4988_vm15 = vmand %vm622_vm6, %vm626_vm13  ;;  %vm7930_vm5 = vcmp.lt.s32.totalorder %v619_v57, 4  ;;  %v698_v17 = vld [vmem:[#allocation2 + $0x15] sm:$0xff]  ;;  %vm7940_vm13 = vnez %v7891_v53  ;;  %v5131_v4 = vld [vmem:[#allocation2 + $0x24] sm:$0xff] }
 0x526   :  { %vm4997_vm8 = vmand %vm4920_vm3, %vm7924_vm0  ;;  %vm7931_vm0 = vcmp.ge.s32.totalorder %v619_v57, 0  ;;  %v5041_v21 = vld [vmem:[#allocation2 + $0x14] sm:$0xff]  ;;  %v923_v26 = vsel %vm7940_vm13, %v698_v17, 0.0  ;;  %vm7947_vm13 = vcmp.ge.s32.totalorder %v4835_v39, 0  ;;  %v4297_v45 = vld [vmem:[#allocation9 + $0x40] sm:$0xff]  }
 0x527   :  { %v7926_v11 = vsel %vm4997_vm8, 4294967295, %v7925_v11  ;;  %vm5005_vm6 = vmand %vm4925_vm12, %vm7927_vm9  ;;  %vm851_vm9 = vcmp.lt.s32.totalorder %v843_v2, 4  ;;  %v5039_v20 = vld [vmem:[#allocation2 + $0x1d] sm:$0xff]  ;;  %vm7937_vm8 = vnez %v7863_v36  ;;  %v681_v28 = vsel %vm4831_vm10, %v5041_v21, 0.0  ;;  %v779_v30 = vld [vmem:[#allocation2 + $0x10] sm:$0xff] }
 0x528   :  { %vm5014_vm4 = vmand %vm7931_vm0, %vm7930_vm5  ;;  %v680_v22 = vsel %vm7937_vm8, %v660_v9, 0.0  ;;  %vm7939_vm0 = vnez %v7888_v52  ;;  %v924_v27 = vsel %vm7941_vm7, %v5039_v20, 0.0  ;;  %v780_v31 = vld [vmem:[#allocation2 + $0x18] sm:$0xff]  ;;  %vm7942_vm8 = vcmp.ge.s32.totalorder %v4957_v0, 0  ;;  %v741_v32 = vld [vmem:[#allocation2 + $0x27] sm:$0xff] }
 0x529   :  { %vm5031_vm5 = vmand %vm4988_vm15, %vm7934_vm11  ;;  %vm7938_vm11 = vnez %v7885_v49  ;;  %v722_v25 = vsel %vm7939_vm0, %v698_v17, 0.0  ;;  %v927_v34 = vpack.c.bf16 %v924_v27, %v923_v26  ;;  %v684_v35 = vpack.c.bf16 %v681_v28, %v680_v22  ;;  %v613_v41 = vld [vmem:[#allocation2 + $0x13] sm:$0xff]  ;;  %v838_v53 = vld [vmem:[#allocation2 + $0x1b] sm:$0xff] }
 0x52a   :  { %v652_v23 = vsel %vm7938_vm11, %v612_v10, 0.0  ;;  %vm5061_vm14 = vmand %vm5014_vm4, %vm7942_vm8  ;;  %v725_v33 = vpack.c.bf16 %v722_v25, %v721_v19  ;;  %v791_v36 = vsel %vm4920_vm3, %v779_v30, 0.0  ;;  %v739_v37 = vld [vmem:[#allocation2 + $0x17] sm:$0xff]  ;;  %v792_v46 = vsel %vm4925_vm12, %v780_v31, 0.0  ;;  %v4296_v27 = vld [vmem:[#allocation9 + $0x38] sm:$0xff]  }
 0x52b   :  { %v653_v47 = vsel %vm4945_vm1, %v613_v41, 0.0  ;;  %vm7945_vm7 = vnez %v7916_v1  ;;  %vm7946_vm10 = vcmp.lt.s32.totalorder %v4835_v39, 4  ;;  %vm7950_vm0 = vcmask 130048   ;;  %688 = vrot.lane.b32.xlu1 %v684_v35, %s4528_s22  ;;  %v808_v39 = vld [vmem:[#allocation2 + $0x11] sm:$0xff]  ;;  %v809_v55 = vld [vmem:[#allocation2 + $0x19] sm:$0xff] }
 0x52c   :  { %v763_v49 = vsel %vm7945_vm7, %v739_v37, 0.0  ;;  %vm5079_vm3 = vmand %vm7947_vm13, %vm7946_vm10  ;;  %929 = vst.msk [vmem:[#allocation3 + $0x8] sm:$0xff] %vm7950_vm0, %v927_v34  ;;  %729 = vrot.lane.b32.xlu0 %v725_v33, %s4527_s2  ;;  %v656_v52 = vpack.c.bf16 %v653_v47, %v652_v23  ;;  %vm7951_vm12 = vcmp.ge.s32.totalorder %v843_v2, 0  ;;  %vm7954_vm11 = vcmp.lt.s32.totalorder %v4850_v44, 4  ;;  %v4295_v9 = vld [vmem:[#allocation9 + $0x30] sm:$0xff]   ;;  %v811_v47 = vld [vmem:[#allocation2 + $0x29] sm:$0xff] }
 0x52d   :  { %vm5089_vm2 = vmand %vm7951_vm12, %vm851_vm9  ;;  %vm7955_vm8 = vcmp.ge.s32.totalorder %v4850_v44, 0  ;;  %v795_v57 = vpack.c.bf16 %v792_v46, %v791_v36  ;;  %v766_v58 = vpack.c.bf16 %v763_v49, %v762_v48  ;;  %vm716_vm13 = vcmp.lt.s32.totalorder %v5024_v15, 4  ;;  %1026 = vmatpush1.bf16.msra.mxu0 %v4295_v9  ;;  %v740_v31 = vld [vmem:[#allocation2 + $0x1f] sm:$0xff] }
 0x52e   :  { %vm5097_vm7 = vmand %vm7955_vm8, %vm7954_vm11  ;;  %vm7959_vm9 = vcmp.lt.s32.totalorder %v4970_v3, 4  ;;  %vm7963_vm1 = vnez %v7919_v5  ;;  %vm7964_vm11 = vnez %v7921_v6  ;;  %vm7965_vm8 = vcmp.lt.s32.totalorder %v5022_v14, 4  ;;  %v700_v5 = vld [vmem:[#allocation2 + $0x25] sm:$0xff]  ;;  %v914_v6 = vld [vmem:[#allocation2 + $0x2d] sm:$0xff]  ;;  %1027 = vmatprep.subr.bf16.mxu0 %v7718_v38 }
 0x52f   :  { %vm7958_vm10 = vmmov %vm7950_vm0  ;;  %vm7960_vm0 = vcmp.ge.s32.totalorder %v4970_v3, 0  ;;  %v865_v44 = vsel %vm7963_vm1, %v613_v41, 0.0  ;;  %v866_v60 = vsel %vm7964_vm11, %v838_v53, 0.0  ;;  %770 = vrot.lane.b32.xlu1 %v766_v58, %s4529_s25  ;;  %v821_v2 = vsel %vm5005_vm6, %v809_v55, 0.0  ;;  %v662_v3 = vld [vmem:[#allocation2 + $0x1c] sm:$0xff]  ;;  %v885_v58 = vld [vmem:[#allocation2 + $0x2c] sm:$0xff] }
 0x530   :  { %658 = vst.msk [vmem:[#allocation3] sm:$0xff] %vm7958_vm10, %v656_v52  ;;  %vm5107_vm12 = vmand %vm7960_vm0, %vm7959_vm9  ;;  %799 = vrot.lane.b32.xlu0 %v795_v57, %s4510_s23  ;;  %vm7968_vm9 = vnez %v7926_v11  ;;  %v869_v10 = vpack.c.bf16 %v866_v60, %v865_v44  ;;  %v654_v11 = vsel %vm5031_vm5, %v838_v53, 0.0  ;;  %v655_v12 = vsel %vm5061_vm14, %v5115_v62, 0.0  ;;  %v810_v46 = vld [vmem:[#allocation2 + $0x21] sm:$0xff]  ;;  %v840_v44 = vld [vmem:[#allocation2 + $0x2b] sm:$0xff] }
 0x531   :  { %vm5121_vm10 = vmand %vm5089_vm2, %vm7965_vm8  ;;  %v820_v1 = vsel %vm7968_vm9, %v808_v39, 0.0  ;;  %vm7971_vm6 = vcmp.ge.s32.totalorder %v4931_v61, 0  ;;  %v682_v23 = vsel %vm4988_vm15, %v662_v3, 0.0  ;;  %v683_v16 = vsel %vm5014_vm4, %v5131_v4, 0.0  ;;  %1028 = vmatpush1.bf16.msra.mxu0 %v4296_v27  ;;  %v781_v49 = vld [vmem:[#allocation2 + $0x20] sm:$0xff]  ;;  %v782_v52 = vld [vmem:[#allocation2 + $0x28] sm:$0xff] }
 0x532   :  { %vm5137_vm1 = vmand %vm5107_vm12, %vm716_vm13  ;;  %v824_v22 = vpack.c.bf16 %v821_v2, %v820_v1  ;;  %vm7974_vm5 = vcmp.ge.s32.totalorder %v4957_v0, 0  ;;  %v925_v26 = vsel %vm5121_vm10, %v700_v5, 0.0  ;;  %vm7977_vm11 = vcmask 130048   ;;  %1029 = vmatprep.subr.bf16.mxu0 %v7718_v38 }
 0x533   :  { %vm5150_vm0 = vmand %vm5079_vm3, %vm7971_vm6  ;;  %v932_v19 = vld [vmem:[#allocation3 + $0x8] sm:$0xff]  ;;  %vm7978_vm8 = vnez %v7867_v40  ;;  %vm7979_vm9 = vnez %v7869_v42  ;;  %vm7980_vm6 = vcmp.lt.s32.totalorder %v5022_v14, 4  ;;  %v926_v34 = vsel %vm5137_vm1, %v914_v6, 0.0 }
 0x534   :  { %vm5163_vm14 = vmand %vm5097_vm7, %vm7974_vm5  ;;  %3834 = vmatprep.mubr.msk.bf16.mxu0 %vm7977_vm11, %v932_v19  ;;  %873 = vrot.lane.b32.xlu0 %v869_v10, %s4525_s20  ;;  %v894_v28 = vsel %vm7978_vm8, %v5041_v21, 0.0  ;;  %v895_v30 = vsel %vm7979_vm9, %v662_v3, 0.0  ;;  %v928_v42 = vpack.c.bf16 %v926_v34, %v925_v26  ;;  %v657_v21 = vpack.c.bf16 %v655_v12, %v654_v11 }
 0x535   :  { %vm5180_vm10 = vmand %vm4988_vm15, %vm7980_vm6  ;;  %828 = vrot.lane.b32.xlu1 %v824_v22, %s4523_s14  ;;  %v685_v7 = vpack.c.bf16 %v683_v16, %v682_v23  ;;  %v898_v35 = vpack.c.bf16 %v895_v30, %v894_v28  ;;  %v764_v36 = vsel %vm5150_vm0, %v740_v31, 0.0  ;;  %v765_v41 = vsel %vm5163_vm14, %v741_v32, 0.0  ;;  %1030 = vmatpush1.bf16.msra.mxu0 %v4297_v45 }
 0x536   :  { %vm5191_vm5 = vmand %vm5014_vm4, %vm716_vm13  ;;  %v723_v37 = vsel %vm5180_vm10, %v5039_v20, 0.0  ;;  %v767_v20 = vpack.c.bf16 %v765_v41, %v764_v36  ;;  %v793_v55 = vsel %vm5079_vm3, %v781_v49, 0.0  ;;  %v794_v57 = vsel %vm5097_vm7, %v782_v52, 0.0 }
 0x537   :  { %vm7985_vm15 = vmmov %vm7980_vm6  ;;  %v724_v14 = vsel %vm5191_vm5, %v700_v5, 0.0  ;;  %vm7993_vm8 = vcmp.ge.s32.totalorder %v4957_v0, 0  ;;  %v796_v51 = vpack.c.bf16 %v794_v57, %v793_v55  ;;  %v896_v56 = vsel %vm5089_vm2, %v5131_v4, 0.0 }
 0x538   :  { %vm5204_vm4 = vmand %vm5079_vm3, %vm7985_vm15  ;;  %690 = vrot.lane.b32.xlu0 %v685_v7, %s4528_s22  ;;  %v726_v53 = vpack.c.bf16 %v724_v14, %v723_v37  ;;  %vm7710_vm3 = vcmask 261248   ;;  %vm7706_vm6 = vcmask 786048   ;;  %vm7705_vm10 = vcmask 917248  }
 0x539   :  { %vm7988_vm1 = vmmov %vm7977_vm11  ;;  %902 = vrot.lane.b32.xlu1 %v898_v35, %s4524_s18  ;;  %v822_v39 = vsel %vm5204_vm4, %v810_v46, 0.0  ;;  %vm7704_vm5 = vcmask 1048448   ;;  %vm7995_vm4 = vcmask 261120  }
 0x53a   :  { %930 = vst.msk [vmem:[#allocation3 + $0x18] sm:$0xff] %vm7988_vm1, %v928_v42  ;;  %vm7989_vm11 = vmmov %vm7988_vm1 }
 0x53b   :  { %659 = vst.msk [vmem:[#allocation3 + $0x10] sm:$0xff] %vm7989_vm11, %v657_v21  ;;  %vm5220_vm0 = vmand %vm5097_vm7, %vm716_vm13  ;;  %vm7992_vm13 = vcmp.ge.s32.totalorder %v4931_v61, 0  ;;  %v897_v61 = vsel %vm5107_vm12, %v885_v58, 0.0  ;;  %vm7709_vm7 = vcmask 392448  }
 0x53c   :  { %v823_v15 = vsel %vm5220_vm0, %v811_v47, 0.0  ;;  %772 = vrot.lane.b32.xlu0 %v767_v20, %s4529_s25  ;;  %vm859_vm14 = vmand %vm5089_vm2, %vm7992_vm13  ;;  %v899_v0 = vpack.c.bf16 %v897_v61, %v896_v56  ;;  %vm7708_vm2 = vcmask 523648  }
 0x53d   :  { %731 = vrot.lane.b32.xlu1 %v726_v53, %s4527_s2  ;;  %vm860_vm9 = vmand %vm5107_vm12, %vm7993_vm8  ;;  %v825_v60 = vpack.c.bf16 %v823_v15, %v822_v39  ;;  %v867_v63 = vsel %vm859_vm14, %v5115_v62, 0.0  ;;  %vm7707_vm12 = vcmask 654848  }
 0x53e   :  { %v868_v1 = vsel %vm860_vm9, %v840_v44, 0.0  ;;  %vm7994_vm15 = vmmov %vm7988_vm1 }
 0x53f   :  { %v870_v2 = vpack.c.bf16 %v868_v1, %v867_v63  ;;  %vm7996_vm1 = vmmov %vm7995_vm4 }
 0x540   :  { %830 = vrot.lane.b32.xlu0 %v825_v60, %s4523_s14  ;;  %vm7997_vm11 = vmmov %vm7996_vm1 }
 0x541   :  { %801 = vrot.lane.b32.xlu1 %v796_v51, %s4510_s23  ;;  %v934_v19 = vld [vmem:[#allocation3 + $0x18] sm:$0xff]  ;;  %vm7998_vm0 = vmmov %vm7996_vm1 }
 0x542   :  { %vm7999_vm13 = vmmov %vm7998_vm0 }
 0x543   :  { %vm8000_vm14 = vmmov %vm7998_vm0 }
 0x544   :  { %904 = vrot.lane.b32.xlu0 %v899_v0, %s4524_s18  ;;  %vm8001_vm8 = vmmov %vm7998_vm0 }
 0x545   :  { %875 = vrot.lane.b32.xlu1 %v870_v2, %s4525_s20  ;;  %vm8002_vm9 = vmmov %vm7998_vm0 }
 0x59d   :  { %v689_v3 = vpop.permute.xlu1 %688 }
 0x59e   :  { %v730_v54 = vpop.permute.xlu0 %729  ;;  %695 = vst.msk [vmem:[#allocation3] sm:$0xff] %vm7710_vm3, %v689_v3  ;;  %v5276_v3 = vld [vmem:[#allocation12 + $0x8] sm:$0xff] }
 0x59f   :  { %736 = vst.msk [vmem:[#allocation3] sm:$0xff] %vm7709_vm7, %v730_v54 }
 0x5a1   :  { %v771_v62 = vpop.permute.xlu1 %770 }
 0x5a2   :  { %v800_v59 = vpop.permute.xlu0 %799  ;;  %777 = vst.msk [vmem:[#allocation3] sm:$0xff] %vm7708_vm2, %v771_v62  ;;  %v5284_v62 = vld [vmem:[#allocation12 + $0x18] sm:$0xff] }
 0x5a3   :  { %806 = vst.msk [vmem:[#allocation3] sm:$0xff] %vm7707_vm12, %v800_v59  ;;  %v5278_v59 = vld [vmem:[#allocation12] sm:$0xff] }
 0x5a4   :  { %4055 = vmatprep.mubr.msk.f32.mxu1 %vm7995_vm4, %v5278_v59  ;;  %vm8004_vm4 = vmmov %vm7998_vm0 }
 0x5a6   :  { %v874_v4 = vpop.permute.xlu0 %873 }
 0x5a7   :  { %v829_v5 = vpop.permute.xlu1 %828 }
 0x5a8   :  { %835 = vst.msk [vmem:[#allocation3] sm:$0xff] %vm7706_vm6, %v829_v5  ;;  %v5294_v5 = vld [vmem:[#allocation12 + $0x28] sm:$0xff] }
 0x5a9   :  { %880 = vst.msk [vmem:[#allocation3] sm:$0xff] %vm7705_vm10, %v874_v4  ;;  %v5286_v4 = vld [vmem:[#allocation12 + $0x10] sm:$0xff] }
 0x5aa   :  { %v691_v6 = vpop.permute.xlu0 %690 }
 0x5ab   :  { %696 = vst.msk [vmem:[#allocation3 + $0x10] sm:$0xff] %vm7710_vm3, %v691_v6  ;;  %v903_v8 = vpop.permute.xlu1 %902 }
 0x5ac   :  { %909 = vst.msk [vmem:[#allocation3] sm:$0xff] %vm7704_vm5, %v903_v8 }
 0x5ae   :  { %v773_v9 = vpop.permute.xlu0 %772 }
 0x5af   :  { %v732_v10 = vpop.permute.xlu1 %731 }
 0x5b0   :  { %737 = vst.msk [vmem:[#allocation3 + $0x10] sm:$0xff] %vm7709_vm7, %v732_v10 }
 0x5b1   :  { %778 = vst.msk [vmem:[#allocation3 + $0x10] sm:$0xff] %vm7708_vm2, %v773_v9 }
 0x5b2   :  { %v831_v11 = vpop.permute.xlu0 %830 }
 0x5b3   :  { %v802_v12 = vpop.permute.xlu1 %801  ;;  %v931_v17 = vld [vmem:[#allocation3] sm:$0xff] }
 0x5b4   :  { %807 = vst.msk [vmem:[#allocation3 + $0x10] sm:$0xff] %vm7707_vm12, %v802_v12  ;;  %1046 = vmatmul.mubr.bf16.vlgmr.msra.gmra.mrb[0].mxu0 %v931_v17 }
 0x5b5   :  { %836 = vst.msk [vmem:[#allocation3 + $0x10] sm:$0xff] %vm7706_vm6, %v831_v11  ;;  %3835 = vmatprep.mubr.msk.bf16.mxu0 %vm7994_vm15, %v934_v19  ;;  %vm8003_vm15 = vmmov %vm7998_vm0 }
 0x5b6   :  { %v905_v22 = vpop.permute.xlu0 %904 }
 0x5b7   :  { %v876_v23 = vpop.permute.xlu1 %875 }
 0x5b8   :  { %881 = vst.msk [vmem:[#allocation3 + $0x10] sm:$0xff] %vm7705_vm10, %v876_v23 }
 0x5b9   :  { %910 = vst.msk [vmem:[#allocation3 + $0x10] sm:$0xff] %vm7704_vm5, %v905_v22  ;;  %v1115_v22 = vld [vmem:[#allocation11] sm:$0x1] }
 0x5c0   :  { %v933_v16 = vld [vmem:[#allocation3 + $0x10] sm:$0xff] }
 0x5c1   :  { %1054 = vmatmul.mubr.bf16.gmra.mrb[4].mxu0 %v933_v16 }
 0x687   :  { %v1047_v25 = vpop.f32.mrb[0].mxu0 }
 0x688   :  { %v1049_v26 = vpop.f32.mrb[1].mxu0 }
 0x689   :  { %v1050_v27 = vpop.f32.mrb[2].mxu0  ;;  %v3836_v26 = vld [vmem:[#allocation11 + $0x1] ss:$0 sm:$0xff] }
 0x68a   :  { %v1062_v28 = vadd.f32 %v1050_v27, %v1047_v25  ;;  %v1052_v30 = vpop.f32.mrb[3].mxu0 }
 0x694   :  { %v1055_v31 = vpop.f32.mrb[4].mxu0 }
 0x695   :  { %v1063_v32 = vadd.f32 %v1062_v28, %v1055_v31  ;;  %v1057_v33 = vpop.f32.mrb[5].mxu0 }
 0x696   :  { %v1058_v34 = vpop.f32.mrb[6].mxu0 }
 0x697   :  { %v1064_v40 = vadd.f32 %v1063_v32, %v1058_v34  ;;  %v1060_v42 = vpop.f32.mrb[7].mxu0 }
 0x699   :  { %v1065_v21 = vrot.slane %v1064_v40, 4 }
 0x69b   :  { %v1066_v7 = vadd.f32 %v1065_v21, %v1064_v40 }
 0x69d   :  { %v1067_v35 = vrot.slane %v1066_v7, 2 }
 0x69f   :  { %v1068_v36 = vadd.f32 %v1067_v35, %v1066_v7 }
 0x6a1   :  { %v1069_v41 = vrot.slane %v1068_v36, 1 }
 0x6a3   :  { %v1070_v13 = vadd.f32 %v1069_v41, %v1068_v36 }
 0x6a5   :  { %1074 = vrot.lane.b32.xlu0 %v1070_v13, %s4510_s23  ;;  %1071 = vrot.lane.b32.xlu1 %v1070_v13, %s4527_s2 }
 0x6a9   :  { %1077 = vrot.lane.b32.xlu1 %v1070_v13, %s4525_s20 }
 0x717   :  { %v1072_v45 = vpop.permute.xlu1 %1071  ;;  %v1075_v14 = vpop.permute.xlu0 %1074 }
 0x718   :  { %v1073_v37 = vadd.f32 %v1072_v45, %v1070_v13 }
 0x71a   :  { %v1076_v46 = vadd.f32 %v1075_v14, %v1073_v37  ;;  %v1145_v37 = vld [vmem:[#allocation12 + $0x38] sm:$0xff]  ;;  %v1142_v14 = vld [vmem:[#allocation12 + $0x20] sm:$0xff] }
 0x71b   :  { %v1078_v47 = vpop.permute.xlu1 %1077 }
 0x71c   :  { %v1079_v48 = vadd.f32 %v1078_v47, %v1076_v46  ;;  %v1147_v46 = vld [vmem:[#allocation12 + $0x48] sm:$0xff]  ;;  %v1144_v47 = vld [vmem:[#allocation12 + $0x30] sm:$0xff] }
 0x71e   :  { %v1081_v49 = vmul.f32 0.0078125, %v1079_v48  ;;  %v1149_v48 = vld [vmem:[#allocation12 + $0x58] sm:$0xff] }
 0x720   :  { %v1085_v52 = vrot.slane %v1081_v49, %v4776_v50  ;;  %v1146_v49 = vld [vmem:[#allocation12 + $0x40] sm:$0xff] }
 0x722   :  { %v1086_v20 = vsub.f32 %v1047_v25, %v1085_v52  ;;  %v1087_v53 = vsub.f32 %v1050_v27, %v1085_v52  ;;  %v1088_v39 = vsub.f32 %v1055_v31, %v1085_v52  ;;  %v1089_v15 = vsub.f32 %v1058_v34, %v1085_v52  ;;  %v1151_v52 = vld [vmem:[#allocation12 + $0x68] sm:$0xff] }
 0x724   :  { %v1090_v55 = vmul.f32 %v1086_v20, %v1086_v20  ;;  %v1091_v57 = vmul.f32 %v1087_v53, %v1087_v53  ;;  %v1092_v58 = vmul.f32 %v1088_v39, %v1088_v39  ;;  %v1093_v60 = vmul.f32 %v1089_v15, %v1089_v15 }
 0x726   :  { %v1094_v44 = vadd.f32 %v1091_v57, %v1090_v55 }
 0x728   :  { %v1095_v51 = vadd.f32 %v1094_v44, %v1092_v58 }
 0x72a   :  { %v1096_v56 = vadd.f32 %v1095_v51, %v1093_v60 }
 0x72c   :  { %v1097_v61 = vrot.slane %v1096_v56, 4 }
 0x72e   :  { %v1098_v63 = vadd.f32 %v1097_v61, %v1096_v56 }
 0x730   :  { %v1099_v1 = vrot.slane %v1098_v63, 2 }
 0x732   :  { %v1100_v0 = vadd.f32 %v1099_v1, %v1098_v63 }
 0x734   :  { %v1101_v2 = vrot.slane %v1100_v0, 1 }
 0x736   :  { %v1102_v54 = vadd.f32 %v1101_v2, %v1100_v0 }
 0x738   :  { %1106 = vrot.lane.b32.xlu1 %v1102_v54, %s4510_s23  ;;  %1103 = vrot.lane.b32.xlu0 %v1102_v54, %s4527_s2 }
 0x73c   :  { %1109 = vrot.lane.b32.xlu0 %v1102_v54, %s4525_s20  ;;  %1572 = vrot.lane.b32.xlu1 %v5278_v59, %s4510_s23 }
 0x740   :  { %1574 = vrot.lane.b32.xlu0 %v5276_v3, %s4510_s23  ;;  %1576 = vrot.lane.b32.xlu1 %v5286_v4, %s4510_s23 }
 0x744   :  { %1578 = vrot.lane.b32.xlu0 %v5284_v62, %s4510_s23 }
 0x748   :  { %1582 = vrot.lane.b32.xlu0 %v5294_v5, %s4510_s23 }
 0x7aa   :  { %v1104_v6 = vpop.permute.xlu0 %1103  ;;  %v1107_v9 = vpop.permute.xlu1 %1106 }
 0x7ab   :  { %v1105_v8 = vadd.f32 %v1104_v6, %v1102_v54 }
 0x7ad   :  { %v1108_v10 = vadd.f32 %v1107_v9, %v1105_v8 }
 0x7ae   :  { %v1110_v11 = vpop.permute.xlu0 %1109  ;;  %v1573_v55 = vpop.permute.xlu1 %1572 }
 0x7af   :  { %v1111_v12 = vadd.f32 %v1110_v11, %v1108_v10 }
 0x7b1   :  { %v1112_v17 = vmul.f32 0.0078125, %v1111_v12 }
 0x7b2   :  { %v1575_v57 = vpop.permute.xlu0 %1574  ;;  %v1577_v44 = vpop.permute.xlu1 %1576 }
 0x7b3   :  { %v1113_v19 = vadd.f32 1e-05, %v1112_v17 }
 0x7b5   :  { %4311 = vrsqrt.f32 %v1113_v19 }
 0x7b6   :  { %v1579_v58 = vpop.permute.xlu0 %1578 }
 0x7ba   :  { %v1583_v60 = vpop.permute.xlu0 %1582 }
 0x7bf   :  { %v4312_v23 = vpop.eup %4311 }
 0x7c0   :  { %v1116_v16 = vmul.f32 %v4312_v23, %v1115_v22 }
 0x7c2   :  { %v1120_v25 = vrot.slane %v1116_v16, %v4776_v50 }
 0x7c4   :  { %v1123_v27 = vmul.f32 %v1120_v25, %v1088_v39  ;;  %v1124_v28 = vmul.f32 %v1120_v25, %v1089_v15  ;;  %v1121_v30 = vmul.f32 %v1120_v25, %v1086_v20  ;;  %v1122_v31 = vmul.f32 %v1120_v25, %v1087_v53  ;;  %v1148_v20 = vld [vmem:[#allocation12 + $0x50] sm:$0xff]  ;;  %v1153_v53 = vld [vmem:[#allocation12 + $0x78] sm:$0xff]  ;;  %v1150_v39 = vld [vmem:[#allocation12 + $0x60] sm:$0xff] }
 0x7c5   :  { %v1152_v15 = vld [vmem:[#allocation12 + $0x70] sm:$0xff] }
 0x7c6   :  { %v1132_v32 = vadd.f32 %v3836_v26, %v1123_v27  ;;  %v1133_v33 = vadd.f32 %v3836_v26, %v1124_v28  ;;  %v1130_v34 = vadd.f32 %v3836_v26, %v1121_v30  ;;  %v1131_v40 = vadd.f32 %v3836_v26, %v1122_v31 }
 0x7c8   :  { %v1136_v42 = vmax.f32 %v1132_v32, 0.0  ;;  %v1137_v21 = vmax.f32 %v1133_v33, 0.0  ;;  %v1134_v7 = vmax.f32 %v1130_v34, 0.0  ;;  %v1135_v35 = vmax.f32 %v1131_v40, 0.0 }
 0x7ca   :  { %v4255_v36 = vpack.i.bf16 %v1137_v21, %v1136_v42  ;;  %v4250_v41 = vpack.i.bf16 %v1135_v35, %v1134_v7  ;;  %v4157_v13 = vpack.c.bf16 %v1135_v35, %v1134_v7  ;;  %v4161_v45 = vpack.c.bf16 %v1137_v21, %v1136_v42 }
 0x7cc   :  { %4256 = vrot.lane.b32.xlu0 %v4255_v36, %s4510_s23  ;;  %4251 = vrot.lane.b32.xlu1 %v4250_v41, %s4510_s23 }
 0x7cd   :  { %4158 = vmatprep.subr.bf16.mxu1 %v4157_v13 }
 0x7ce   :  { %4160 = vmatpush3.bf16.msra.mxu1 %v4157_v13 }
 0x7cf   :  { %4162 = vmatprep.subr.bf16.mxu1 %v4161_v45 }
 0x7d0   :  { %1586 = vrot.lane.b32.xlu0 %v1145_v37, %s4510_s23  ;;  %1580 = vrot.lane.b32.xlu1 %v1142_v14, %s4510_s23 }
 0x7d2   :  { %4164 = vmatpush3.bf16.msra.mxu1 %v4161_v45 }
 0x7d4   :  { %1590 = vrot.lane.b32.xlu0 %v1147_v46, %s4510_s23  ;;  %1584 = vrot.lane.b32.xlu1 %v1144_v47, %s4510_s23 }
 0x7d5   :  { %4056 = vmatmul.mubr.msk.f32.vlgmr.msra.gmra.mrb[2].mxu1 %vm7996_vm1, %v5276_v3  ;;  %vm8005_vm1 = vmmov %vm7998_vm0 }
 0x7d6   :  { %4058 = vmatprep.mubr.msk.f32.mxu1 %vm7997_vm11, %v5286_v4  ;;  %vm8006_vm11 = vmmov %vm7998_vm0 }
 0x7d8   :  { %1594 = vrot.lane.b32.xlu0 %v1149_v48, %s4510_s23  ;;  %1588 = vrot.lane.b32.xlu1 %v1146_v49, %s4510_s23 }
 0x7d9   :  { %4059 = vmatmul.mubr.msk.f32.gmra.mrb[8].mxu1 %vm7998_vm0, %v5284_v62 }
 0x7da   :  { %4061 = vmatprep.mubr.msk.f32.mxu1 %vm7999_vm13, %v1142_v14  ;;  %vm8007_vm13 = vmmov %vm7998_vm0 }
 0x7dc   :  { %1598 = vrot.lane.b32.xlu0 %v1151_v52, %s4510_s23  ;;  %1592 = vrot.lane.b32.xlu1 %v1148_v20, %s4510_s23 }
 0x7dd   :  { %4062 = vmatmul.mubr.msk.f32.gmra.mrb[10].mxu1 %vm8000_vm14, %v5294_v5  ;;  %vm8008_vm14 = vmmov %vm7998_vm0 }
 0x7de   :  { %4064 = vmatprep.mubr.msk.f32.mxu1 %vm8001_vm8, %v1144_v47  ;;  %vm8009_vm8 = vmmov %vm7998_vm0 }
 0x7e0   :  { %1602 = vrot.lane.b32.xlu0 %v1153_v53, %s4510_s23  ;;  %1596 = vrot.lane.b32.xlu1 %v1150_v39, %s4510_s23 }
 0x7e1   :  { %4065 = vmatmul.mubr.msk.f32.gmra.mrb[12].mxu1 %vm8002_vm9, %v1145_v37  ;;  %vm8010_vm9 = vmmov %vm7998_vm0 }
 0x7e2   :  { %4067 = vmatprep.mubr.msk.f32.mxu1 %vm8003_vm15, %v1146_v49  ;;  %vm8011_vm15 = vmmov %vm7998_vm0 }
 0x7e4   :  { %1809 = vrot.lane.b32.xlu0 %v5278_v59, %s4527_s2  ;;  %1600 = vrot.lane.b32.xlu1 %v1152_v15, %s4510_s23 }
 0x7e5   :  { %4068 = vmatmul.mubr.msk.f32.gmra.mrb[14].mxu1 %vm8004_vm4, %v1147_v46  ;;  %vm8012_vm4 = vmmov %vm7998_vm0 }
 0x7e6   :  { %4070 = vmatprep.mubr.msk.f32.mxu1 %vm8005_vm1, %v1148_v20  ;;  %vm8013_vm1 = vmmov %vm7998_vm0 }
 0x7e8   :  { %4266 = vrot.lane.b32.xlu0 %v4250_v41, %s4527_s2  ;;  %1170 = vrot.lane.b32.xlu1 %v5278_v59, %s4525_s20 }
 0x7e9   :  { %4071 = vmatmul.mubr.msk.f32.gmra.mrb[16].mxu1 %vm8006_vm11, %v1149_v48  ;;  %vm8014_vm11 = vmmov %vm7998_vm0 }
 0x7ea   :  { %4073 = vmatprep.mubr.msk.f32.mxu1 %vm7998_vm0, %v1150_v39 }
 0x7ec   :  { %4276 = vrot.lane.b32.xlu0 %v4255_v36, %s4527_s2  ;;  %4261 = vrot.lane.b32.xlu1 %v4250_v41, %s4525_s20 }
 0x7ed   :  { %4074 = vmatmul.mubr.msk.f32.gmra.mrb[18].mxu1 %vm8007_vm13, %v1151_v52  ;;  %vm8015_vm13 = vmmov %vm7998_vm0 }
 0x7ee   :  { %4076 = vmatprep.mubr.msk.f32.mxu1 %vm8008_vm14, %v1152_v15  ;;  %vm8016_vm14 = vmmov %vm7998_vm0 }
 0x7f0   :  { %1811 = vrot.lane.b32.xlu0 %v5276_v3, %s4527_s2  ;;  %4271 = vrot.lane.b32.xlu1 %v4255_v36, %s4525_s20 }
 0x7f1   :  { %4077 = vmatmul.mubr.msk.f32.gmra.mrb[20].mxu1 %vm8009_vm8, %v1153_v53  ;;  %vm8017_vm8 = vmmov %vm7998_vm0 }
 0x7f2   :  { %4087 = vmatprep.mubr.msk.f32.mxu1 %vm8010_vm9, %v1573_v55  ;;  %vm8018_vm9 = vmmov %vm7998_vm0 }
 0x7f4   :  { %1813 = vrot.lane.b32.xlu0 %v5286_v4, %s4527_s2  ;;  %1172 = vrot.lane.b32.xlu1 %v5276_v3, %s4525_s20 }
 0x7f8   :  { %1815 = vrot.lane.b32.xlu0 %v5284_v62, %s4527_s2  ;;  %1174 = vrot.lane.b32.xlu1 %v5286_v4, %s4525_s20 }
 0x7fc   :  { %1817 = vrot.lane.b32.xlu0 %v1142_v14, %s4527_s2  ;;  %1176 = vrot.lane.b32.xlu1 %v5284_v62, %s4525_s20 }
 0x800   :  { %1819 = vrot.lane.b32.xlu0 %v5294_v5, %s4527_s2  ;;  %1178 = vrot.lane.b32.xlu1 %v1142_v14, %s4525_s20 }
 0x804   :  { %1821 = vrot.lane.b32.xlu0 %v1144_v47, %s4527_s2  ;;  %1180 = vrot.lane.b32.xlu1 %v5294_v5, %s4525_s20 }
 0x808   :  { %1823 = vrot.lane.b32.xlu0 %v1145_v37, %s4527_s2  ;;  %1182 = vrot.lane.b32.xlu1 %v1144_v47, %s4525_s20 }
 0x80c   :  { %1825 = vrot.lane.b32.xlu0 %v1146_v49, %s4527_s2  ;;  %1184 = vrot.lane.b32.xlu1 %v1145_v37, %s4525_s20 }
 0x810   :  { %1827 = vrot.lane.b32.xlu0 %v1147_v46, %s4527_s2  ;;  %1186 = vrot.lane.b32.xlu1 %v1146_v49, %s4525_s20 }
 0x814   :  { %1829 = vrot.lane.b32.xlu0 %v1148_v20, %s4527_s2  ;;  %1188 = vrot.lane.b32.xlu1 %v1147_v46, %s4525_s20 }
 0x818   :  { %1831 = vrot.lane.b32.xlu0 %v1149_v48, %s4527_s2  ;;  %1190 = vrot.lane.b32.xlu1 %v1148_v20, %s4525_s20 }
 0x81c   :  { %1833 = vrot.lane.b32.xlu0 %v1150_v39, %s4527_s2  ;;  %1192 = vrot.lane.b32.xlu1 %v1149_v48, %s4525_s20 }
 0x820   :  { %1835 = vrot.lane.b32.xlu0 %v1151_v52, %s4527_s2  ;;  %1194 = vrot.lane.b32.xlu1 %v1150_v39, %s4525_s20 }
 0x824   :  { %1837 = vrot.lane.b32.xlu0 %v1152_v15, %s4527_s2  ;;  %1196 = vrot.lane.b32.xlu1 %v1151_v52, %s4525_s20 }
 0x828   :  { %1839 = vrot.lane.b32.xlu0 %v1153_v53, %s4527_s2  ;;  %1198 = vrot.lane.b32.xlu1 %v1152_v15, %s4525_s20 }
 0x82c   :  { %1200 = vrot.lane.b32.xlu1 %v1153_v53, %s4525_s20 }
 0x83e   :  { %v4252_v51 = vpop.permute.xlu1 %4251  ;;  %v4257_v56 = vpop.permute.xlu0 %4256 }
 0x83f   :  { %v4254_v61 = vunpack.i.h.bf16 %v4252_v51  ;;  %v4253_v63 = vunpack.i.l.bf16 %v4252_v51  ;;  %v4259_v1 = vunpack.i.h.bf16 %v4257_v56  ;;  %v4258_v0 = vunpack.i.l.bf16 %v4257_v56 }
 0x841   :  { %v4165_v2 = vpack.c.bf16 %v4254_v61, %v4253_v63  ;;  %v4169_v59 = vpack.c.bf16 %v4259_v1, %v4258_v0 }
 0x842   :  { %v1581_v54 = vpop.permute.xlu1 %1580  ;;  %v1587_v3 = vpop.permute.xlu0 %1586 }
 0x843   :  { %4166 = vmatprep.subr.bf16.mxu1 %v4165_v2 }
 0x844   :  { %4168 = vmatpush3.bf16.msra.mxu1 %v4165_v2 }
 0x845   :  { %4170 = vmatprep.subr.bf16.mxu1 %v4169_v59 }
 0x846   :  { %v1585_v62 = vpop.permute.xlu1 %1584  ;;  %v1591_v4 = vpop.permute.xlu0 %1590 }
 0x848   :  { %4172 = vmatpush3.bf16.msra.mxu1 %v4169_v59  ;;  %v2090_v59 = vshra.s32 %v4706_v43, 3 }
 0x84a   :  { %v1589_v5 = vpop.permute.xlu1 %1588  ;;  %v1595_v6 = vpop.permute.xlu0 %1594 }
 0x84b   :  { %4088 = vmatmul.mubr.msk.f32.vlgmr.msra.gmra.mrb[2].mxu1 %vm8011_vm15, %v1575_v57  ;;  %vm8019_vm15 = vmmov %vm7998_vm0 }
 0x84c   :  { %4090 = vmatprep.mubr.msk.f32.mxu1 %vm8012_vm4, %v1577_v44  ;;  %vm8020_vm4 = vmmov %vm7998_vm0 }
 0x84e   :  { %v1593_v8 = vpop.permute.xlu1 %1592  ;;  %v1599_v9 = vpop.permute.xlu0 %1598 }
 0x84f   :  { %4091 = vmatmul.mubr.msk.f32.gmra.mrb[8].mxu1 %vm8013_vm1, %v1579_v58  ;;  %vm8021_vm1 = vmmov %vm7998_vm0 }
 0x850   :  { %4093 = vmatprep.mubr.msk.f32.mxu1 %vm8014_vm11, %v1581_v54  ;;  %vm8022_vm11 = vmmov %vm7998_vm0 }
 0x852   :  { %v1597_v10 = vpop.permute.xlu1 %1596  ;;  %v1603_v11 = vpop.permute.xlu0 %1602 }
 0x853   :  { %4094 = vmatmul.mubr.msk.f32.gmra.mrb[10].mxu1 %vm7998_vm0, %v1583_v60 }
 0x854   :  { %4096 = vmatprep.mubr.msk.f32.mxu1 %vm8015_vm13, %v1585_v62  ;;  %vm8023_vm13 = vmmov %vm7998_vm0  ;;  %v2091_v62 = vshra.s32 %v4799_v18, 3 }
 0x856   :  { %v1601_v12 = vpop.permute.xlu1 %1600  ;;  %v1810_v17 = vpop.permute.xlu0 %1809 }
 0x857   :  { %4097 = vmatmul.mubr.msk.f32.gmra.mrb[12].mxu1 %vm8016_vm14, %v1587_v3  ;;  %vm8024_vm14 = vmmov %vm7998_vm0 }
 0x858   :  { %4099 = vmatprep.mubr.msk.f32.mxu1 %vm8017_vm8, %v1589_v5  ;;  %vm8025_vm8 = vmmov %vm7998_vm0  ;;  %v5430_v5 = vand.u32 7, %v2091_v62  ;;  %v8072_v62 = vmov 0 }
 0x85a   :  { %v1171_v19 = vpop.permute.xlu1 %1170  ;;  %v4267_v22 = vpop.permute.xlu0 %4266  ;;  %vm2635_vm10 = vcmp.ge.s32.totalorder %v5430_v5, 0  ;;  %vm2651_vm12 = vcmp.lt.s32.totalorder %v5430_v5, 8 }
 0x85b   :  { %v4269_v23 = vunpack.i.h.bf16 %v4267_v22  ;;  %v4268_v16 = vunpack.i.l.bf16 %v4267_v22  ;;  %4100 = vmatmul.mubr.msk.f32.gmra.mrb[14].mxu1 %vm8018_vm9, %v1591_v4  ;;  %4023 = vmatprep.mubr.msk.f32.mxu0 %vm8019_vm15, %v1171_v19  ;;  %vm8026_vm9 = vmmov %vm7998_vm0  ;;  %v5428_v4 = vand.u32 7, %v2090_v59 }
 0x85c   :  { %4102 = vmatprep.mubr.msk.f32.mxu1 %vm8020_vm4, %v1593_v8  ;;  %vm8027_vm15 = vmmov %vm7998_vm0  ;;  %v2075_v8 = vand.u32 7, %v4799_v18  ;;  %v5444_v18 = vadd.s32 1, %v5430_v5 }
 0x85d   :  { %v4173_v25 = vpack.c.bf16 %v4269_v23, %v4268_v16  ;;  %vm8028_vm4 = vmmov %vm7998_vm0  ;;  %v3018_v22 = vadd.s32 1, %v5428_v4  ;;  %v2093_v23 = vshra.s32 %v4816_v29, 3  ;;  %v4299_v16 = vld [vmem:[#allocation14 + $0x8] sm:$0xff]   ;;  %vm2634_vm5 = vcmp.ge.s32.totalorder %v5428_v4, 0 }
 0x85e   :  { %v4262_v26 = vpop.permute.xlu1 %4261  ;;  %v4277_v27 = vpop.permute.xlu0 %4276  ;;  %v5439_v19 = vadd.s32 1, %v2075_v8  ;;  %vm2650_vm6 = vcmp.lt.s32.totalorder %v5428_v4, 8 }
 0x85f   :  { %v4264_v28 = vunpack.i.h.bf16 %v4262_v26  ;;  %v4263_v30 = vunpack.i.l.bf16 %v4262_v26  ;;  %v4279_v31 = vunpack.i.h.bf16 %v4277_v27  ;;  %v4278_v32 = vunpack.i.l.bf16 %v4277_v27  ;;  %4103 = vmatmul.mubr.msk.f32.gmra.mrb[16].mxu1 %vm8021_vm1, %v1595_v6  ;;  %4174 = vmatprep.subr.bf16.mxu1 %v4173_v25  ;;  %vm8029_vm1 = vmmov %vm7998_vm0 }
 0x860   :  { %4176 = vmatpush3.bf16.msra.mxu1 %v4173_v25  ;;  %4105 = vmatprep.mubr.msk.f32.mxu1 %vm8022_vm11, %v1597_v10  ;;  %vm8030_vm11 = vmmov %vm7998_vm0  ;;  %v2074_v6 = vand.u32 7, %v4706_v43  ;;  %v4298_v10 = vld [vmem:[#allocation14] sm:$0xff]   ;;  %v2076_v26 = vand.u32 7, %v4809_v24  ;;  %v5451_v27 = vadd.s32 32, %v4706_v43 }
 0x861   :  { %v4149_v33 = vpack.c.bf16 %v4264_v28, %v4263_v30  ;;  %v4177_v34 = vpack.c.bf16 %v4279_v31, %v4278_v32  ;;  %v8053_v28 = vmov 0  ;;  %v5457_v30 = vld [vmem:[#allocation2 + $0x8] sm:$0xff]  ;;  %v5461_v32 = vadd.s32 4294967295, %v2075_v8 }
 0x862   :  { %v4272_v40 = vpop.permute.xlu1 %4271  ;;  %v1812_v42 = vpop.permute.xlu0 %1811  ;;  %v5459_v31 = vadd.s32 4294967295, %v2074_v6 }
 0x863   :  { %v4274_v21 = vunpack.i.h.bf16 %v4272_v40  ;;  %v4273_v7 = vunpack.i.l.bf16 %v4272_v40  ;;  %4150 = vmatprep.subr.bf16.mxu0 %v4149_v33  ;;  %4106 = vmatmul.mubr.msk.f32.gmra.mrb[18].mxu1 %vm7998_vm0, %v1599_v9  ;;  %v2138_v9 = vadd.s32 4294967295, %v5428_v4  ;;  %v4300_v40 = vld [vmem:[#allocation14 + $0x10] sm:$0xff]   ;;  %vm8076_vm7 = vcmp.ge.s32.totalorder %v5461_v32, 0 }
 0x864   :  { %4178 = vmatprep.subr.bf16.mxu1 %v4177_v34  ;;  %4152 = vmatpush3.bf16.msra.mxu0 %v4149_v33  ;;  %v5467_v33 = vadd.s32 40, %v4706_v43  ;;  %vm7711_vm2 = vcmp.ge.s32.totalorder %v5459_v31, 0 }
 0x865   :  { %v4153_v35 = vpack.c.bf16 %v4274_v21, %v4273_v7  ;;  %4180 = vmatpush3.bf16.msra.mxu1 %v4177_v34  ;;  %4108 = vmatprep.mubr.msk.f32.mxu1 %vm8023_vm13, %v1601_v12  ;;  %vm8031_vm13 = vmmov %vm7998_vm0  ;;  %v2139_v12 = vadd.s32 4294967295, %v5430_v5  ;;  %v5471_v34 = vand.u32 7, %v2093_v23  ;;  %v5483_v21 = vadd.s32 4294967295, %v2076_v26 }
 0x866   :  { %v1173_v36 = vpop.permute.xlu1 %1172  ;;  %v1814_v41 = vpop.permute.xlu0 %1813  ;;  %v2094_v7 = vshra.s32 %v5451_v27, 3  ;;  %v8077_v5 = vmov 0  ;;  %v8084_v23 = vmov 0 }
 0x867   :  { %4154 = vmatprep.subr.bf16.mxu0 %v4153_v35  ;;  %4109 = vmatmul.mubr.msk.f32.gmra.mrb[20].mxu1 %vm8024_vm14, %v1603_v11  ;;  %vm8032_vm14 = vmmov %vm7998_vm0  ;;  %v2092_v11 = vshra.s32 %v4809_v24, 3  ;;  %v2077_v24 = vand.u32 7, %v4816_v29 }
 0x868   :  { %4156 = vmatpush3.bf16.msra.mxu0 %v4153_v35  ;;  %4119 = vmatprep.mubr.msk.f32.mxu1 %vm8025_vm8, %v1810_v17  ;;  %vm8033_vm8 = vmmov %vm7998_vm0  ;;  %v5437_v17 = vadd.s32 1, %v2074_v6  ;;  %v8080_v6 = vmov 0 }
 0x869   :  { %3482 = vmatprep.subr.bf16.mxu0 %v7718_v38  ;;  %v5447_v25 = vand.u32 7, %v2092_v11  ;;  %v5488_v35 = vadd.s32 4294967295, %v2077_v24  ;;  %v5629_v11 = vadd.s32 72, %v4706_v43 }
 0x86a   :  { %v1175_v13 = vpop.permute.xlu1 %1174  ;;  %v1816_v45 = vpop.permute.xlu0 %1815 }
 0x86b   :  { %4024 = vmatmul.mubr.msk.f32.vlgmr.msra.gmra.mrb[8].mxu0 %vm8026_vm9, %v1173_v36  ;;  %4120 = vmatmul.mubr.msk.f32.vlgmr.msra.gmra.mrb[2].mxu1 %vm8027_vm15, %v1812_v42  ;;  %vm8034_vm9 = vmmov %vm7998_vm0  ;;  %v5479_v29 = vadd.s32 4294967295, %v5447_v25  ;;  %v2095_v36 = vshra.s32 %v5467_v33, 3 }
 0x86c   :  { %4026 = vmatprep.mubr.msk.f32.mxu0 %vm8028_vm4, %v1175_v13  ;;  %4122 = vmatprep.mubr.msk.f32.mxu1 %vm8029_vm1, %v1814_v41  ;;  %vm8035_vm15 = vmmov %vm7998_vm0  ;;  %v5494_v41 = vadd.s32 4294967295, %v5471_v34  ;;  %v5496_v13 = vadd.s32 1, %v2076_v26 }
 0x86d   :  { %vm8036_vm4 = vmmov %vm7998_vm0  ;;  %3483 = vmatpush1.bf16.msra.mxu0 %v4298_v10  ;;  %v5626_v10 = vadd.s32 64, %v4706_v43 }
 0x86e   :  { %v1177_v37 = vpop.permute.xlu1 %1176  ;;  %v1818_v14 = vpop.permute.xlu0 %1817  ;;  %vm8037_vm1 = vmmov %vm7998_vm0  ;;  %3484 = vmatprep.subr.bf16.mxu0 %v7718_v38 }
 0x86f   :  { %4027 = vmatmul.mubr.msk.f32.gmra.mrb[10].mxu0 %vm8030_vm11, %v1177_v37  ;;  %4123 = vmatmul.mubr.msk.f32.gmra.mrb[8].mxu1 %vm7998_vm0, %v1816_v45  ;;  %vm8038_vm11 = vmmov %vm7998_vm0  ;;  %v5499_v45 = vadd.s32 48, %v4706_v43  ;;  %v4301_v37 = vld [vmem:[#allocation14 + $0x18] sm:$0xff]  }
 0x870   :  { %4125 = vmatprep.mubr.msk.f32.mxu1 %vm8031_vm13, %v1818_v14  ;;  %vm8039_vm13 = vmmov %vm7998_vm0 }
 0x871   :  { %3485 = vmatpush1.bf16.msra.mxu0 %v4299_v16 }
 0x872   :  { %v1179_v46 = vpop.permute.xlu1 %1178  ;;  %v1820_v47 = vpop.permute.xlu0 %1819  ;;  %3486 = vmatprep.subr.bf16.mxu0 %v7718_v38 }
 0x873   :  { %4126 = vmatmul.mubr.msk.f32.gmra.mrb[10].mxu1 %vm8032_vm14, %v1820_v47  ;;  %4029 = vmatprep.mubr.msk.f32.mxu0 %vm8033_vm8, %v1179_v46  ;;  %vm8040_vm14 = vmmov %vm7998_vm0  ;;  %v5510_v46 = vadd.s32 1, %v5447_v25  ;;  %v5513_v47 = vadd.s32 56, %v4706_v43 }
 0x874   :  { %vm8041_vm8 = vmmov %vm7998_vm0 }
 0x875   :  { %3487 = vmatpush1.bf16.msra.mxu0 %v4300_v40 }
 0x876   :  { %v1181_v48 = vpop.permute.xlu1 %1180  ;;  %v1822_v49 = vpop.permute.xlu0 %1821  ;;  %3488 = vmatprep.subr.bf16.mxu0 %v7718_v38 }
 0x877   :  { %4030 = vmatmul.mubr.msk.f32.gmra.mrb[12].mxu0 %vm8034_vm9, %v1181_v48  ;;  %4128 = vmatprep.mubr.msk.f32.mxu1 %vm8035_vm15, %v1822_v49  ;;  %vm8042_vm9 = vmmov %vm7998_vm0  ;;  %v5515_v48 = vld [vmem:[#allocation2 + $0x7] sm:$0xff]  ;;  %v8057_v49 = vmov 0 }
 0x878   :  { %vm8043_vm15 = vmmov %vm7998_vm0 }
 0x879   :  { %3489 = vmatpush1.bf16.msra.mxu0 %v4301_v37  ;;  %v8091_v37 = vmov 0 }
 0x87a   :  { %v1183_v52 = vpop.permute.xlu1 %1182  ;;  %v1824_v20 = vpop.permute.xlu0 %1823  ;;  %3490 = vmatprep.subr.bf16.mxu0 %v7718_v38 }
 0x87b   :  { %4129 = vmatmul.mubr.msk.f32.gmra.mrb[12].mxu1 %vm8036_vm4, %v1824_v20  ;;  %4032 = vmatprep.mubr.msk.f32.mxu0 %vm8037_vm1, %v1183_v52  ;;  %vm8044_vm4 = vmmov %vm7998_vm0  ;;  %v5525_v52 = vadd.s32 1, %v2077_v24  ;;  %v5531_v20 = vadd.s32 1, %v5471_v34  ;;  %v2081_v24 = vand.u32 7, %v5513_v47 }
 0x87c   :  { %vm8045_vm1 = vmmov %vm7998_vm0 }
 0x87e   :  { %v1185_v53 = vpop.permute.xlu1 %1184  ;;  %v1826_v39 = vpop.permute.xlu0 %1825 }
 0x87f   :  { %4033 = vmatmul.mubr.msk.f32.gmra.mrb[14].mxu0 %vm8038_vm11, %v1185_v53  ;;  %4131 = vmatprep.mubr.msk.f32.mxu1 %vm7998_vm0, %v1826_v39  ;;  %vm8046_vm11 = vmmov %vm7998_vm0  ;;  %v5533_v53 = vand.u32 7, %v2094_v7  ;;  %v8059_v39 = vmov 0 }
 0x881   :  { %v5601_v4 = vadd.s32 4294967295, %v5533_v53 }
 0x882   :  { %v1187_v15 = vpop.permute.xlu1 %1186  ;;  %v1828_v55 = vpop.permute.xlu0 %1827 }
 0x883   :  { %4132 = vmatmul.mubr.msk.f32.gmra.mrb[14].mxu1 %vm8039_vm13, %v1828_v55  ;;  %4035 = vmatprep.mubr.msk.f32.mxu0 %vm8040_vm14, %v1187_v15  ;;  %vm8047_vm13 = vmmov %vm7998_vm0  ;;  %v5544_v15 = vand.u32 7, %v2095_v36  ;;  %v8088_v36 = vmov 0 }
 0x884   :  { %vm8048_vm14 = vmmov %vm7998_vm0 }
 0x885   :  { %v5621_v8 = vadd.s32 4294967295, %v5544_v15  ;;  %v5645_v26 = vadd.s32 1, %v5544_v15 }
 0x886   :  { %v1189_v57 = vpop.permute.xlu1 %1188  ;;  %v1830_v58 = vpop.permute.xlu0 %1829 }
 0x887   :  { %4036 = vmatmul.mubr.msk.f32.gmra.mrb[16].mxu0 %vm8041_vm8, %v1189_v57  ;;  %4134 = vmatprep.mubr.msk.f32.mxu1 %vm8042_vm9, %v1830_v58  ;;  %vm8049_vm8 = vmmov %vm7998_vm0 }
 0x888   :  { %vm8050_vm9 = vmmov %vm7998_vm0 }
 0x88a   :  { %v1191_v44 = vpop.permute.xlu1 %1190  ;;  %v1832_v60 = vpop.permute.xlu0 %1831 }
 0x88b   :  { %4135 = vmatmul.mubr.msk.f32.gmra.mrb[16].mxu1 %vm8043_vm15, %v1832_v60  ;;  %4038 = vmatprep.mubr.msk.f32.mxu0 %vm8044_vm4, %v1191_v44  ;;  %vm8051_vm15 = vmmov %vm7998_vm0  ;;  %v2079_v44 = vand.u32 7, %v5467_v33  ;;  %v2096_v60 = vshra.s32 %v5499_v45, 3 }
 0x88c   :  { %vm8052_vm4 = vmmov %vm7998_vm0 }
 0x88d   :  { %v5642_v16 = vadd.s32 1, %v2079_v44 }
 0x88e   :  { %v1193_v51 = vpop.permute.xlu1 %1192  ;;  %v1834_v56 = vpop.permute.xlu0 %1833 }
 0x88f   :  { %4039 = vmatmul.mubr.msk.f32.gmra.mrb[18].mxu0 %vm8045_vm1, %v1193_v51  ;;  %4137 = vmatprep.mubr.msk.f32.mxu1 %vm8046_vm11, %v1834_v56  ;;  %vm2154_vm1 = vcmp.ge.s32.totalorder %v2138_v9, 0  ;;  %vm2170_vm11 = vcmp.lt.s32.totalorder %v2138_v9, 8 }
 0x892   :  { %v1195_v61 = vpop.permute.xlu1 %1194  ;;  %v1836_v63 = vpop.permute.xlu0 %1835 }
 0x893   :  { %4138 = vmatmul.mubr.msk.f32.gmra.mrb[18].mxu1 %vm7998_vm0, %v1836_v63  ;;  %4041 = vmatprep.mubr.msk.f32.mxu0 %vm8047_vm13, %v1195_v61  ;;  %vm2155_vm0 = vcmp.ge.s32.totalorder %v2139_v12, 0  ;;  %vm2171_vm13 = vcmp.lt.s32.totalorder %v2139_v12, 8  ;;  %v4302_v12 = vld [vmem:[#allocation14 + $0x20] sm:$0xff]  }
 0x894   :  { %vm5503_vm3 = vmand %vm2155_vm0, %vm2171_vm13  ;;  %3491 = vmatpush1.bf16.msra.mxu0 %v4302_v12 }
 0x895   :  { %3492 = vmatprep.subr.bf16.mxu0 %v7718_v38  ;;  %v8133_v38 = vmov 0 }
 0x896   :  { %v1197_v1 = vpop.permute.xlu1 %1196  ;;  %v1838_v0 = vpop.permute.xlu0 %1837 }
 0x897   :  { %4042 = vmatmul.mubr.msk.f32.gmra.mrb[20].mxu0 %vm8048_vm14, %v1197_v1  ;;  %4140 = vmatprep.mubr.msk.f32.mxu1 %vm8049_vm8, %v1838_v0  ;;  %vm5453_vm14 = vmand %vm2154_vm1, %vm2170_vm11  ;;  %vm7713_vm8 = vcmp.lt.s32.totalorder %v5437_v17, 8  ;;  %vm3050_vm1 = vcmp.lt.s32.totalorder %v3018_v22, 8  ;;  %vm8075_vm11 = vcmask 130048  }
 0x898   :  { %v8054_v28 = vsel %vm5453_vm14, 4294967295, %v8053_v28  ;;  %vm5521_vm0 = vmand %vm5453_vm14, %vm7711_vm2 }
 0x899   :  { %v8058_v49 = vsel %vm5521_vm0, 4294967295, %v8057_v49  ;;  %vm8093_vm0 = vcmp.lt.s32.totalorder %v5479_v29, 8 }
 0x89a   :  { %v1199_v2 = vpop.permute.xlu1 %1198  ;;  %v1840_v54 = vpop.permute.xlu0 %1839 }
 0x89b   :  { %4141 = vmatmul.mubr.msk.f32.gmra.mrb[20].mxu1 %vm8050_vm9, %v1840_v54  ;;  %4044 = vmatprep.mubr.msk.f32.mxu0 %vm8051_vm15, %v1199_v2  ;;  %vm7712_vm9 = vcmp.lt.s32.totalorder %v5439_v19, 8  ;;  %vm3034_vm15 = vcmp.ge.s32.totalorder %v3018_v22, 0  ;;  %v2078_v54 = vand.u32 7, %v5451_v27  ;;  %v5647_v27 = vand.u32 7, %v2096_v60 }
 0x89c   :  { %vm5537_vm2 = vmand %vm3034_vm15, %vm3050_vm1  ;;  %vm8070_vm1 = vcmp.lt.s32.totalorder %v5444_v18, 8  ;;  %v2080_v60 = vand.u32 7, %v5499_v45  ;;  %v2098_v45 = vshra.s32 %v5626_v10, 3  ;;  %v2082_v2 = vand.u32 7, %v5626_v10 }
 0x89d   :  { %v8060_v39 = vsel %vm5537_vm2, 4294967295, %v8059_v39  ;;  %vm5551_vm15 = vmand %vm2634_vm5, %vm2650_vm6  ;;  %v5623_v9 = vadd.s32 1, %v2078_v54  ;;  %8086 = vst [vmem:[#allocation22_spill] sm:$0xff] %v5647_v27  ;;  %v5791_v50 = vadd.s32 1, %v5647_v27  ;;  %v5798_v10 = vadd.s32 80, %v4706_v43 }
 0x89e   :  { %v1201_v3 = vpop.permute.xlu1 %1200  ;;  %8061 = vst [vmem:[#allocation20_spill] sm:$0xff] %v8060_v39  ;;  %vm5571_vm6 = vmand %vm5503_vm3, %vm7712_vm9  ;;  %vm8090_vm9 = vcmp.lt.s32.totalorder %v5439_v19, 8  ;;  %v5722_v12 = vadd.s32 1, %v2080_v60 }
 0x89f   :  { %4045 = vmatmul.mubr.msk.f32.gmra.mrb[22].mxu0 %vm8052_vm4, %v1201_v3  ;;  %vm5563_vm4 = vmand %vm5453_vm14, %vm7713_vm8  ;;  %v2097_v3 = vshra.s32 %v5513_v47, 3  ;;  %vm8107_vm14 = vcmp.lt.s32.totalorder %v5439_v19, 8  ;;  %v8113_v19 = vmov 0 }
 0x8a0   :  { %vm5579_vm5 = vmand %vm2635_vm10, %vm2651_vm12  ;;  %vm8071_vm12 = vcmp.ge.s32.totalorder %v5444_v18, 0  ;;  %8110 = vst [vmem:[#allocation25_spill] sm:$0xff] %v5722_v12 }
 0x8a1   :  { %vm5594_vm10 = vmand %vm8071_vm12, %vm8070_vm1  ;;  %vm8079_vm1 = vcmp.ge.s32.totalorder %v5459_v31, 0 }
 0x8a2   :  { %v8073_v62 = vsel %vm5594_vm10, 4294967295, %v8072_v62  ;;  %vm5608_vm8 = vmand %vm5503_vm3, %vm8076_vm7 }
 0x8a3   :  { %8074 = vst [vmem:[#allocation21_spill] sm:$0xff] %v8073_v62  ;;  %v8078_v5 = vsel %vm5608_vm8, 4294967295, %v8077_v5  ;;  %vm5616_vm12 = vmand %vm5551_vm15, %vm8079_vm1  ;;  %vm8094_vm8 = vcmp.ge.s32.totalorder %v5479_v29, 0  ;;  %v5689_v29 = vadd.s32 4294967295, %v2078_v54  ;;  %v4303_v54 = vld [vmem:[#allocation14 + $0x28] sm:$0xff]  }
 0x8a4   :  { %v8081_v6 = vsel %vm5616_vm12, 4294967295, %v8080_v6  ;;  %vm8082_vm7 = vmmov %vm8075_vm11  ;;  %3493 = vmatpush1.bf16.msra.mxu0 %v4303_v54  ;;  %v8135_v54 = vmov 0  }
 0x8a5   :  { %vm5662_vm13 = vmand %vm5594_vm10, %vm8090_vm9  ;;  %vm8099_vm9 = vcmp.lt.s32.totalorder %v5494_v41, 8  ;;  %3494 = vmatprep.subr.bf16.mxu0 %v8135_v54 }
 0x8a6   :  { %v8092_v37 = vsel %vm5662_vm13, 4294967295, %v8091_v37 }
 0x93e   :  { %v4025_v55 = vpop.f32.mrb[8].mxu0  ;;  %v4121_v57 = vpop.f32.mrb[2].mxu1 }
 0x93f   :  { %v4181_v51 = vadd.f32 %v4121_v57, %v4025_v55  ;;  %v1316_v56 = vpop.f32.mrb[9].mxu0  ;;  %v1951_v61 = vpop.f32.mrb[3].mxu1  ;;  %v5675_v55 = vadd.s32 1, %v5533_v53  ;;  %v5677_v57 = vand.u32 7, %v2097_v3  ;;  %v8108_v3 = vmov 0 }
 0x940   :  { %v4182_v59 = vadd.f32 %v1951_v61, %v1316_v56  ;;  %v5691_v61 = vadd.s32 4294967295, %v2079_v44  ;;  %v2099_v44 = vshra.s32 %v5629_v11, 3  ;;  %v8244_v56 = vmov 0 }
 0x941   :  { %2047 = vst.msk [vmem:[#allocation2 + $0x18] sm:$0xff] %vm8075_vm11, %v4181_v51  ;;  %vm8083_vm11 = vcmp.ge.s32.totalorder %v5461_v32, 0  ;;  %8097 = vst [vmem:[#allocation23_spill] sm:$0xff] %v5675_v55 }
 0x942   :  { %2046 = vst.msk [vmem:[#allocation2 + $0x10] sm:$0xff] %vm8082_vm7, %v4182_v59  ;;  %v4028_v22 = vpop.f32.mrb[10].mxu0  ;;  %v4124_v18 = vpop.f32.mrb[8].mxu1  ;;  %vm5636_vm1 = vmand %vm5579_vm5, %vm8083_vm11  ;;  %vm8087_vm7 = vcmp.lt.s32.totalorder %v5437_v17, 8  ;;  %v5720_v59 = vadd.s32 4294967295, %v5647_v27  ;;  %v5805_v62 = vand.u32 7, %v2099_v44 }
 0x943   :  { %v8085_v23 = vsel %vm5636_vm1, 4294967295, %v8084_v23  ;;  %v4183_v33 = vadd.f32 %v4124_v18, %v4028_v22  ;;  %v1326_v40 = vpop.f32.mrb[11].mxu0  ;;  %v1961_v7 = vpop.f32.mrb[9].mxu1  ;;  %vm5654_vm11 = vmand %vm5537_vm2, %vm8087_vm7  ;;  %8098 = vst [vmem:[#allocation24_spill] sm:$0xff] %v5677_v57  ;;  %vm8100_vm7 = vcmp.ge.s32.totalorder %v5494_v41, 0  ;;  %v8105_v41 = vmov 0 }
 0x944   :  { %v8089_v36 = vsel %vm5654_vm11, 4294967295, %v8088_v36  ;;  %vm5670_vm1 = vmand %vm8094_vm8, %vm8093_vm0  ;;  %v4184_v51 = vadd.f32 %v1961_v7, %v1326_v40  ;;  %vm8103_vm0 = vcmask 130048   ;;  %vm8104_vm11 = vcmp.ge.s32.totalorder %v5461_v32, 0  ;;  %8137 = vst [vmem:[#allocation31_spill] sm:$0xff] %v5805_v62 }
 0x945   :  { %vm5684_vm13 = vmand %vm8100_vm7, %vm8099_vm9  ;;  %2049 = vst.msk [vmem:[#allocation2 + $0x28] sm:$0xff] %vm8103_vm0, %v4183_v33  ;;  %v5724_v22 = vadd.s32 1, %v2081_v24  ;;  %vm8115_vm9 = vcmp.lt.s32.totalorder %v5437_v17, 8  ;;  %v8116_v33 = vmov 0  ;;  %vm8118_vm7 = vcmp.ge.s32.totalorder %v5483_v21, 0 }
 0x946   :  { %vm5699_vm12 = vmand %vm5594_vm10, %vm8104_vm11  ;;  %2048 = vst.msk [vmem:[#allocation2 + $0x20] sm:$0xff] %vm8103_vm0, %v4184_v51  ;;  %v4127_v32 = vpop.f32.mrb[10].mxu1  ;;  %vm8112_vm0 = vcmp.ge.s32.totalorder %v5459_v31, 0  ;;  %v8119_v31 = vmov 0  ;;  %v8122_v17 = vmov 0  ;;  %v5773_v7 = vadd.s32 4294967295, %v5677_v57 }
 0x947   :  { %v8106_v41 = vsel %vm5699_vm12, 4294967295, %v8105_v41  ;;  %vm5713_vm11 = vmand %vm5579_vm5, %vm8107_vm14  ;;  %8111 = vst [vmem:[#allocation26_spill] sm:$0xff] %v5724_v22  ;;  %v1971_v18 = vpop.f32.mrb[11].mxu1  ;;  %v5777_v51 = vadd.s32 4294967295, %v2081_v24  ;;  %v2083_v24 = vand.u32 7, %v5629_v11  ;;  %v5807_v27 = vadd.s32 1, %v2082_v2 }
 0x948   :  { %v8109_v3 = vsel %vm5713_vm11, 4294967295, %v8108_v3  ;;  %vm5730_vm14 = vmand %vm5537_vm2, %vm8112_vm0  ;;  %vm8121_vm0 = vcmp.ge.s32.totalorder %v5488_v35, 0  ;;  %v5780_v42 = vld [vmem:[#allocation2 + $0x18] sm:$0xff]  ;;  %v8141_v44 = vmov 0  ;;  %vm8167_vm12 = vnez %v8089_v36 }
 0x949   :  { %v8114_v19 = vsel %vm5730_vm14, 4294967295, %v8113_v19  ;;  %vm5738_vm8 = vmand %vm5551_vm15, %vm8115_vm9  ;;  %vm8124_vm9 = vcmp.lt.s32.totalorder %v5447_v25, 8  ;;  %8129 = vst [vmem:[#allocation28_spill] sm:$0xff] %v5777_v51  ;;  %v2458_v39 = vld [vmem:[#allocation2 + $0x9] sm:$0xff]  ;;  %v5801_v51 = vld [vmem:[#allocation2 + $0x11] sm:$0xff]  ;;  %v8173_v36 = vmov 0 }
 0x94a   :  { %v8117_v33 = vsel %vm5738_vm8, 4294967295, %v8116_v33  ;;  %vm5746_vm10 = vmand %vm5670_vm1, %vm8118_vm7  ;;  %vm8125_vm8 = vcmp.ge.s32.totalorder %v5447_v25, 0  ;;  %v5775_v25 = vadd.s32 4294967295, %v2080_v60  ;;  %8130 = vst [vmem:[#allocation29_spill] sm:$0xff] %v5780_v42  ;;  %v5794_v60 = vadd.s32 1, %v5677_v57  ;;  %v4031_v22 = vpop.f32.mrb[12].mxu0 }
 0x94b   :  { %v8120_v31 = vsel %vm5746_vm10, 4294967295, %v8119_v31  ;;  %vm5754_vm2 = vmand %vm5684_vm13, %vm8121_vm0  ;;  %8138 = vst [vmem:[#allocation32_spill] sm:$0xff] %v5807_v27  ;;  %v2554_v57 = vsel %vm5563_vm4, %v2458_v39, 0.0  ;;  %v2555_v11 = vsel %vm5571_vm6, %v5801_v51, 0.0  ;;  %v2618_v55 = vld [vmem:[#allocation2 + $0xf] sm:$0xff]  ;;  %v4185_v14 = vadd.f32 %v4127_v32, %v4031_v22  ;;  %v1336_v39 = vpop.f32.mrb[13].mxu0 }
 0x94c   :  { %v8123_v17 = vsel %vm5754_vm2, 4294967295, %v8122_v17  ;;  %vm5762_vm14 = vmand %vm8125_vm8, %vm8124_vm9  ;;  %8128 = vst [vmem:[#allocation27_spill] sm:$0xff] %v5775_v25  ;;  %vm8131_vm8 = vcmp.lt.s32.totalorder %v5471_v34, 8  ;;  %vm8132_vm9 = vcmp.ge.s32.totalorder %v5471_v34, 0  ;;  %v2315_v34 = vld [vmem:[#allocation2 + $0x10] sm:$0xff]  ;;  %v5803_v25 = vand.u32 7, %v2098_v45 }
 0x94d   :  { %vm5786_vm10 = vmand %vm8132_vm9, %vm8131_vm8  ;;  %v2395_v12 = vsel %vm5503_vm3, %v2315_v34, 0.0  ;;  %v2827_v45 = vsel %vm5579_vm5, %v5780_v42, 0.0  ;;  %vm8139_vm8 = vcmp.lt.s32.totalorder %v5510_v46, 8  ;;  %vm8140_vm9 = vcmp.ge.s32.totalorder %v5510_v46, 0  ;;  %v5836_v27 = vld [vmem:[#allocation2 + $0x17] sm:$0xff] }
 0x94e   :  { %v8134_v38 = vsel %vm5786_vm10, 4294967295, %v8133_v38  ;;  %8136 = vst [vmem:[#allocation30_spill] sm:$0xff] %v5803_v25  ;;  %vm5823_vm0 = vmand %vm8140_vm9, %vm8139_vm8  ;;  %v2570_v63 = vpack.c.bf16 %v2555_v11, %v2554_v57  ;;  %vm8143_vm3 = vnez %v8054_v28  ;;  %v2826_v46 = vsel %vm5551_vm15, %v2315_v34, 0.0  ;;  %v4304_v28 = vld [vmem:[#allocation14 + $0x30] sm:$0xff]  }
 0x94f   :  { %v8142_v44 = vsel %vm5823_vm0, 4294967295, %v8141_v44  ;;  %v8144_v1 = vsel %vm8143_vm3, %v5457_v30, 0.0  ;;  %vm8145_vm5 = vcmp.lt.s32.totalorder %v5531_v20, 8  ;;  %vm8146_vm8 = vcmp.ge.s32.totalorder %v5531_v20, 0  ;;  %3495 = vmatpush1.bf16.msra.mxu0 %v4304_v28  ;;  %v4305_v28 = vld [vmem:[#allocation14 + $0x38] sm:$0xff]  }
 0x950   :  { %v2410_v0 = vpack.c.bf16 %v2395_v12, %v8144_v1  ;;  %vm5842_vm9 = vmand %vm8146_vm8, %vm8145_vm5  ;;  %v8147_v42 = vmov 0  ;;  %v4186_v30 = vadd.f32 %v1971_v18, %v1336_v39  ;;  %vm8150_vm15 = vnez %v8081_v6  ;;  %2586 = vrot.lane.b32.xlu0 %v2570_v63, %s4527_s2  ;;  %v5868_v6 = vld [vmem:[#allocation2 + $0x19] sm:$0xff]  ;;  %v4130_v39 = vpop.f32.mrb[12].mxu1  ;;  %3496 = vmatprep.subr.bf16.mxu0 %v8135_v54 }
 0x951   :  { %v8148_v42 = vsel %vm5842_vm9, 4294967295, %v8147_v42  ;;  %v2714_v58 = vsel %vm8150_vm15, %v2618_v55, 0.0  ;;  %vm8151_vm4 = vnez %v8085_v23  ;;  %vm8152_vm5 = vnez %v8078_v5  ;;  %v5870_v5 = vld [vmem:[#allocation2 + $0x21] sm:$0xff] }
 0x952   :  { %8149 = vst [vmem:[#allocation33_spill] sm:$0xff] %v8148_v42  ;;  %v2715_v57 = vsel %vm8151_vm4, %v5836_v27, 0.0  ;;  %v2283_v20 = vsel %vm8152_vm5, %v2618_v55, 0.0  ;;  %vm8153_vm8 = vcmp.lt.s32.totalorder %v5496_v13, 8  ;;  %vm8156_vm15 = vcmask 130048   ;;  %2426 = vrot.lane.b32.xlu1 %v2410_v0, %s4528_s22  ;;  %v5877_v12 = vld [vmem:[#allocation2 + $0x1f] sm:$0xff] }
 0x953   :  { %vm5860_vm6 = vmand %vm5823_vm0, %vm8153_vm8  ;;  %2051 = vst.msk [vmem:[#allocation2 + $0x38] sm:$0xff] %vm8156_vm15, %v4185_v14  ;;  %vm8157_vm4 = vnez %v8058_v49  ;;  %v8160_v22 = vmov 0  ;;  %vm8162_vm15 = vcmp.lt.s32.totalorder %v5525_v52, 8  ;;  %v8163_v18 = vmov 0  ;;  %3497 = vmatpush1.bf16.msra.mxu0 %v4305_v28 }
 0x954   :  { %v8158_v23 = vsel %vm8157_vm4, %v5515_v48, 0.0  ;;  %vm8159_vm5 = vmmov %vm8153_vm8  ;;  %v5897_v48 = vadd.s32 4294967295, %v2082_v2  ;;  %v5900_v49 = vadd.s32 88, %v4706_v43  ;;  %v2100_v34 = vshra.s32 %v5798_v10, 3  ;;  %3498 = vmatprep.subr.bf16.mxu0 %v8135_v54  ;;  %v8233_v54 = vld [vmem:[#allocation27_spill] sm:$0xff] }
 0x955   :  { %v2298_v55 = vpack.c.bf16 %v2283_v20, %v8158_v23  ;;  %vm5883_vm8 = vmand %vm5670_vm1, %vm8159_vm5  ;;  %vm8166_vm5 = vcmask 130048   ;;  %v3338_v11 = vsel %vm8167_vm12, %v5868_v6, 0.0  ;;  %v8170_v2 = vmov 0 }
 0x956   :  { %v8161_v22 = vsel %vm5883_vm8, 4294967295, %v8160_v22  ;;  %vm5891_vm2 = vmand %vm5684_vm13, %vm8162_vm15  ;;  %8165 = vst [vmem:[#allocation34_spill] sm:$0xff] %v5897_v48  ;;  %vm8168_vm15 = vnez %v8092_v37  ;;  %vm8175_vm12 = vcmp.lt.s32.totalorder %v5525_v52, 8  ;;  %v5935_v63 = vadd.s32 1, %v2083_v24 }
 0x957   :  { %v8164_v18 = vsel %vm5891_vm2, 4294967295, %v8163_v18  ;;  %2050 = vst.msk [vmem:[#allocation2 + $0x30] sm:$0xff] %vm8166_vm5, %v4186_v30  ;;  %v3339_v14 = vsel %vm8168_vm15, %v5870_v5, 0.0  ;;  %vm8169_vm4 = vmmov %vm8118_vm7  ;;  %vm8172_vm7 = vcmp.ge.s32.totalorder %v5488_v35, 0  ;;  %v5937_v1 = vadd.s32 4294967295, %v2083_v24  ;;  %v1981_v30 = vpop.f32.mrb[13].mxu1 }
 0x958   :  { %vm5914_vm3 = vmand %vm5762_vm14, %vm8169_vm4  ;;  %8178 = vst [vmem:[#allocation35_spill] sm:$0xff] %v5935_v63  ;;  %v3354_v0 = vpack.c.bf16 %v3339_v14, %v3338_v11  ;;  %v2842_v20 = vpack.c.bf16 %v2827_v45, %v2826_v46  ;;  %v2730_v23 = vpack.c.bf16 %v2715_v57, %v2714_v58  ;;  %vm8181_vm11 = vcmp.lt.s32.totalorder %v5601_v4, 8 }
 0x959   :  { %v8171_v2 = vsel %vm5914_vm3, 4294967295, %v8170_v2  ;;  %vm5922_vm5 = vmand %vm5786_vm10, %vm8172_vm7  ;;  %8179 = vst [vmem:[#allocation36_spill] sm:$0xff] %v5937_v1  ;;  %vm8180_vm7 = vcmask 130048   ;;  %v8183_v48 = vmov 0  ;;  %v5950_v24 = vadd.s32 4294967295, %v5803_v25 }
 0x95a   :  { %v8174_v36 = vsel %vm5922_vm5, 4294967295, %v8173_v36  ;;  %vm5930_vm15 = vmand %vm5842_vm9, %vm8175_vm12  ;;  %2306 = vst.msk [vmem:[#allocation3] sm:$0xff] %vm8180_vm7, %v2298_v55  ;;  %vm8182_vm12 = vcmp.ge.s32.totalorder %v5601_v4, 0  ;;  %vm8186_vm3 = vnez %v8106_v41  ;;  %vm8187_vm7 = vnez %v8109_v3  ;;  %2858 = vrot.lane.b32.xlu0 %v2842_v20, %s4510_s23  ;;  %2746 = vrot.lane.b32.xlu1 %v2730_v23, %s4529_s25  ;;  %v5976_v41 = vld [vmem:[#allocation2 + $0x20] sm:$0xff] }
 0x95b   :  { %vm5944_vm5 = vmand %vm8182_vm12, %vm8181_vm11  ;;  %v3115_v45 = vsel %vm8186_vm3, %v5877_v12, 0.0  ;;  %v2939_v4 = vsel %vm8187_vm7, %v5868_v6, 0.0  ;;  %vm8188_vm11 = vcmp.lt.s32.totalorder %v5621_v8, 8  ;;  %vm8189_vm12 = vcmp.ge.s32.totalorder %v5621_v8, 0 }
 0x95c   :  { %v8184_v48 = vsel %vm5944_vm5, 4294967295, %v8183_v48  ;;  %vm5963_vm5 = vmand %vm8189_vm12, %vm8188_vm11  ;;  %v8190_v46 = vmov 0  ;;  %v5968_v58 = vadd.s32 4294967295, %v5805_v62  ;;  %v5971_v57 = vadd.s32 1, %v5803_v25 }
 0x95d   :  { %8185 = vst [vmem:[#allocation37_spill] sm:$0xff] %v8184_v48  ;;  %v8191_v46 = vsel %vm5963_vm5, 4294967295, %v8190_v46  ;;  %vm8192_vm4 = vcmask 130048   ;;  %vm8193_vm3 = vcmp.lt.s32.totalorder %v5645_v26, 8  ;;  %vm8194_vm7 = vcmp.ge.s32.totalorder %v5645_v26, 0 }
 0x95e   :  { %3362 = vst.msk [vmem:[#allocation3 + $0x8] sm:$0xff] %vm8192_vm4, %v3354_v0  ;;  %vm5982_vm11 = vmand %vm8194_vm7, %vm8193_vm3  ;;  %v8195_v8 = vmov 0  ;;  %v2101_v3 = vshra.s32 %v5900_v49, 3  ;;  %v5987_v55 = vand.u32 7, %v2100_v34  ;;  %v4034_v0 = vpop.f32.mrb[14].mxu0  ;;  %vm8199_vm4 = vnez %v8114_v19 }
 0x95f   :  { %v8196_v8 = vsel %vm5982_vm11, 4294967295, %v8195_v8  ;;  %v3114_v20 = vsel %vm8199_vm4, %v5836_v27, 0.0  ;;  %vm8200_vm12 = vnez %v8117_v33  ;;  %vm8201_vm3 = vnez %v8120_v31  ;;  %v4306_v31 = vld [vmem:[#allocation14 + $0x40] sm:$0xff]  }
 0x960   :  { %8197 = vst [vmem:[#allocation38_spill] sm:$0xff] %v8196_v8  ;;  %8198 = vst [vmem:[#allocation39_spill] sm:$0xff] %v5987_v55  ;;  %v2938_v26 = vsel %vm8200_vm12, %v5801_v51, 0.0  ;;  %v2284_v23 = vsel %vm8201_vm3, %v5836_v27, 0.0  ;;  %vm8202_vm7 = vnez %v8123_v17  ;;  %vm8203_vm5 = vcmp.lt.s32.totalorder %v5525_v52, 8  ;;  %v8214_v27 = vld [vmem:[#allocation23_spill] sm:$0xff]  ;;  %3499 = vmatpush1.bf16.msra.mxu0 %v4306_v31 }
 0x961   :  { %v2285_v34 = vsel %vm8202_vm7, %v5877_v12, 0.0  ;;  %vm6007_vm2 = vmand %vm5786_vm10, %vm8203_vm5  ;;  %v8204_v14 = vmov 0  ;;  %vm8206_vm4 = vcmp.lt.s32.totalorder %v5533_v53, 8  ;;  %vm8207_vm12 = vcmp.ge.s32.totalorder %v5533_v53, 0  ;;  %v8220_v53 = vld [vmem:[#allocation25_spill] sm:$0xff]  ;;  %v1346_v51 = vpop.f32.mrb[15].mxu0 }
 0x962   :  { %v8205_v14 = vsel %vm6007_vm2, 4294967295, %v8204_v14  ;;  %vm6015_vm8 = vmand %vm8207_vm12, %vm8206_vm4  ;;  %v8208_v19 = vmov 0  ;;  %vm8210_vm3 = vcmp.lt.s32.totalorder %v5544_v15, 8  ;;  %vm8211_vm7 = vcmp.ge.s32.totalorder %v5544_v15, 0  ;;  %v6116_v8 = vld [vmem:[#allocation2 + $0x27] sm:$0xff] }
 0x963   :  { %v8209_v19 = vsel %vm6015_vm8, 4294967295, %v8208_v19  ;;  %vm6023_vm0 = vmand %vm8211_vm7, %vm8210_vm3  ;;  %v8212_v52 = vmov 0  ;;  %vm8215_vm5 = vcmp.lt.s32.totalorder %v8214_v27, 8  ;;  %vm8216_vm2 = vcmp.ge.s32.totalorder %v8214_v27, 0  ;;  %v8224_v27 = vld [vmem:[#allocation26_spill] sm:$0xff] }
 0x964   :  { %v8213_v52 = vsel %vm6023_vm0, 4294967295, %v8212_v52  ;;  %vm6031_vm10 = vmand %vm8216_vm2, %vm8215_vm5  ;;  %v8217_v33 = vmov 0  ;;  %v4187_v17 = vadd.f32 %v4130_v39, %v4034_v0  ;;  %v3130_v11 = vpack.c.bf16 %v3115_v45, %v3114_v20  ;;  %v8225_v39 = vld [vmem:[#allocation21_spill] sm:$0xff]  ;;  %v8235_v20 = vld [vmem:[#allocation24_spill] sm:$0xff] }
 0x965   :  { %v8218_v33 = vsel %vm6031_vm10, 4294967295, %v8217_v33  ;;  %v2954_v15 = vpack.c.bf16 %v2939_v4, %v2938_v26  ;;  %v2299_v25 = vpack.c.bf16 %v2285_v34, %v2284_v23  ;;  %vm8221_vm12 = vcmp.lt.s32.totalorder %v5623_v9, 8  ;;  %v6082_v23 = vld [vmem:[#allocation2 + $0x29] sm:$0xff] }
 0x966   :  { %8219 = vst [vmem:[#allocation23_spill] sm:$0xff] %v8218_v33  ;;  %vm6040_vm3 = vmand %vm6031_vm10, %vm8221_vm12  ;;  %v8222_v1 = vmov 0  ;;  %v4188_v28 = vadd.f32 %v1981_v30, %v1346_v51  ;;  %vm8226_vm5 = vnez %v8225_v39  ;;  %vm8227_vm4 = vcmp.lt.s32.totalorder %v5496_v13, 8  ;;  %v8234_v30 = vld [vmem:[#allocation22_spill] sm:$0xff]  ;;  %3146 = vrot.lane.b32.xlu0 %v3130_v11, %s4525_s20  ;;  %v4133_v39 = vpop.f32.mrb[14].mxu1  ;;  %v8251_v33 = vld [vmem:[#allocation29_spill] sm:$0xff] }
 0x967   :  { %v8223_v1 = vsel %vm6040_vm3, 4294967295, %v8222_v1  ;;  %v3227_v45 = vsel %vm8226_vm5, %v5976_v41, 0.0  ;;  %vm6054_vm0 = vmand %vm5762_vm14, %vm8227_vm4  ;;  %v8228_v4 = vmov 0  ;;  %vm8230_vm12 = vcmp.lt.s32.totalorder %v5642_v16, 8  ;;  %2970 = vrot.lane.b32.xlu1 %v2954_v15, %s4523_s14  ;;  %v3371_v47 = vld [vmem:[#allocation3 + $0x8] sm:$0xff] }
 0x968   :  { %v8229_v4 = vsel %vm6054_vm0, 4294967295, %v8228_v4  ;;  %vm6062_vm7 = vmand %vm5982_vm11, %vm8230_vm12  ;;  %v6073_v13 = vadd.s32 1, %v5805_v62  ;;  %vm8236_vm8 = vcmask 130048   ;;  %v2397_v26 = vsel %vm5684_vm13, %v5976_v41, 0.0 }
 0x969   :  { %2053 = vst.msk [vmem:[#allocation2 + $0x48] sm:$0xff] %vm8236_vm8, %v4187_v17  ;;  %vm8237_vm12 = vmmov %vm8236_vm8  ;;  %vm8238_vm2 = vcmp.ge.s32.totalorder %v5488_v35, 0  ;;  %v6092_v17 = vld [vmem:[#allocation2 + $0x31] sm:$0xff]  ;;  %vm8242_vm8 = vcmp.lt.s32.totalorder %v5720_v59, 8  ;;  %vm8243_vm4 = vcmp.ge.s32.totalorder %v5720_v59, 0  ;;  %v6103_v11 = vand.u32 7, %v2101_v3 }
 0x96a   :  { %2307 = vst.msk [vmem:[#allocation3 + $0x10] sm:$0xff] %vm8237_vm12, %v2299_v25  ;;  %vm6088_vm10 = vmand %vm5842_vm9, %vm8238_vm2  ;;  %v8246_v25 = vld [vmem:[#allocation28_spill] sm:$0xff]  ;;  %v6106_v35 = vadd.s32 4294967295, %v5987_v55  ;;  %v8248_v51 = vand.u32 7, %v5798_v10  ;;  %v3340_v3 = vsel %vm5860_vm6, %v6082_v23, 0.0  ;;  %v3341_v42 = vsel %vm5930_vm15, %v6092_v17, 0.0 }
 0x96b   :  { %8241 = vst [vmem:[#allocation25_spill] sm:$0xff] %v6092_v17  ;;  %vm6098_vm5 = vmand %vm8243_vm4, %vm8242_vm8  ;;  %v8252_v59 = vld [vmem:[#allocation20_spill] sm:$0xff]  ;;  %vm8255_vm8 = vcmp.ge.s32.totalorder %v5773_v7, 0  ;;  %v2396_v17 = vsel %vm5670_vm1, %v8251_v33, 0.0  ;;  %vm8260_vm6 = vcmp.ge.s32.totalorder %v5483_v21, 0  ;;  %vm8261_vm15 = vnez %v8142_v44 }
 0x96c   :  { %v8245_v56 = vsel %vm6098_vm5, 4294967295, %v8244_v56  ;;  %8247 = vst [vmem:[#allocation26_spill] sm:$0xff] %v6103_v11  ;;  %v6110_v15 = vadd.s32 1, %v8248_v51  ;;  %vm8250_vm2 = vmmov %vm8237_vm12  ;;  %vm8253_vm4 = vnez %v8252_v59  ;;  %vm8254_vm12 = vcmp.lt.s32.totalorder %v5773_v7, 8  ;;  %v1991_v59 = vpop.f32.mrb[15].mxu1 }
 0x96d   :  { %2052 = vst.msk [vmem:[#allocation2 + $0x40] sm:$0xff] %vm8250_vm2, %v4188_v28  ;;  %v3226_v62 = vsel %vm8253_vm4, %v8251_v33, 0.0  ;;  %vm6128_vm2 = vmand %vm8255_vm8, %vm8254_vm12  ;;  %v8256_v28 = vmov 0  ;;  %v8258_v51 = vand.u32 7, %v5900_v49  ;;  %vm8264_vm8 = vcmp.lt.s32.totalorder %v5791_v50, 8 }
 0x96e   :  { %8249 = vst [vmem:[#allocation21_spill] sm:$0xff] %v6110_v15  ;;  %v8257_v28 = vsel %vm6128_vm2, 4294967295, %v8256_v28  ;;  %v3242_v37 = vpack.c.bf16 %v3227_v45, %v3226_v62  ;;  %vm6145_vm12 = vmand %vm8261_vm15, %vm8260_vm6  ;;  %v3355_v15 = vpack.c.bf16 %v3341_v42, %v3340_v3  ;;  %vm8265_vm4 = vcmp.ge.s32.totalorder %v5791_v50, 0  ;;  %v6169_v45 = vld [vmem:[#allocation2 + $0x28] sm:$0xff] }
 0x96f   :  { %v6136_v32 = vadd.s32 1, %v8258_v51  ;;  %vm6153_vm13 = vmand %vm8265_vm4, %vm8264_vm8  ;;  %v8266_v31 = vmov 0  ;;  %v8269_v21 = vand.u32 7, %v5798_v10  ;;  %v2411_v33 = vpack.c.bf16 %v2397_v26, %v2396_v17  ;;  %v2126_v17 = vld [vmem:[#allocation2 + $0x27] sm:$0xff] }
 0x970   :  { %v8267_v31 = vsel %vm6153_vm13, 4294967295, %v8266_v31  ;;  %vm8270_vm6 = vnez %v8161_v22  ;;  %vm8271_vm4 = vnez %v8164_v18  ;;  %vm8272_vm8 = vcmp.lt.s32.totalorder %v5794_v60, 8  ;;  %3258 = vrot.lane.b32.xlu1 %v3242_v37, %s4524_s18 }
 0x971   :  { %8259 = vst [vmem:[#allocation27_spill] sm:$0xff] %v6136_v32  ;;  %8268 = vst [vmem:[#allocation22_spill] sm:$0xff] %v8267_v31  ;;  %v6161_v62 = vadd.s32 4294967295, %v8269_v21  ;;  %v2556_v42 = vsel %vm8270_vm6, %v5868_v6, 0.0  ;;  %v2557_v50 = vsel %vm8271_vm4, %v5870_v5, 0.0  ;;  %vm8273_vm3 = vcmp.ge.s32.totalorder %v5794_v60, 0  ;;  %2428 = vrot.lane.b32.xlu0 %v2411_v33, %s4528_s22 }
 0x972   :  { %vm6175_vm1 = vmand %vm8273_vm3, %vm8272_vm8  ;;  %v8274_v10 = vmov 0  ;;  %v8277_v6 = vmov %v8258_v51  ;;  %vm8279_vm6 = vcmask 130048   ;;  %vm8280_vm4 = vnez %v8171_v2  ;;  %v4136_v33 = vpop.f32.mrb[16].mxu1 }
 0x973   :  { %v8275_v10 = vsel %vm6175_vm1, 4294967295, %v8274_v10  ;;  %v6183_v22 = vadd.s32 4294967295, %v8277_v6  ;;  %3910 = vmatprep.mubr.msk.bf16.mxu0 %vm8279_vm6, %v3371_v47  ;;  %v2716_v60 = vsel %vm8280_vm4, %v5877_v12, 0.0  ;;  %vm8281_vm3 = vnez %v8174_v36  ;;  %vm8282_vm8 = vmmov %vm8279_vm6  ;;  %v2127_v12 = vld [vmem:[#allocation2 + $0x2f] sm:$0xff]  ;;  %v4037_v36 = vpop.f32.mrb[16].mxu0 }
 0x974   :  { %8276 = vst [vmem:[#allocation24_spill] sm:$0xff] %v8275_v10  ;;  %v2717_v18 = vsel %vm8281_vm3, %v6116_v8, 0.0  ;;  %3363 = vst.msk [vmem:[#allocation3 + $0x18] sm:$0xff] %vm8282_vm8, %v3355_v15  ;;  %v6195_v26 = vadd.s32 4294967295, %v6103_v11  ;;  %v6198_v49 = vadd.s32 96, %v4706_v43  ;;  %vm8283_vm6 = vcmp.ge.s32.totalorder %v5689_v29, 0 }
 0x975   :  { %8278 = vst [vmem:[#allocation28_spill] sm:$0xff] %v6183_v22  ;;  %vm8284_vm0 = vnez %v8184_v48  ;;  %vm8287_vm4 = vcmp.lt.s32.totalorder %v5623_v9, 8  ;;  %v8288_v15 = vmov 0  ;;  %vm8290_vm8 = vcmp.lt.s32.totalorder %v5642_v16, 8 }
 0x976   :  { %vm6204_vm11 = vmand %vm8284_vm0, %vm8283_vm6  ;;  %vm8291_vm15 = vnez %v8191_v46  ;;  %v8292_v3 = vmov 0  ;;  %v6226_v51 = vadd.s32 1, %v5987_v55  ;;  %v6229_v37 = vadd.s32 1, %v6103_v11  ;;  %v1356_v55 = vpop.f32.mrb[17].mxu0 }
 0x977   :  { %vm6213_vm3 = vmand %vm8284_vm0, %vm8287_vm4  ;;  %v6232_v21 = vadd.s32 104, %v4706_v43  ;;  %v6235_v47 = vadd.s32 112, %v4706_v43  ;;  %vm8295_vm4 = vcmp.ge.s32.totalorder %v5691_v61, 0  ;;  %v4189_v6 = vadd.f32 %v4133_v39, %v4037_v36  ;;  %v4040_v34 = vpop.f32.mrb[18].mxu0 }
 0x978   :  { %v8289_v15 = vsel %vm6213_vm3, 4294967295, %v8288_v15  ;;  %vm6221_vm6 = vmand %vm8291_vm15, %vm8290_vm8  ;;  %v2571_v48 = vpack.c.bf16 %v2557_v50, %v2556_v42  ;;  %v2828_v11 = vsel %vm5762_vm14, %v5976_v41, 0.0  ;;  %vm8298_vm0 = vnez %v8134_v38  ;;  %v8306_v38 = vld [vmem:[#allocation34_spill] sm:$0xff] }
 0x979   :  { %v8293_v3 = vsel %vm6221_vm6, 4294967295, %v8292_v3  ;;  %vm6241_vm8 = vmand %vm8291_vm15, %vm8295_vm4  ;;  %v2829_v22 = vsel %vm8298_vm0, %v6169_v45, 0.0  ;;  %vm8299_vm6 = vcmp.lt.s32.totalorder %v8220_v53, 8  ;;  %v8300_v32 = vmov 0 }
 0x97a   :  { %8294 = vst [vmem:[#allocation29_spill] sm:$0xff] %v8293_v3  ;;  %vm6255_vm3 = vmand %vm6153_vm13, %vm8299_vm6  ;;  %v8302_v3 = vld [vmem:[#allocation32_spill] sm:$0xff]  ;;  %v4190_v39 = vadd.f32 %v1991_v59, %v1356_v55  ;;  %v2731_v42 = vpack.c.bf16 %v2717_v18, %v2716_v60  ;;  %vm8303_vm15 = vcmp.lt.s32.totalorder %v8224_v27, 8  ;;  %v8304_v40 = vmov 0  ;;  %2588 = vrot.lane.b32.xlu1 %v2571_v48, %s4527_s2  ;;  %v6278_v59 = vld [vmem:[#allocation2 + $0x2f] sm:$0xff] }
 0x97b   :  { %v8301_v32 = vsel %vm6255_vm3, 4294967295, %v8300_v32  ;;  %vm6264_vm14 = vmand %vm6175_vm1, %vm8303_vm15  ;;  %v2286_v41 = vsel %vm6204_vm11, %v2126_v17, 0.0  ;;  %v2287_v50 = vsel %vm6241_vm8, %v2127_v12, 0.0  ;;  %vm8307_vm6 = vcmask 130048   ;;  %v6298_v18 = vld [vmem:[#allocation2 + $0x41] sm:$0xff] }
 0x97c   :  { %v8305_v40 = vsel %vm6264_vm14, 4294967295, %v8304_v40  ;;  %2055 = vst.msk [vmem:[#allocation2 + $0x58] sm:$0xff] %vm8307_vm6, %v4189_v6  ;;  %vm8308_vm4 = vnez %v8205_v14  ;;  %vm8309_vm15 = vcmp.ge.s32.totalorder %v5689_v29, 0  ;;  %vm8310_vm0 = vnez %v8209_v19  ;;  %v6296_v14 = vld [vmem:[#allocation2 + $0x39] sm:$0xff]  ;;  %8317 = vst [vmem:[#allocation20_spill] sm:$0xff] %v6298_v18  ;;  %v8318_v17 = vld [vmem:[#allocation36_spill] sm:$0xff]  ;;  %2748 = vrot.lane.b32.xlu0 %v2731_v42, %s4529_s25 }
 0x97d   :  { %v2941_v55 = vsel %vm8308_vm4, %v6082_v23, 0.0  ;;  %vm6284_vm13 = vmand %vm8310_vm0, %vm8309_vm15  ;;  %v8311_v60 = vmov 0  ;;  %vm8313_vm11 = vcmp.ge.s32.totalorder %v5691_v61, 0  ;;  %vm8314_vm8 = vnez %v8213_v52  ;;  %v6308_v6 = vld [vmem:[#allocation2 + $0x30] sm:$0xff]  ;;  %v2001_v42 = vpop.f32.mrb[17].mxu1 }
 0x97e   :  { %v8312_v60 = vsel %vm6284_vm13, 4294967295, %v8311_v60  ;;  %vm6292_vm6 = vmand %vm8314_vm8, %vm8313_vm11  ;;  %v8315_v48 = vmov 0  ;;  %v2102_v2 = vshra.s32 %v6198_v49, 3  ;;  %v6304_v12 = vadd.s32 120, %v4706_v43 }
 0x97f   :  { %v8316_v48 = vsel %vm6292_vm6, 4294967295, %v8315_v48  ;;  %v2300_v36 = vpack.c.bf16 %v2287_v50, %v2286_v41  ;;  %vm8319_vm15 = vcmask 130048   ;;  %vm8320_vm11 = vnez %v8223_v1 }
 0x980   :  { %2054 = vst.msk [vmem:[#allocation2 + $0x50] sm:$0xff] %vm8319_vm15, %v4190_v39  ;;  %v3342_v31 = vsel %vm8320_vm11, %v6296_v14, 0.0  ;;  %v3343_v10 = vsel %vm6062_vm7, %v6298_v18, 0.0  ;;  %vm8321_vm1 = vcmp.lt.s32.totalorder %v5950_v24, 8  ;;  %vm8322_vm4 = vcmp.ge.s32.totalorder %v5950_v24, 0  ;;  %v1366_v18 = vpop.f32.mrb[19].mxu0 }
 0x981   :  { %vm6320_vm6 = vmand %vm8322_vm4, %vm8321_vm1  ;;  %v8323_v43 = vmov 0  ;;  %v2103_v1 = vshra.s32 %v6232_v21, 3  ;;  %v2843_v41 = vpack.c.bf16 %v2829_v22, %v2828_v11  ;;  %vm8326_vm7 = vnez %v8229_v4  ;;  %v2129_v22 = vld [vmem:[#allocation2 + $0x3f] sm:$0xff] }
 0x982   :  { %v8324_v43 = vsel %vm6320_vm6, 4294967295, %v8323_v43  ;;  %v2940_v0 = vsel %vm8326_vm7, %v5870_v5, 0.0  ;;  %v3356_v50 = vpack.c.bf16 %v3343_v10, %v3342_v31  ;;  %vm8327_vm1 = vcmp.lt.s32.totalorder %v8234_v30, 8  ;;  %v2128_v31 = vld [vmem:[#allocation2 + $0x37] sm:$0xff] }
 0x983   :  { %8325 = vst [vmem:[#allocation40_spill] sm:$0xff] %v8324_v43  ;;  %vm8328_vm4 = vcmp.ge.s32.totalorder %v8234_v30, 0  ;;  %v8329_v24 = vmov 0  ;;  %vm8331_vm15 = vcmp.lt.s32.totalorder %v8235_v20, 8  ;;  %vm8332_vm13 = vcmp.ge.s32.totalorder %v8235_v20, 0  ;;  %2860 = vrot.lane.b32.xlu1 %v2843_v41, %s4510_s23  ;;  %v6485_v10 = vld [vmem:[#allocation2 + $0x37] sm:$0xff] }
 0x984   :  { %vm6335_vm11 = vmand %vm8328_vm4, %vm8327_vm1  ;;  %v8333_v39 = vmov 0  ;;  %v7781_v5 = vand.u32 7, %v6198_v49  ;;  %vm8335_vm3 = vcmask 130048   ;;  %vm8336_vm1 = vcmp.ge.s32.totalorder %v8233_v54, 0 }
 0x985   :  { %v8330_v24 = vsel %vm6335_vm11, 4294967295, %v8329_v24  ;;  %vm6343_vm6 = vmand %vm8332_vm13, %vm8331_vm15  ;;  %2308 = vst.msk [vmem:[#allocation3 + $0x20] sm:$0xff] %vm8335_vm3, %v2300_v36  ;;  %v2955_v30 = vpack.c.bf16 %v2941_v55, %v2940_v0  ;;  %v3117_v20 = vsel %vm6088_vm10, %v6278_v59, 0.0  ;;  %vm8339_vm3 = vcmp.ge.s32.totalorder %v8246_v25, 0 }
 0x986   :  { %v8334_v39 = vsel %vm6343_vm6, 4294967295, %v8333_v39  ;;  %vm6355_vm4 = vmand %vm6098_vm5, %vm8336_vm1  ;;  %v3229_v55 = vsel %vm5842_vm9, %v6308_v6, 0.0  ;;  %vm8343_vm10 = vcmask 130048   ;;  %vm8344_vm13 = vcmp.lt.s32.totalorder %v5642_v16, 8 }
 0x987   :  { %vm6369_vm1 = vmand %vm6128_vm2, %vm8339_vm3  ;;  %3364 = vst.msk [vmem:[#allocation3 + $0x28] sm:$0xff] %vm8343_vm10, %v3356_v50  ;;  %v8345_v36 = vmov 0  ;;  %vm8347_vm3 = vcmp.lt.s32.totalorder %v5968_v58, 8  ;;  %vm8348_vm14 = vcmp.ge.s32.totalorder %v5968_v58, 0  ;;  %v8349_v41 = vmov 0  ;;  %2972 = vrot.lane.b32.xlu0 %v2955_v30, %s4523_s14  ;;  %v8360_v50 = vld [vmem:[#allocation30_spill] sm:$0xff] }
 0x988   :  { %vm6382_vm15 = vmand %vm8314_vm8, %vm8344_vm13  ;;  %v6396_v0 = vand.u32 7, %v2102_v2  ;;  %v6400_v16 = vadd.s32 1, %v7781_v5  ;;  %v3116_v58 = vsel %vm6145_vm12, %v6116_v8, 0.0  ;;  %vm8355_vm13 = vcmp.ge.s32.totalorder %v5691_v61, 0  ;;  %v8356_v2 = vld [vmem:[#allocation38_spill] sm:$0xff] }
 0x989   :  { %v8346_v36 = vsel %vm6382_vm15, 4294967295, %v8345_v36  ;;  %vm6390_vm7 = vmand %vm8348_vm14, %vm8347_vm3  ;;  %vm8354_vm14 = vnez %v8142_v44  ;;  %vm8357_vm3 = vnez %v8356_v2  ;;  %vm8361_vm6 = vcmp.lt.s32.totalorder %v5971_v57, 8 }
 0x98a   :  { %v8350_v41 = vsel %vm6390_vm7, 4294967295, %v8349_v41  ;;  %8352 = vst [vmem:[#allocation41_spill] sm:$0xff] %v6396_v0  ;;  %8353 = vst [vmem:[#allocation42_spill] sm:$0xff] %v6400_v16  ;;  %v3228_v11 = vsel %vm8354_vm14, %v6169_v45, 0.0  ;;  %vm8362_vm12 = vcmp.ge.s32.totalorder %v5971_v57, 0  ;;  %v8363_v8 = vmov 0 }
 0x98b   :  { %8351 = vst [vmem:[#allocation33_spill] sm:$0xff] %v8350_v41  ;;  %vm6414_vm9 = vmand %vm8357_vm3, %vm8355_vm13  ;;  %v6428_v44 = vand.u32 7, %v2103_v1  ;;  %v8367_v61 = vand.u32 7, %v6232_v21  ;;  %v4191_v30 = vadd.f32 %v4136_v33, %v4040_v34  ;;  %v3131_v2 = vpack.c.bf16 %v3117_v20, %v3116_v58  ;;  %v8371_v57 = vld [vmem:[#allocation31_spill] sm:$0xff] }
 0x98c   :  { %vm6424_vm11 = vmand %vm8362_vm12, %vm8361_vm6  ;;  %vm8368_vm14 = vcmp.lt.s32.totalorder %v5623_v9, 8  ;;  %v8369_v16 = vmov 0  ;;  %vm8372_vm10 = vcmp.lt.s32.totalorder %v6073_v13, 8  ;;  %vm8373_vm15 = vcmp.ge.s32.totalorder %v6073_v13, 0 }
 0x98d   :  { %v8364_v8 = vsel %vm6424_vm11, 4294967295, %v8363_v8  ;;  %8366 = vst [vmem:[#allocation43_spill] sm:$0xff] %v6428_v44  ;;  %v6432_v7 = vadd.s32 1, %v8367_v61  ;;  %vm6438_vm13 = vmand %vm8310_vm0, %vm8368_vm14  ;;  %v8374_v33 = vmov 0  ;;  %v2288_v9 = vsel %vm6355_vm4, %v2128_v31, 0.0  ;;  %v8379_v61 = vld [vmem:[#allocation23_spill] sm:$0xff]  ;;  %3148 = vrot.lane.b32.xlu1 %v3131_v2, %s4525_s20 }
 0x98e   :  { %8365 = vst [vmem:[#allocation30_spill] sm:$0xff] %v8364_v8  ;;  %v8370_v16 = vsel %vm6438_vm13, 4294967295, %v8369_v16  ;;  %vm6448_vm3 = vmand %vm8373_vm15, %vm8372_vm10  ;;  %v2289_v1 = vsel %vm6369_vm1, %v2129_v22, 0.0  ;;  %v4192_v20 = vadd.f32 %v2001_v42, %v1366_v18  ;;  %v3243_v34 = vpack.c.bf16 %v3229_v55, %v3228_v11  ;;  %v8386_v18 = vld [vmem:[#allocation21_spill] sm:$0xff]  ;;  %v8394_v8 = vld [vmem:[#allocation27_spill] sm:$0xff] }
 0x98f   :  { %v8375_v33 = vsel %vm6448_vm3, 4294967295, %v8374_v33  ;;  %vm8377_vm14 = vnez %v8191_v46  ;;  %vm8378_vm6 = vcmp.ge.s32.totalorder %v5689_v29, 0  ;;  %vm8380_vm12 = vnez %v8379_v61  ;;  %v8389_v42 = vld [vmem:[#allocation25_spill] sm:$0xff] }
 0x990   :  { %8376 = vst [vmem:[#allocation31_spill] sm:$0xff] %v8375_v33  ;;  %v2399_v58 = vsel %vm8377_vm14, %v6308_v6, 0.0  ;;  %vm6463_vm15 = vmand %vm8380_vm12, %vm8378_vm6  ;;  %vm8383_vm10 = vcmp.lt.s32.totalorder %v8302_v3, 8  ;;  %v2301_v46 = vpack.c.bf16 %v2289_v1, %v2288_v9  ;;  %vm8387_vm13 = vcmask 130048   ;;  %v8390_v11 = vld [vmem:[#allocation29_spill] sm:$0xff]  ;;  %v8395_v9 = vld [vmem:[#allocation28_spill] sm:$0xff]  ;;  %3260 = vrot.lane.b32.xlu0 %v3243_v34, %s4524_s18 }
 0x991   :  { %vm6471_vm4 = vmand %vm6424_vm11, %vm8383_vm10  ;;  %2057 = vst.msk [vmem:[#allocation2 + $0x68] sm:$0xff] %vm8387_vm13, %v4191_v30  ;;  %vm8388_vm6 = vnez %v8289_v15  ;;  %vm8391_vm12 = vnez %v8390_v11  ;;  %v6487_v22 = vld [vmem:[#allocation2 + $0x49] sm:$0xff]  ;;  %v6489_v55 = vld [vmem:[#allocation2 + $0x51] sm:$0xff]  ;;  %v6494_v2 = vadd.s32 4294967295, %v6396_v0  ;;  %vm8401_vm10 = vcmp.lt.s32.totalorder %v5935_v63, 8 }
 0x992   :  { %v2558_v29 = vsel %vm8388_vm6, %v6082_v23, 0.0  ;;  %v2559_v31 = vsel %vm8391_vm12, %v8389_v42, 0.0  ;;  %8392 = vst [vmem:[#allocation23_spill] sm:$0xff] %v6487_v22  ;;  %8393 = vst [vmem:[#allocation21_spill] sm:$0xff] %v6489_v55  ;;  %v4139_v23 = vpop.f32.mrb[18].mxu1  ;;  %v8397_v15 = vld [vmem:[#allocation37_spill] sm:$0xff]  ;;  %vm8399_vm6 = vnez %v8301_v32  ;;  %vm8413_vm1 = vnez %v8316_v48 }
 0x993   :  { %vm8396_vm14 = vmmov %vm8387_vm13  ;;  %vm8398_vm12 = vnez %v8397_v15  ;;  %v6501_v1 = vld [vmem:[#allocation2 + $0x38] sm:$0xff]  ;;  %v3344_v11 = vsel %vm8399_vm6, %v6487_v22, 0.0  ;;  %vm8400_vm13 = vnez %v8305_v40  ;;  %v2011_v34 = vpop.f32.mrb[19].mxu1  ;;  %v8405_v22 = vand.u32 7, %v6198_v49 }
 0x994   :  { %2056 = vst.msk [vmem:[#allocation2 + $0x60] sm:$0xff] %vm8396_vm14, %v4192_v20  ;;  %v2398_v30 = vsel %vm8398_vm12, %v6169_v45, 0.0  ;;  %v3345_v3 = vsel %vm8400_vm13, %v6489_v55, 0.0  ;;  %vm6513_vm14 = vmand %vm6448_vm3, %vm8401_vm10  ;;  %v6518_v45 = vadd.s32 4294967295, %v6428_v44  ;;  %vm8404_vm12 = vcmask 130048   ;;  %v4142_v5 = vpop.f32.mrb[20].mxu1 }
 0x995   :  { %2309 = vst.msk [vmem:[#allocation3 + $0x30] sm:$0xff] %vm8404_vm12, %v2301_v46  ;;  %v2412_v32 = vpack.c.bf16 %v2399_v58, %v2398_v30  ;;  %v3357_v15 = vpack.c.bf16 %v3345_v3, %v3344_v11  ;;  %v6523_v40 = vadd.s32 4294967295, %v8405_v22  ;;  %v8406_v55 = vand.u32 7, %v6232_v21  ;;  %v4043_v30 = vpop.f32.mrb[20].mxu0  ;;  %v6594_v11 = vld [vmem:[#allocation2 + $0x3f] sm:$0xff] }
 0x996   :  { %vm8408_vm10 = vcmp.ge.s32.totalorder %v8306_v38, 0  ;;  %vm8409_vm13 = vnez %v8324_v43  ;;  %v2572_v46 = vpack.c.bf16 %v2559_v31, %v2558_v29  ;;  %vm8412_vm12 = vnez %v8312_v60  ;;  %v2130_v29 = vld [vmem:[#allocation2 + $0x47] sm:$0xff]  ;;  %v2131_v60 = vld [vmem:[#allocation2 + $0x4f] sm:$0xff] }
 0x997   :  { %v6527_v63 = vadd.s32 4294967295, %v8406_v55  ;;  %vm6533_vm6 = vmand %vm8409_vm13, %vm8408_vm10  ;;  %v2718_v3 = vsel %vm8412_vm12, %v6278_v59, 0.0  ;;  %v2719_v49 = vsel %vm8413_vm1, %v6485_v10, 0.0  ;;  %vm8414_vm11 = vcmp.lt.s32.totalorder %v8220_v53, 8  ;;  %2430 = vrot.lane.b32.xlu1 %v2412_v32, %s4528_s22 }
 0x998   :  { %vm6547_vm3 = vmand %vm6098_vm5, %vm8414_vm11  ;;  %v8415_v21 = vmov 0  ;;  %v8417_v58 = vshra.s32 %v6235_v47, 3  ;;  %vm8419_vm10 = vcmp.ge.s32.totalorder %v8318_v17, 0  ;;  %v2830_v48 = vsel %vm8310_vm0, %v6308_v6, 0.0  ;;  %2590 = vrot.lane.b32.xlu0 %v2572_v46, %s4527_s2 }
 0x999   :  { %8407 = vst [vmem:[#allocation25_spill] sm:$0xff] %v6527_v63  ;;  %v8416_v21 = vsel %vm6547_vm3, 4294967295, %v8415_v21  ;;  %vm6559_vm12 = vmand %vm6390_vm7, %vm8419_vm10  ;;  %v2831_v31 = vsel %vm8314_vm8, %v6501_v1, 0.0  ;;  %vm8422_vm11 = vcmp.lt.s32.totalorder %v8224_v27, 8  ;;  %v8423_v55 = vmov 0 }
 0x99a   :  { %v6553_v22 = vand.u32 7, %v8417_v58  ;;  %vm6574_vm1 = vmand %vm6128_vm2, %vm8422_vm11  ;;  %vm8425_vm10 = vcmask 130048   ;;  %vm8426_vm7 = vcmp.lt.s32.totalorder %v6106_v35, 8  ;;  %vm8427_vm13 = vcmp.ge.s32.totalorder %v6106_v35, 0 }
 0x99b   :  { %v8424_v55 = vsel %vm6574_vm1, 4294967295, %v8423_v55  ;;  %3365 = vst.msk [vmem:[#allocation3 + $0x38] sm:$0xff] %vm8425_vm10, %v3357_v15  ;;  %vm6583_vm3 = vmand %vm8427_vm13, %vm8426_vm7  ;;  %v8428_v19 = vmov 0  ;;  %v6588_v52 = vadd.s32 1, %v6396_v0  ;;  %v6591_v6 = vadd.s32 1, %v6428_v44  ;;  %v1376_v0 = vpop.f32.mrb[21].mxu0 }
 0x99c   :  { %8418 = vst [vmem:[#allocation29_spill] sm:$0xff] %v6553_v22  ;;  %v8429_v19 = vsel %vm6583_vm3, 4294967295, %v8428_v19  ;;  %vm8430_vm0 = vcmp.ge.s32.totalorder %v8233_v54, 0  ;;  %vm8431_vm8 = vnez %v8330_v24  ;;  %v8432_v35 = vmov 0 }
 0x99d   :  { %vm6600_vm11 = vmand %vm8431_vm8, %vm8430_vm0  ;;  %vm8434_vm7 = vcmp.ge.s32.totalorder %v8246_v25, 0  ;;  %vm8435_vm13 = vnez %v8334_v39  ;;  %v8436_v32 = vmov 0  ;;  %vm8438_vm1 = vcmp.lt.s32.totalorder %v6195_v26, 8 }
 0x99e   :  { %v8433_v35 = vsel %vm6600_vm11, 4294967295, %v8432_v35  ;;  %vm6608_vm10 = vmand %vm8435_vm13, %vm8434_vm7  ;;  %vm8439_vm5 = vcmp.ge.s32.totalorder %v6195_v26, 0  ;;  %v8440_v15 = vmov 0  ;;  %v8442_v46 = vshra.s32 %v6304_v12, 3 }
 0x99f   :  { %v8437_v32 = vsel %vm6608_vm10, 4294967295, %v8436_v32  ;;  %vm6616_vm2 = vmand %vm8439_vm5, %vm8438_vm1  ;;  %v4193_v44 = vadd.f32 %v4139_v23, %v4043_v30  ;;  %v2732_v17 = vpack.c.bf16 %v2719_v49, %v2718_v3  ;;  %vm8444_vm7 = vcmp.lt.s32.totalorder %v6229_v37, 8  ;;  %v6642_v3 = vld [vmem:[#allocation2 + $0x40] sm:$0xff]  ;;  %v8475_v49 = vld [vmem:[#allocation38_spill] sm:$0xff] }
 0x9a0   :  { %v8441_v15 = vsel %vm6616_vm2, 4294967295, %v8440_v15  ;;  %v6625_v58 = vand.u32 7, %v8442_v46  ;;  %vm8445_vm5 = vcmp.ge.s32.totalorder %v6229_v37, 0  ;;  %v8446_v26 = vmov 0 }
 0x9a1   :  { %vm6631_vm1 = vmand %vm8445_vm5, %vm8444_vm7  ;;  %v2290_v38 = vsel %vm6533_vm6, %v2130_v29, 0.0  ;;  %v2291_v41 = vsel %vm6559_vm12, %v2131_v60, 0.0  ;;  %v4194_v43 = vadd.f32 %v2011_v34, %v1376_v0  ;;  %v2844_v46 = vpack.c.bf16 %v2831_v31, %v2830_v48  ;;  %2750 = vrot.lane.b32.xlu1 %v2732_v17, %s4529_s25  ;;  %v6666_v0 = vld [vmem:[#allocation2 + $0x59] sm:$0xff]  ;;  %v6668_v34 = vld [vmem:[#allocation2 + $0x61] sm:$0xff] }
 0x9a2   :  { %8443 = vst [vmem:[#allocation27_spill] sm:$0xff] %v6625_v58  ;;  %v8447_v26 = vsel %vm6631_vm1, 4294967295, %v8446_v26  ;;  %vm8448_vm11 = vnez %v8346_v36  ;;  %vm8449_vm0 = vcmp.lt.s32.totalorder %v6226_v51, 8  ;;  %vm8450_vm7 = vcmp.ge.s32.totalorder %v6226_v51, 0  ;;  %v8461_v17 = vld [vmem:[#allocation42_spill] sm:$0xff]  ;;  %v6746_v31 = vld [vmem:[#allocation2 + $0x5f] sm:$0xff] }
 0x9a3   :  { %v2943_v23 = vsel %vm8448_vm11, %v6296_v14, 0.0  ;;  %vm6648_vm5 = vmand %vm8450_vm7, %vm8449_vm0  ;;  %v8451_v37 = vmov 0  ;;  %v2302_v33 = vpack.c.bf16 %v2291_v41, %v2290_v38  ;;  %vm8453_vm12 = vcmask 130048   ;;  %2862 = vrot.lane.b32.xlu0 %v2844_v46, %s4510_s23 }
 0x9a4   :  { %v8452_v37 = vsel %vm6648_vm5, 4294967295, %v8451_v37  ;;  %2059 = vst.msk [vmem:[#allocation2 + $0x78] sm:$0xff] %vm8453_vm12, %v4193_v44  ;;  %v3119_v36 = vsel %vm6414_vm9, %v6594_v11, 0.0  ;;  %vm8454_vm11 = vcmp.lt.s32.totalorder %v8360_v50, 8  ;;  %vm8455_vm8 = vcmp.ge.s32.totalorder %v8360_v50, 0 }
 0x9a5   :  { %vm6662_vm10 = vmand %vm8455_vm8, %vm8454_vm11  ;;  %v8456_v51 = vmov 0  ;;  %vm8458_vm0 = vcmp.lt.s32.totalorder %v8386_v18, 8  ;;  %vm8467_vm8 = vcmp.lt.s32.totalorder %v8371_v57, 8  ;;  %vm8468_vm6 = vcmp.ge.s32.totalorder %v8371_v57, 0 }
 0x9a6   :  { %v8457_v51 = vsel %vm6662_vm10, 4294967295, %v8456_v51  ;;  %vm6674_vm7 = vmand %vm6648_vm5, %vm8458_vm0  ;;  %vm8463_vm0 = vnez %v8370_v16  ;;  %vm8464_vm5 = vcmp.lt.s32.totalorder %v8224_v27, 8  ;;  %v3346_v16 = vsel %vm6471_vm4, %v6666_v0, 0.0 }
 0x9a7   :  { %vm8462_vm10 = vmmov %vm8453_vm12  ;;  %v2942_v41 = vsel %vm8463_vm0, %v8389_v42, 0.0  ;;  %v3347_v27 = vsel %vm6513_vm14, %v6668_v34, 0.0  ;;  %v6719_v57 = vadd.s32 4294967295, %v6553_v22  ;;  %v2021_v42 = vpop.f32.mrb[21].mxu1  ;;  %v3118_v4 = vsel %vm6463_vm15, %v6485_v10, 0.0  ;;  %v6744_v10 = vld [vmem:[#allocation2 + $0x57] sm:$0xff] }
 0x9a8   :  { %2058 = vst.msk [vmem:[#allocation2 + $0x70] sm:$0xff] %vm8462_vm10, %v4194_v43  ;;  %vm6692_vm12 = vmand %vm8435_vm13, %vm8464_vm5  ;;  %v8469_v43 = vmov 0  ;;  %vm8471_vm5 = vcmp.lt.s32.totalorder %v8394_v8, 8  ;;  %v2956_v20 = vpack.c.bf16 %v2943_v23, %v2942_v41  ;;  %vm8476_vm4 = vnez %v8475_v49  ;;  %v4046_v41 = vpop.f32.mrb[22].mxu0 }
 0x9a9   :  { %vm6700_vm10 = vmand %vm8468_vm6, %vm8467_vm8  ;;  %vm8474_vm6 = vcmask 130048   ;;  %v3231_v29 = vsel %vm8476_vm4, %v6642_v3, 0.0  ;;  %v3358_v59 = vpack.c.bf16 %v3347_v27, %v3346_v16  ;;  %vm8477_vm14 = vcmp.ge.s32.totalorder %v6161_v62, 0  ;;  %v1386_v49 = vpop.f32.mrb[23].mxu0 }
 0x9aa   :  { %v8470_v43 = vsel %vm6700_vm10, 4294967295, %v8469_v43  ;;  %vm6714_vm0 = vmand %vm6631_vm1, %vm8471_vm5  ;;  %2310 = vst.msk [vmem:[#allocation3 + $0x40] sm:$0xff] %vm8474_vm6, %v2302_v33  ;;  %v3132_v48 = vpack.c.bf16 %v3119_v36, %v3118_v4  ;;  %vm8480_vm5 = vcmp.lt.s32.totalorder %v8220_v53, 8  ;;  %vm8481_vm6 = vnez %v8330_v24  ;;  %2974 = vrot.lane.b32.xlu1 %v2956_v20, %s4523_s14  ;;  %v8490_v33 = vld [vmem:[#allocation24_spill] sm:$0xff]  ;;  %v8553_v24 = vld [vmem:[#allocation23_spill] sm:$0xff] }
 0x9ab   :  { %vm6732_vm8 = vmand %vm6583_vm3, %vm8477_vm14  ;;  %v8482_v13 = vmov 0  ;;  %v6752_v30 = vadd.s32 4294967295, %v6625_v58  ;;  %vm8484_vm9 = vcmp.ge.s32.totalorder %v8395_v9, 0  ;;  %vm8487_vm4 = vnez %v8379_v61  ;;  %v6792_v4 = vld [vmem:[#allocation2 + $0x47] sm:$0xff] }
 0x9ac   :  { %vm6740_vm15 = vmand %vm8481_vm6, %vm8480_vm5  ;;  %v3230_v46 = vsel %vm8487_vm4, %v6501_v1, 0.0  ;;  %vm8488_vm11 = vnez %v8257_v28  ;;  %vm8489_vm14 = vcmp.ge.s32.totalorder %v8246_v25, 0  ;;  %vm8491_vm1 = vnez %v8490_v33  ;;  %3150 = vrot.lane.b32.xlu0 %v3132_v48, %s4525_s20  ;;  %v6848_v53 = vld [vmem:[#allocation2 + $0x48] sm:$0xff] }
 0x9ad   :  { %v8483_v13 = vsel %vm6740_vm15, 4294967295, %v8482_v13  ;;  %vm6758_vm5 = vmand %vm6616_vm2, %vm8484_vm9  ;;  %v2401_v23 = vsel %vm8488_vm11, %v6642_v3, 0.0  ;;  %v8492_v36 = vmov 0  ;;  %vm8494_vm9 = vcmask 130048  }
 0x9ae   :  { %vm6773_vm3 = vmand %vm8491_vm1, %vm8489_vm14  ;;  %3366 = vst.msk [vmem:[#allocation3 + $0x48] sm:$0xff] %vm8494_vm9, %v3358_v59  ;;  %vm8495_vm2 = vcmp.lt.s32.totalorder %v6494_v2, 8  ;;  %vm8496_vm15 = vcmp.ge.s32.totalorder %v6494_v2, 0  ;;  %v8497_v61 = vmov 0  ;;  %v2088_v28 = vand.u32 7, %v6235_v47  ;;  %v8515_v59 = vld [vmem:[#allocation20_spill] sm:$0xff] }
 0x9af   :  { %v8493_v36 = vsel %vm6773_vm3, 4294967295, %v8492_v36  ;;  %vm6782_vm10 = vmand %vm8496_vm15, %vm8495_vm2  ;;  %v7829_v25 = vand.u32 7, %v6304_v12  ;;  %v3244_v16 = vpack.c.bf16 %v3231_v29, %v3230_v46  ;;  %vm8499_vm11 = vnez %v8245_v56  ;;  %v8527_v46 = vld [vmem:[#allocation40_spill] sm:$0xff] }
 0x9b0   :  { %v8498_v61 = vsel %vm6782_vm10, 4294967295, %v8497_v61  ;;  %v2400_v27 = vsel %vm8499_vm11, %v6501_v1, 0.0  ;;  %vm8500_vm4 = vcmp.lt.s32.totalorder %v6518_v45, 8  ;;  %vm8501_vm2 = vcmp.ge.s32.totalorder %v6518_v45, 0  ;;  %v8506_v1 = vld [vmem:[#allocation22_spill] sm:$0xff] }
 0x9b1   :  { %vm6798_vm15 = vmand %vm8501_vm2, %vm8500_vm4  ;;  %v8502_v2 = vmov 0  ;;  %v3033_v47 = vadd.s32 1, %v6625_v58  ;;  %v4195_v20 = vadd.f32 %v4142_v5, %v4046_v41  ;;  %vm8504_vm9 = vnez %v8416_v21  ;;  %3262 = vrot.lane.b32.xlu1 %v3244_v16, %s4524_s18  ;;  %v8531_v41 = vld [vmem:[#allocation35_spill] sm:$0xff]  ;;  %v8533_v16 = vld [vmem:[#allocation33_spill] sm:$0xff] }
 0x9b2   :  { %v8503_v2 = vsel %vm6798_vm15, 4294967295, %v8502_v2  ;;  %v2560_v56 = vsel %vm8504_vm9, %v6296_v14, 0.0  ;;  %vm8505_vm11 = vcmp.ge.s32.totalorder %v8233_v54, 0  ;;  %vm8507_vm1 = vnez %v8506_v1 }
 0x9b3   :  { %vm6811_vm3 = vmand %vm8507_vm1, %vm8505_vm11  ;;  %v8508_v45 = vmov 0  ;;  %vm8510_vm4 = vcmp.lt.s32.totalorder %v6588_v52, 8  ;;  %vm8511_vm2 = vcmp.ge.s32.totalorder %v6588_v52, 0  ;;  %v8512_v29 = vmov 0 }
 0x9b4   :  { %v8509_v45 = vsel %vm6811_vm3, 4294967295, %v8508_v45  ;;  %vm6819_vm14 = vmand %vm8511_vm2, %vm8510_vm4  ;;  %v2292_v14 = vsel %vm6732_vm8, %v6744_v10, 0.0  ;;  %v2293_v54 = vsel %vm6758_vm5, %v6746_v31, 0.0  ;;  %v4196_v21 = vadd.f32 %v2021_v42, %v1386_v49 }
 0x9b5   :  { %v8513_v29 = vsel %vm6819_vm14, 4294967295, %v8512_v29  ;;  %v2413_v5 = vpack.c.bf16 %v2401_v23, %v2400_v27  ;;  %vm8516_vm9 = vnez %v8424_v55  ;;  %vm8517_vm11 = vcmp.lt.s32.totalorder %v6591_v6, 8  ;;  %v7065_v23 = vld [vmem:[#allocation2 + $0x77] sm:$0xff] }
 0x9b6   :  { %8514 = vst [vmem:[#allocation28_spill] sm:$0xff] %v8513_v29  ;;  %v2561_v48 = vsel %vm8516_vm9, %v8515_v59, 0.0  ;;  %vm8518_vm4 = vcmp.ge.s32.totalorder %v6591_v6, 0  ;;  %v8519_v52 = vmov 0  ;;  %v2303_v60 = vpack.c.bf16 %v2293_v54, %v2292_v14  ;;  %v8525_v6 = vld [vmem:[#allocation32_spill] sm:$0xff] }
 0x9b7   :  { %vm6836_vm2 = vmand %vm8518_vm4, %vm8517_vm11  ;;  %vm8522_vm8 = vcmask 130048   ;;  %vm8523_vm5 = vnez %v8433_v35  ;;  %vm8524_vm9 = vnez %v8437_v32  ;;  %vm8526_vm11 = vcmp.lt.s32.totalorder %v8525_v6, 8  ;;  %v6866_v35 = vld [vmem:[#allocation2 + $0x69] sm:$0xff]  ;;  %v6868_v32 = vld [vmem:[#allocation2 + $0x71] sm:$0xff]  ;;  %2432 = vrot.lane.b32.xlu0 %v2413_v5, %s4528_s22 }
 0x9b8   :  { %v8520_v52 = vsel %vm6836_vm2, 4294967295, %v8519_v52  ;;  %2061 = vst.msk [vmem:[#allocation2 + $0x88] sm:$0xff] %vm8522_vm8, %v4195_v20  ;;  %v2720_v42 = vsel %vm8523_vm5, %v6594_v11, 0.0  ;;  %v2721_v55 = vsel %vm8524_vm9, %v6792_v4, 0.0  ;;  %vm8528_vm4 = vnez %v8527_v46  ;;  %8537 = vst [vmem:[#allocation42_spill] sm:$0xff] %v6868_v32 }
 0x9b9   :  { %8521 = vst [vmem:[#allocation37_spill] sm:$0xff] %v8520_v52  ;;  %vm6854_vm1 = vmand %vm8528_vm4, %vm8526_vm11  ;;  %vm8532_vm8 = vcmp.lt.s32.totalorder %v8531_v41, 8  ;;  %vm8534_vm3 = vnez %v8533_v16  ;;  %v3032_v27 = vadd.s32 1, %v6553_v22  ;;  %vm8538_vm5 = vcmask 130048   ;;  %v6955_v22 = vld [vmem:[#allocation2 + $0x50] sm:$0xff] }
 0x9ba   :  { %vm6862_vm2 = vmand %vm8534_vm3, %vm8532_vm8  ;;  %2060 = vst.msk [vmem:[#allocation2 + $0x80] sm:$0xff] %vm8538_vm5, %v4196_v21  ;;  %v3348_v20 = vsel %vm6674_vm7, %v6866_v35, 0.0  ;;  %v3349_v49 = vsel %vm6714_vm0, %v6868_v32, 0.0  ;;  %vm8539_vm9 = vcmp.lt.s32.totalorder %v8461_v17, 8  ;;  %v6890_v54 = vadd.s32 1, %v7829_v25 }
 0x9bb   :  { %vm6883_vm11 = vmand %vm6819_vm14, %vm8539_vm9  ;;  %2311 = vst.msk [vmem:[#allocation3 + $0x50] sm:$0xff] %vm8538_vm5, %v2303_v60  ;;  %v2573_v38 = vpack.c.bf16 %v2561_v48, %v2560_v56  ;;  %v3359_v21 = vpack.c.bf16 %v3349_v49, %v3348_v20  ;;  %v6893_v44 = vadd.s32 1, %v2088_v28  ;;  %vm8542_vm0 = vcmp.ge.s32.totalorder %v6523_v40, 0  ;;  %v8545_v48 = vld [vmem:[#allocation34_spill] sm:$0xff]  ;;  %v6917_v20 = vld [vmem:[#allocation2 + $0x67] sm:$0xff] }
 0x9bc   :  { %vm6899_vm9 = vmand %vm6782_vm10, %vm8542_vm0  ;;  %v2733_v58 = vpack.c.bf16 %v2721_v55, %v2720_v42  ;;  %v2832_v25 = vsel %vm8481_vm6, %v6642_v3, 0.0  ;;  %v2833_v56 = vsel %vm8435_vm13, %v6848_v53, 0.0  ;;  %vm8546_vm5 = vcmp.ge.s32.totalorder %v8545_v48, 0  ;;  %v6919_v49 = vld [vmem:[#allocation2 + $0x6f] sm:$0xff]  ;;  %v8554_v55 = vld [vmem:[#allocation36_spill] sm:$0xff] }
 0x9bd   :  { %vm8547_vm7 = vnez %v8457_v51  ;;  %v8548_v60 = vmov 0  ;;  %vm8550_vm14 = vcmp.ge.s32.totalorder %v6527_v63, 0  ;;  %2592 = vrot.lane.b32.xlu1 %v2573_v38, %s4527_s2  ;;  %v2945_v3 = vsel %vm6692_vm12, %v8553_v24, 0.0  ;;  %v6933_v42 = vld [vmem:[#allocation2 + $0x4f] sm:$0xff] }
 0x9be   :  { %vm6913_vm8 = vmand %vm8547_vm7, %vm8546_vm5  ;;  %vm8555_vm13 = vcmp.ge.s32.totalorder %v8554_v55, 0  ;;  %vm8556_vm5 = vnez %v8470_v43  ;;  %v8557_v29 = vmov 0  ;;  %vm8561_vm10 = vnez %v8520_v52  ;;  %2752 = vrot.lane.b32.xlu0 %v2733_v58, %s4529_s25 }
 0x9bf   :  { %v8549_v60 = vsel %vm6913_vm8, 4294967295, %v8548_v60  ;;  %vm6925_vm6 = vmand %vm6798_vm15, %vm8550_vm14  ;;  %vm8559_vm14 = vcmask 130048   ;;  %vm8560_vm15 = vcmp.lt.s32.totalorder %v6432_v7, 8  ;;  %v6952_v50 = vadd.s32 4294967295, %v2088_v28 }
 0x9c0   :  { %vm6939_vm0 = vmand %vm8556_vm5, %vm8555_vm13  ;;  %3367 = vst.msk [vmem:[#allocation3 + $0x58] sm:$0xff] %vm8559_vm14, %v3359_v21  ;;  %vm8564_vm5 = vcmp.lt.s32.totalorder %v6719_v57, 8  ;;  %v8568_v28 = vand.u32 7, %v6304_v12  ;;  %v2845_v58 = vpack.c.bf16 %v2833_v56, %v2832_v25  ;;  %vm8569_vm13 = vnez %v8483_v13  ;;  %v3305_v56 = vld [vmem:[#allocation2 + $0x91] sm:$0xff] }
 0x9c1   :  { %v8558_v29 = vsel %vm6939_vm0, 4294967295, %v8557_v29  ;;  %vm6948_vm7 = vmand %vm8561_vm10, %vm8560_vm15  ;;  %vm8565_vm0 = vcmp.ge.s32.totalorder %v6719_v57, 0  ;;  %vm7848_vm10 = vcmp.lt.s32.totalorder %v6890_v54, 8  ;;  %v2944_v63 = vsel %vm8569_vm13, %v8515_v59, 0.0  ;;  %v7003_v5 = vld [vmem:[#allocation2 + $0x81] sm:$0xff] }
 0x9c2   :  { %vm6963_vm15 = vmand %vm8565_vm0, %vm8564_vm5  ;;  %v6970_v52 = vadd.s32 4294967295, %v8568_v28  ;;  %vm8570_vm14 = vcmp.lt.s32.totalorder %v3033_v47, 8  ;;  %vm8571_vm12 = vcmp.ge.s32.totalorder %v3033_v47, 0  ;;  %v8572_v32 = vmov 0  ;;  %2864 = vrot.lane.b32.xlu1 %v2845_v58, %s4510_s23  ;;  %v7067_v11 = vld [vmem:[#allocation2 + $0x7f] sm:$0xff] }
 0x9c3   :  { %vm6977_vm8 = vmand %vm8571_vm12, %vm8570_vm14  ;;  %v2294_v57 = vsel %vm6899_vm9, %v6917_v20, 0.0  ;;  %v2295_v12 = vsel %vm6925_vm6, %v6919_v49, 0.0  ;;  %v2957_v28 = vpack.c.bf16 %v2945_v3, %v2944_v63  ;;  %vm8574_vm0 = vnez %v8493_v36  ;;  %v7001_v63 = vld [vmem:[#allocation2 + $0x79] sm:$0xff] }
 0x9c4   :  { %v8573_v32 = vsel %vm6977_vm8, 4294967295, %v8572_v32  ;;  %v3121_v13 = vsel %vm8574_vm0, %v6933_v42, 0.0  ;;  %vm8575_vm13 = vcmp.lt.s32.totalorder %v3032_v27, 8  ;;  %vm8576_vm12 = vcmp.ge.s32.totalorder %v3032_v27, 0  ;;  %v8614_v3 = vld [vmem:[#allocation39_spill] sm:$0xff] }
 0x9c5   :  { %vm6993_vm14 = vmand %vm8576_vm12, %vm8575_vm13  ;;  %v8577_v25 = vmov 0  ;;  %v2304_v47 = vpack.c.bf16 %v2295_v12, %v2294_v57  ;;  %vm8579_vm9 = vnez %v8490_v33  ;;  %vm8580_vm6 = vcmp.lt.s32.totalorder %v6752_v30, 8  ;;  %2976 = vrot.lane.b32.xlu0 %v2957_v28, %s4523_s14  ;;  %v8592_v57 = vld [vmem:[#allocation21_spill] sm:$0xff] }
 0x9c6   :  { %v8578_v25 = vsel %vm6993_vm14, 4294967295, %v8577_v25  ;;  %v3233_v59 = vsel %vm8579_vm9, %v6955_v22, 0.0  ;;  %vm8581_vm0 = vcmp.ge.s32.totalorder %v6752_v30, 0  ;;  %vm7847_vm13 = vcmp.ge.s32.totalorder %v6952_v50, 0  ;;  %v7054_v28 = vld [vmem:[#allocation2 + $0x89] sm:$0xff] }
 0x9c7   :  { %vm7009_vm5 = vmand %vm8581_vm0, %vm8580_vm6  ;;  %vm8584_vm12 = vnez %v8509_v45  ;;  %v3350_v27 = vsel %vm6883_vm11, %v7001_v63, 0.0  ;;  %v3351_v30 = vsel %vm6948_vm7, %v7003_v5, 0.0  ;;  %vm7846_vm9 = vcmp.ge.s32.totalorder %v6970_v52, 0 }
 0x9c8   :  { %v3120_v33 = vsel %vm8584_vm12, %v6792_v4, 0.0  ;;  %vm7029_vm6 = vmand %vm6977_vm8, %vm7848_vm10  ;;  %vm8587_vm0 = vcmask 130048   ;;  %vm8588_vm11 = vnez %v8506_v1  ;;  %v3360_v14 = vpack.c.bf16 %v3351_v30, %v3350_v27 }
 0x9c9   :  { %2312 = vst.msk [vmem:[#allocation3 + $0x60] sm:$0xff] %vm8587_vm0, %v2304_v47  ;;  %v3133_v4 = vpack.c.bf16 %v3121_v13, %v3120_v33  ;;  %v3232_v45 = vsel %vm8588_vm11, %v6848_v53, 0.0  ;;  %vm8589_vm7 = vcmp.lt.s32.totalorder %v6893_v44, 8  ;;  %v2562_v58 = vsel %vm6854_vm1, %v8553_v24, 0.0  ;;  %vm7060_vm0 = vmand %vm6963_vm15, %vm7847_vm13 }
 0x9ca   :  { %vm7041_vm12 = vmand %vm6993_vm14, %vm8589_vm7  ;;  %v3245_v38 = vpack.c.bf16 %v3233_v59, %v3232_v45  ;;  %v2563_v12 = vsel %vm6862_vm2, %v8592_v57, 0.0  ;;  %v2403_v1 = vsel %vm8534_vm3, %v6955_v22, 0.0  ;;  %vm8595_vm1 = vcmask 130048   ;;  %v2787_v59 = vld [vmem:[#allocation2 + $0x58] sm:$0xff] }
 0x9cb   :  { %3152 = vrot.lane.b32.xlu1 %v3133_v4, %s4525_s20  ;;  %3368 = vst.msk [vmem:[#allocation3 + $0x68] sm:$0xff] %vm8595_vm1, %v3360_v14  ;;  %v3353_v16 = vsel %vm7029_vm6, %v3305_v56, 0.0  ;;  %vm7076_vm3 = vmand %vm7009_vm5, %vm7846_vm9  ;;  %v2402_v47 = vsel %vm8528_vm4, %v6848_v53, 0.0  ;;  %v2574_v33 = vpack.c.bf16 %v2563_v12, %v2562_v58  ;;  %vm8598_vm2 = vnez %v8549_v60  ;;  %v8606_v14 = vld [vmem:[#allocation31_spill] sm:$0xff] }
 0x9cc   :  { %3264 = vrot.lane.b32.xlu0 %v3245_v38, %s4524_s18  ;;  %v2414_v27 = vpack.c.bf16 %v2403_v1, %v2402_v47  ;;  %v2722_v30 = vsel %vm8598_vm2, %v6933_v42, 0.0  ;;  %v3352_v56 = vsel %vm7041_vm12, %v7054_v28, 0.0  ;;  %vm8599_vm6 = vnez %v8558_v29  ;;  %v8617_v38 = vld [vmem:[#allocation30_spill] sm:$0xff]  ;;  %v3187_v12 = vld [vmem:[#allocation2 + $0x60] sm:$0xff]  ;;  %v2789_v29 = vld [vmem:[#allocation2 + $0x68] sm:$0xff] }
 0x9cd   :  { %v2723_v39 = vsel %vm8599_vm6, %v6744_v10, 0.0  ;;  %v3361_v4 = vpack.c.bf16 %v3353_v16, %v3352_v56  ;;  %v2296_v53 = vsel %vm7060_vm0, %v7065_v23, 0.0  ;;  %v2297_v46 = vsel %vm7076_vm3, %v7067_v11, 0.0 }
 0x9ce   :  { %vm8600_vm4 = vnez %v8457_v51  ;;  %vm8601_vm11 = vnez %v8470_v43  ;;  %vm8602_vm7 = vcmp.lt.s32.totalorder %v8531_v41, 8  ;;  %v2305_v45 = vpack.c.bf16 %v2297_v46, %v2296_v53 }
 0x9cf   :  { %2434 = vrot.lane.b32.xlu1 %v2414_v27, %s4528_s22  ;;  %v2834_v60 = vsel %vm8600_vm4, %v6955_v22, 0.0  ;;  %v2835_v42 = vsel %vm8601_vm11, %v2787_v59, 0.0  ;;  %vm7109_vm12 = vmand %vm8601_vm11, %vm8602_vm7  ;;  %vm8605_vm0 = vcmp.ge.s32.totalorder %v8554_v55, 0  ;;  %vm8607_vm1 = vnez %v8606_v14  ;;  %v3189_v22 = vld [vmem:[#allocation2 + $0x70] sm:$0xff] }
 0x9d0   :  { %2594 = vrot.lane.b32.xlu0 %v2574_v33, %s4527_s2  ;;  %vm7118_vm3 = vmand %vm8607_vm1, %vm8605_vm0  ;;  %vm8610_vm2 = vcmask 130048   ;;  %v2734_v41 = vpack.c.bf16 %v2723_v39, %v2722_v30  ;;  %vm8611_vm6 = vcmp.lt.s32.totalorder %v8525_v6, 8  ;;  %vm2644_vm7 = vcmp.ge.s32.totalorder %v8614_v3, 0  ;;  %v8619_v6 = vld [vmem:[#allocation26_spill] sm:$0xff] }
 0x9d1   :  { %3369 = vst.msk [vmem:[#allocation3 + $0x78] sm:$0xff] %vm8610_vm2, %v3361_v4  ;;  %vm7127_vm11 = vmand %vm8600_vm4, %vm8611_vm6  ;;  %vm2660_vm9 = vcmp.lt.s32.totalorder %v8614_v3, 8  ;;  %v2846_v55 = vpack.c.bf16 %v2835_v42, %v2834_v60  ;;  %vm8616_vm0 = vcmp.ge.s32.totalorder %v8545_v48, 0  ;;  %v2947_v51 = vsel %vm7109_vm12, %v6666_v0, 0.0  ;;  %v8653_v3 = vld [vmem:[#allocation43_spill] sm:$0xff] }
 0x9d2   :  { %vm8615_vm13 = vmmov %vm8610_vm2  ;;  %vm8618_vm2 = vnez %v8617_v38  ;;  %vm2645_vm4 = vcmp.ge.s32.totalorder %v8619_v6, 0  ;;  %vm2661_vm6 = vcmp.lt.s32.totalorder %v8619_v6, 8  ;;  %v3123_v58 = vsel %vm7118_vm3, %v6746_v31, 0.0 }
 0x9d3   :  { %2313 = vst.msk [vmem:[#allocation3 + $0x70] sm:$0xff] %vm8615_vm13, %v2305_v45  ;;  %vm3090_vm10 = vmand %vm8618_vm2, %vm8616_vm0  ;;  %2754 = vrot.lane.b32.xlu1 %v2734_v41, %s4529_s25  ;;  %vm8620_vm13 = vcmp.lt.s32.totalorder %v8386_v18, 8  ;;  %vm8621_vm8 = vnez %v8429_v19  ;;  %v2946_v1 = vsel %vm7127_vm11, %v8592_v57, 0.0  ;;  %v3235_v27 = vsel %vm8607_vm1, %v3187_v12, 0.0  ;;  %v8648_v41 = vld [vmem:[#allocation41_spill] sm:$0xff] }
 0x9d4   :  { %vm7151_vm0 = vmand %vm8621_vm8, %vm8620_vm13  ;;  %2866 = vrot.lane.b32.xlu0 %v2846_v55, %s4510_s23  ;;  %v3122_v16 = vsel %vm3090_vm10, %v6744_v10, 0.0  ;;  %v2958_v24 = vpack.c.bf16 %v2947_v51, %v2946_v1  ;;  %vm8628_vm13 = vcmp.lt.s32.totalorder %v8394_v8, 8  ;;  %vm8629_vm14 = vnez %v8441_v15 }
 0x9d5   :  { %vm7159_vm12 = vmand %vm2644_vm7, %vm2660_vm9  ;;  %v3134_v33 = vpack.c.bf16 %v3123_v58, %v3122_v16  ;;  %v2405_v10 = vsel %vm8629_vm14, %v3187_v12, 0.0  ;;  %vm8632_vm10 = vcmp.ge.s32.totalorder %v6161_v62, 0  ;;  %v3234_v56 = vsel %vm8618_vm2, %v2787_v59, 0.0 }
 0x9d6   :  { %vm7164_vm3 = vmand %vm2645_vm4, %vm2661_vm6  ;;  %vm8635_vm1 = vcmp.ge.s32.totalorder %v8395_v9, 0  ;;  %v3246_v15 = vpack.c.bf16 %v3235_v27, %v3234_v56  ;;  %v2404_v39 = vsel %vm8621_vm8, %v2787_v59, 0.0  ;;  %v2564_v53 = vsel %vm7151_vm0, %v6666_v0, 0.0 }
 0x9d7   :  { %vm7174_vm11 = vmand %vm8629_vm14, %vm8628_vm13  ;;  %2978 = vrot.lane.b32.xlu1 %v2958_v24, %s4523_s14  ;;  %v2415_v4 = vpack.c.bf16 %v2405_v10, %v2404_v39  ;;  %v2836_v45 = vsel %vm7159_vm12, %v3187_v12, 0.0  ;;  %vm8639_vm2 = vcmp.lt.s32.totalorder %v8386_v18, 8  ;;  %vm8641_vm0 = vnez %v8447_v26 }
 0x9d8   :  { %vm7185_vm9 = vmand %vm7159_vm12, %vm8632_vm10  ;;  %3154 = vrot.lane.b32.xlu0 %v3134_v33, %s4525_s20  ;;  %v2565_v46 = vsel %vm7174_vm11, %v6668_v34, 0.0  ;;  %v3237_v51 = vsel %vm8641_vm0, %v3189_v22, 0.0  ;;  %v2791_v33 = vld [vmem:[#allocation2 + $0x78] sm:$0xff] }
 0x9d9   :  { %vm2693_vm7 = vmand %vm7164_vm3, %vm8635_vm1  ;;  %v2724_v60 = vsel %vm7185_vm9, %v6746_v31, 0.0  ;;  %v2575_v0 = vpack.c.bf16 %v2565_v46, %v2564_v53  ;;  %v2837_v31 = vsel %vm7164_vm3, %v2789_v29, 0.0  ;;  %vm2662_vm9 = vcmp.lt.s32.totalorder %v8648_v41, 8  ;;  %v8680_v46 = vld [vmem:[#allocation28_spill] sm:$0xff] }
 0x9da   :  { %v2725_v42 = vsel %vm2693_vm7, %v6917_v20, 0.0  ;;  %vm8636_vm8 = vmmov %vm8628_vm13  ;;  %v2847_v9 = vpack.c.bf16 %v2837_v31, %v2836_v45  ;;  %vm8650_vm7 = vnez %v8498_v61  ;;  %v3373_v61 = vld [vmem:[#allocation3 + $0x18] sm:$0xff] }
 0x9db   :  { %3266 = vrot.lane.b32.xlu1 %v3246_v15, %s4524_s18  ;;  %vm7214_vm14 = vmand %vm7164_vm3, %vm8636_vm8  ;;  %v2735_v59 = vpack.c.bf16 %v2725_v42, %v2724_v60  ;;  %v2406_v47 = vsel %vm8650_vm7, %v2789_v29, 0.0  ;;  %v8682_v60 = vld [vmem:[#allocation27_spill] sm:$0xff] }
 0x9dc   :  { %2436 = vrot.lane.b32.xlu0 %v2415_v4, %s4528_s22  ;;  %vm2932_vm4 = vmand %vm7159_vm12, %vm8639_vm2  ;;  %v2949_v8 = vsel %vm7214_vm14, %v6866_v35, 0.0  ;;  %vm8645_vm12 = vnez %v8452_v37  ;;  %vm2647_vm14 = vcmp.ge.s32.totalorder %v8653_v3, 0  ;;  %vm2663_vm2 = vcmp.lt.s32.totalorder %v8653_v3, 8  ;;  %v8665_v37 = vld [vmem:[#allocation42_spill] sm:$0xff]  ;;  %v8679_v4 = vld [vmem:[#allocation29_spill] sm:$0xff] }
 0x9dd   :  { %vm8640_vm6 = vmmov %vm8635_vm1  ;;  %v2948_v43 = vsel %vm2932_vm4, %v6668_v34, 0.0  ;;  %vm8649_vm1 = vcmp.lt.s32.totalorder %v8461_v17, 8  ;;  %vm8655_vm4 = vnez %v8503_v2  ;;  %v3236_v1 = vsel %vm8645_vm12, %v2789_v29, 0.0  ;;  %v8666_v2 = vld [vmem:[#allocation25_spill] sm:$0xff]  ;;  %v3191_v29 = vld [vmem:[#allocation2 + $0x80] sm:$0xff] }
 0x9de   :  { %vm7234_vm13 = vmand %vm8641_vm0, %vm8640_vm6  ;;  %v2959_v55 = vpack.c.bf16 %v2949_v8, %v2948_v43  ;;  %vm8654_vm6 = vcmp.lt.s32.totalorder %v6432_v7, 8  ;;  %v3247_v26 = vpack.c.bf16 %v3237_v51, %v3236_v1  ;;  %v2407_v13 = vsel %vm8655_vm4, %v3189_v22, 0.0  ;;  %v2793_v51 = vld [vmem:[#allocation2 + $0x88] sm:$0xff] }
 0x9df   :  { %2596 = vrot.lane.b32.xlu1 %v2575_v0, %s4527_s2  ;;  %vm8644_vm3 = vmmov %vm8632_vm10  ;;  %vm2646_vm10 = vcmp.ge.s32.totalorder %v8648_v41, 0  ;;  %v3125_v38 = vsel %vm7234_vm13, %v6919_v49, 0.0  ;;  %vm8662_vm0 = vcmp.ge.s32.totalorder %v6523_v40, 0  ;;  %v2416_v27 = vpack.c.bf16 %v2407_v13, %v2406_v47 }
 0x9e0   :  { %2756 = vrot.lane.b32.xlu0 %v2735_v59, %s4529_s25  ;;  %vm7243_vm11 = vmand %vm8645_vm12, %vm8644_vm3  ;;  %vm8667_vm12 = vcmp.ge.s32.totalorder %v8666_v2, 0  ;;  %v2408_v43 = vsel %vm6963_vm15, %v2791_v33, 0.0 }
 0x9e1   :  { %vm7254_vm8 = vmand %vm8650_vm7, %vm8649_vm1  ;;  %v3124_v58 = vsel %vm7243_vm11, %v6917_v20, 0.0 }
 0x9e2   :  { %vm7267_vm3 = vmand %vm8655_vm4, %vm8654_vm6  ;;  %v3135_v48 = vpack.c.bf16 %v3125_v38, %v3124_v58  ;;  %v2566_v20 = vsel %vm7254_vm8, %v6866_v35, 0.0 }
 0x9e3   :  { %2868 = vrot.lane.b32.xlu1 %v2847_v9, %s4510_s23  ;;  %vm7274_vm1 = vmand %vm2646_vm10, %vm2662_vm9  ;;  %v2567_v24 = vsel %vm7267_vm3, %v8665_v37, 0.0  ;;  %vm2648_vm3 = vcmp.ge.s32.totalorder %v8679_v4, 0  ;;  %v2633_v9 = vld [vmem:[#allocation2 + $0x87] sm:$0xff] }
 0x9e4   :  { %2980 = vrot.lane.b32.xlu0 %v2959_v55, %s4523_s14  ;;  %vm7282_vm13 = vmand %vm2647_vm14, %vm2663_vm2  ;;  %v2576_v57 = vpack.c.bf16 %v2567_v24, %v2566_v20  ;;  %v2838_v30 = vsel %vm7274_vm1, %v3189_v22, 0.0  ;;  %v2427_v24 = vpop.permute.xlu1 %2426 }
 0x9e5   :  { %vm7294_vm10 = vmand %vm7274_vm1, %vm8662_vm0  ;;  %v2839_v56 = vsel %vm7282_vm13, %v2791_v33, 0.0 }
 0x9e6   :  { %vm2695_vm11 = vmand %vm7282_vm13, %vm8667_vm12  ;;  %v2726_v35 = vsel %vm7294_vm10, %v6919_v49, 0.0  ;;  %v8672_v49 = vld [vmem:[#allocation37_spill] sm:$0xff]  ;;  %v2848_v53 = vpack.c.bf16 %v2839_v56, %v2838_v30  ;;  %vm8681_vm10 = vnez %v8680_v46 }
 0x9e7   :  { %3156 = vrot.lane.b32.xlu1 %v3135_v48, %s4525_s20  ;;  %v2727_v10 = vsel %vm2695_vm11, %v7065_v23, 0.0  ;;  %vm8668_vm9 = vmmov %vm8654_vm6  ;;  %vm8673_vm14 = vnez %v8672_v49  ;;  %vm8676_vm6 = vcmp.lt.s32.totalorder %v8461_v17, 8  ;;  %vm2649_vm11 = vcmp.ge.s32.totalorder %v8682_v60, 0  ;;  %v3017_v48 = vld [vmem:[#allocation2 + $0x8f] sm:$0xff] }
 0x9e8   :  { %3268 = vrot.lane.b32.xlu0 %v3247_v26, %s4524_s18  ;;  %vm7325_vm7 = vmand %vm7282_vm13, %vm8668_vm9  ;;  %v2736_v39 = vpack.c.bf16 %v2727_v10, %v2726_v35  ;;  %vm2664_vm13 = vcmp.lt.s32.totalorder %v8679_v4, 8  ;;  %vm8683_vm9 = vcmp.lt.s32.totalorder %v6893_v44, 8  ;;  %v3239_v14 = vsel %vm8673_vm14, %v3191_v29, 0.0 }
 0x9e9   :  { %vm8671_vm8 = vmmov %vm8667_vm12  ;;  %v2951_v17 = vsel %vm7325_vm7, %v7001_v63, 0.0  ;;  %v3238_v41 = vsel %vm8681_vm10, %v2791_v33, 0.0 }
 0x9ea   :  { %vm7334_vm2 = vmand %vm8673_vm14, %vm8671_vm8  ;;  %vm8696_vm14 = vcmp.ge.s32.totalorder %v6970_v52, 0  ;;  %v3248_v36 = vpack.c.bf16 %v3239_v14, %v3238_v41 }
 0x9eb   :  { %2438 = vrot.lane.b32.xlu1 %v2416_v27, %s4528_s22  ;;  %vm7342_vm4 = vmand %vm7274_vm1, %vm8676_vm6  ;;  %vm2665_vm1 = vcmp.lt.s32.totalorder %v8682_v60, 8  ;;  %v3127_v42 = vsel %vm7334_vm2, %v7067_v11, 0.0  ;;  %vm8690_vm6 = vcmp.lt.s32.totalorder %v6890_v54, 8 }
 0x9ec   :  { %2598 = vrot.lane.b32.xlu0 %v2576_v57, %s4527_s2  ;;  %vm3094_vm12 = vmand %vm8681_vm10, %vm8662_vm0  ;;  %v2950_v19 = vsel %vm7342_vm4, %v8665_v37, 0.0  ;;  %v2587_v37 = vpop.permute.xlu0 %2586 }
 0x9ed   :  { %vm7365_vm8 = vmand %vm6963_vm15, %vm8683_vm9  ;;  %v3126_v59 = vsel %vm3094_vm12, %v7065_v23, 0.0  ;;  %v2960_v45 = vpack.c.bf16 %v2951_v17, %v2950_v19  ;;  %v2409_v23 = vsel %vm7009_vm5, %v3191_v29, 0.0  ;;  %v3375_v17 = vld [vmem:[#allocation3 + $0x28] sm:$0xff] }
 0x9ee   :  { %vm7373_vm7 = vmand %vm2648_vm3, %vm2664_vm13  ;;  %v3136_v8 = vpack.c.bf16 %v3127_v42, %v3126_v59  ;;  %vm8693_vm3 = vcmp.ge.s32.totalorder %v6952_v50, 0  ;;  %v2417_v62 = vpack.c.bf16 %v2409_v23, %v2408_v43  ;;  %v2568_v3 = vsel %vm7365_vm8, %v7001_v63, 0.0  ;;  %v3193_v50 = vld [vmem:[#allocation2 + $0x90] sm:$0xff]  ;;  %v3379_v43 = vld [vmem:[#allocation3 + $0x48] sm:$0xff] }
 0x9ef   :  { %2758 = vrot.lane.b32.xlu1 %v2736_v39, %s4529_s25  ;;  %vm7378_vm2 = vmand %vm2649_vm11, %vm2665_vm1  ;;  %vm8702_vm1 = vnez %v8578_v25  ;;  %v2747_v25 = vpop.permute.xlu1 %2746 }
 0x9f0   :  { %2870 = vrot.lane.b32.xlu0 %v2848_v53, %s4510_s23  ;;  %vm7388_vm4 = vmand %vm7009_vm5, %vm8690_vm6  ;;  %v2841_v44 = vsel %vm7378_vm2, %v2793_v51, 0.0  ;;  %v2859_v2 = vpop.permute.xlu0 %2858 }
 0x9f1   :  { %vm7399_vm13 = vmand %vm7373_vm7, %vm8693_vm3  ;;  %v2569_v55 = vsel %vm7388_vm4, %v7003_v5, 0.0  ;;  %vm8708_vm4 = vcmask 392448  }
 0x9f2   :  { %vm2697_vm0 = vmand %vm7378_vm2, %vm8696_vm14  ;;  %v2728_v38 = vsel %vm7399_vm13, %v7067_v11, 0.0  ;;  %v2577_v63 = vpack.c.bf16 %v2569_v55, %v2568_v3  ;;  %v2840_v11 = vsel %vm7373_vm7, %v3191_v29, 0.0  ;;  %vm8710_vm13 = vcmask 654848  }
 0x9f3   :  { %2982 = vrot.lane.b32.xlu1 %v2960_v45, %s4523_s14  ;;  %v2729_v34 = vsel %vm2697_vm0, %v2633_v9, 0.0  ;;  %vm8697_vm5 = vmmov %vm8683_vm9  ;;  %v2849_v1 = vpack.c.bf16 %v2841_v44, %v2840_v11  ;;  %v2971_v47 = vpop.permute.xlu1 %2970  ;;  %vm8712_vm0 = vcmask 917248   ;;  %v3381_v11 = vld [vmem:[#allocation3 + $0x58] sm:$0xff] }
 0x9f4   :  { %3158 = vrot.lane.b32.xlu0 %v3136_v8, %s4525_s20  ;;  %vm7426_vm15 = vmand %vm7373_vm7, %vm8697_vm5  ;;  %v2737_v6 = vpack.c.bf16 %v2729_v34, %v2728_v38  ;;  %vm8706_vm7 = vnez %v8573_v32  ;;  %v3147_v32 = vpop.permute.xlu0 %3146  ;;  %vm8713_vm5 = vcmask 1048448   ;;  %v3377_v8 = vld [vmem:[#allocation3 + $0x38] sm:$0xff] }
 0x9f5   :  { %vm8700_vm10 = vmmov %vm8690_vm6  ;;  %v2952_v54 = vsel %vm7426_vm15, %v7003_v5, 0.0  ;;  %v3240_v5 = vsel %vm8702_vm1, %v2793_v51, 0.0  ;;  %v3241_v52 = vsel %vm8706_vm7, %v3193_v50, 0.0  ;;  %vm8707_vm6 = vcmask 261248  }
 0x9f6   :  { %vm2937_vm12 = vmand %vm7378_vm2, %vm8700_vm10  ;;  %v3249_v20 = vpack.c.bf16 %v3241_v52, %v3240_v5  ;;  %2450 = vst.msk [vmem:[#allocation3] sm:$0xff] %vm8707_vm6, %v2427_v24 }
 0x9f7   :  { %3270 = vrot.lane.b32.xlu1 %v3248_v36, %s4524_s18  ;;  %vm8701_vm11 = vmmov %vm8693_vm3  ;;  %v2953_v12 = vsel %vm2937_vm12, %v7054_v28, 0.0  ;;  %2610 = vst.msk [vmem:[#allocation3] sm:$0xff] %vm8708_vm4, %v2587_v37  ;;  %vm8709_vm3 = vcmask 523648   ;;  %v3259_v33 = vpop.permute.xlu1 %3258 }
 0x9f8   :  { %2440 = vrot.lane.b32.xlu0 %v2417_v62, %s4528_s22  ;;  %vm7443_vm9 = vmand %vm8702_vm1, %vm8701_vm11  ;;  %v2961_v26 = vpack.c.bf16 %v2953_v12, %v2952_v54  ;;  %2770 = vst.msk [vmem:[#allocation3] sm:$0xff] %vm8709_vm3, %v2747_v25  ;;  %v2429_v27 = vpop.permute.xlu0 %2428  ;;  %v3385_v25 = vld [vmem:[#allocation3 + $0x78] sm:$0xff] }
 0x9f9   :  { %vm8705_vm8 = vmmov %vm8696_vm14  ;;  %v3128_v13 = vsel %vm7443_vm9, %v2633_v9, 0.0  ;;  %2882 = vst.msk [vmem:[#allocation3] sm:$0xff] %vm8710_vm13, %v2859_v2  ;;  %vm8711_vm14 = vcmask 786048   ;;  %vm8719_vm9 = vcmask 130048  }
 0x9fa   :  { %vm3097_vm2 = vmand %vm8706_vm7, %vm8705_vm8  ;;  %2994 = vst.msk [vmem:[#allocation3] sm:$0xff] %vm8711_vm14, %v2971_v47 }
 0x9fb   :  { %2600 = vrot.lane.b32.xlu1 %v2577_v63, %s4527_s2  ;;  %v3129_v16 = vsel %vm3097_vm2, %v3017_v48, 0.0  ;;  %3170 = vst.msk [vmem:[#allocation3] sm:$0xff] %vm8712_vm0, %v3147_v32  ;;  %vm8714_vm15 = vmmov %vm8707_vm6  ;;  %v2589_v57 = vpop.permute.xlu1 %2588 }
 0x9fc   :  { %2760 = vrot.lane.b32.xlu0 %v2737_v6, %s4529_s25  ;;  %v3137_v28 = vpack.c.bf16 %v3129_v16, %v3128_v13  ;;  %3282 = vst.msk [vmem:[#allocation3] sm:$0xff] %vm8713_vm5, %v3259_v33  ;;  %vm8715_vm10 = vmmov %vm8708_vm4  ;;  %v2749_v35 = vpop.permute.xlu0 %2748 }
 0x9fd   :  { %2451 = vst.msk [vmem:[#allocation3 + $0x10] sm:$0xff] %vm8714_vm15, %v2429_v27  ;;  %vm8716_vm12 = vmmov %vm8709_vm3 }
 0x9fe   :  { %2611 = vst.msk [vmem:[#allocation3 + $0x10] sm:$0xff] %vm8715_vm10, %v2589_v57  ;;  %vm8717_vm11 = vmmov %vm8710_vm13 }
 0x9ff   :  { %2872 = vrot.lane.b32.xlu1 %v2849_v1, %s4510_s23  ;;  %2771 = vst.msk [vmem:[#allocation3 + $0x10] sm:$0xff] %vm8716_vm12, %v2749_v35  ;;  %v2861_v10 = vpop.permute.xlu1 %2860  ;;  %vm8718_vm1 = vmmov %vm8711_vm14 }
 0xa00   :  { %2984 = vrot.lane.b32.xlu0 %v2961_v26, %s4523_s14  ;;  %2883 = vst.msk [vmem:[#allocation3 + $0x10] sm:$0xff] %vm8717_vm11, %v2861_v10  ;;  %v2973_v56 = vpop.permute.xlu0 %2972  ;;  %vm8720_vm8 = vmmov %vm8712_vm0  ;;  %v3383_v26 = vld [vmem:[#allocation3 + $0x68] sm:$0xff] }
 0xa01   :  { %2995 = vst.msk [vmem:[#allocation3 + $0x10] sm:$0xff] %vm8718_vm1, %v2973_v56  ;;  %vm8721_vm7 = vmmov %vm8713_vm5 }
 0xa02   :  { %vm8722_vm2 = vmmov %vm8707_vm6 }
 0xa03   :  { %3160 = vrot.lane.b32.xlu1 %v3137_v28, %s4525_s20  ;;  %v3370_v30 = vld [vmem:[#allocation3] sm:$0xff]  ;;  %v3149_v49 = vpop.permute.xlu1 %3148  ;;  %vm8723_vm6 = vmmov %vm8708_vm4 }
 0xa04   :  { %3272 = vrot.lane.b32.xlu0 %v3249_v20, %s4524_s18  ;;  %3515 = vmatmul.mubr.bf16.vlgmr.msra.gmra.mrb[24].mxu0 %v3370_v30  ;;  %3171 = vst.msk [vmem:[#allocation3 + $0x10] sm:$0xff] %vm8720_vm8, %v3149_v49  ;;  %v3261_v15 = vpop.permute.xlu0 %3260  ;;  %vm8724_vm4 = vmmov %vm8709_vm3 }
 0xa05   :  { %3911 = vmatprep.mubr.msk.bf16.mxu0 %vm8719_vm9, %v3373_v61  ;;  %3283 = vst.msk [vmem:[#allocation3 + $0x10] sm:$0xff] %vm8721_vm7, %v3261_v15  ;;  %vm8725_vm3 = vmmov %vm8717_vm11 }
 0xa06   :  { %vm8726_vm13 = vmmov %vm8719_vm9 }
 0xa07   :  { %vm8727_vm14 = vmmov %vm8718_vm1 }
 0xa08   :  { %vm8728_vm15 = vmmov %vm8722_vm2 }
 0xa09   :  { %v2431_v39 = vpop.permute.xlu1 %2430  ;;  %vm8729_vm10 = vmmov %vm8723_vm6 }
 0xa0a   :  { %v2591_v7 = vpop.permute.xlu0 %2590  ;;  %2452 = vst.msk [vmem:[#allocation3 + $0x20] sm:$0xff] %vm8722_vm2, %v2431_v39  ;;  %vm8730_vm12 = vmmov %vm8724_vm4 }
 0xa0b   :  { %2612 = vst.msk [vmem:[#allocation3 + $0x20] sm:$0xff] %vm8723_vm6, %v2591_v7  ;;  %vm8731_vm11 = vmmov %vm8725_vm3 }
 0xa0c   :  { %v3372_v46 = vld [vmem:[#allocation3 + $0x10] sm:$0xff]  ;;  %vm8732_vm8 = vmmov %vm8712_vm0 }
 0xa0d   :  { %3523 = vmatmul.mubr.bf16.gmra.mrb[28].mxu0 %v3372_v46  ;;  %vm8733_vm7 = vmmov %vm8713_vm5 }
 0xa0e   :  { %3912 = vmatprep.mubr.msk.bf16.mxu0 %vm8726_vm13, %v3375_v17  ;;  %vm8734_vm13 = vmmov %vm8719_vm9 }
 0xa13   :  { %v2751_v4 = vpop.permute.xlu1 %2750 }
 0xa14   :  { %2772 = vst.msk [vmem:[#allocation3 + $0x20] sm:$0xff] %vm8724_vm4, %v2751_v4 }
 0xa15   :  { %v2863_v53 = vpop.permute.xlu0 %2862 }
 0xa16   :  { %2884 = vst.msk [vmem:[#allocation3 + $0x20] sm:$0xff] %vm8725_vm3, %v2863_v53 }
 0xa1c   :  { %v2975_v60 = vpop.permute.xlu1 %2974 }
 0xa1d   :  { %2996 = vst.msk [vmem:[#allocation3 + $0x20] sm:$0xff] %vm8727_vm14, %v2975_v60  ;;  %vm8735_vm14 = vmmov %vm8718_vm1 }
 0xa1e   :  { %v3151_v42 = vpop.permute.xlu0 %3150 }
 0xa1f   :  { %3172 = vst.msk [vmem:[#allocation3 + $0x20] sm:$0xff] %vm8712_vm0, %v3151_v42 }
 0xa23   :  { %v3263_v29 = vpop.permute.xlu1 %3262 }
 0xa24   :  { %3284 = vst.msk [vmem:[#allocation3 + $0x20] sm:$0xff] %vm8713_vm5, %v3263_v29 }
 0xa29   :  { %v2433_v40 = vpop.permute.xlu0 %2432 }
 0xa2a   :  { %2453 = vst.msk [vmem:[#allocation3 + $0x30] sm:$0xff] %vm8728_vm15, %v2433_v40  ;;  %vm8736_vm15 = vmmov %vm8722_vm2 }
 0xa2b   :  { %v3374_v45 = vld [vmem:[#allocation3 + $0x20] sm:$0xff] }
 0xa2c   :  { %3531 = vmatmul.mubr.bf16.gmra.mrb[32].mxu0 %v3374_v45 }
 0xa2d   :  { %3913 = vmatprep.mubr.msk.bf16.mxu0 %vm8719_vm9, %v3377_v8 }
 0xa2f   :  { %v2593_v19 = vpop.permute.xlu1 %2592 }
 0xa30   :  { %2613 = vst.msk [vmem:[#allocation3 + $0x30] sm:$0xff] %vm8729_vm10, %v2593_v19  ;;  %v2753_v0 = vpop.permute.xlu0 %2752  ;;  %vm8737_vm10 = vmmov %vm8723_vm6 }
 0xa31   :  { %2773 = vst.msk [vmem:[#allocation3 + $0x30] sm:$0xff] %vm8730_vm12, %v2753_v0  ;;  %vm8738_vm12 = vmmov %vm8724_vm4 }
 0xa34   :  { %v2865_v59 = vpop.permute.xlu1 %2864 }
 0xa35   :  { %2885 = vst.msk [vmem:[#allocation3 + $0x30] sm:$0xff] %vm8731_vm11, %v2865_v59  ;;  %vm8739_vm11 = vmmov %vm8725_vm3 }
 0xa37   :  { %v2977_v31 = vpop.permute.xlu0 %2976 }
 0xa38   :  { %2997 = vst.msk [vmem:[#allocation3 + $0x30] sm:$0xff] %vm8718_vm1, %v2977_v31 }
 0xa3d   :  { %v3153_v14 = vpop.permute.xlu1 %3152 }
 0xa3e   :  { %3173 = vst.msk [vmem:[#allocation3 + $0x30] sm:$0xff] %vm8732_vm8, %v3153_v14  ;;  %v3265_v18 = vpop.permute.xlu0 %3264  ;;  %vm8740_vm8 = vmmov %vm8712_vm0 }
 0xa3f   :  { %3285 = vst.msk [vmem:[#allocation3 + $0x30] sm:$0xff] %vm8733_vm7, %v3265_v18  ;;  %vm8741_vm7 = vmmov %vm8713_vm5 }
 0xa41   :  { %v2435_v23 = vpop.permute.xlu1 %2434 }
 0xa42   :  { %v2595_v22 = vpop.permute.xlu0 %2594  ;;  %2454 = vst.msk [vmem:[#allocation3 + $0x40] sm:$0xff] %vm8722_vm2, %v2435_v23 }
 0xa43   :  { %2614 = vst.msk [vmem:[#allocation3 + $0x40] sm:$0xff] %vm8723_vm6, %v2595_v22 }
 0xa45   :  { %v2755_v41 = vpop.permute.xlu1 %2754 }
 0xa46   :  { %v2867_v9 = vpop.permute.xlu0 %2866  ;;  %2774 = vst.msk [vmem:[#allocation3 + $0x40] sm:$0xff] %vm8724_vm4, %v2755_v41  ;;  %v3376_v36 = vld [vmem:[#allocation3 + $0x30] sm:$0xff] }
 0xa47   :  { %2886 = vst.msk [vmem:[#allocation3 + $0x40] sm:$0xff] %vm8725_vm3, %v2867_v9  ;;  %3539 = vmatmul.mubr.bf16.gmra.mrb[36].mxu0 %v3376_v36 }
 0xa48   :  { %3914 = vmatprep.mubr.msk.bf16.mxu0 %vm8734_vm13, %v3379_v43  ;;  %vm8742_vm13 = vmmov %vm8719_vm9 }
 0xa49   :  { %v2979_v62 = vpop.permute.xlu1 %2978 }
 0xa4a   :  { %v3155_v3 = vpop.permute.xlu0 %3154  ;;  %2998 = vst.msk [vmem:[#allocation3 + $0x40] sm:$0xff] %vm8735_vm14, %v2979_v62  ;;  %vm8743_vm14 = vmmov %vm8718_vm1 }
 0xa4b   :  { %3174 = vst.msk [vmem:[#allocation3 + $0x40] sm:$0xff] %vm8712_vm0, %v3155_v3 }
 0xa4d   :  { %v3267_v55 = vpop.permute.xlu1 %3266 }
 0xa4e   :  { %3286 = vst.msk [vmem:[#allocation3 + $0x40] sm:$0xff] %vm8713_vm5, %v3267_v55  ;;  %v2437_v38 = vpop.permute.xlu0 %2436 }
 0xa4f   :  { %2455 = vst.msk [vmem:[#allocation3 + $0x50] sm:$0xff] %vm8736_vm15, %v2437_v38  ;;  %vm8744_vm15 = vmmov %vm8722_vm2 }
 0xa51   :  { %v2597_v34 = vpop.permute.xlu1 %2596 }
 0xa52   :  { %2615 = vst.msk [vmem:[#allocation3 + $0x50] sm:$0xff] %vm8737_vm10, %v2597_v34  ;;  %v2757_v51 = vpop.permute.xlu0 %2756  ;;  %vm8745_vm10 = vmmov %vm8723_vm6 }
 0xa53   :  { %2775 = vst.msk [vmem:[#allocation3 + $0x50] sm:$0xff] %vm8738_vm12, %v2757_v51  ;;  %vm8746_vm12 = vmmov %vm8724_vm4 }
 0xa55   :  { %v2869_v21 = vpop.permute.xlu1 %2868  ;;  %v3378_v63 = vld [vmem:[#allocation3 + $0x40] sm:$0xff] }
 0xa56   :  { %2887 = vst.msk [vmem:[#allocation3 + $0x50] sm:$0xff] %vm8739_vm11, %v2869_v21  ;;  %v2981_v6 = vpop.permute.xlu0 %2980  ;;  %3547 = vmatmul.mubr.bf16.gmra.mrb[40].mxu0 %v3378_v63  ;;  %vm8747_vm11 = vmmov %vm8725_vm3 }
 0xa57   :  { %2999 = vst.msk [vmem:[#allocation3 + $0x50] sm:$0xff] %vm8718_vm1, %v2981_v6  ;;  %3915 = vmatprep.mubr.msk.bf16.mxu0 %vm8719_vm9, %v3381_v11 }
 0xa59   :  { %v3157_v44 = vpop.permute.xlu1 %3156 }
 0xa5a   :  { %3175 = vst.msk [vmem:[#allocation3 + $0x50] sm:$0xff] %vm8740_vm8, %v3157_v44  ;;  %v3269_v58 = vpop.permute.xlu0 %3268  ;;  %vm8748_vm8 = vmmov %vm8712_vm0 }
 0xa5b   :  { %3287 = vst.msk [vmem:[#allocation3 + $0x50] sm:$0xff] %vm8741_vm7, %v3269_v58  ;;  %vm8749_vm7 = vmmov %vm8713_vm5 }
 0xa5d   :  { %v2439_v54 = vpop.permute.xlu1 %2438 }
 0xa5e   :  { %v2599_v12 = vpop.permute.xlu0 %2598  ;;  %2456 = vst.msk [vmem:[#allocation3 + $0x60] sm:$0xff] %vm8722_vm2, %v2439_v54 }
 0xa5f   :  { %2616 = vst.msk [vmem:[#allocation3 + $0x60] sm:$0xff] %vm8723_vm6, %v2599_v12 }
 0xa61   :  { %v2759_v48 = vpop.permute.xlu1 %2758 }
 0xa62   :  { %v2871_v50 = vpop.permute.xlu0 %2870  ;;  %2776 = vst.msk [vmem:[#allocation3 + $0x60] sm:$0xff] %vm8724_vm4, %v2759_v48  ;;  %v3380_v1 = vld [vmem:[#allocation3 + $0x50] sm:$0xff] }
 0xa63   :  { %2888 = vst.msk [vmem:[#allocation3 + $0x60] sm:$0xff] %vm8725_vm3, %v2871_v50  ;;  %3555 = vmatmul.mubr.bf16.gmra.mrb[44].mxu0 %v3380_v1 }
 0xa64   :  { %3916 = vmatprep.mubr.msk.bf16.mxu0 %vm8742_vm13, %v3383_v26 }
 0xa65   :  { %v2983_v13 = vpop.permute.xlu1 %2982 }
 0xa66   :  { %v3159_v16 = vpop.permute.xlu0 %3158  ;;  %3000 = vst.msk [vmem:[#allocation3 + $0x60] sm:$0xff] %vm8743_vm14, %v2983_v13 }
 0xa67   :  { %3176 = vst.msk [vmem:[#allocation3 + $0x60] sm:$0xff] %vm8712_vm0, %v3159_v16 }
 0xa69   :  { %v3271_v5 = vpop.permute.xlu1 %3270 }
 0xa6a   :  { %3288 = vst.msk [vmem:[#allocation3 + $0x60] sm:$0xff] %vm8713_vm5, %v3271_v5  ;;  %v2441_v52 = vpop.permute.xlu0 %2440 }
 0xa6b   :  { %2457 = vst.msk [vmem:[#allocation3 + $0x70] sm:$0xff] %vm8744_vm15, %v2441_v52 }
 0xa6d   :  { %v2601_v28 = vpop.permute.xlu1 %2600 }
 0xa6e   :  { %2617 = vst.msk [vmem:[#allocation3 + $0x70] sm:$0xff] %vm8745_vm10, %v2601_v28  ;;  %v2761_v20 = vpop.permute.xlu0 %2760 }
 0xa6f   :  { %2777 = vst.msk [vmem:[#allocation3 + $0x70] sm:$0xff] %vm8746_vm12, %v2761_v20 }
 0xa71   :  { %v2873_v37 = vpop.permute.xlu1 %2872  ;;  %v3382_v24 = vld [vmem:[#allocation3 + $0x60] sm:$0xff] }
 0xa72   :  { %2889 = vst.msk [vmem:[#allocation3 + $0x70] sm:$0xff] %vm8747_vm11, %v2873_v37  ;;  %v2985_v2 = vpop.permute.xlu0 %2984  ;;  %3563 = vmatmul.mubr.bf16.gmra.mrb[48].mxu0 %v3382_v24 }
 0xa73   :  { %3001 = vst.msk [vmem:[#allocation3 + $0x70] sm:$0xff] %vm8718_vm1, %v2985_v2  ;;  %3917 = vmatprep.mubr.msk.bf16.mxu0 %vm8719_vm9, %v3385_v25  ;;  %v8750_v25 = vld [vmem:[#allocation19_spill] sm:$0xff] }
 0xa75   :  { %v3161_v32 = vpop.permute.xlu1 %3160 }
 0xa76   :  { %3177 = vst.msk [vmem:[#allocation3 + $0x70] sm:$0xff] %vm8748_vm8, %v3161_v32  ;;  %v3273_v47 = vpop.permute.xlu0 %3272 }
 0xa77   :  { %3289 = vst.msk [vmem:[#allocation3 + $0x70] sm:$0xff] %vm8749_vm7, %v3273_v47 }
 0xa7e   :  { %v3384_v33 = vld [vmem:[#allocation3 + $0x70] sm:$0xff] }
 0xa7f   :  { %3571 = vmatmul.mubr.bf16.gmra.mrb[52].mxu0 %v3384_v33 }
 0xad7   :  { %v7530_v27 = vpop.f32.mrb[24].mxu0 }
 0xad8   :  { %v3518_v57 = vpop.f32.mrb[25].mxu0 }
 0xad9   :  { %v7532_v35 = vpop.f32.mrb[26].mxu0 }
 0xada   :  { %v3579_v10 = vadd.f32 %v7532_v35, %v7530_v27  ;;  %v3521_v30 = vpop.f32.mrb[27].mxu0 }
 0xae0   :  { %v3524_v56 = vpop.f32.mrb[28].mxu0 }
 0xae1   :  { %v3580_v61 = vadd.f32 %v3579_v10, %v3524_v56  ;;  %v3526_v49 = vpop.f32.mrb[29].mxu0 }
 0xae2   :  { %v3527_v15 = vpop.f32.mrb[30].mxu0 }
 0xae3   :  { %v3581_v39 = vadd.f32 %v3580_v61, %v3527_v15  ;;  %v3529_v7 = vpop.f32.mrb[31].mxu0 }
 0xaff   :  { %v3532_v4 = vpop.f32.mrb[32].mxu0 }
 0xb00   :  { %v3582_v53 = vadd.f32 %v3581_v39, %v3532_v4  ;;  %v3534_v46 = vpop.f32.mrb[33].mxu0 }
 0xb01   :  { %v3535_v17 = vpop.f32.mrb[34].mxu0 }
 0xb02   :  { %v3583_v60 = vadd.f32 %v3582_v53, %v3535_v17  ;;  %v3537_v42 = vpop.f32.mrb[35].mxu0 }
 0xb1a   :  { %v3540_v29 = vpop.f32.mrb[36].mxu0 }
 0xb1b   :  { %v3584_v40 = vadd.f32 %v3583_v60, %v3540_v29  ;;  %v3542_v19 = vpop.f32.mrb[37].mxu0 }
 0xb1c   :  { %v3543_v0 = vpop.f32.mrb[38].mxu0 }
 0xb1d   :  { %v3585_v59 = vadd.f32 %v3584_v40, %v3543_v0  ;;  %v3545_v45 = vpop.f32.mrb[39].mxu0 }
 0xb29   :  { %v3548_v31 = vpop.f32.mrb[40].mxu0 }
 0xb2a   :  { %v3586_v8 = vadd.f32 %v3585_v59, %v3548_v31  ;;  %v3550_v14 = vpop.f32.mrb[41].mxu0 }
 0xb2b   :  { %v3551_v18 = vpop.f32.mrb[42].mxu0 }
 0xb2c   :  { %v3587_v23 = vadd.f32 %v3586_v8, %v3551_v18  ;;  %v3553_v22 = vpop.f32.mrb[43].mxu0 }
 0xb36   :  { %v3556_v41 = vpop.f32.mrb[44].mxu0 }
 0xb37   :  { %v3588_v9 = vadd.f32 %v3587_v23, %v3556_v41  ;;  %v3558_v36 = vpop.f32.mrb[45].mxu0 }
 0xb38   :  { %v3559_v43 = vpop.f32.mrb[46].mxu0 }
 0xb39   :  { %v3589_v62 = vadd.f32 %v3588_v9, %v3559_v43  ;;  %v3561_v3 = vpop.f32.mrb[47].mxu0 }
 0xb45   :  { %v3564_v55 = vpop.f32.mrb[48].mxu0 }
 0xb46   :  { %v3590_v38 = vadd.f32 %v3589_v62, %v3564_v55  ;;  %v3566_v34 = vpop.f32.mrb[49].mxu0 }
 0xb47   :  { %v3567_v51 = vpop.f32.mrb[50].mxu0 }
 0xb48   :  { %v3591_v21 = vadd.f32 %v3590_v38, %v3567_v51  ;;  %v3569_v63 = vpop.f32.mrb[51].mxu0 }
 0xb52   :  { %v3572_v6 = vpop.f32.mrb[52].mxu0 }
 0xb53   :  { %v3592_v11 = vadd.f32 %v3591_v21, %v3572_v6  ;;  %v3574_v44 = vpop.f32.mrb[53].mxu0 }
 0xb54   :  { %v3575_v58 = vpop.f32.mrb[54].mxu0 }
 0xb55   :  { %v3593_v54 = vadd.f32 %v3592_v11, %v3575_v58  ;;  %v3577_v12 = vpop.f32.mrb[55].mxu0 }
 0xb57   :  { %v3594_v48 = vrot.slane %v3593_v54, 4 }
 0xb59   :  { %v3595_v50 = vadd.f32 %v3594_v48, %v3593_v54 }
 0xb5b   :  { %v3596_v1 = vrot.slane %v3595_v50, 2 }
 0xb5d   :  { %v3597_v26 = vadd.f32 %v3596_v1, %v3595_v50 }
 0xb5f   :  { %v3598_v13 = vrot.slane %v3597_v26, 1 }
 0xb61   :  { %v3599_v16 = vadd.f32 %v3598_v13, %v3597_v26 }
 0xb63   :  { %3603 = vrot.lane.b32.xlu0 %v3599_v16, %s4510_s23  ;;  %3600 = vrot.lane.b32.xlu1 %v3599_v16, %s4527_s2 }
 0xb67   :  { %3606 = vrot.lane.b32.xlu1 %v3599_v16, %s4525_s20 }
 0xbd5   :  { %v3601_v5 = vpop.permute.xlu1 %3600  ;;  %v3604_v28 = vpop.permute.xlu0 %3603 }
 0xbd6   :  { %v3602_v52 = vadd.f32 %v3601_v5, %v3599_v16 }
 0xbd8   :  { %v3605_v20 = vadd.f32 %v3604_v28, %v3602_v52 }
 0xbd9   :  { %v3607_v37 = vpop.permute.xlu1 %3606 }
 0xbda   :  { %v3608_v24 = vadd.f32 %v3607_v37, %v3605_v20 }
 0xbdc   :  { %v3610_v2 = vmul.f32 0.001953125, %v3608_v24 }
 0xbde   :  { %v3614_v32 = vrot.slane %v3610_v2, %v8750_v25  ;;  %v3680_v2 = vld [vmem:[%s7689_s9] sm:$0x1] }
 0xbe0   :  { %v7541_v47 = vsub.f32 %v7530_v27, %v3614_v32  ;;  %v7544_v33 = vsub.f32 %v7532_v35, %v3614_v32  ;;  %v7546_v57 = vsub.f32 %v3524_v56, %v3614_v32  ;;  %v7552_v61 = vsub.f32 %v3527_v15, %v3614_v32 }
 0xbe1   :  { %v7554_v49 = vsub.f32 %v3532_v4, %v3614_v32  ;;  %v7558_v7 = vsub.f32 %v3535_v17, %v3614_v32  ;;  %v7562_v53 = vsub.f32 %v3540_v29, %v3614_v32  ;;  %v7566_v15 = vsub.f32 %v3543_v0, %v3614_v32 }
 0xbe2   :  { %v3631_v10 = vmul.f32 %v7541_v47, %v7541_v47  ;;  %v3632_v30 = vmul.f32 %v7544_v33, %v7544_v33  ;;  %v3633_v39 = vmul.f32 %v7546_v57, %v7546_v57  ;;  %v3634_v35 = vmul.f32 %v7552_v61, %v7552_v61 }
 0xbe3   :  { %v3635_v46 = vmul.f32 %v7554_v49, %v7554_v49  ;;  %v3636_v4 = vmul.f32 %v7558_v7, %v7558_v7  ;;  %v7570_v40 = vsub.f32 %v3548_v31, %v3614_v32  ;;  %v3637_v17 = vmul.f32 %v7562_v53, %v7562_v53 }
 0xbe4   :  { %v3647_v27 = vadd.f32 %v3632_v30, %v3631_v10  ;;  %v7574_v59 = vsub.f32 %v3551_v18, %v3614_v32  ;;  %v3638_v29 = vmul.f32 %v7566_v15, %v7566_v15  ;;  %v7578_v8 = vsub.f32 %v3556_v41, %v3614_v32 }
 0xbe5   :  { %v3639_v0 = vmul.f32 %v7570_v40, %v7570_v40  ;;  %v7582_v23 = vsub.f32 %v3559_v43, %v3614_v32  ;;  %v7586_v9 = vsub.f32 %v3564_v55, %v3614_v32  ;;  %v7590_v62 = vsub.f32 %v3567_v51, %v3614_v32 }
 0xbe6   :  { %v3648_v56 = vadd.f32 %v3647_v27, %v3633_v39  ;;  %v3640_v31 = vmul.f32 %v7574_v59, %v7574_v59  ;;  %v3641_v18 = vmul.f32 %v7578_v8, %v7578_v8  ;;  %v7594_v38 = vsub.f32 %v3572_v6, %v3614_v32  ;;  %v3918_v27 = vld [vmem:[%s7689_s9 + $0x1] ss:$0 sm:$0xff] }
 0xbe7   :  { %v3642_v41 = vmul.f32 %v7582_v23, %v7582_v23  ;;  %v3643_v43 = vmul.f32 %v7586_v9, %v7586_v9  ;;  %v7598_v21 = vsub.f32 %v3575_v58, %v3614_v32  ;;  %v3644_v55 = vmul.f32 %v7590_v62, %v7590_v62 }
 0xbe8   :  { %v3649_v60 = vadd.f32 %v3648_v56, %v3634_v35  ;;  %v3645_v51 = vmul.f32 %v7594_v38, %v7594_v38 }
 0xbe9   :  { %v3646_v44 = vmul.f32 %v7598_v21, %v7598_v21 }
 0xbea   :  { %v3650_v42 = vadd.f32 %v3649_v60, %v3635_v46 }
 0xbec   :  { %v3651_v19 = vadd.f32 %v3650_v42, %v3636_v4 }
 0xbee   :  { %v3652_v45 = vadd.f32 %v3651_v19, %v3637_v17 }
 0xbf0   :  { %v3653_v14 = vadd.f32 %v3652_v45, %v3638_v29 }
 0xbf2   :  { %v3654_v22 = vadd.f32 %v3653_v14, %v3639_v0 }
 0xbf4   :  { %v3655_v36 = vadd.f32 %v3654_v22, %v3640_v31 }
 0xbf6   :  { %v3656_v3 = vadd.f32 %v3655_v36, %v3641_v18 }
 0xbf8   :  { %v3657_v34 = vadd.f32 %v3656_v3, %v3642_v41 }
 0xbfa   :  { %v3658_v63 = vadd.f32 %v3657_v34, %v3643_v43 }
 0xbfc   :  { %v3659_v11 = vadd.f32 %v3658_v63, %v3644_v55 }
 0xbfe   :  { %v3660_v54 = vadd.f32 %v3659_v11, %v3645_v51 }
 0xc00   :  { %v3661_v6 = vadd.f32 %v3660_v54, %v3646_v44 }
 0xc02   :  { %v3662_v12 = vrot.slane %v3661_v6, 4 }
 0xc04   :  { %v3663_v48 = vadd.f32 %v3662_v12, %v3661_v6 }
 0xc06   :  { %v3664_v50 = vrot.slane %v3663_v48, 2 }
 0xc08   :  { %v3665_v1 = vadd.f32 %v3664_v50, %v3663_v48 }
 0xc0a   :  { %v3666_v26 = vrot.slane %v3665_v1, 1 }
 0xc0c   :  { %v3667_v58 = vadd.f32 %v3666_v26, %v3665_v1 }
 0xc0e   :  { %3671 = vrot.lane.b32.xlu1 %v3667_v58, %s4510_s23  ;;  %3668 = vrot.lane.b32.xlu0 %v3667_v58, %s4527_s2 }
 0xc12   :  { %3674 = vrot.lane.b32.xlu0 %v3667_v58, %s4525_s20 }
 0xc80   :  { %v3669_v13 = vpop.permute.xlu0 %3668  ;;  %v3672_v5 = vpop.permute.xlu1 %3671 }
 0xc81   :  { %v3670_v16 = vadd.f32 %v3669_v13, %v3667_v58 }
 0xc83   :  { %v3673_v52 = vadd.f32 %v3672_v5, %v3670_v16 }
 0xc84   :  { %v3675_v28 = vpop.permute.xlu0 %3674 }
 0xc85   :  { %v3676_v20 = vadd.f32 %v3675_v28, %v3673_v52 }
 0xc87   :  { %v3677_v37 = vmul.f32 0.001953125, %v3676_v20 }
 0xc89   :  { %v3678_v24 = vadd.f32 1e-05, %v3677_v37 }
 0xc8b   :  { %4313 = vrsqrt.f32 %v3678_v24 }
 0xc95   :  { %v4314_v32 = vpop.eup %4313 }
 0xc96   :  { %v3681_v10 = vmul.f32 %v4314_v32, %v3680_v2 }
 0xc98   :  { %v3685_v30 = vrot.slane %v3681_v10, %v8750_v25 }
 0xc9a   :  { %v3686_v39 = vmul.f32 %v3685_v30, %v7541_v47  ;;  %v3687_v35 = vmul.f32 %v3685_v30, %v7544_v33  ;;  %v3688_v56 = vmul.f32 %v3685_v30, %v7546_v57  ;;  %v3689_v46 = vmul.f32 %v3685_v30, %v7552_v61 }
 0xc9b   :  { %v3690_v60 = vmul.f32 %v3685_v30, %v7554_v49  ;;  %v3691_v42 = vmul.f32 %v3685_v30, %v7558_v7  ;;  %v3692_v25 = vmul.f32 %v3685_v30, %v7562_v53  ;;  %v3693_v47 = vmul.f32 %v3685_v30, %v7566_v15 }
 0xc9c   :  { %v3707_v4 = vadd.f32 %v3918_v27, %v3686_v39  ;;  %v3708_v17 = vadd.f32 %v3918_v27, %v3687_v35  ;;  %v3709_v19 = vadd.f32 %v3918_v27, %v3688_v56  ;;  %v3710_v29 = vadd.f32 %v3918_v27, %v3689_v46 }
 0xc9d   :  { %v3694_v45 = vmul.f32 %v3685_v30, %v7570_v40  ;;  %v3711_v0 = vadd.f32 %v3918_v27, %v3690_v60  ;;  %v3695_v57 = vmul.f32 %v3685_v30, %v7574_v59  ;;  %v3712_v14 = vadd.f32 %v3918_v27, %v3691_v42 }
 0xc9e   :  { %v3723_v33 = vmul.f32 0.5, %v3707_v4  ;;  %v3724_v61 = vmul.f32 0.5, %v3708_v17  ;;  %v3696_v49 = vmul.f32 %v3685_v30, %v7578_v8  ;;  %v3713_v31 = vadd.f32 %v3918_v27, %v3692_v25 }
 0xc9f   :  { %v3725_v22 = vmul.f32 0.5, %v3709_v19  ;;  %v3697_v7 = vmul.f32 %v3685_v30, %v7582_v23  ;;  %v3714_v18 = vadd.f32 %v3918_v27, %v3693_v47  ;;  %v3726_v53 = vmul.f32 0.5, %v3710_v29 }
 0xca0   :  { %v3698_v36 = vmul.f32 %v3685_v30, %v7586_v9  ;;  %v3715_v15 = vadd.f32 %v3918_v27, %v3694_v45  ;;  %v3727_v41 = vmul.f32 0.5, %v3711_v0  ;;  %4315 = vtanh.f32 %v3723_v33 }
 0xca1   :  { %v3699_v40 = vmul.f32 %v3685_v30, %v7590_v62  ;;  %v3716_v3 = vadd.f32 %v3918_v27, %v3695_v57  ;;  %v3728_v43 = vmul.f32 0.5, %v3712_v14  ;;  %4317 = vtanh.f32 %v3724_v61 }
 0xca2   :  { %v3700_v59 = vmul.f32 %v3685_v30, %v7594_v38  ;;  %v3717_v34 = vadd.f32 %v3918_v27, %v3696_v49  ;;  %v3729_v8 = vmul.f32 0.5, %v3713_v31  ;;  %4319 = vtanh.f32 %v3725_v22 }
 0xca3   :  { %v3701_v55 = vmul.f32 %v3685_v30, %v7598_v21  ;;  %v3718_v23 = vadd.f32 %v3918_v27, %v3697_v7  ;;  %v3730_v63 = vmul.f32 0.5, %v3714_v18  ;;  %4321 = vtanh.f32 %v3726_v53 }
 0xca4   :  { %v3719_v51 = vadd.f32 %v3918_v27, %v3698_v36  ;;  %v3731_v9 = vmul.f32 0.5, %v3715_v15  ;;  %4323 = vtanh.f32 %v3727_v41  ;;  %v3720_v11 = vadd.f32 %v3918_v27, %v3699_v40 }
 0xca5   :  { %v3732_v44 = vmul.f32 0.5, %v3716_v3  ;;  %4325 = vtanh.f32 %v3728_v43  ;;  %v3721_v62 = vadd.f32 %v3918_v27, %v3700_v59  ;;  %v3733_v54 = vmul.f32 0.5, %v3717_v34 }
 0xca6   :  { %4327 = vtanh.f32 %v3729_v8  ;;  %v3722_v6 = vadd.f32 %v3918_v27, %v3701_v55  ;;  %v3734_v12 = vmul.f32 0.5, %v3718_v23  ;;  %v3735_v38 = vmul.f32 0.5, %v3719_v51 }
 0xca7   :  { %4329 = vtanh.f32 %v3730_v63  ;;  %v3736_v48 = vmul.f32 0.5, %v3720_v11  ;;  %v3737_v50 = vmul.f32 0.5, %v3721_v62 }
 0xca8   :  { %4331 = vtanh.f32 %v3731_v9  ;;  %v3738_v26 = vmul.f32 0.5, %v3722_v6 }
 0xca9   :  { %4333 = vtanh.f32 %v3732_v44 }
 0xcaa   :  { %v4316_v21 = vpop.eup %4315  ;;  %4335 = vtanh.f32 %v3733_v54 }
 0xcab   :  { %v4318_v1 = vpop.eup %4317  ;;  %4337 = vtanh.f32 %v3734_v12  ;;  %v3755_v58 = vmul.f32 0.5, %v4316_v21 }
 0xcac   :  { %v4320_v13 = vpop.eup %4319  ;;  %4339 = vtanh.f32 %v3735_v38  ;;  %v3756_v16 = vmul.f32 0.5, %v4318_v1 }
 0xcad   :  { %v4322_v5 = vpop.eup %4321  ;;  %4341 = vtanh.f32 %v3736_v48  ;;  %v3757_v52 = vmul.f32 0.5, %v4320_v13  ;;  %v3771_v28 = vadd.f32 0.5, %v3755_v58 }
 0xcae   :  { %v4324_v20 = vpop.eup %4323  ;;  %4343 = vtanh.f32 %v3737_v50  ;;  %v3758_v37 = vmul.f32 0.5, %v4322_v5  ;;  %v3772_v24 = vadd.f32 0.5, %v3756_v16 }
 0xcaf   :  { %v4326_v2 = vpop.eup %4325  ;;  %4345 = vtanh.f32 %v3738_v26  ;;  %v3759_v32 = vmul.f32 0.5, %v4324_v20  ;;  %v3773_v10 = vadd.f32 0.5, %v3757_v52  ;;  %3787 = vst [vmem:[%s7690_s10] sm:$0xff] %v3771_v28 }
 0xcb0   :  { %v4328_v30 = vpop.eup %4327  ;;  %v3760_v39 = vmul.f32 0.5, %v4326_v2  ;;  %v3774_v27 = vadd.f32 0.5, %v3758_v37  ;;  %3788 = vst [vmem:[%s7690_s10 + $0x8] sm:$0xff] %v3772_v24 }
 0xcb1   :  { %v4330_v35 = vpop.eup %4329  ;;  %v3761_v56 = vmul.f32 0.5, %v4328_v30  ;;  %v3775_v46 = vadd.f32 0.5, %v3759_v32  ;;  %3789 = vst [vmem:[%s7690_s10 + $0x10] sm:$0xff] %v3773_v10 }
 0xcb2   :  { %v4332_v60 = vpop.eup %4331  ;;  %v3762_v4 = vmul.f32 0.5, %v4330_v35  ;;  %v3776_v42 = vadd.f32 0.5, %v3760_v39  ;;  %3790 = vst [vmem:[%s7690_s10 + $0x18] sm:$0xff] %v3774_v27 }
 0xcb3   :  { %v4334_v17 = vpop.eup %4333  ;;  %v3763_v25 = vmul.f32 0.5, %v4332_v60  ;;  %v3777_v19 = vadd.f32 0.5, %v3761_v56  ;;  %3791 = vst [vmem:[%s7690_s10 + $0x20] sm:$0xff] %v3775_v46 }
 0xcb4   :  { %v4336_v47 = vpop.eup %4335  ;;  %v3764_v29 = vmul.f32 0.5, %v4334_v17  ;;  %v3778_v45 = vadd.f32 0.5, %v3762_v4  ;;  %3792 = vst [vmem:[%s7690_s10 + $0x28] sm:$0xff] %v3776_v42 }
 0xcb5   :  { %v4338_v0 = vpop.eup %4337  ;;  %v3765_v33 = vmul.f32 0.5, %v4336_v47  ;;  %v3779_v57 = vadd.f32 0.5, %v3763_v25  ;;  %3793 = vst [vmem:[%s7690_s10 + $0x30] sm:$0xff] %v3777_v19 }
 0xcb6   :  { %v4340_v14 = vpop.eup %4339  ;;  %v3766_v61 = vmul.f32 0.5, %v4338_v0  ;;  %v3780_v49 = vadd.f32 0.5, %v3764_v29  ;;  %3794 = vst [vmem:[%s7690_s10 + $0x38] sm:$0xff] %v3778_v45 }
 0xcb7   :  { %v4342_v31 = vpop.eup %4341  ;;  %v3767_v22 = vmul.f32 0.5, %v4340_v14  ;;  %v3781_v7 = vadd.f32 0.5, %v3765_v33  ;;  %3795 = vst [vmem:[%s7690_s10 + $0x40] sm:$0xff] %v3779_v57 }
 0xcb8   :  { %v4344_v18 = vpop.eup %4343  ;;  %v3768_v53 = vmul.f32 0.5, %v4342_v31  ;;  %v3782_v36 = vadd.f32 0.5, %v3766_v61  ;;  %3796 = vst [vmem:[%s7690_s10 + $0x48] sm:$0xff] %v3780_v49 }
 0xcb9   :  { %v4346_v15 = vpop.eup %4345  ;;  %v3769_v41 = vmul.f32 0.5, %v4344_v18  ;;  %v3783_v40 = vadd.f32 0.5, %v3767_v22  ;;  %3797 = vst [vmem:[%s7690_s10 + $0x50] sm:$0xff] %v3781_v7 }
 0xcba   :  { %v3770_v3 = vmul.f32 0.5, %v4346_v15  ;;  %v3784_v43 = vadd.f32 0.5, %v3768_v53  ;;  %3798 = vst [vmem:[%s7690_s10 + $0x58] sm:$0xff] %v3782_v36 }
 0xcbb   :  { %v3785_v59 = vadd.f32 0.5, %v3769_v41  ;;  %3799 = vst [vmem:[%s7690_s10 + $0x60] sm:$0xff] %v3783_v40 }
 0xcbc   :  { %v3786_v34 = vadd.f32 0.5, %v3770_v3  ;;  %3800 = vst [vmem:[%s7690_s10 + $0x68] sm:$0xff] %v3784_v43 }
 0xcbd   :  { %3801 = vst [vmem:[%s7690_s10 + $0x70] sm:$0xff] %v3785_v59 }
 0xcbe   :  { %3802 = vst [vmem:[%s7690_s10 + $0x78] sm:$0xff] %v3786_v34 }
 0xcbf   :  { %3807 = vsyncpa [#allocation5], 1 }
 0xcc0   :  { %3808 = vsyncpa [#allocation7], 1 }
 0xcc1   :  { %3809 = vsyncpa [#allocation10], 1 }
 0xcc2   :  { %3810 = vsyncpa [#allocation13], 1 }

</bundles_post_ra>
